<compile_context>
chip_gen: v7x
topology: tpu7x:2x2x1
jax: 0.10.0
libtpu: 0.0.40
codegen_flags: <defaults>
</compile_context>

<pallas_src>
import functools
import math

import jax
import jax.numpy as jnp
from jax.experimental import pallas as pl
from jax.experimental.pallas import tpu as pltpu


# ----------------------------------------------------------------------------
# Fused CNN kernel: conv1+relu -> conv2+relu -> conv3+relu+maxpool -> fc+relu
# ----------------------------------------------------------------------------

def _cnn_kernel(x_ref, w1_ref, b1_ref, w2_ref, b2_ref, w3_ref, b3_ref,
                wfc_ref, bfc_ref, o_ref, *, length, chunk):
    k1 = w1_ref.shape[0]
    k2 = w2_ref.shape[0]
    k3 = w3_ref.shape[0]
    lo1 = length - k1 + 1
    lo2 = lo1 - k2 + 1
    lo3 = lo2 - k3 + 1
    c_out3 = w3_ref.shape[2]

    x = x_ref[0]                                   # (L, Cin) channels-last, f32

    # --- Conv1d(26->64, k=3) + ReLU (valid), via K shifted MXU matmuls ---
    h1 = jnp.zeros((lo1, w1_ref.shape[2]), jnp.float32)
    for k in range(k1):
        h1 = h1 + jnp.dot(x[k:k + lo1, :], w1_ref[k],
                          preferred_element_type=jnp.float32)
    h1 = jnp.maximum(h1 + b1_ref[...], 0.0)

    # --- Conv1d(64->256, k=3) + ReLU ---
    h2 = jnp.zeros((lo2, w2_ref.shape[2]), jnp.float32)
    for k in range(k2):
        h2 = h2 + jnp.dot(h1[k:k + lo2, :], w2_ref[k],
                          preferred_element_type=jnp.float32)
    h2 = jnp.maximum(h2 + b2_ref[...], 0.0)

    # --- Conv1d(256->1024, k=5) + ReLU, fused with AdaptiveMaxPool1d(1) as a
    #     running max over Lout chunks (Dropout(0.25) is identity in eval mode) ---
    pooled = jnp.full((1, c_out3), -jnp.inf, jnp.float32)
    for c0 in range(0, lo3, chunk):
        cl = min(chunk, lo3 - c0)
        acc = jnp.zeros((cl, c_out3), jnp.float32)
        for k in range(k3):
            acc = acc + jnp.dot(h2[c0 + k:c0 + k + cl, :], w3_ref[k],
                                preferred_element_type=jnp.float32)
        acc = jnp.maximum(acc + b3_ref[...], 0.0)
        pooled = jnp.maximum(pooled, jnp.max(acc, axis=0, keepdims=True))

    # --- flatten (already (1, 1024)) -> Linear(1024, 768) + ReLU ---
    y = jnp.dot(pooled, wfc_ref[...], preferred_element_type=jnp.float32)
    y = jnp.maximum(y + bfc_ref[...], 0.0)
    o_ref[0] = y.astype(o_ref.dtype)


def cnn_forward(params, x_ncl, *, chunk=256):
    """strokeDTI CNN forward.  x_ncl: (B, 26, L) float in PyTorch NCL layout."""
    batch, c_in, length = x_ncl.shape
    x_nlc = jnp.transpose(x_ncl.astype(jnp.float32), (0, 2, 1))   # (B, L, Cin)

    w1, b1 = params["w1"], params["b1"]
    w2, b2 = params["w2"], params["b2"]
    w3, b3 = params["w3"], params["b3"]
    wfc, bfc = params["wfc"], params["bfc"]
    n_out = wfc.shape[1]

    def full_block(shape):
        return pl.BlockSpec(shape, lambda i, _s=shape: (0,) * len(_s))

    out = pl.pallas_call(
        functools.partial(_cnn_kernel, length=length, chunk=chunk),
        out_shape=jax.ShapeDtypeStruct((batch, 1, n_out), jnp.float32),
        grid=(batch,),
        in_specs=[
            pl.BlockSpec((1, length, c_in), lambda i: (i, 0, 0)),   # per-sample input
            full_block(w1.shape), full_block(b1.shape),             # weights resident
            full_block(w2.shape), full_block(b2.shape),
            full_block(w3.shape), full_block(b3.shape),
            full_block(wfc.shape), full_block(bfc.shape),
        ],
        out_specs=pl.BlockSpec((1, 1, n_out), lambda i: (i, 0, 0)),
        compiler_params=pltpu.CompilerParams(
            dimension_semantics=("parallel",)),
    )(x_nlc, w1, b1, w2, b2, w3, b3, wfc, bfc)
    return out.reshape(batch, n_out)


# ----------------------------------------------------------------------------
# Parameters (PyTorch Conv1d weights (Cout, Cin, K) -> kernel layout (K, Cin, Cout))
# ----------------------------------------------------------------------------

def init_params(key):
    def conv(k, cout, cin, ksz):
        kw, kb = jax.random.split(k)
        w = jax.random.normal(kw, (cout, cin, ksz), jnp.float32) / math.sqrt(cin * ksz)
        b = jax.random.normal(kb, (cout,), jnp.float32) * 0.05
        return jnp.transpose(w, (2, 1, 0)), b.reshape(1, cout)

    def lin(k, fin, fout):
        kw, kb = jax.random.split(k)
        w = jax.random.normal(kw, (fin, fout), jnp.float32) / math.sqrt(fin)
        b = jax.random.normal(kb, (fout,), jnp.float32) * 0.05
        return w, b.reshape(1, fout)

    ks = jax.random.split(key, 4)
    p = {}
    p["w1"], p["b1"] = conv(ks[0], 64, 26, 3)
    p["w2"], p["b2"] = conv(ks[1], 256, 64, 3)
    p["w3"], p["b3"] = conv(ks[2], 1024, 256, 5)
    p["wfc"], p["bfc"] = lin(ks[3], 1024, 768)
    return p


# ----------------------------------------------------------------------------
# Pure-JAX reference (same math, no Pallas) for a correctness sanity check
# ----------------------------------------------------------------------------

def cnn_reference(params, x_ncl):
    hp = jax.lax.Precision.HIGHEST
    x = jnp.transpose(x_ncl.astype(jnp.float32), (0, 2, 1))

    def conv_relu(h, w, bias):          # w: (K, Cin, Cout), bias: (1, Cout)
        ksz = w.shape[0]
        lo = h.shape[1] - ksz + 1
        acc = jnp.zeros((h.shape[0], lo, w.shape[2]), jnp.float32)
        for k in range(ksz):
            acc = acc + jnp.einsum("blc,cd->bld", h[:, k:k + lo, :], w[k],
                                   precision=hp)
        return jnp.maximum(acc + bias[None], 0.0)

    h = conv_relu(x, params["w1"], params["b1"])
    h = conv_relu(h, params["w2"], params["b2"])
    h = conv_relu(h, params["w3"], params["b3"])
    pooled = jnp.max(h, axis=1)                         # AdaptiveMaxPool1d(1) + flatten
    y = jnp.dot(pooled, params["wfc"], precision=hp) + params["bfc"]
    return jnp.maximum(y, 0.0)


if __name__ == "__main__":
    key = jax.random.PRNGKey(0)
    kp, kx = jax.random.split(key)
    params = init_params(kp)

    # Small protein target batch in PyTorch NCL layout: (batch=2, channels=26, length=64).
    x = jax.random.normal(kx, (2, 26, 64), jnp.float32)

    out = jax.block_until_ready(cnn_forward(params, x))
    assert out.shape == (2, 768)

    ref = cnn_reference(params, x)
    max_err = float(jnp.max(jnp.abs(out - ref)))
    assert jnp.allclose(out, ref, rtol=5e-2, atol=5e-2), max_err

    print("KERNEL_OK")
</pallas_src>

<mosaic_0001>
module attributes {stable_mosaic.version = 11 : i64} {
  func.func @_cnn_kernel(%arg0: i32, %arg1: memref<1x64x26xf32, #tpu.memory_space<vmem>>, %arg2: memref<3x26x64xf32, #tpu.memory_space<vmem>>, %arg3: memref<1x64xf32, #tpu.memory_space<vmem>>, %arg4: memref<3x64x256xf32, #tpu.memory_space<vmem>>, %arg5: memref<1x256xf32, #tpu.memory_space<vmem>>, %arg6: memref<5x256x1024xf32, #tpu.memory_space<vmem>>, %arg7: memref<1x1024xf32, #tpu.memory_space<vmem>>, %arg8: memref<1024x768xf32, #tpu.memory_space<vmem>>, %arg9: memref<1x768xf32, #tpu.memory_space<vmem>>, %arg10: memref<1x1x768xf32, #tpu.memory_space<vmem>>) attributes {dimension_semantics = [#tpu.dimension_semantics<parallel>], iteration_bounds = array<i64: 2>, scalar_prefetch = 0 : i64, scratch_operands = 0 : i64, tpu.core_type = #tpu.core_type<tc>, window_params = [{transform_indices = @transform_0, window_bounds = array<i64: 1, 64, 26>}, {pipeline_mode = #tpu.pipeline_mode<synchronous>, transform_indices = @transform_1, window_bounds = array<i64: 3, 26, 64>}, {pipeline_mode = #tpu.pipeline_mode<synchronous>, transform_indices = @transform_2, window_bounds = array<i64: 1, 64>}, {pipeline_mode = #tpu.pipeline_mode<synchronous>, transform_indices = @transform_3, window_bounds = array<i64: 3, 64, 256>}, {pipeline_mode = #tpu.pipeline_mode<synchronous>, transform_indices = @transform_4, window_bounds = array<i64: 1, 256>}, {pipeline_mode = #tpu.pipeline_mode<synchronous>, transform_indices = @transform_5, window_bounds = array<i64: 5, 256, 1024>}, {pipeline_mode = #tpu.pipeline_mode<synchronous>, transform_indices = @transform_6, window_bounds = array<i64: 1, 1024>}, {pipeline_mode = #tpu.pipeline_mode<synchronous>, transform_indices = @transform_7, window_bounds = array<i64: 1024, 768>}, {pipeline_mode = #tpu.pipeline_mode<synchronous>, transform_indices = @transform_8, window_bounds = array<i64: 1, 768>}, {transform_indices = @transform_9, window_bounds = array<i64: 1, 1, 768>}]} {
    %c0 = arith.constant 0 : index
    %c0_0 = arith.constant 0 : index
    %c0_1 = arith.constant 0 : index
    %0 = vector.load %arg1[%c0, %c0_0, %c0_1] : memref<1x64x26xf32, #tpu.memory_space<vmem>>, vector<1x64x26xf32>
    %1 = vector.shape_cast %0 : vector<1x64x26xf32> to vector<64x26xf32>
    %cst = arith.constant 0.000000e+00 : f32
    %2 = vector.broadcast %cst : f32 to vector<62x64xf32>
    %3 = vector.extract_strided_slice %1 {offsets = [0, 0], sizes = [62, 26], strides = [1, 1]} : vector<64x26xf32> to vector<62x26xf32>
    %c0_2 = arith.constant 0 : index
    %c0_3 = arith.constant 0 : index
    %c0_4 = arith.constant 0 : index
    %4 = vector.load %arg2[%c0_2, %c0_3, %c0_4] : memref<3x26x64xf32, #tpu.memory_space<vmem>>, vector<1x26x64xf32>
    %5 = vector.shape_cast %4 : vector<1x26x64xf32> to vector<26x64xf32>
    %cst_5 = arith.constant dense<0.000000e+00> : vector<62x64xf32>
    %6 = tpu.matmul %3, %5, %cst_5 {dimension_numbers = #tpu.dot_dimension_numbers<[1], [0], [0], [1], [0, 0, 1, 1], [], []>} : vector<62x26xf32>, vector<26x64xf32>, vector<62x64xf32> -> vector<62x64xf32>
    %7 = arith.addf %2, %6 : vector<62x64xf32>
    %8 = vector.extract_strided_slice %1 {offsets = [1, 0], sizes = [62, 26], strides = [1, 1]} : vector<64x26xf32> to vector<62x26xf32>
    %c1 = arith.constant 1 : index
    %c0_6 = arith.constant 0 : index
    %c0_7 = arith.constant 0 : index
    %9 = vector.load %arg2[%c1, %c0_6, %c0_7] : memref<3x26x64xf32, #tpu.memory_space<vmem>>, vector<1x26x64xf32>
    %10 = vector.shape_cast %9 : vector<1x26x64xf32> to vector<26x64xf32>
    %cst_8 = arith.constant dense<0.000000e+00> : vector<62x64xf32>
    %11 = tpu.matmul %8, %10, %cst_8 {dimension_numbers = #tpu.dot_dimension_numbers<[1], [0], [0], [1], [0, 0, 1, 1], [], []>} : vector<62x26xf32>, vector<26x64xf32>, vector<62x64xf32> -> vector<62x64xf32>
    %12 = arith.addf %7, %11 : vector<62x64xf32>
    %13 = vector.extract_strided_slice %1 {offsets = [2, 0], sizes = [62, 26], strides = [1, 1]} : vector<64x26xf32> to vector<62x26xf32>
    %c2 = arith.constant 2 : index
    %c0_9 = arith.constant 0 : index
    %c0_10 = arith.constant 0 : index
    %14 = vector.load %arg2[%c2, %c0_9, %c0_10] : memref<3x26x64xf32, #tpu.memory_space<vmem>>, vector<1x26x64xf32>
    %15 = vector.shape_cast %14 : vector<1x26x64xf32> to vector<26x64xf32>
    %cst_11 = arith.constant dense<0.000000e+00> : vector<62x64xf32>
    %16 = tpu.matmul %13, %15, %cst_11 {dimension_numbers = #tpu.dot_dimension_numbers<[1], [0], [0], [1], [0, 0, 1, 1], [], []>} : vector<62x26xf32>, vector<26x64xf32>, vector<62x64xf32> -> vector<62x64xf32>
    %17 = arith.addf %12, %16 : vector<62x64xf32>
    %c0_12 = arith.constant 0 : index
    %c0_13 = arith.constant 0 : index
    %18 = vector.load %arg3[%c0_12, %c0_13] : memref<1x64xf32, #tpu.memory_space<vmem>>, vector<1x64xf32>
    %19 = vector.broadcast %18 : vector<1x64xf32> to vector<62x64xf32>
    %20 = arith.addf %17, %19 : vector<62x64xf32>
    %cst_14 = arith.constant 0.000000e+00 : f32
    %21 = vector.broadcast %cst_14 : f32 to vector<62x64xf32>
    %22 = arith.maximumf %20, %21 : vector<62x64xf32>
    %cst_15 = arith.constant 0.000000e+00 : f32
    %23 = vector.broadcast %cst_15 : f32 to vector<60x256xf32>
    %24 = vector.extract_strided_slice %22 {offsets = [0, 0], sizes = [60, 64], strides = [1, 1]} : vector<62x64xf32> to vector<60x64xf32>
    %c0_16 = arith.constant 0 : index
    %c0_17 = arith.constant 0 : index
    %c0_18 = arith.constant 0 : index
    %25 = vector.load %arg4[%c0_16, %c0_17, %c0_18] : memref<3x64x256xf32, #tpu.memory_space<vmem>>, vector<1x64x256xf32>
    %26 = vector.shape_cast %25 : vector<1x64x256xf32> to vector<64x256xf32>
    %cst_19 = arith.constant dense<0.000000e+00> : vector<60x256xf32>
    %27 = tpu.matmul %24, %26, %cst_19 {dimension_numbers = #tpu.dot_dimension_numbers<[1], [0], [0], [1], [0, 0, 1, 1], [], []>} : vector<60x64xf32>, vector<64x256xf32>, vector<60x256xf32> -> vector<60x256xf32>
    %28 = arith.addf %23, %27 : vector<60x256xf32>
    %29 = vector.extract_strided_slice %22 {offsets = [1, 0], sizes = [60, 64], strides = [1, 1]} : vector<62x64xf32> to vector<60x64xf32>
    %c1_20 = arith.constant 1 : index
    %c0_21 = arith.constant 0 : index
    %c0_22 = arith.constant 0 : index
    %30 = vector.load %arg4[%c1_20, %c0_21, %c0_22] : memref<3x64x256xf32, #tpu.memory_space<vmem>>, vector<1x64x256xf32>
    %31 = vector.shape_cast %30 : vector<1x64x256xf32> to vector<64x256xf32>
    %cst_23 = arith.constant dense<0.000000e+00> : vector<60x256xf32>
    %32 = tpu.matmul %29, %31, %cst_23 {dimension_numbers = #tpu.dot_dimension_numbers<[1], [0], [0], [1], [0, 0, 1, 1], [], []>} : vector<60x64xf32>, vector<64x256xf32>, vector<60x256xf32> -> vector<60x256xf32>
    %33 = arith.addf %28, %32 : vector<60x256xf32>
    %34 = vector.extract_strided_slice %22 {offsets = [2, 0], sizes = [60, 64], strides = [1, 1]} : vector<62x64xf32> to vector<60x64xf32>
    %c2_24 = arith.constant 2 : index
    %c0_25 = arith.constant 0 : index
    %c0_26 = arith.constant 0 : index
    %35 = vector.load %arg4[%c2_24, %c0_25, %c0_26] : memref<3x64x256xf32, #tpu.memory_space<vmem>>, vector<1x64x256xf32>
    %36 = vector.shape_cast %35 : vector<1x64x256xf32> to vector<64x256xf32>
    %cst_27 = arith.constant dense<0.000000e+00> : vector<60x256xf32>
    %37 = tpu.matmul %34, %36, %cst_27 {dimension_numbers = #tpu.dot_dimension_numbers<[1], [0], [0], [1], [0, 0, 1, 1], [], []>} : vector<60x64xf32>, vector<64x256xf32>, vector<60x256xf32> -> vector<60x256xf32>
    %38 = arith.addf %33, %37 : vector<60x256xf32>
    %c0_28 = arith.constant 0 : index
    %c0_29 = arith.constant 0 : index
    %39 = vector.load %arg5[%c0_28, %c0_29] : memref<1x256xf32, #tpu.memory_space<vmem>>, vector<1x256xf32>
    %40 = vector.broadcast %39 : vector<1x256xf32> to vector<60x256xf32>
    %41 = arith.addf %38, %40 : vector<60x256xf32>
    %cst_30 = arith.constant 0.000000e+00 : f32
    %42 = vector.broadcast %cst_30 : f32 to vector<60x256xf32>
    %43 = arith.maximumf %41, %42 : vector<60x256xf32>
    %cst_31 = arith.constant 0xFF800000 : f32
    %44 = vector.broadcast %cst_31 : f32 to vector<1x1024xf32>
    %cst_32 = arith.constant 0.000000e+00 : f32
    %45 = vector.broadcast %cst_32 : f32 to vector<56x1024xf32>
    %46 = vector.extract_strided_slice %43 {offsets = [0, 0], sizes = [56, 256], strides = [1, 1]} : vector<60x256xf32> to vector<56x256xf32>
    %c0_33 = arith.constant 0 : index
    %c0_34 = arith.constant 0 : index
    %c0_35 = arith.constant 0 : index
    %47 = vector.load %arg6[%c0_33, %c0_34, %c0_35] : memref<5x256x1024xf32, #tpu.memory_space<vmem>>, vector<1x256x1024xf32>
    %48 = vector.shape_cast %47 : vector<1x256x1024xf32> to vector<256x1024xf32>
    %cst_36 = arith.constant dense<0.000000e+00> : vector<56x1024xf32>
    %49 = tpu.matmul %46, %48, %cst_36 {dimension_numbers = #tpu.dot_dimension_numbers<[1], [0], [0], [1], [0, 0, 1, 1], [], []>} : vector<56x256xf32>, vector<256x1024xf32>, vector<56x1024xf32> -> vector<56x1024xf32>
    %50 = arith.addf %45, %49 : vector<56x1024xf32>
    %51 = vector.extract_strided_slice %43 {offsets = [1, 0], sizes = [56, 256], strides = [1, 1]} : vector<60x256xf32> to vector<56x256xf32>
    %c1_37 = arith.constant 1 : index
    %c0_38 = arith.constant 0 : index
    %c0_39 = arith.constant 0 : index
    %52 = vector.load %arg6[%c1_37, %c0_38, %c0_39] : memref<5x256x1024xf32, #tpu.memory_space<vmem>>, vector<1x256x1024xf32>
    %53 = vector.shape_cast %52 : vector<1x256x1024xf32> to vector<256x1024xf32>
    %cst_40 = arith.constant dense<0.000000e+00> : vector<56x1024xf32>
    %54 = tpu.matmul %51, %53, %cst_40 {dimension_numbers = #tpu.dot_dimension_numbers<[1], [0], [0], [1], [0, 0, 1, 1], [], []>} : vector<56x256xf32>, vector<256x1024xf32>, vector<56x1024xf32> -> vector<56x1024xf32>
    %55 = arith.addf %50, %54 : vector<56x1024xf32>
    %56 = vector.extract_strided_slice %43 {offsets = [2, 0], sizes = [56, 256], strides = [1, 1]} : vector<60x256xf32> to vector<56x256xf32>
    %c2_41 = arith.constant 2 : index
    %c0_42 = arith.constant 0 : index
    %c0_43 = arith.constant 0 : index
    %57 = vector.load %arg6[%c2_41, %c0_42, %c0_43] : memref<5x256x1024xf32, #tpu.memory_space<vmem>>, vector<1x256x1024xf32>
    %58 = vector.shape_cast %57 : vector<1x256x1024xf32> to vector<256x1024xf32>
    %cst_44 = arith.constant dense<0.000000e+00> : vector<56x1024xf32>
    %59 = tpu.matmul %56, %58, %cst_44 {dimension_numbers = #tpu.dot_dimension_numbers<[1], [0], [0], [1], [0, 0, 1, 1], [], []>} : vector<56x256xf32>, vector<256x1024xf32>, vector<56x1024xf32> -> vector<56x1024xf32>
    %60 = arith.addf %55, %59 : vector<56x1024xf32>
    %61 = vector.extract_strided_slice %43 {offsets = [3, 0], sizes = [56, 256], strides = [1, 1]} : vector<60x256xf32> to vector<56x256xf32>
    %c3 = arith.constant 3 : index
    %c0_45 = arith.constant 0 : index
    %c0_46 = arith.constant 0 : index
    %62 = vector.load %arg6[%c3, %c0_45, %c0_46] : memref<5x256x1024xf32, #tpu.memory_space<vmem>>, vector<1x256x1024xf32>
    %63 = vector.shape_cast %62 : vector<1x256x1024xf32> to vector<256x1024xf32>
    %cst_47 = arith.constant dense<0.000000e+00> : vector<56x1024xf32>
    %64 = tpu.matmul %61, %63, %cst_47 {dimension_numbers = #tpu.dot_dimension_numbers<[1], [0], [0], [1], [0, 0, 1, 1], [], []>} : vector<56x256xf32>, vector<256x1024xf32>, vector<56x1024xf32> -> vector<56x1024xf32>
    %65 = arith.addf %60, %64 : vector<56x1024xf32>
    %66 = vector.extract_strided_slice %43 {offsets = [4, 0], sizes = [56, 256], strides = [1, 1]} : vector<60x256xf32> to vector<56x256xf32>
    %c4 = arith.constant 4 : index
    %c0_48 = arith.constant 0 : index
    %c0_49 = arith.constant 0 : index
    %67 = vector.load %arg6[%c4, %c0_48, %c0_49] : memref<5x256x1024xf32, #tpu.memory_space<vmem>>, vector<1x256x1024xf32>
    %68 = vector.shape_cast %67 : vector<1x256x1024xf32> to vector<256x1024xf32>
    %cst_50 = arith.constant dense<0.000000e+00> : vector<56x1024xf32>
    %69 = tpu.matmul %66, %68, %cst_50 {dimension_numbers = #tpu.dot_dimension_numbers<[1], [0], [0], [1], [0, 0, 1, 1], [], []>} : vector<56x256xf32>, vector<256x1024xf32>, vector<56x1024xf32> -> vector<56x1024xf32>
    %70 = arith.addf %65, %69 : vector<56x1024xf32>
    %c0_51 = arith.constant 0 : index
    %c0_52 = arith.constant 0 : index
    %71 = vector.load %arg7[%c0_51, %c0_52] : memref<1x1024xf32, #tpu.memory_space<vmem>>, vector<1x1024xf32>
    %72 = vector.broadcast %71 : vector<1x1024xf32> to vector<56x1024xf32>
    %73 = arith.addf %70, %72 : vector<56x1024xf32>
    %cst_53 = arith.constant 0.000000e+00 : f32
    %74 = vector.broadcast %cst_53 : f32 to vector<56x1024xf32>
    %75 = arith.maximumf %73, %74 : vector<56x1024xf32>
    %cst_54 = arith.constant dense<0xFF800000> : vector<1024xf32>
    %76 = vector.multi_reduction <maximumf>, %75, %cst_54 [0] : vector<56x1024xf32> to vector<1024xf32>
    %77 = vector.shape_cast %76 : vector<1024xf32> to vector<1x1024xf32>
    %78 = arith.maximumf %44, %77 : vector<1x1024xf32>
    %c0_55 = arith.constant 0 : index
    %c0_56 = arith.constant 0 : index
    %79 = vector.load %arg8[%c0_55, %c0_56] : memref<1024x768xf32, #tpu.memory_space<vmem>>, vector<1024x768xf32>
    %cst_57 = arith.constant dense<0.000000e+00> : vector<1x768xf32>
    %80 = tpu.matmul %78, %79, %cst_57 {dimension_numbers = #tpu.dot_dimension_numbers<[1], [0], [0], [1], [0, 0, 1, 1], [], []>} : vector<1x1024xf32>, vector<1024x768xf32>, vector<1x768xf32> -> vector<1x768xf32>
    %c0_58 = arith.constant 0 : index
    %c0_59 = arith.constant 0 : index
    %81 = vector.load %arg9[%c0_58, %c0_59] : memref<1x768xf32, #tpu.memory_space<vmem>>, vector<1x768xf32>
    %82 = arith.addf %80, %81 : vector<1x768xf32>
    %cst_60 = arith.constant 0.000000e+00 : f32
    %83 = vector.broadcast %cst_60 : f32 to vector<1x768xf32>
    %84 = arith.maximumf %82, %83 : vector<1x768xf32>
    %c0_61 = arith.constant 0 : index
    %c0_62 = arith.constant 0 : index
    %c0_63 = arith.constant 0 : index
    %85 = vector.load %arg10[%c0_61, %c0_62, %c0_63] : memref<1x1x768xf32, #tpu.memory_space<vmem>>, vector<1x1x768xf32>
    %86 = vector.shape_cast %85 : vector<1x1x768xf32> to vector<1x768xf32>
    %87 = vector.shape_cast %84 : vector<1x768xf32> to vector<1x1x768xf32>
    tpu.vector_store %arg10[%c0_61, %c0_62, %c0_63], %87 {strides = array<i32>} : memref<1x1x768xf32, #tpu.memory_space<vmem>>, vector<1x1x768xf32>,
    return
  }
  func.func @transform_0(%arg0: i32) -> (i32, i32, i32) {
    %c0_i32 = arith.constant 0 : i32
    %c0_i32_0 = arith.constant 0 : i32
    %c0_i32_1 = arith.constant 0 : i32
    return %arg0, %c0_i32, %c0_i32_0 : i32, i32, i32
  }
  func.func @transform_1(%arg0: i32) -> (i32, i32, i32) {
    %c0_i32 = arith.constant 0 : i32
    %c0_i32_0 = arith.constant 0 : i32
    %c0_i32_1 = arith.constant 0 : i32
    %c0_i32_2 = arith.constant 0 : i32
    return %c0_i32, %c0_i32_0, %c0_i32_1 : i32, i32, i32
  }
  func.func @transform_2(%arg0: i32) -> (i32, i32) {
    %c0_i32 = arith.constant 0 : i32
    %c0_i32_0 = arith.constant 0 : i32
    %c0_i32_1 = arith.constant 0 : i32
    return %c0_i32, %c0_i32_0 : i32, i32
  }
  func.func @transform_3(%arg0: i32) -> (i32, i32, i32) {
    %c0_i32 = arith.constant 0 : i32
    %c0_i32_0 = arith.constant 0 : i32
    %c0_i32_1 = arith.constant 0 : i32
    %c0_i32_2 = arith.constant 0 : i32
    return %c0_i32, %c0_i32_0, %c0_i32_1 : i32, i32, i32
  }
  func.func @transform_4(%arg0: i32) -> (i32, i32) {
    %c0_i32 = arith.constant 0 : i32
    %c0_i32_0 = arith.constant 0 : i32
    %c0_i32_1 = arith.constant 0 : i32
    return %c0_i32, %c0_i32_0 : i32, i32
  }
  func.func @transform_5(%arg0: i32) -> (i32, i32, i32) {
    %c0_i32 = arith.constant 0 : i32
    %c0_i32_0 = arith.constant 0 : i32
    %c0_i32_1 = arith.constant 0 : i32
    %c0_i32_2 = arith.constant 0 : i32
    return %c0_i32, %c0_i32_0, %c0_i32_1 : i32, i32, i32
  }
  func.func @transform_6(%arg0: i32) -> (i32, i32) {
    %c0_i32 = arith.constant 0 : i32
    %c0_i32_0 = arith.constant 0 : i32
    %c0_i32_1 = arith.constant 0 : i32
    return %c0_i32, %c0_i32_0 : i32, i32
  }
  func.func @transform_7(%arg0: i32) -> (i32, i32) {
    %c0_i32 = arith.constant 0 : i32
    %c0_i32_0 = arith.constant 0 : i32
    %c0_i32_1 = arith.constant 0 : i32
    return %c0_i32, %c0_i32_0 : i32, i32
  }
  func.func @transform_8(%arg0: i32) -> (i32, i32) {
    %c0_i32 = arith.constant 0 : i32
    %c0_i32_0 = arith.constant 0 : i32
    %c0_i32_1 = arith.constant 0 : i32
    return %c0_i32, %c0_i32_0 : i32, i32
  }
  func.func @transform_9(%arg0: i32) -> (i32, i32, i32) {
    %c0_i32 = arith.constant 0 : i32
    %c0_i32_0 = arith.constant 0 : i32
    %c0_i32_1 = arith.constant 0 : i32
    return %arg0, %c0_i32, %c0_i32_0 : i32, i32, i32
  }
}

</mosaic_0001>

<bundles_post_ra>
// kernel: tpu_custom_call.1
= control target key start
LH: loop header
LB: loop body
LE: loop exit
PB: predicated region body
PF: predicated region fallthrough
CT: control target
= control target key end

     0   :  { %s11858_s0 = inlined_call_operand.vmem [shape: f32[2,64,26], index: 0, kind: input, shape index: {}]   ;;  %s11859_s1 = inlined_call_operand.hbm [shape: f32[3,26,64], index: 1, kind: input, shape index: {}]   ;;  %s11860_s2 = inlined_call_operand.hbm [shape: f32[1,64], index: 2, kind: input, shape index: {}]   ;;  %s11861_s3 = inlined_call_operand.hbm [shape: f32[3,64,256], index: 3, kind: input, shape index: {}]   ;;  %s11862_s4 = inlined_call_operand.hbm [shape: f32[1,256], index: 4, kind: input, shape index: {}]   ;;  %s11863_s5 = inlined_call_operand.hbm [shape: f32[5,256,1024], index: 5, kind: input, shape index: {}]   ;;  %s11864_s6 = inlined_call_operand.hbm [shape: f32[1,1024], index: 6, kind: input, shape index: {}]   ;;  %s11865_s7 = inlined_call_operand.hbm [shape: f32[1024,768], index: 7, kind: input, shape index: {}]   ;;  %s11866_s8 = inlined_call_operand.hbm [shape: f32[1,768], index: 8, kind: input, shape index: {}]   ;;  %s11867_s9 = inlined_call_operand.hbm [shape: f32[2,1,768], index: 9, kind: output, shape index: {}]  }
   0x1   :  { %11901 = sst [smem:[#allocation62_spill]] %s11860_s2 }
   0x2   :  { %11902 = sst [smem:[#allocation63_spill]] %s11862_s4 }
   0x3   :  { %14 = vsyncpa [#allocation3], 0 }
   0x4   :  { %15 = vsyncpa [#allocation6], 0 }
   0x5   :  { %16 = vsyncpa [#allocation9], 0 }
   0x6   :  { %17 = vsyncpa [#allocation12], 0 }
   0x7   :  { %18 = vsyncpa [#allocation15], 0 }
   0x8   :  { %19 = vsyncpa [#allocation4], 0 }
   0x9   :  { %21 = vsyncpa [#allocation4 + $0x1], 0  ;;  %s10450_s30 = smov 0   ;;  %s10452_s10 = smov 0  }
   0xa   :  { %s10454_s11 = smov 0   ;;  %s10456_s12 = smov 0  }
   0xb LB: > { %11903 = sst [smem:[#allocation23_spill]] %s10374_s11  ;;  %s10471_s13 = sadd.s32 4294967295, %s10378_s12   ;;  %s10378_s12 = sphi %s10456_s12, %s12011_s12   ;;  %s10374_s11 = sphi %s10454_s11, %s12013_s11   ;;  %s10370_s10 = sphi %s10452_s10, %s12015_s10   ;;  %s10366_s30 = sphi %s10450_s30, %s12014_s30  }
   0xc   : > { %s7342_s14 = sadd.s32 4294967294, %s10378_s12   ;;  %s10475_s15 = sadd.s32 1, %s10378_s12  }
   0xd   : > { %11904 = sst [smem:[#allocation24_spill]] %s10475_s15  ;;  %s228_s16 = sadd.s32 1, %s10374_s11 }
   0xe   : > { %s225_s17 = ssub.s32 %s10378_s12, %s10475_s15  ;;  %p238_p0 = scmp.ne.s32.totalorder %s10374_s11, %s10370_s10 }
   0xf   : > { %p226_p1 = scmp.eq.s32.totalorder %s225_s17, 0  ;;  %p239_p2 = scmp.eq.s32.totalorder %s10471_s13, 1 }
  0x10   : > { %p244_p3 = scmp.ne.s32.totalorder %s10370_s10, %s10366_s30  ;;  %p245_p4 = scmp.eq.s32.totalorder %s7342_s14, 1 }
  0x11   : > { %s10486_s18 = scalar_select %p226_p1, %s10374_s11, %s228_s16  }
  0x12   : > { %p10488_p5 = por %p239_p2, %p238_p0  ;;  %p10492_p6 = por %p245_p4, %p244_p3 }
  0x13   : > { %11905 = sst [smem:[#allocation25_spill]] %s10486_s18  ;;  %p7343_p7 = scmp.ge.s32.totalorder %s10378_s12, 1 }
  0x14   : > { %s11906_s19 = scalar_select %p10488_p5, 1, 0 }
  0x15   : > { %s11907_s20 = scalar_select %p10492_p6, 1, 0 }
  0x16   : > { %p252_p8 = scmp.lt.s32.totalorder %s10378_s12, 3  ;;  %p11868_p9 = scmp.eq.s32.totalorder %s10471_s13, 0 }
  0x17   : > { %s10380_s22 = smov [#allocation5]   ;;  %s10381_s24 = smov [#allocation8]  }
  0x18   : > { %p10499_p10 = pnand %p7343_p7, %p252_p8  ;;  %s278_s23 = sshll.u32 %s10380_s22, 4  ;;  %s279_s23 = int_to_ptr.vmem [resolvable:$true] %s278_s23 }
  0x19   : > { %s302_s25 = sshll.u32 %s10381_s24, 4  ;;  %s10382_s27 = smov [#allocation11]   ;;  %s10511_s25 = int_to_ptr.vmem [resolvable:$true] %s302_s25 }
  0x1a   : > { %s11908_s21 = scalar_select %p10499_p10, 1, 0 }
  0x1b   : > { %p9974_p11 = pneg %p10499_p10  ;;  %s326_s28 = sshll.u32 %s10382_s27, 4  ;;  %s10513_s28 = int_to_ptr.vmem [resolvable:$true] %s326_s28 }
  0x1c   : > { %s11910_s2 = sld [smem:[#allocation62_spill]] }
  0x1d   : > { %p10507_p12 = pnand %p11868_p9, %p9974_p11 }
  0x1f   : > { %p10523_p0 = pneg %p10507_p12 }
  0x22   : > { %s10072_s16 = scalar_lea.hbm %s11910_s2, 16 }
  0x23   : > { %p10073_p13 = scmp.ne.s32.totalorder %s11910_s2, %s10072_s16  ;;  %p10079_p3 = scmp.lt.u32.totalorder %s10072_s16, %s11910_s2 }
  0x25   : > { %p10075_p1 = pnand %p10523_p0, %p10073_p13 }
  0x27   : > { %p10076_p2 = pneg %p10075_p1 }
  0x29   : > { %p10081_p4 = pnand %p10079_p3, %p10076_p2 }
  0x2b   : > { %10084 = shalt.err (!%p10081_p4)
}
  0x2c   : > { %s10085_s29 = scalar_lea.vmem %s279_s23, 16  ;;  %s10092_s14 = scalar_lea.vmem %s279_s23, 32 }
  0x2d   : > { %p10086_p7 = scmp.ne.s32.totalorder %s279_s23, %s10085_s29  ;;  %p10093_p9 = scmp.lt.s32.totalorder %s279_s23, %s279_s23 }
  0x2e   : > { %p10094_p6 = scmp.lt.s32.totalorder %s10092_s14, %s10085_s29 }
  0x2f   : > { %p10088_p8 = pnand %p10086_p7, %p10523_p0 }
  0x30   : > { %p10095_p5 = por %p10094_p6, %p10093_p9 }
  0x31   : > { %p10089_p11 = pneg %p10088_p8 }
  0x33   : > { %p10096_p10 = pnand %p10095_p5, %p10089_p11 }
  0x35   : > { %10099 = shalt.err (!%p10096_p10)
}
  0x36   : > { %9980 = dma.hbm_to_vmem [thread:$0]  (!%p10507_p12), %s11910_s2, 16, %s279_s23, [#allocation6]  }
  0x37   : > { %s11912_s4 = sld [smem:[#allocation63_spill]] }
  0x3d   : > { %s10100_s27 = scalar_lea.hbm %s11912_s4, 32 }
  0x3e   : > { %p10101_p13 = scmp.ne.s32.totalorder %s11912_s4, %s10100_s27  ;;  %p10107_p5 = scmp.lt.u32.totalorder %s10100_s27, %s11912_s4 }
  0x40   : > { %p10103_p1 = pnand %p10101_p13, %p10523_p0 }
  0x42   : > { %p10104_p6 = pneg %p10103_p1 }
  0x44   : > { %p10109_p9 = pnand %p10107_p5, %p10104_p6 }
  0x46   : > { %10112 = shalt.err (!%p10109_p9)
}
  0x47   : > { %s10113_s23 = scalar_lea.vmem %s10511_s25, 32  ;;  %p10121_p4 = scmp.lt.s32.totalorder %s10511_s25, %s10511_s25 }
  0x48   : > { %p10114_p10 = scmp.ne.s32.totalorder %s10511_s25, %s10113_s23  ;;  %p10122_p7 = scmp.lt.s32.totalorder %s10113_s23, %s10113_s23 }
  0x4a   : > { %p10116_p2 = pnand %p10114_p10, %p10523_p0  ;;  %p10123_p8 = por %p10122_p7, %p10121_p4 }
  0x4c   : > { %p10117_p3 = pneg %p10116_p2 }
  0x4e   : > { %p10124_p11 = pnand %p10123_p8, %p10117_p3 }
  0x50   : > { %10127 = shalt.err (!%p10124_p11)
}
  0x51   : > { %9986 = dma.hbm_to_vmem [thread:$0]  (!%p10507_p12), %s11912_s4, 32, %s10511_s25, [#allocation9]  }
  0x52   : > { %s10128_s18 = scalar_lea.hbm %s11864_s6, 128 }
  0x53   : > { %p10129_p13 = scmp.ne.s32.totalorder %s11864_s6, %s10128_s18  ;;  %p10135_p5 = scmp.lt.u32.totalorder %s10128_s18, %s11864_s6 }
  0x55   : > { %p10131_p1 = pnand %p10129_p13, %p10523_p0 }
  0x57   : > { %p10132_p6 = pneg %p10131_p1 }
  0x59   : > { %p10137_p9 = pnand %p10135_p5, %p10132_p6 }
  0x5b   : > { %10140 = shalt.err (!%p10137_p9)
}
  0x5c   : > { %s10141_s25 = scalar_lea.vmem %s10513_s28, 128  ;;  %p10149_p4 = scmp.lt.s32.totalorder %s10513_s28, %s10513_s28 }
  0x5d   : > { %p10142_p10 = scmp.ne.s32.totalorder %s10513_s28, %s10141_s25  ;;  %p10150_p7 = scmp.lt.s32.totalorder %s10141_s25, %s10141_s25 }
  0x5f   : > { %p10144_p2 = pnand %p10142_p10, %p10523_p0  ;;  %p10151_p8 = por %p10150_p7, %p10149_p4 }
  0x61   : > { %p10145_p3 = pneg %p10144_p2 }
  0x63   : > { %p10152_p11 = pnand %p10151_p8, %p10145_p3 }
  0x65   : > { %10155 = shalt.err (!%p10152_p11)
}
  0x66   : > { %9992 = dma.hbm_to_vmem [thread:$0]  (!%p10507_p12), %s11864_s6, 128, %s10513_s28, [#allocation12]  }
  0x67   : > { %s10383_s15 = smov [#allocation2]   ;;  %s10156_s16 = scalar_lea.hbm %s11859_s1, 1536 }
  0x68   : > { %s264_s17 = sshll.u32 %s10383_s15, 4  ;;  %p10157_p13 = scmp.ne.s32.totalorder %s11859_s1, %s10156_s16  ;;  %s265_s17 = int_to_ptr.vmem [resolvable:$true] %s264_s17 }
  0x69   : > { %p10163_p5 = scmp.lt.u32.totalorder %s10156_s16, %s11859_s1 }
  0x6a   : > { %p10159_p1 = pnand %p10157_p13, %p10523_p0 }
  0x6c   : > { %p10160_p6 = pneg %p10159_p1 }
  0x6e   : > { %p10165_p9 = pnand %p10163_p5, %p10160_p6 }
  0x70   : > { %10168 = shalt.err (!%p10165_p9)
}
  0x71   : > { %s10169_s28 = scalar_lea.vmem %s265_s17, 1536  ;;  %p10177_p4 = scmp.lt.s32.totalorder %s265_s17, %s265_s17 }
  0x72   : > { %p10170_p10 = scmp.ne.s32.totalorder %s265_s17, %s10169_s28  ;;  %p10178_p7 = scmp.lt.s32.totalorder %s10169_s28, %s10169_s28 }
  0x74   : > { %p10172_p2 = pnand %p10170_p10, %p10523_p0  ;;  %p10179_p8 = por %p10178_p7, %p10177_p4 }
  0x76   : > { %p10173_p3 = pneg %p10172_p2 }
  0x78   : > { %p10180_p11 = pnand %p10179_p8, %p10173_p3 }
  0x7a   : > { %10183 = shalt.err (!%p10180_p11)
}
  0x7b   : > { %s10384_s23 = smov 128   ;;  %s10385_s11 = smov 8  }
  0x7c   : > { %9977 = dma.hbm_to_vmem [thread:$0]  (!%p10507_p12), %s11859_s1, 1536, %s265_s17, [#allocation3], %s10384_s23, %s10384_s23, %s10385_s11  }
  0x7d   : > { %s10386_s18 = smov [#allocation7]   ;;  %s10184_s14 = scalar_lea.hbm %s11861_s3, 6144 }
  0x7e   : > { %s288_s16 = sshll.u32 %s10386_s18, 4  ;;  %p10185_p13 = scmp.ne.s32.totalorder %s11861_s3, %s10184_s14  ;;  %s289_s16 = int_to_ptr.vmem [resolvable:$true] %s288_s16 }
  0x7f   : > { %p10191_p5 = scmp.lt.u32.totalorder %s10184_s14, %s11861_s3 }
  0x80   : > { %p10187_p1 = pnand %p10185_p13, %p10523_p0 }
  0x82   : > { %p10188_p6 = pneg %p10187_p1 }
  0x84   : > { %p10193_p9 = pnand %p10191_p5, %p10188_p6 }
  0x86   : > { %10196 = shalt.err (!%p10193_p9)
}
  0x87   : > { %s10197_s17 = scalar_lea.vmem %s289_s16, 6144  ;;  %p10205_p4 = scmp.lt.s32.totalorder %s289_s16, %s289_s16 }
  0x88   : > { %p10198_p10 = scmp.ne.s32.totalorder %s289_s16, %s10197_s17  ;;  %p10206_p7 = scmp.lt.s32.totalorder %s10197_s17, %s10197_s17 }
  0x8a   : > { %p10200_p2 = pnand %p10198_p10, %p10523_p0  ;;  %p10207_p8 = por %p10206_p7, %p10205_p4 }
  0x8c   : > { %p10201_p3 = pneg %p10200_p2 }
  0x8e   : > { %p10208_p11 = pnand %p10207_p8, %p10201_p3 }
  0x90   : > { %10211 = shalt.err (!%p10208_p11)
}
  0x91   : > { %s10387_s23 = smov 256   ;;  %s10388_s11 = smov 16  }
  0x92   : > { %9983 = dma.hbm_to_vmem [thread:$0]  (!%p10507_p12), %s11861_s3, 6144, %s289_s16, [#allocation6], %s10387_s23, %s10387_s23, %s10388_s11  }
  0x93   : > { %s10389_s15 = smov [#allocation10]   ;;  %s10212_s29 = scalar_lea.hbm %s11863_s5, 163840 }
  0x94   : > { %s312_s22 = sshll.u32 %s10389_s15, 4  ;;  %p10213_p13 = scmp.ne.s32.totalorder %s11863_s5, %s10212_s29  ;;  %s313_s22 = int_to_ptr.vmem [resolvable:$true] %s312_s22 }
  0x95   : > { %p10219_p5 = scmp.lt.u32.totalorder %s10212_s29, %s11863_s5 }
  0x96   : > { %p10215_p1 = pnand %p10213_p13, %p10523_p0 }
  0x98   : > { %p10216_p6 = pneg %p10215_p1 }
  0x9a   : > { %p10221_p9 = pnand %p10219_p5, %p10216_p6 }
  0x9c   : > { %10224 = shalt.err (!%p10221_p9)
}
  0x9d   : > { %s10225_s16 = scalar_lea.vmem %s313_s22, 163840  ;;  %p10233_p4 = scmp.lt.s32.totalorder %s313_s22, %s313_s22 }
  0x9e   : > { %p10226_p10 = scmp.ne.s32.totalorder %s313_s22, %s10225_s16  ;;  %p10234_p7 = scmp.lt.s32.totalorder %s10225_s16, %s10225_s16 }
  0xa0   : > { %p10228_p2 = pnand %p10226_p10, %p10523_p0  ;;  %p10235_p8 = por %p10234_p7, %p10233_p4 }
  0xa2   : > { %p10229_p3 = pneg %p10228_p2 }
  0xa4   : > { %p10236_p11 = pnand %p10235_p8, %p10229_p3 }
  0xa6   : > { %10239 = shalt.err (!%p10236_p11)
}
  0xa7   : > { %s10390_s23 = smov 1024   ;;  %s10391_s11 = smov 64  }
  0xa8   : > { %9989 = dma.hbm_to_vmem [thread:$0]  (!%p10507_p12), %s11863_s5, 163840, %s313_s22, [#allocation9], %s10390_s23, %s10390_s23, %s10391_s11  }
  0xa9   : > { %s10392_s15 = smov [#allocation13]   ;;  %s10240_s14 = scalar_lea.hbm %s11865_s7, 98304 }
  0xaa   : > { %s336_s18 = sshll.u32 %s10392_s15, 4  ;;  %p10241_p13 = scmp.ne.s32.totalorder %s11865_s7, %s10240_s14  ;;  %s337_s18 = int_to_ptr.vmem [resolvable:$true] %s336_s18 }
  0xab   : > { %p10247_p5 = scmp.lt.u32.totalorder %s10240_s14, %s11865_s7 }
  0xac   : > { %p10243_p1 = pnand %p10241_p13, %p10523_p0 }
  0xae   : > { %p10244_p6 = pneg %p10243_p1 }
  0xb0   : > { %p10249_p9 = pnand %p10247_p5, %p10244_p6 }
  0xb2   : > { %10252 = shalt.err (!%p10249_p9)
}
  0xb3   : > { %s10253_s22 = scalar_lea.vmem %s337_s18, 98304  ;;  %p10261_p4 = scmp.lt.s32.totalorder %s337_s18, %s337_s18 }
  0xb4   : > { %p10254_p10 = scmp.ne.s32.totalorder %s337_s18, %s10253_s22  ;;  %p10262_p7 = scmp.lt.s32.totalorder %s10253_s22, %s10253_s22 }
  0xb6   : > { %p10256_p2 = pnand %p10254_p10, %p10523_p0  ;;  %p10263_p8 = por %p10262_p7, %p10261_p4 }
  0xb8   : > { %p10257_p3 = pneg %p10256_p2 }
  0xba   : > { %p10264_p11 = pnand %p10263_p8, %p10257_p3 }
  0xbc   : > { %10267 = shalt.err (!%p10264_p11)
}
  0xbd   : > { %s10393_s23 = smov 768   ;;  %s10394_s11 = smov 48  }
  0xbe   : > { %9995 = dma.hbm_to_vmem [thread:$0]  (!%p10507_p12), %s11865_s7, 98304, %s337_s18, [#allocation12], %s10393_s23, %s10393_s23, %s10394_s11  }
  0xbf   : > { %s10395_s15 = smov [#allocation14]   ;;  %s10268_s25 = scalar_lea.hbm %s11866_s8, 96 }
  0xc0   : > { %s350_s27 = sshll.u32 %s10395_s15, 4  ;;  %p10269_p13 = scmp.ne.s32.totalorder %s11866_s8, %s10268_s25  ;;  %s351_s27 = int_to_ptr.vmem [resolvable:$true] %s350_s27 }
  0xc1   : > { %p10275_p5 = scmp.lt.u32.totalorder %s10268_s25, %s11866_s8 }
  0xc2   : > { %p10271_p1 = pnand %p10269_p13, %p10523_p0 }
  0xc4   : > { %p10272_p6 = pneg %p10271_p1 }
  0xc6   : > { %p10277_p9 = pnand %p10275_p5, %p10272_p6 }
  0xc8   : > { %10280 = shalt.err (!%p10277_p9)
}
  0xc9   : > { %s10281_s18 = scalar_lea.vmem %s351_s27, 96  ;;  %p10289_p4 = scmp.lt.s32.totalorder %s351_s27, %s351_s27 }
  0xca   : > { %p10282_p10 = scmp.ne.s32.totalorder %s351_s27, %s10281_s18  ;;  %p10290_p7 = scmp.lt.s32.totalorder %s10281_s18, %s10281_s18 }
  0xcc   : > { %p10284_p2 = pnand %p10282_p10, %p10523_p0  ;;  %p10291_p8 = por %p10290_p7, %p10289_p4 }
  0xce   : > { %p10285_p3 = pneg %p10284_p2 }
  0xd0   : > { %p10292_p11 = pnand %p10291_p8, %p10285_p3 }
  0xd2   : > { %10295 = shalt.err (!%p10292_p11)
}
  0xd3   : > { %9998 = dma.hbm_to_vmem [thread:$0]  (!%p10507_p12), %s11866_s8, 96, %s351_s27, [#allocation15]  }
  0xd4   : > { %p11913_p13 = scmp.ne.s32.totalorder %s11908_s21, 0 }
  0xd6   : > { %371 = sbr.rel (%p11913_p13) target bundleno = 2276 (0x8e4), region = 56 }
  0xdd   : > { %p11914_p1 = scmp.eq.s32.totalorder %s10471_s13, 0 }
  0xdf   : > { %10341 = dma.done.wait (%p11914_p1), [#allocation3], 1536   ;;  %p11915_p0 = pmov %p11914_p1 }
  0xe1   : > { %10343 = vsyncadd (%p11915_p0), [#allocation3], 4294965760  ;;  %p11916_p6 = pmov %p11915_p0 }
  0xe2   : > { %p11917_p5 = pmov %p11915_p0 }
  0xe3   : > { %10345 = dma.done.wait (%p11916_p6), [#allocation6], 6160  }
  0xe4   : > { %10347 = vsyncadd (%p11917_p5), [#allocation6], 4294961136  ;;  %p11918_p9 = pmov %p11915_p0 }
  0xe5   : > { %p11919_p12 = pmov %p11915_p0 }
  0xe6   : > { %10349 = dma.done.wait (%p11918_p9), [#allocation9], 163872  }
  0xe7   : > { %10351 = vsyncadd (%p11919_p12), [#allocation9], 4294803424  ;;  %p11920_p10 = pmov %p11915_p0 }
  0xe8   : > { %p11921_p2 = pmov %p11915_p0 }
  0xe9   : > { %10353 = dma.done.wait (%p11920_p10), [#allocation12], 98432  }
  0xea   : > { %10355 = vsyncadd (%p11921_p2), [#allocation12], 4294868864  ;;  %p11922_p3 = pmov %p11915_p0 }
  0xeb   : > { %p11923_p4 = pmov %p11915_p0 }
  0xec   : > { %10357 = dma.done.wait (%p11922_p3), [#allocation15], 96  }
  0xed   : > { %10359 = vsyncadd (%p11923_p4), [#allocation15], 4294967200  ;;  %p435_p7 = scmp.lt.s32.totalorder %s10471_s13, 1  ;;  %vm498_vm0 = vcmask 1041408   ;;  %vm10396_vm1 = vmmov 1   ;;  %v453_v1 = vld [vmem:[#allocation2 + $0x20] sm:$0xff] }
  0xee   : > { %vm10704_vm2 = vmpackc.low %vm498_vm0, %vm10396_vm1  ;;  %v454_v2 = vld [vmem:[#allocation2 + $0x28] sm:$0xff]  ;;  %v455_v3 = vld [vmem:[#allocation2 + $0x30] sm:$0xff]  ;;  %vm465_vm3 = vcmask 1046528   ;;  %vm481_vm4 = vcmask 211968   ;;  %vm736_vm5 = vcmask 1045504   ;;  %vm963_vm6 = vcmask 523264  }
  0xef   : > { %s436_s21 = scalar_select %p435_p7, %s10471_s13, 1  ;;  %v7516_v4 = vpack.c.bf16 %v454_v2, %v453_v1  ;;  %v456_v5 = vld [vmem:[#allocation2 + $0x38] sm:$0x3]  ;;  %v448_v12 = vld [vmem:[#allocation2] sm:$0xff]  ;;  %v449_v13 = vld [vmem:[#allocation2 + $0x8] sm:$0xff]  ;;  %vm3914_vm7 = vcmask 1044480  }
  0xf0   : > { %v7520_v8 = vpack.c.bf16 %v456_v5, %v455_v3  ;;  %v7526_v17 = vpack.c.bf16 %v449_v13, %v448_v12  ;;  %v450_v21 = vld [vmem:[#allocation2 + $0x10] sm:$0xff]  ;;  %v451_v22 = vld [vmem:[#allocation2 + $0x18] sm:$0x3]  ;;  %v910_v24 = vld [vmem:[#allocation7 + $0x18] sm:$0xff]  ;;  %vm4700_vm8 = vcmask 1043456   ;;  %s432_s15 = sand.u32 1, %s10370_s10  }
  0xf1   : > { %s7419_s26 = sshll.u32 %s436_s21, 6  ;;  %7517 = vmatprep.subr.bf16.mxu0 %v7516_v4  ;;  %v908_v23 = vld [vmem:[#allocation7 + $0x8] sm:$0xff]  ;;  %v907_v25 = vld [vmem:[#allocation7] sm:$0xff]  ;;  %v909_v26 = vld [vmem:[#allocation7 + $0x10] sm:$0xff]  ;;  %v7530_v33 = vpack.c.bf16 %v451_v22, %v450_v21  ;;  %s9938_s27 = smul.u32 6, %s432_s15 }
  0xf2   : > { %s10702_s4 = scalar_lea.vmem %s11858_s0, %s7419_s26  ;;  %7519 = vmatpush3.bf16.msra.mxu0 %v7516_v4  ;;  %v732_v34 = vld [vmem:[#allocation2 + $0x40] sm:$0xff]  ;;  %v7562_v35 = vpack.c.bf16 %v910_v24, %v908_v23  ;;  %v7564_v36 = vpack.c.bf16 %v909_v26, %v907_v25  ;;  %v912_v37 = vld [vmem:[#allocation7 + $0x28] sm:$0xff]  ;;  %v913_v41 = vld [vmem:[#allocation7 + $0x30] sm:$0xff]  ;;  %s9939_s29 = smul.u32 96, %s10471_s13 }
  0xf3   : > { %v10709_v6 = vld [vmem:[%s10702_s4] sm:$0xff]  ;;  %v10712_v7 = vld [vmem:[%s10702_s4 + $0x8] sm:$0xff]  ;;  %v10717_v11 = vld [vmem:[%s10702_s4 + $0x10] sm:$0xff]  ;;  %7522 = vmatprep.subr.msk.bf16.mxu0 %vm10704_vm2, %v7520_v8  ;;  %s434_s14 = scalar_lea.vmem [#allocation16], %s9938_s27  ;;  %s7190_s13 = scalar_lea.sflag [#allocation4], %s432_s15 }
  0xf4   : > { %v466_v9 = vrot.slane %v10709_v6, 1  ;;  %v467_v10 = vrot.slane %v10712_v7, 1  ;;  %v10720_v14 = vld [vmem:[%s10702_s4 + $0x18] sm:$0xff]  ;;  %v469_v16 = vrot.slane %v10717_v11, 1  ;;  %v10729_v19 = vld [vmem:[%s10702_s4 + $0x20] sm:$0xff]  ;;  %v10732_v20 = vld [vmem:[%s10702_s4 + $0x28] sm:$0xff]  ;;  %7563 = vmatprep.subr.bf16.mxu1 %v7562_v35  ;;  %s11816_s16 = scalar_lea.hbm %s11867_s9, %s9939_s29 }
  0xf5   : > { %v471_v18 = vrot.slane %v10720_v14, 1  ;;  %v473_v28 = vrot.slane %v10729_v19, 1  ;;  %v475_v29 = vrot.slane %v10732_v20, 1  ;;  %v10740_v30 = vld [vmem:[%s10702_s4 + $0x30] sm:$0xff]  ;;  %v10743_v31 = vld [vmem:[%s10702_s4 + $0x38] sm:$0xff]  ;;  %v733_v39 = vld [vmem:[#allocation2 + $0x48] sm:$0xff]  ;;  %7565 = vmatpush1.bf16.msra.mxu1 %v7564_v36 }
  0xf6   : > { %v468_v15 = vsel %vm465_vm3, %v466_v9, %v467_v10  ;;  %7525 = vmatpush3.bf16.msk.msra.mxu0 %vm10704_vm2, %v7520_v8  ;;  %v470_v27 = vsel %vm465_vm3, %v467_v10, %v469_v16  ;;  %v914_v38 = vld [vmem:[#allocation7 + $0x38] sm:$0xff]  ;;  %v911_v40 = vld [vmem:[#allocation7 + $0x20] sm:$0xff]  ;;  %v477_v43 = vrot.slane %v10740_v30, 1  ;;  %v916_v45 = vld [vmem:[#allocation7 + $0x48] sm:$0xff]  ;;  %v479_v48 = vrot.slane %v10743_v31, 1  ;;  %s7204_s25 = sshll.u32 %s434_s14, 4  ;;  %s11818_s25 = int_to_ptr.vmem [resolvable:$true] %s7204_s25 }
  0xf7   : > { %7464 = vmatprep.mubr.msk.f32.mxu0 %vm481_vm4, %v468_v15  ;;  %7527 = vmatprep.subr.bf16.mxu0 %v7526_v17  ;;  %v472_v32 = vsel %vm465_vm3, %v469_v16, %v471_v18  ;;  %v474_v42 = vsel %vm465_vm3, %v471_v18, %v473_v28  ;;  %v7566_v44 = vpack.c.bf16 %v914_v38, %v912_v37  ;;  %v918_v46 = vld [vmem:[#allocation7 + $0x58] sm:$0xff]  ;;  %v915_v52 = vld [vmem:[#allocation7 + $0x40] sm:$0xff]  ;;  %v917_v53 = vld [vmem:[#allocation7 + $0x50] sm:$0xff]  ;;  %v737_v63 = vrot.slane %v10709_v6, 2  ;;  %s10296_s22 = scalar_lea.vmem %s11818_s25, 96  ;;  %p12009_p11 = scmp.ne.s32.totalorder %s11906_s19, 0 }
  0xf8   : > { %v476_v47 = vsel %vm465_vm3, %v473_v28, %v475_v29  ;;  %v7536_v49 = vpack.c.bf16 %v733_v39, %v732_v34  ;;  %v7568_v50 = vpack.c.bf16 %v913_v41, %v911_v40  ;;  %v7570_v51 = vpack.c.bf16 %v918_v46, %v916_v45  ;;  %v734_v57 = vld [vmem:[#allocation2 + $0x50] sm:$0xff]  ;;  %v735_v58 = vld [vmem:[#allocation2 + $0x58] sm:$0x3]  ;;  %v927_v61 = vld [vmem:[#allocation7 + $0x98] sm:$0xff]  ;;  %p10297_p8 = scmp.ne.s32.totalorder %s11818_s25, %s10296_s22  ;;  %s10399_s18 = smov [#allocation16]  }
  0xf9   : > { %7465 = vmatmul.mubr.msk.f32.vlgmr.msra.gmra.mrb[0].mxu0 %vm481_vm4, %v470_v27  ;;  %7567 = vmatprep.subr.bf16.mxu1 %v7566_v44  ;;  %v478_v54 = vsel %vm465_vm3, %v475_v29, %v477_v43  ;;  %v480_v55 = vsel %vm465_vm3, %v477_v43, %v479_v48  ;;  %v7572_v56 = vpack.c.bf16 %v917_v53, %v915_v52  ;;  %v925_v60 = vld [vmem:[#allocation7 + $0x88] sm:$0xff]  ;;  %v738_v1 = vrot.slane %v10712_v7, 2  ;;  %v924_v0 = vld [vmem:[#allocation7 + $0x80] sm:$0xff]  ;;  %v926_v5 = vld [vmem:[#allocation7 + $0x90] sm:$0xff]  ;;  %s10300_s23 = sshll.u32 %s10399_s18, 4  ;;  %s10301_s23 = int_to_ptr.vmem [resolvable:$false] %s10300_s23 }
  0xfa   : > { %7529 = vmatpush3.bf16.msra.mxu0 %v7526_v17  ;;  %7467 = vmatprep.mubr.msk.f32.mxu0 %vm481_vm4, %v472_v32  ;;  %v7540_v59 = vpack.c.bf16 %v735_v58, %v734_v57  ;;  %v7546_v62 = vpack.c.bf16 %v927_v61, %v925_v60  ;;  %v740_v2 = vrot.slane %v10717_v11, 2  ;;  %v742_v4 = vrot.slane %v10720_v14, 2  ;;  %v929_v8 = vld [vmem:[#allocation7 + $0xa8] sm:$0xff]  ;;  %v930_v15 = vld [vmem:[#allocation7 + $0xb0] sm:$0xff]  ;;  %v935_v24 = vld [vmem:[#allocation7 + $0xd8] sm:$0xff]  ;;  %p10298_p13 = pnand %p10297_p8, %p12009_p11  ;;  %s10302_s11 = scalar_lea.vmem %s10301_s23, 192 }
  0xfb   : > { %7532 = vmatprep.subr.msk.bf16.mxu0 %vm10704_vm2, %v7530_v33  ;;  %7569 = vmatpush1.bf16.msra.mxu1 %v7568_v50  ;;  %v739_v3 = vsel %vm736_vm5, %v737_v63, %v738_v1  ;;  %v744_v9 = vrot.slane %v10729_v19, 2  ;;  %v7548_v10 = vpack.c.bf16 %v926_v5, %v924_v0  ;;  %v746_v12 = vrot.slane %v10732_v20, 2  ;;  %v933_v23 = vld [vmem:[#allocation7 + $0xc8] sm:$0xff]  ;;  %v932_v26 = vld [vmem:[#allocation7 + $0xc0] sm:$0xff]  ;;  %v934_v27 = vld [vmem:[#allocation7 + $0xd0] sm:$0xff]  ;;  %p10303_p0 = scmp.lt.s32.totalorder %s11818_s25, %s10301_s23  ;;  %p10304_p6 = scmp.lt.s32.totalorder %s10302_s11, %s10296_s22 }
  0xfc   : > { %7571 = vmatprep.subr.bf16.mxu1 %v7570_v51  ;;  %v748_v17 = vrot.slane %v10740_v30, 2  ;;  %v750_v21 = vrot.slane %v10743_v31, 2  ;;  %v7554_v25 = vpack.c.bf16 %v935_v24, %v933_v23  ;;  %v920_v28 = vld [vmem:[#allocation7 + $0x68] sm:$0xff]  ;;  %v7556_v29 = vpack.c.bf16 %v934_v27, %v932_v26  ;;  %v939_v36 = vld [vmem:[#allocation7 + $0xf8] sm:$0xff]  ;;  %v936_v38 = vld [vmem:[#allocation7 + $0xe0] sm:$0xff]  ;;  %p10299_p1 = pneg %p10298_p13 }
  0xfd   : > { %7468 = vmatmul.mubr.msk.f32.gmra.mrb[2].mxu0 %vm481_vm4, %v474_v42  ;;  %v745_v16 = vsel %vm736_vm5, %v742_v4, %v744_v9  ;;  %v937_v35 = vld [vmem:[#allocation7 + $0xe8] sm:$0xff]  ;;  %v938_v39 = vld [vmem:[#allocation7 + $0xf0] sm:$0xff]  ;;  %v10397_v41 = vmov 0.0   ;;  %v1226_v43 = vld [vmem:[#allocation7 + $0x118] sm:$0xff]  ;;  %p10305_p5 = por %p10304_p6, %p10303_p0 }
  0xfe   : > { %7470 = vmatprep.mubr.msk.f32.mxu0 %vm481_vm4, %v476_v47  ;;  %7535 = vmatpush3.bf16.msk.msra.mxu0 %vm10704_vm2, %v7530_v33  ;;  %v751_v22 = vsel %vm736_vm5, %v748_v17, %v750_v21  ;;  %v921_v33 = vld [vmem:[#allocation7 + $0x70] sm:$0xff]  ;;  %v7558_v37 = vpack.c.bf16 %v939_v36, %v937_v35  ;;  %v7560_v40 = vpack.c.bf16 %v938_v39, %v936_v38  ;;  %v1224_v42 = vld [vmem:[#allocation7 + $0x108] sm:$0xff]  ;;  %v1223_v50 = vld [vmem:[#allocation7 + $0x100] sm:$0xff] }
  0xff   : > { %7537 = vmatprep.subr.bf16.mxu0 %v7536_v49  ;;  %7573 = vmatpush1.bf16.msra.mxu1 %v7572_v56  ;;  %v7578_v44 = vpack.c.bf16 %v1226_v43, %v1224_v42  ;;  %v1444_v45 = vld [vmem:[#allocation10 + $0x8] sm:$0xff]  ;;  %v1467_v26 = vld [vmem:[#allocation10 + $0xc0] sm:$0xff]  ;;  %p10306_p9 = pnand %p10305_p5, %p10299_p1 }
 0x100   : > { %1173 = vmatprep.mubr.f32.mxu1 %v10397_v41  ;;  %v1452_v46 = vld [vmem:[#allocation10 + $0x48] sm:$0xff] }
 0x101   : > { %7471 = vmatmul.mubr.msk.f32.gmra.mrb[4].mxu0 %vm481_vm4, %v478_v54  ;;  %v7850_v47 = vpack.c.bf16 %v1452_v46, %v1444_v45  ;;  %v1225_v51 = vld [vmem:[#allocation7 + $0x110] sm:$0xff]  ;;  %v1228_v54 = vld [vmem:[#allocation7 + $0x128] sm:$0xff] }
 0x102   : > { %7473 = vmatprep.mubr.msk.f32.mxu0 %vm481_vm4, %v480_v55  ;;  %v1230_v55 = vld [vmem:[#allocation7 + $0x138] sm:$0xff]  ;;  %v7580_v58 = vpack.c.bf16 %v1225_v51, %v1223_v50  ;;  %v1229_v63 = vld [vmem:[#allocation7 + $0x130] sm:$0xff] }
 0x103   : > { %v10834_v27 = vld [vmem:[#allocation10 + $0x108] sm:$0xff] }
 0x104   : > { %v1701_v51 = vld [vmem:[#allocation10 + $0x808] sm:$0xff] }
 0x105   : > { %7474 = vmatmul.mubr.msk.f32.gmra.mrb[6].mxu0 %vm481_vm4, %v479_v48  ;;  %v10808_v48 = vld [vmem:[#allocation5] ss:$0 sm:$0xff] }
 0x106   : > { %7484 = vmatprep.mubr.msk.f32.mxu0 %vm481_vm4, %v10709_v6  ;;  %v931_v6 = vld [vmem:[#allocation7 + $0xb8] sm:$0xff] }
 0x107   : > { %v7550_v13 = vpack.c.bf16 %v931_v6, %v929_v8  ;;  %v10817_v8 = vld [vmem:[#allocation7 + $0x140] sm:$0xff] }
 0x108   : > { %v1443_v6 = vld [vmem:[#allocation10] sm:$0xff] }
 0x109   : > { %7485 = vmatmul.mubr.msk.f32.vlgmr.msra.gmra.mrb[0].mxu0 %vm481_vm4, %v10712_v7  ;;  %v741_v7 = vsel %vm736_vm5, %v738_v1, %v740_v2  ;;  %v1232_v1 = vld [vmem:[#allocation7 + $0x148] sm:$0xff] }
 0x10a   : > { %7539 = vmatpush3.bf16.msra.mxu0 %v7536_v49  ;;  %7487 = vmatprep.mubr.msk.f32.mxu0 %vm481_vm4, %v10717_v11  ;;  %v743_v11 = vsel %vm736_vm5, %v740_v2, %v742_v4  ;;  %v1234_v2 = vld [vmem:[#allocation7 + $0x158] sm:$0xff] }
 0x10b   : > { %7542 = vmatprep.subr.msk.bf16.mxu0 %vm10704_vm2, %v7540_v59 }
 0x10d   : > { %7488 = vmatmul.mubr.msk.f32.gmra.mrb[2].mxu0 %vm481_vm4, %v10720_v14  ;;  %v928_v14 = vld [vmem:[#allocation7 + $0xa0] sm:$0xff] }
 0x10e   : > { %7490 = vmatprep.mubr.msk.f32.mxu0 %vm481_vm4, %v10729_v19  ;;  %7545 = vmatpush3.bf16.msk.msra.mxu0 %vm10704_vm2, %v7540_v59  ;;  %v7552_v18 = vpack.c.bf16 %v930_v15, %v928_v14  ;;  %v747_v19 = vsel %vm736_vm5, %v744_v9, %v746_v12  ;;  %v1227_v59 = vld [vmem:[#allocation7 + $0x120] sm:$0xff]  ;;  %v1468_v14 = vld [vmem:[#allocation10 + $0xc8] sm:$0xff] }
 0x10f   : > { %7547 = vmatprep.subr.bf16.mxu0 %v7546_v62  ;;  %v7582_v62 = vpack.c.bf16 %v1230_v55, %v1228_v54 }
 0x111   : > { %7491 = vmatmul.mubr.msk.f32.gmra.mrb[4].mxu0 %vm481_vm4, %v10732_v20  ;;  %v749_v20 = vsel %vm736_vm5, %v746_v12, %v748_v17  ;;  %v10821_v12 = vld [vmem:[#allocation7 + $0x150] sm:$0xff]  ;;  %v7586_v17 = vpack.c.bf16 %v1234_v2, %v1232_v1  ;;  %v1475_v1 = vld [vmem:[#allocation10 + $0x100] sm:$0xff] }
 0x112   : > { %7493 = vmatprep.mubr.msk.f32.mxu0 %vm481_vm4, %v10740_v30  ;;  %v922_v30 = vld [vmem:[#allocation7 + $0x78] sm:$0xff] }
 0x113   : > { %v7574_v32 = vpack.c.bf16 %v922_v30, %v920_v28  ;;  %v1484_v28 = vld [vmem:[#allocation10 + $0x148] sm:$0xff] }
 0x114   : > { %v7858_v43 = vpack.c.bf16 %v1484_v28, %v10834_v27  ;;  %v1524_v27 = vld [vmem:[#allocation10 + $0x288] sm:$0xff] }
 0x115   : > { %7494 = vmatmul.mubr.msk.f32.gmra.mrb[6].mxu0 %vm481_vm4, %v10743_v31  ;;  %v919_v31 = vld [vmem:[#allocation7 + $0x60] sm:$0xff]  ;;  %7575 = vmatprep.subr.bf16.mxu1 %v7574_v32  ;;  %v1532_v28 = vld [vmem:[#allocation10 + $0x2c8] sm:$0xff] }
 0x116   : > { %7504 = vmatprep.mubr.msk.f32.mxu0 %vm481_vm4, %v739_v3  ;;  %v7576_v34 = vpack.c.bf16 %v921_v33, %v919_v31 }
 0x118   : > { %7577 = vmatpush1.bf16.msra.mxu1 %v7576_v34 }
 0x119   : > { %7505 = vmatmul.mubr.msk.f32.vlgmr.msra.gmra.mrb[0].mxu0 %vm481_vm4, %v741_v7  ;;  %7579 = vmatprep.subr.bf16.mxu1 %v7578_v44  ;;  %v1451_v7 = vld [vmem:[#allocation10 + $0x40] sm:$0xff] }
 0x11a   : > { %7507 = vmatprep.mubr.msk.f32.mxu0 %vm481_vm4, %v743_v11  ;;  %7549 = vmatpush1.bf16.msra.mxu0 %v7548_v10 }
 0x11b   : > { %7551 = vmatprep.subr.bf16.mxu0 %v7550_v13  ;;  %v1460_v13 = vld [vmem:[#allocation10 + $0x88] sm:$0xff] }
 0x11c   : > { %v7854_v33 = vpack.c.bf16 %v1468_v14, %v1460_v13 }
 0x11d   : > { %7508 = vmatmul.mubr.msk.f32.gmra.mrb[2].mxu0 %vm481_vm4, %v745_v16  ;;  %v7584_v16 = vpack.c.bf16 %v1229_v63, %v1227_v59 }
 0x11e   : > { %7510 = vmatprep.mubr.msk.f32.mxu0 %vm481_vm4, %v747_v19  ;;  %7553 = vmatpush1.bf16.msra.mxu0 %v7552_v18  ;;  %v10826_v18 = vld [vmem:[#allocation7 + $0x168] sm:$0xff]  ;;  %v1238_v19 = vld [vmem:[#allocation7 + $0x178] sm:$0xff] }
 0x11f   : > { %7555 = vmatprep.subr.bf16.mxu0 %v7554_v25  ;;  %v7852_v25 = vpack.c.bf16 %v1451_v7, %v1443_v6  ;;  %v7590_v39 = vpack.c.bf16 %v1238_v19, %v10826_v18  ;;  %v1491_v18 = vld [vmem:[#allocation10 + $0x180] sm:$0xff] }
 0x120   : > { %v1499_v19 = vld [vmem:[#allocation10 + $0x1c0] sm:$0xff] }
 0x121   : > { %7511 = vmatmul.mubr.msk.f32.gmra.mrb[4].mxu0 %vm481_vm4, %v749_v20 }
 0x122   : > { %7513 = vmatprep.mubr.msk.f32.mxu0 %vm481_vm4, %v751_v22  ;;  %7557 = vmatpush1.bf16.msra.mxu0 %v7556_v29 }
 0x123   : > { %7559 = vmatprep.subr.bf16.mxu0 %v7558_v37  ;;  %v7588_v37 = vpack.c.bf16 %v10821_v12, %v10817_v8  ;;  %v1500_v8 = vld [vmem:[#allocation10 + $0x1c8] sm:$0xff] }
 0x125   : > { %7514 = vmatmul.mubr.msk.f32.gmra.mrb[6].mxu0 %vm481_vm4, %v750_v21  ;;  %v10828_v21 = vld [vmem:[#allocation10 + $0x80] sm:$0xff] }
 0x126   : > { %7561 = vmatpush1.bf16.msra.mxu0 %v7560_v40  ;;  %1044 = vmatprep.mubr.f32.mxu0 %v10397_v41  ;;  %v1235_v40 = vld [vmem:[#allocation7 + $0x160] sm:$0xff]  ;;  %v7856_v42 = vpack.c.bf16 %v1467_v26, %v10828_v21  ;;  %v1508_v21 = vld [vmem:[#allocation10 + $0x208] sm:$0xff] }
 0x127   : > { %7851 = vmatprep.subr.bf16.mxu0 %v7850_v47  ;;  %v1515_v26 = vld [vmem:[#allocation10 + $0x240] sm:$0xff] }
 0x1ec   : > { %v7506_v49 = vpop.f32.mrb[0].mxu0 }
 0x1ed   : > { %v892_v52 = vadd.f32 %v7506_v49, %v10808_v48  ;;  %v837_v53 = vpop.f32.mrb[1].mxu0  ;;  %v1237_v49 = vld [vmem:[#allocation7 + $0x170] sm:$0xff] }
 0x1ee   : > { %v891_v56 = vadd.f32 %v10808_v48, %v837_v53 }
 0x1ef   : > { %v10812_v57 = vmax.f32 %v892_v52, 0.0  ;;  %v1709_v52 = vld [vmem:[#allocation10 + $0x848] sm:$0xff] }
 0x1f0   : > { %v899_v60 = vmax.f32 %v891_v56, 0.0  ;;  %v7509_v61 = vpop.f32.mrb[2].mxu0  ;;  %v7594_v63 = vpack.c.bf16 %v1709_v52, %v1701_v51  ;;  %v1733_v51 = vld [vmem:[#allocation10 + $0x908] sm:$0xff] }
 0x1f1   : > { %v949_v3 = vrot.slane %v10812_v57, 1  ;;  %v1240_v4 = vrot.slane %v10812_v57, 2  ;;  %v894_v0 = vadd.f32 %v7509_v61, %v10808_v48  ;;  %v847_v5 = vpop.f32.mrb[3].mxu0  ;;  %v1741_v52 = vld [vmem:[#allocation10 + $0x948] sm:$0xff] }
 0x1f2   : > { %v948_v9 = vrot.slane %v899_v60, 1  ;;  %v1239_v10 = vrot.slane %v899_v60, 2  ;;  %v893_v11 = vadd.f32 %v10808_v48, %v847_v5  ;;  %7400 = vmatmul.mubr.msk.f32.vlgmr.msra.gmra.mrb[0].mxu1 %vm963_vm6, %v899_v60  ;;  %v1492_v5 = vld [vmem:[#allocation10 + $0x188] sm:$0xff] }
 0x1f3   : > { %v10823_v15 = vmax.f32 %v894_v0, 0.0  ;;  %7581 = vmatpush1.bf16.msra.mxu1 %v7580_v58  ;;  %1179 = vmatprep.mubr.f32.mxu1 %v10397_v41  ;;  %v1483_v0 = vld [vmem:[#allocation10 + $0x140] sm:$0xff]  ;;  %v7862_v13 = vpack.c.bf16 %v1500_v8, %v1492_v5 }
 0x1f4   : > { %v901_v20 = vmax.f32 %v893_v11, 0.0  ;;  %v7512_v22 = vpop.f32.mrb[4].mxu0  ;;  %v950_v23 = vsel %vm465_vm3, %v948_v9, %v949_v3  ;;  %7583 = vmatprep.subr.bf16.mxu1 %v7582_v62  ;;  %v10832_v24 = vsel %vm736_vm5, %v1239_v10, %v1240_v4  ;;  %v7592_v62 = vpack.c.bf16 %v1237_v49, %v1235_v40  ;;  %v1725_v40 = vld [vmem:[#allocation10 + $0x8c8] sm:$0xff] }
 0x1f5   : > { %v953_v29 = vrot.slane %v10823_v15, 1  ;;  %v1244_v30 = vrot.slane %v10823_v15, 2  ;;  %v896_v31 = vadd.f32 %v7512_v22, %v10808_v48  ;;  %v857_v32 = vpop.f32.mrb[5].mxu0  ;;  %7392 = vmatmul.mubr.msk.f32.vlgmr.msra.gmra.mrb[8].mxu0 %vm963_vm6, %v950_v23  ;;  %v7860_v12 = vpack.c.bf16 %v1483_v0, %v1475_v1  ;;  %v1765_v1 = vld [vmem:[#allocation10 + $0xa08] sm:$0xff]  ;;  %v1772_v0 = vld [vmem:[#allocation10 + $0xa40] sm:$0xff] }
 0x1f6   : > { %v951_v34 = vrot.slane %v901_v20, 1  ;;  %v1242_v35 = vrot.slane %v901_v20, 2  ;;  %v895_v36 = vadd.f32 %v10808_v48, %v857_v32  ;;  %7401 = vmatmul.mubr.msk.f32.gmra.mrb[2].mxu1 %vm963_vm6, %v10812_v57  ;;  %1050 = vmatprep.mubr.f32.mxu0 %v10397_v41  ;;  %v7864_v22 = vpack.c.bf16 %v1499_v19, %v1491_v18  ;;  %v1531_v32 = vld [vmem:[#allocation10 + $0x2c0] sm:$0xff]  ;;  %v1572_v19 = vld [vmem:[#allocation10 + $0x408] sm:$0xff] }
 0x1f7   : > { %v10846_v38 = vmax.f32 %v896_v31, 0.0  ;;  %1185 = vmatprep.mubr.f32.mxu1 %v10397_v41  ;;  %7585 = vmatpush1.bf16.msra.mxu1 %v7584_v16  ;;  %v1523_v31 = vld [vmem:[#allocation10 + $0x280] sm:$0xff] }
 0x1f8   : > { %v903_v44 = vmax.f32 %v895_v36, 0.0  ;;  %v7515_v45 = vpop.f32.mrb[6].mxu0  ;;  %v952_v46 = vsel %vm465_vm3, %v949_v3, %v951_v34  ;;  %v954_v47 = vsel %vm465_vm3, %v951_v34, %v953_v29  ;;  %7587 = vmatprep.subr.bf16.mxu1 %v7586_v17  ;;  %v10855_v50 = vsel %vm736_vm5, %v1240_v4, %v1242_v35  ;;  %7853 = vmatpush1.bf16.msra.mxu0 %v7852_v25  ;;  %v1507_v25 = vld [vmem:[#allocation10 + $0x200] sm:$0xff]  ;;  %v1548_v34 = vld [vmem:[#allocation10 + $0x348] sm:$0xff] }
 0x1f9   : > { %v957_v53 = vrot.slane %v10846_v38, 1  ;;  %v1248_v54 = vrot.slane %v10846_v38, 2  ;;  %v898_v55 = vadd.f32 %v7515_v45, %v10808_v48  ;;  %v867_v56 = vpop.f32.mrb[7].mxu0  ;;  %7393 = vmatmul.mubr.msk.f32.gmra.mrb[10].mxu0 %vm963_vm6, %v952_v46  ;;  %v10862_v57 = vsel %vm736_vm5, %v1242_v35, %v1244_v30  ;;  %7855 = vmatprep.subr.bf16.mxu0 %v7854_v33  ;;  %v1540_v33 = vld [vmem:[#allocation10 + $0x308] sm:$0xff]  ;;  %v1700_v36 = vld [vmem:[#allocation10 + $0x800] sm:$0xff] }
 0x1fa   : > { %v955_v58 = vrot.slane %v903_v44, 1  ;;  %v1246_v59 = vrot.slane %v903_v44, 2  ;;  %v897_v60 = vadd.f32 %v10808_v48, %v867_v56  ;;  %7402 = vmatmul.mubr.msk.f32.gmra.mrb[4].mxu1 %vm963_vm6, %v901_v20  ;;  %1056 = vmatprep.mubr.f32.mxu0 %v10397_v41  ;;  %v1516_v20 = vld [vmem:[#allocation10 + $0x248] sm:$0xff]  ;;  %v7872_v35 = vpack.c.bf16 %v1531_v32, %v1523_v31  ;;  %v1716_v46 = vld [vmem:[#allocation10 + $0x880] sm:$0xff] }
 0x1fb   : > { %v10867_v61 = vmax.f32 %v898_v55, 0.0  ;;  %1191 = vmatprep.mubr.f32.mxu1 %v10397_v41  ;;  %7589 = vmatpush1.bf16.msra.mxu1 %v7588_v37  ;;  %v7866_v23 = vpack.c.bf16 %v1516_v20, %v1508_v21  ;;  %v1708_v37 = vld [vmem:[#allocation10 + $0x840] sm:$0xff]  ;;  %v1580_v20 = vld [vmem:[#allocation10 + $0x448] sm:$0xff] }
 0x1fc   : > { %v905_v2 = vmax.f32 %v897_v60, 0.0  ;;  %v956_v3 = vsel %vm465_vm3, %v953_v29, %v955_v58  ;;  %v958_v4 = vsel %vm465_vm3, %v955_v58, %v957_v53  ;;  %7591 = vmatprep.subr.bf16.mxu1 %v7590_v39  ;;  %v10873_v48 = vsel %vm736_vm5, %v1244_v30, %v1246_v59  ;;  %7857 = vmatpush1.bf16.msra.mxu0 %v7856_v42  ;;  %v1539_v42 = vld [vmem:[#allocation10 + $0x300] sm:$0xff]  ;;  %v1749_v58 = vld [vmem:[#allocation10 + $0x988] sm:$0xff] }
 0x1fd   : > { %v961_v6 = vrot.slane %v10867_v61, 1  ;;  %v1252_v7 = vrot.slane %v10867_v61, 2  ;;  %7394 = vmatmul.mubr.msk.f32.gmra.mrb[12].mxu0 %vm963_vm6, %v954_v47  ;;  %v10879_v9 = vsel %vm736_vm5, %v1246_v59, %v1248_v54  ;;  %7859 = vmatprep.subr.bf16.mxu0 %v7858_v43  ;;  %v7868_v29 = vpack.c.bf16 %v1515_v26, %v1507_v25  ;;  %v1547_v43 = vld [vmem:[#allocation10 + $0x340] sm:$0xff]  ;;  %v1757_v59 = vld [vmem:[#allocation10 + $0x9c8] sm:$0xff] }
 0x1fe   : > { %v959_v10 = vrot.slane %v905_v2, 1  ;;  %v1250_v11 = vrot.slane %v905_v2, 2  ;;  %7403 = vmatmul.mubr.msk.f32.gmra.mrb[6].mxu1 %vm963_vm6, %v10823_v15  ;;  %1062 = vmatprep.mubr.f32.mxu0 %v10397_v41  ;;  %v7870_v30 = vpack.c.bf16 %v1532_v28, %v1524_v27  ;;  %v7874_v39 = vpack.c.bf16 %v1548_v34, %v1540_v33  ;;  %v1724_v47 = vld [vmem:[#allocation10 + $0x8c0] sm:$0xff]  ;;  %v1813_v27 = vld [vmem:[#allocation10 + $0xb88] sm:$0xff] }
 0x1ff   : > { %1197 = vmatprep.mubr.f32.mxu1 %v10397_v41  ;;  %7593 = vmatpush1.bf16.msra.mxu1 %v7592_v62  ;;  %v7876_v49 = vpack.c.bf16 %v1547_v43, %v1539_v42  ;;  %v1732_v55 = vld [vmem:[#allocation10 + $0x900] sm:$0xff]  ;;  %v7882_v25 = vpack.c.bf16 %v1580_v20, %v1572_v19  ;;  %v1821_v28 = vld [vmem:[#allocation10 + $0xbc8] sm:$0xff] }
 0x200   : > { %v960_v14 = vsel %vm465_vm3, %v957_v53, %v959_v10  ;;  %v962_v16 = vsel %vm465_vm3, %v959_v10, %v961_v6  ;;  %v10890_v17 = vsel %vm736_vm5, %v1248_v54, %v1250_v11  ;;  %v10895_v15 = vsel %vm736_vm5, %v1250_v11, %v1252_v7  ;;  %7595 = vmatprep.subr.bf16.mxu1 %v7594_v63  ;;  %v1740_v56 = vld [vmem:[#allocation10 + $0x940] sm:$0xff]  ;;  %v1556_v10 = vld [vmem:[#allocation10 + $0x388] sm:$0xff] }
 0x201   : > { %7395 = vmatmul.mubr.msk.f32.gmra.mrb[14].mxu0 %vm963_vm6, %v956_v3  ;;  %v7600_v53 = vpack.c.bf16 %v1724_v47, %v1716_v46  ;;  %v7602_v54 = vpack.c.bf16 %v1741_v52, %v1733_v51  ;;  %v7604_v60 = vpack.c.bf16 %v1740_v56, %v1732_v55  ;;  %v1748_v62 = vld [vmem:[#allocation10 + $0x980] sm:$0xff]  ;;  %v1588_v32 = vld [vmem:[#allocation10 + $0x488] sm:$0xff] }
 0x202   : > { %7404 = vmatmul.mubr.msk.f32.gmra.mrb[8].mxu1 %vm963_vm6, %v903_v44  ;;  %1068 = vmatprep.mubr.f32.mxu0 %v10397_v41  ;;  %v7596_v44 = vpack.c.bf16 %v1708_v37, %v1700_v36  ;;  %v1756_v63 = vld [vmem:[#allocation10 + $0x9c0] sm:$0xff]  ;;  %v1596_v34 = vld [vmem:[#allocation10 + $0x4c8] sm:$0xff] }
 0x203   : > { %1203 = vmatprep.mubr.f32.mxu1 %v10397_v41  ;;  %7861 = vmatpush1.bf16.msra.mxu0 %v7860_v12  ;;  %v7608_v3 = vpack.c.bf16 %v1756_v63, %v1748_v62  ;;  %v1564_v12 = vld [vmem:[#allocation10 + $0x3c8] sm:$0xff]  ;;  %v1796_v18 = vld [vmem:[#allocation10 + $0xb00] sm:$0xff]  ;;  %v7886_v37 = vpack.c.bf16 %v1596_v34, %v1588_v32 }
 0x204   : > { %7863 = vmatprep.subr.bf16.mxu0 %v7862_v13  ;;  %v1555_v13 = vld [vmem:[#allocation10 + $0x380] sm:$0xff]  ;;  %v1612_v47 = vld [vmem:[#allocation10 + $0x548] sm:$0xff] }
 0x205   : > { %7396 = vmatmul.mubr.msk.f32.gmra.mrb[16].mxu0 %vm963_vm6, %v958_v4  ;;  %v1820_v31 = vld [vmem:[#allocation10 + $0xbc0] sm:$0xff]  ;;  %v1853_v55 = vld [vmem:[#allocation10 + $0xcc8] sm:$0xff] }
 0x206   : > { %7405 = vmatmul.mubr.msk.f32.gmra.mrb[10].mxu1 %vm963_vm6, %v10846_v38  ;;  %1074 = vmatprep.mubr.f32.mxu0 %v10397_v41  ;;  %v1717_v38 = vld [vmem:[#allocation10 + $0x888] sm:$0xff]  ;;  %v1595_v36 = vld [vmem:[#allocation10 + $0x4c0] sm:$0xff] }
 0x207   : > { %1209 = vmatprep.mubr.f32.mxu1 %v10397_v41  ;;  %7865 = vmatpush1.bf16.msra.mxu0 %v7864_v22  ;;  %v7598_v45 = vpack.c.bf16 %v1725_v40, %v1717_v38  ;;  %v1571_v22 = vld [vmem:[#allocation10 + $0x400] sm:$0xff]  ;;  %v1837_v40 = vld [vmem:[#allocation10 + $0xc48] sm:$0xff] }
 0x208   : > { %7867 = vmatprep.subr.bf16.mxu0 %v7866_v23  ;;  %v1579_v23 = vld [vmem:[#allocation10 + $0x440] sm:$0xff]  ;;  %v1628_v62 = vld [vmem:[#allocation10 + $0x5c8] sm:$0xff] }
 0x209   : > { %7397 = vmatmul.mubr.msk.f32.gmra.mrb[18].mxu0 %vm963_vm6, %v960_v14  ;;  %v1563_v14 = vld [vmem:[#allocation10 + $0x3c0] sm:$0xff]  ;;  %v7884_v26 = vpack.c.bf16 %v1579_v23, %v1571_v22  ;;  %v1893_v22 = vld [vmem:[#allocation10 + $0xe08] sm:$0xff] }
 0x20a   : > { %7406 = vmatmul.mubr.msk.f32.gmra.mrb[12].mxu1 %vm963_vm6, %v905_v2  ;;  %1080 = vmatprep.mubr.f32.mxu0 %v10397_v41  ;;  %v1773_v2 = vld [vmem:[#allocation10 + $0xa48] sm:$0xff]  ;;  %v1828_v43 = vld [vmem:[#allocation10 + $0xc00] sm:$0xff] }
 0x20b   : > { %1215 = vmatprep.mubr.f32.mxu1 %v10397_v41  ;;  %7869 = vmatpush1.bf16.msra.mxu0 %v7868_v29  ;;  %v7610_v4 = vpack.c.bf16 %v1773_v2, %v1765_v1  ;;  %v7622_v29 = vpack.c.bf16 %v1821_v28, %v1813_v27  ;;  %v1611_v51 = vld [vmem:[#allocation10 + $0x540] sm:$0xff]  ;;  %v1901_v23 = vld [vmem:[#allocation10 + $0xe48] sm:$0xff] }
 0x20c   : > { %7871 = vmatprep.subr.bf16.mxu0 %v7870_v30  ;;  %v1812_v30 = vld [vmem:[#allocation10 + $0xb80] sm:$0xff]  ;;  %v1668_v28 = vld [vmem:[#allocation10 + $0x708] sm:$0xff] }
 0x20d   : > { %7398 = vmatmul.mubr.msk.f32.gmra.mrb[20].mxu0 %vm963_vm6, %v962_v16  ;;  %v7878_v16 = vpack.c.bf16 %v1564_v12, %v1556_v10  ;;  %v7624_v33 = vpack.c.bf16 %v1820_v31, %v1812_v30  ;;  %v1619_v63 = vld [vmem:[#allocation10 + $0x580] sm:$0xff]  ;;  %v1676_v30 = vld [vmem:[#allocation10 + $0x748] sm:$0xff] }
 0x20e   : > { %7407 = vmatmul.mubr.msk.f32.gmra.mrb[14].mxu1 %vm963_vm6, %v10867_v61  ;;  %1086 = vmatprep.mubr.f32.mxu0 %v10397_v41  ;;  %v1627_v1 = vld [vmem:[#allocation10 + $0x5c0] sm:$0xff] }
 0x20f   : > { %1334 = vmatprep.mubr.f32.mxu1 %v10397_v41  ;;  %7873 = vmatpush1.bf16.msra.mxu0 %v7872_v35  ;;  %v1587_v35 = vld [vmem:[#allocation10 + $0x480] sm:$0xff] }
 0x210   : > { %7875 = vmatprep.subr.bf16.mxu0 %v7874_v39  ;;  %v7888_v38 = vpack.c.bf16 %v1595_v36, %v1587_v35  ;;  %v1829_v39 = vld [vmem:[#allocation10 + $0xc08] sm:$0xff]  ;;  %v1643_v10 = vld [vmem:[#allocation10 + $0x640] sm:$0xff] }
 0x211   : > { %7399 = vmatmul.mubr.msk.f32.gmra.mrb[22].mxu0 %vm963_vm6, %v961_v6  ;;  %v1780_v6 = vld [vmem:[#allocation10 + $0xa80] sm:$0xff]  ;;  %v7626_v42 = vpack.c.bf16 %v1837_v40, %v1829_v39  ;;  %v1909_v35 = vld [vmem:[#allocation10 + $0xe88] sm:$0xff] }
 0x212   : > { %7408 = vmatmul.mubr.msk.f32.vlgmr.msra.gmra.mrb[0].mxu1 %vm963_vm6, %v10832_v24  ;;  %v7606_v24 = vpack.c.bf16 %v1757_v59, %v1749_v58  ;;  %v1844_v58 = vld [vmem:[#allocation10 + $0xc80] sm:$0xff]  ;;  %v1917_v36 = vld [vmem:[#allocation10 + $0xec8] sm:$0xff] }
 0x213   : > { %1340 = vmatprep.mubr.f32.mxu1 %v10397_v41  ;;  %7597 = vmatpush1.bf16.msra.mxu1 %v7596_v44  ;;  %v1836_v44 = vld [vmem:[#allocation10 + $0xc40] sm:$0xff]  ;;  %v1684_v40 = vld [vmem:[#allocation10 + $0x788] sm:$0xff] }
 0x214   : > { %7599 = vmatprep.subr.bf16.mxu1 %v7598_v45  ;;  %7877 = vmatpush1.bf16.msra.mxu0 %v7876_v49  ;;  %v1604_v45 = vld [vmem:[#allocation10 + $0x508] sm:$0xff]  ;;  %v7628_v46 = vpack.c.bf16 %v1836_v44, %v1828_v43  ;;  %v1603_v49 = vld [vmem:[#allocation10 + $0x500] sm:$0xff] }
 0x215   : > { %7879 = vmatprep.subr.bf16.mxu0 %v7878_v16  ;;  %v7890_v52 = vpack.c.bf16 %v1612_v47, %v1604_v45  ;;  %v1852_v59 = vld [vmem:[#allocation10 + $0xcc0] sm:$0xff]  ;;  %v1692_v43 = vld [vmem:[#allocation10 + $0x7c8] sm:$0xff] }
 0x216   : > { %7409 = vmatmul.mubr.msk.f32.gmra.mrb[2].mxu1 %vm963_vm6, %v10855_v50  ;;  %v1764_v50 = vld [vmem:[#allocation10 + $0xa00] sm:$0xff] }
 0x217   : > { %1346 = vmatprep.mubr.f32.mxu1 %v10397_v41  ;;  %7601 = vmatpush1.bf16.msra.mxu1 %v7600_v53  ;;  %v7612_v5 = vpack.c.bf16 %v1772_v0, %v1764_v50  ;;  %v7892_v53 = vpack.c.bf16 %v1611_v51, %v1603_v49  ;;  %v1869_v50 = vld [vmem:[#allocation10 + $0xd48] sm:$0xff]  ;;  %v1659_v19 = vld [vmem:[#allocation10 + $0x6c0] sm:$0xff] }
 0x218   : > { %7603 = vmatprep.subr.bf16.mxu1 %v7602_v54  ;;  %v1845_v54 = vld [vmem:[#allocation10 + $0xc88] sm:$0xff]  ;;  %v1900_v27 = vld [vmem:[#allocation10 + $0xe40] sm:$0xff] }
 0x219   : > { %v7630_v56 = vpack.c.bf16 %v1853_v55, %v1845_v54  ;;  %v1667_v31 = vld [vmem:[#allocation10 + $0x700] sm:$0xff]  ;;  %v1925_v49 = vld [vmem:[#allocation10 + $0xf08] sm:$0xff] }
 0x21a   : > { %7410 = vmatmul.mubr.msk.f32.gmra.mrb[4].mxu1 %vm963_vm6, %v10862_v57  ;;  %v1781_v57 = vld [vmem:[#allocation10 + $0xa88] sm:$0xff]  ;;  %v1675_v32 = vld [vmem:[#allocation10 + $0x740] sm:$0xff] }
 0x21b   : > { %1352 = vmatprep.mubr.f32.mxu1 %v10397_v41  ;;  %7605 = vmatpush1.bf16.msra.mxu1 %v7604_v60  ;;  %v1620_v60 = vld [vmem:[#allocation10 + $0x588] sm:$0xff]  ;;  %v7908_v34 = vpack.c.bf16 %v1675_v32, %v1667_v31  ;;  %v1916_v39 = vld [vmem:[#allocation10 + $0xec0] sm:$0xff] }
 0x21c   : > { %7607 = vmatprep.subr.bf16.mxu1 %v7606_v24  ;;  %v7632_v24 = vpack.c.bf16 %v1852_v59, %v1844_v58  ;;  %v7894_v2 = vpack.c.bf16 %v1628_v62, %v1620_v60  ;;  %v1683_v44 = vld [vmem:[#allocation10 + $0x780] sm:$0xff]  ;;  %v1933_v51 = vld [vmem:[#allocation10 + $0xf48] sm:$0xff] }
 0x21d   : > { %v1691_v45 = vld [vmem:[#allocation10 + $0x7c0] sm:$0xff]  ;;  %v1448_v55 = vld [vmem:[#allocation10 + $0x28] sm:$0xff] }
 0x21e   : > { %7411 = vmatmul.mubr.msk.f32.gmra.mrb[6].mxu1 %vm963_vm6, %v10873_v48  ;;  %v1789_v48 = vld [vmem:[#allocation10 + $0xac8] sm:$0xff]  ;;  %v7912_v47 = vpack.c.bf16 %v1691_v45, %v1683_v44  ;;  %v1932_v54 = vld [vmem:[#allocation10 + $0xf40] sm:$0xff] }
 0x21f   : > { %1358 = vmatprep.mubr.f32.mxu1 %v10397_v41  ;;  %7609 = vmatpush1.bf16.msra.mxu1 %v7608_v3  ;;  %v7614_v8 = vpack.c.bf16 %v1789_v48, %v1781_v57  ;;  %v7896_v3 = vpack.c.bf16 %v1627_v1, %v1619_v63  ;;  %v1868_v57 = vld [vmem:[#allocation10 + $0xd40] sm:$0xff]  ;;  %v1636_v48 = vld [vmem:[#allocation10 + $0x608] sm:$0xff] }
 0x220   : > { %7611 = vmatprep.subr.bf16.mxu1 %v7610_v4  ;;  %v1861_v4 = vld [vmem:[#allocation10 + $0xd08] sm:$0xff]  ;;  %v1940_v63 = vld [vmem:[#allocation10 + $0xf80] sm:$0xff] }
 0x221   : > { %v7634_v0 = vpack.c.bf16 %v1869_v50, %v1861_v4  ;;  %v1456_v58 = vld [vmem:[#allocation10 + $0x68] sm:$0xff]  ;;  %v1948_v1 = vld [vmem:[#allocation10 + $0xfc0] sm:$0xff]  ;;  %v1711_v4 = vld [vmem:[#allocation10 + $0x858] sm:$0xff] }
 0x222   : > { %7412 = vmatmul.mubr.msk.f32.gmra.mrb[8].mxu1 %vm963_vm6, %v10879_v9  ;;  %v1788_v9 = vld [vmem:[#allocation10 + $0xac0] sm:$0xff]  ;;  %v7978_v59 = vpack.c.bf16 %v1456_v58, %v1448_v55  ;;  %v1941_v60 = vld [vmem:[#allocation10 + $0xf88] sm:$0xff]  ;;  %v1702_v55 = vld [vmem:[#allocation10 + $0x810] sm:$0xff] }
 0x223   : > { %1364 = vmatprep.mubr.f32.mxu1 %v10397_v41  ;;  %7613 = vmatpush1.bf16.msra.mxu1 %v7612_v5  ;;  %v7616_v11 = vpack.c.bf16 %v1788_v9, %v1780_v6  ;;  %v1860_v5 = vld [vmem:[#allocation10 + $0xd00] sm:$0xff]  ;;  %v1644_v6 = vld [vmem:[#allocation10 + $0x648] sm:$0xff] }
 0x224   : > { %7615 = vmatprep.subr.bf16.mxu1 %v7614_v8  ;;  %v7636_v8 = vpack.c.bf16 %v1868_v57, %v1860_v5  ;;  %v1635_v9 = vld [vmem:[#allocation10 + $0x600] sm:$0xff] }
 0x225   : > { %v7900_v12 = vpack.c.bf16 %v1643_v10, %v1635_v9  ;;  %v1463_v44 = vld [vmem:[#allocation10 + $0xa0] sm:$0xff] }
 0x226   : > { %7413 = vmatmul.mubr.msk.f32.gmra.mrb[10].mxu1 %vm963_vm6, %v10890_v17  ;;  %v7880_v17 = vpack.c.bf16 %v1563_v14, %v1555_v13  ;;  %v1877_v13 = vld [vmem:[#allocation10 + $0xd88] sm:$0xff]  ;;  %v1471_v45 = vld [vmem:[#allocation10 + $0xe0] sm:$0xff] }
 0x227   : > { %1370 = vmatprep.mubr.f32.mxu1 %v10397_v41  ;;  %7617 = vmatpush1.bf16.msra.mxu1 %v7616_v11  ;;  %v7898_v11 = vpack.c.bf16 %v1644_v6, %v1636_v48  ;;  %v1885_v14 = vld [vmem:[#allocation10 + $0xdc8] sm:$0xff] }
 0x228   : > { %7881 = vmatpush1.bf16.msra.mxu0 %v7880_v17  ;;  %v7638_v16 = vpack.c.bf16 %v1885_v14, %v1877_v13  ;;  %v1876_v17 = vld [vmem:[#allocation10 + $0xd80] sm:$0xff] }
 0x229   : > { %7883 = vmatprep.subr.bf16.mxu0 %v7882_v25  ;;  %v7642_v25 = vpack.c.bf16 %v1901_v23, %v1893_v22 }
 0x22a   : > { %7414 = vmatmul.mubr.msk.f32.gmra.mrb[12].mxu1 %vm963_vm6, %v10895_v15  ;;  %v1797_v15 = vld [vmem:[#allocation10 + $0xb08] sm:$0xff] }
 0x22b   : > { %1376 = vmatprep.mubr.f32.mxu1 %v10397_v41  ;;  %v1805_v41 = vld [vmem:[#allocation10 + $0xb48] sm:$0xff] }
 0x22c   : > { %v7618_v61 = vpack.c.bf16 %v1805_v41, %v1797_v15  ;;  %7885 = vmatpush1.bf16.msra.mxu0 %v7884_v26  ;;  %v1884_v15 = vld [vmem:[#allocation10 + $0xdc0] sm:$0xff]  ;;  %v1652_v41 = vld [vmem:[#allocation10 + $0x688] sm:$0xff] }
 0x22d   : > { %7887 = vmatprep.subr.bf16.mxu0 %v7886_v37  ;;  %v1892_v26 = vld [vmem:[#allocation10 + $0xe00] sm:$0xff]  ;;  %v7646_v37 = vpack.c.bf16 %v1917_v36, %v1909_v35 }
 0x22e   : > { %7415 = vmatmul.mubr.msk.f32.gmra.mrb[14].mxu1 %vm963_vm6, %v1252_v7  ;;  %v1804_v7 = vld [vmem:[#allocation10 + $0xb40] sm:$0xff]  ;;  %7619 = vmatprep.subr.bf16.mxu1 %v7618_v61  ;;  %v7640_v61 = vpack.c.bf16 %v1884_v15, %v1876_v17 }
 0x22f   : > { %v7620_v21 = vpack.c.bf16 %v1804_v7, %v1796_v18  ;;  %v1660_v18 = vld [vmem:[#allocation10 + $0x6c8] sm:$0xff]  ;;  %v1651_v7 = vld [vmem:[#allocation10 + $0x680] sm:$0xff] }
 0x230   : > { %7889 = vmatpush1.bf16.msra.mxu0 %v7888_v38  ;;  %v7904_v20 = vpack.c.bf16 %v1659_v19, %v1651_v7  ;;  %v1908_v38 = vld [vmem:[#allocation10 + $0xe80] sm:$0xff] }
 0x231   : > { %7621 = vmatpush1.bf16.msra.mxu1 %v7620_v21  ;;  %7891 = vmatprep.subr.bf16.mxu0 %v7890_v52  ;;  %v7902_v21 = vpack.c.bf16 %v1660_v18, %v1652_v41  ;;  %v7650_v52 = vpack.c.bf16 %v1933_v51, %v1925_v49  ;;  %v1399_v18 = vld [vmem:[#allocation8] sm:$0x3]  ;;  %v1480_v49 = vld [vmem:[#allocation10 + $0x128] sm:$0xff] }
 0x232   : > { %7623 = vmatprep.subr.bf16.mxu1 %v7622_v29  ;;  %v7644_v29 = vpack.c.bf16 %v1900_v27, %v1892_v26  ;;  %v1488_v51 = vld [vmem:[#allocation10 + $0x168] sm:$0xff] }
 0x234   : > { %7893 = vmatpush1.bf16.msra.mxu0 %v7892_v53  ;;  %v1924_v53 = vld [vmem:[#allocation10 + $0xf00] sm:$0xff] }
 0x235   : > { %7625 = vmatpush1.bf16.msra.mxu1 %v7624_v33  ;;  %7895 = vmatprep.subr.bf16.mxu0 %v7894_v2  ;;  %v7906_v33 = vpack.c.bf16 %v1676_v30, %v1668_v28  ;;  %v7656_v2 = vpack.c.bf16 %v1948_v1, %v1940_v63  ;;  %v1455_v30 = vld [vmem:[#allocation10 + $0x60] sm:$0xff] }
 0x236   : > { %7627 = vmatprep.subr.bf16.mxu1 %v7626_v42  ;;  %v7648_v42 = vpack.c.bf16 %v1916_v39, %v1908_v38 }
 0x238   : > { %7897 = vmatpush1.bf16.msra.mxu0 %v7896_v3  ;;  %v1703_v3 = vld [vmem:[#allocation10 + $0x818] sm:$0xff] }
 0x239   : > { %7629 = vmatpush1.bf16.msra.mxu1 %v7628_v46  ;;  %7899 = vmatprep.subr.bf16.mxu0 %v7898_v11  ;;  %v7910_v46 = vpack.c.bf16 %v1692_v43, %v1684_v40  ;;  %v7658_v50 = vpack.c.bf16 %v1711_v4, %v1703_v3  ;;  %v1719_v3 = vld [vmem:[#allocation10 + $0x898] sm:$0xff] }
 0x23a   : > { %7631 = vmatprep.subr.bf16.mxu1 %v7630_v56  ;;  %v7652_v56 = vpack.c.bf16 %v1932_v54, %v1924_v53  ;;  %v1727_v4 = vld [vmem:[#allocation10 + $0x8d8] sm:$0xff] }
 0x23c   : > { %7901 = vmatpush1.bf16.msra.mxu0 %v7900_v12  ;;  %v11874_v12 = vlaneseq }
 0x23d   : > { %7633 = vmatpush1.bf16.msra.mxu1 %v7632_v24  ;;  %7903 = vmatprep.subr.bf16.mxu0 %v7902_v21  ;;  %v1949_v24 = vld [vmem:[#allocation10 + $0xfc8] sm:$0xff] }
 0x23e   : > { %7635 = vmatprep.subr.bf16.mxu1 %v7634_v0  ;;  %v7654_v62 = vpack.c.bf16 %v1949_v24, %v1941_v60  ;;  %v7984_v60 = vpack.c.bf16 %v1471_v45, %v1463_v44  ;;  %v1479_v24 = vld [vmem:[#allocation10 + $0x120] sm:$0xff] }
 0x240   : > { %7905 = vmatpush1.bf16.msra.mxu0 %v7904_v20 }
 0x241   : > { %7637 = vmatpush1.bf16.msra.mxu1 %v7636_v8  ;;  %7907 = vmatprep.subr.bf16.mxu0 %v7906_v33  ;;  %v1464_v33 = vld [vmem:[#allocation10 + $0xa8] sm:$0xff] }
 0x242   : > { %7639 = vmatprep.subr.bf16.mxu1 %v7638_v16  ;;  %v10953_v16 = vshrl.u32 %v11874_v12, 7  ;;  %v2949_v12 = vld [vmem:[#allocation10 + $0x1260] sm:$0xff] }
 0x244   : > { %7909 = vmatpush1.bf16.msra.mxu0 %v7908_v34  ;;  %11926 = vst [vmem:[#allocation26_spill] sm:$0xff] %v10953_v16  ;;  %v10960_v41 = vsub.s32 0, %v10953_v16  ;;  %v10965_v7 = vsub.s32 1, %v10953_v16  ;;  %v1472_v34 = vld [vmem:[#allocation10 + $0xe8] sm:$0xff]  ;;  %v2957_v16 = vld [vmem:[#allocation10 + $0x12a0] sm:$0xff] }
 0x245   : > { %7641 = vmatpush1.bf16.msra.mxu1 %v7640_v61  ;;  %7911 = vmatprep.subr.bf16.mxu0 %v7910_v46  ;;  %v7982_v43 = vpack.c.bf16 %v1472_v34, %v1464_v33  ;;  %v1726_v33 = vld [vmem:[#allocation10 + $0x8d0] sm:$0xff]  ;;  %v1495_v34 = vld [vmem:[#allocation10 + $0x1a0] sm:$0xff] }
 0x246   : > { %7643 = vmatprep.subr.bf16.mxu1 %v7642_v25  ;;  %11927 = vst [vmem:[#allocation27_spill] sm:$0xff] %v10960_v41  ;;  %11928 = vst [vmem:[#allocation28_spill] sm:$0xff] %v10965_v7  ;;  %v10970_v21 = vrot.slane %v1399_v18, %v10960_v41  ;;  %v10975_v23 = vrot.slane %v1399_v18, %v10965_v7  ;;  %v2965_v7 = vld [vmem:[#allocation10 + $0x12e0] sm:$0xff] }
 0x247   : > { %v2973_v41 = vld [vmem:[#allocation10 + $0x1320] sm:$0xff] }
 0x248   : > { %7913 = vmatpush1.bf16.msra.mxu0 %v7912_v47 }
 0x249   : > { %7645 = vmatpush1.bf16.msra.mxu1 %v7644_v29  ;;  %7979 = vmatprep.subr.bf16.mxu0 %v7978_v59  ;;  %v1447_v29 = vld [vmem:[#allocation10 + $0x20] sm:$0xff] }
 0x24a   : > { %7647 = vmatprep.subr.bf16.mxu1 %v7646_v37  ;;  %v7980_v39 = vpack.c.bf16 %v1455_v30, %v1447_v29 }
 0x24d   : > { %7649 = vmatpush1.bf16.msra.mxu1 %v7648_v42 }
 0x24e   : > { %7651 = vmatprep.subr.bf16.mxu1 %v7650_v52 }
 0x251   : > { %7653 = vmatpush1.bf16.msra.mxu1 %v7652_v56  ;;  %v1710_v56 = vld [vmem:[#allocation10 + $0x850] sm:$0xff] }
 0x252   : > { %7655 = vmatprep.subr.bf16.mxu1 %v7654_v62  ;;  %v1487_v62 = vld [vmem:[#allocation10 + $0x160] sm:$0xff] }
 0x255   : > { %7657 = vmatpush1.bf16.msra.mxu1 %v7656_v2  ;;  %v7986_v2 = vpack.c.bf16 %v1488_v51, %v1480_v49 }
 0x256   : > { %7659 = vmatprep.subr.bf16.mxu1 %v7658_v50 }
 0x2c8   : > { %v1046_v0 = vpop.f32.mrb[8].mxu0 }
 0x2c9   : > { %v1048_v5 = vpop.f32.mrb[9].mxu0 }
 0x2cc   : > { %v1052_v57 = vpop.f32.mrb[10].mxu0 }
 0x2cd   : > { %v1054_v48 = vpop.f32.mrb[11].mxu0 }
 0x2d0   : > { %v1058_v8 = vpop.f32.mrb[12].mxu0 }
 0x2d1   : > { %v1060_v6 = vpop.f32.mrb[13].mxu0 }
 0x2d4   : > { %v10942_v9 = vpop.f32.mrb[14].mxu0 }
 0x2d5   : > { %v10944_v10 = vpop.f32.mrb[15].mxu0 }
 0x2d8   : > { %v10946_v11 = vpop.f32.mrb[16].mxu0 }
 0x2d9   : > { %v10948_v13 = vpop.f32.mrb[17].mxu0 }
 0x2dc   : > { %v10950_v14 = vpop.f32.mrb[18].mxu0 }
 0x2dd   : > { %v10955_v17 = vpop.f32.mrb[19].mxu0 }
 0x2e0   : > { %v10957_v15 = vpop.f32.mrb[20].mxu0 }
 0x2e1   : > { %v10962_v61 = vpop.f32.mrb[21].mxu0 }
 0x2e4   : > { %v10967_v19 = vpop.f32.mrb[22].mxu0 }
 0x2e5   : > { %v10972_v20 = vpop.f32.mrb[23].mxu0  ;;  %v1336_v22 = vpop.f32.mrb[0].mxu1 }
 0x2e6   : > { %v9642_v25 = vadd.f32 %v1336_v22, %v1046_v0  ;;  %v1338_v26 = vpop.f32.mrb[1].mxu1 }
 0x2e7   : > { %v9643_v27 = vadd.f32 %v1338_v26, %v1048_v5 }
 0x2e8   : > { %v1411_v28 = vadd.f32 %v9642_v25, %v10970_v21 }
 0x2e9   : > { %v1412_v31 = vadd.f32 %v9643_v27, %v10975_v23  ;;  %v1342_v32 = vpop.f32.mrb[2].mxu1  ;;  %v7988_v27 = vpack.c.bf16 %v1487_v62, %v1479_v24 }
 0x2ea   : > { %v9644_v35 = vadd.f32 %v1342_v32, %v1052_v57  ;;  %v1344_v36 = vpop.f32.mrb[3].mxu1  ;;  %v10981_v40 = vmax.f32 %v1411_v28, 0.0  ;;  %v1718_v28 = vld [vmem:[#allocation10 + $0x890] sm:$0xff]  ;;  %v7662_v32 = vpack.c.bf16 %v1727_v4, %v1719_v3 }
 0x2eb   : > { %v10979_v37 = vmax.f32 %v1412_v31, 0.0  ;;  %v9645_v38 = vadd.f32 %v1344_v36, %v1054_v48  ;;  %v7660_v48 = vpack.c.bf16 %v1710_v56, %v1702_v55  ;;  %v1734_v56 = vld [vmem:[#allocation10 + $0x910] sm:$0xff] }
 0x2ec   : > { %v1413_v42 = vadd.f32 %v9644_v35, %v10970_v21  ;;  %v1972_v26 = vrot.slane %v10981_v40, 1  ;;  %v1503_v35 = vld [vmem:[#allocation10 + $0x1e0] sm:$0xff] }
 0x2ed   : > { %v1414_v46 = vadd.f32 %v9645_v38, %v10975_v23  ;;  %v1348_v47 = vpop.f32.mrb[4].mxu1  ;;  %2508 = vmatprep.mubr.f32.mxu0 %v10979_v37  ;;  %v1975_v5 = vrot.slane %v10979_v37, 1  ;;  %v7992_v55 = vpack.c.bf16 %v1503_v35, %v1495_v34 }
 0x2ee   : > { %v10986_v52 = vmax.f32 %v1413_v42, 0.0  ;;  %v9646_v53 = vadd.f32 %v1348_v47, %v1058_v8  ;;  %v1350_v54 = vpop.f32.mrb[5].mxu1  ;;  %2509 = vmatmul.mubr.f32.vlgmr.msra.gmra.mrb[24].mxu0 %v10981_v40  ;;  %v1496_v8 = vld [vmem:[#allocation10 + $0x1a8] sm:$0xff]  ;;  %v1743_v42 = vld [vmem:[#allocation10 + $0x958] sm:$0xff] }
 0x2ef   : > { %v10989_v58 = vmax.f32 %v1414_v46, 0.0  ;;  %v9647_v59 = vadd.f32 %v1350_v54, %v1060_v6  ;;  %7981 = vmatpush1.bf16.msra.mxu0 %v7980_v39  ;;  %v1504_v6 = vld [vmem:[#allocation10 + $0x1e8] sm:$0xff]  ;;  %v7664_v54 = vpack.c.bf16 %v1726_v33, %v1718_v28 }
 0x2f0   : > { %v1415_v63 = vadd.f32 %v9646_v53, %v10970_v21  ;;  %7983 = vmatprep.subr.bf16.mxu0 %v7982_v43  ;;  %v1973_v1 = vrot.slane %v10986_v52, 1  ;;  %v7990_v39 = vpack.c.bf16 %v1504_v6, %v1496_v8  ;;  %v1512_v46 = vld [vmem:[#allocation10 + $0x228] sm:$0xff] }
 0x2f1   : > { %v1416_v50 = vadd.f32 %v9647_v59, %v10975_v23  ;;  %v1354_v0 = vpop.f32.mrb[6].mxu1  ;;  %2514 = vmatprep.mubr.f32.mxu0 %v10989_v58  ;;  %v1976_v57 = vrot.slane %v10989_v58, 1  ;;  %v1520_v47 = vld [vmem:[#allocation10 + $0x268] sm:$0xff] }
 0x2f2   : > { %v10997_v18 = vmax.f32 %v1415_v63, 0.0  ;;  %v9648_v22 = vadd.f32 %v1354_v0, %v10942_v9  ;;  %v1356_v25 = vpop.f32.mrb[7].mxu1  ;;  %2515 = vmatmul.mubr.f32.gmra.mrb[26].mxu0 %v10986_v52  ;;  %v11011_v36 = vsel %vm465_vm3, %v1972_v26, %v1973_v1  ;;  %v1742_v63 = vld [vmem:[#allocation10 + $0x950] sm:$0xff]  ;;  %v1751_v0 = vld [vmem:[#allocation10 + $0x998] sm:$0xff]  ;;  %v1528_v6 = vld [vmem:[#allocation10 + $0x2a8] sm:$0xff] }
 0x2f3   : > { %v11002_v29 = vmax.f32 %v1416_v50, 0.0  ;;  %v9649_v30 = vadd.f32 %v1356_v25, %v10944_v10  ;;  %7985 = vmatpush1.bf16.msra.mxu0 %v7984_v60  ;;  %v11006_v31 = vsel %vm465_vm3, %v1975_v5, %v1976_v57  ;;  %v1735_v10 = vld [vmem:[#allocation10 + $0x918] sm:$0xff]  ;;  %v7994_v50 = vpack.c.bf16 %v1520_v47, %v1512_v46 }
 0x2f4   : > { %v1417_v9 = vadd.f32 %v9648_v22, %v10970_v21  ;;  %2080 = vmatprep.mubr.f32.mxu1 %v11006_v31  ;;  %7987 = vmatprep.subr.bf16.mxu0 %v7986_v2  ;;  %v1978_v38 = vrot.slane %v10997_v18, 1  ;;  %v7666_v62 = vpack.c.bf16 %v1743_v42, %v1735_v10  ;;  %v1511_v2 = vld [vmem:[#allocation10 + $0x220] sm:$0xff]  ;;  %v1759_v5 = vld [vmem:[#allocation10 + $0x9d8] sm:$0xff]  ;;  %v1536_v22 = vld [vmem:[#allocation10 + $0x2e8] sm:$0xff] }
 0x2f5   : > { %v1418_v43 = vadd.f32 %v9649_v30, %v10975_v23  ;;  %v1360_v44 = vpop.f32.mrb[8].mxu1  ;;  %2081 = vmatmul.mubr.f32.vlgmr.msra.gmra.mrb[16].mxu1 %v11011_v36  ;;  %2520 = vmatprep.mubr.f32.mxu0 %v11002_v29  ;;  %v1980_v45 = vrot.slane %v11002_v29, 1  ;;  %v1750_v30 = vld [vmem:[#allocation10 + $0x990] sm:$0xff]  ;;  %v7670_v35 = vpack.c.bf16 %v1759_v5, %v1751_v0 }
 0x2f6   : > { %v11018_v49 = vmax.f32 %v1417_v9, 0.0  ;;  %v9650_v51 = vadd.f32 %v1360_v44, %v10946_v11  ;;  %7661 = vmatpush1.bf16.msra.mxu1 %v7660_v48  ;;  %v1362_v53 = vpop.f32.mrb[9].mxu1  ;;  %2521 = vmatmul.mubr.f32.gmra.mrb[28].mxu0 %v10997_v18  ;;  %v1519_v11 = vld [vmem:[#allocation10 + $0x260] sm:$0xff]  ;;  %v11033_v4 = vsel %vm465_vm3, %v1973_v1, %v1978_v38  ;;  %v1758_v9 = vld [vmem:[#allocation10 + $0x9d0] sm:$0xff]  ;;  %v1767_v44 = vld [vmem:[#allocation10 + $0xa18] sm:$0xff] }
 0x2f7   : > { %v11022_v59 = vmax.f32 %v1418_v43, 0.0  ;;  %v9651_v60 = vadd.f32 %v1362_v53, %v10948_v13  ;;  %7989 = vmatpush1.bf16.msra.mxu0 %v7988_v27  ;;  %v11026_v24 = vsel %vm465_vm3, %v1976_v57, %v1980_v45  ;;  %7663 = vmatprep.subr.bf16.mxu1 %v7662_v32  ;;  %v7668_v27 = vpack.c.bf16 %v1742_v63, %v1734_v56  ;;  %v1544_v53 = vld [vmem:[#allocation10 + $0x328] sm:$0xff]  ;;  %v1774_v0 = vld [vmem:[#allocation10 + $0xa50] sm:$0xff] }
 0x2f8   : > { %v1419_v3 = vadd.f32 %v9650_v51, %v10970_v21  ;;  %2086 = vmatprep.mubr.f32.mxu1 %v11026_v24  ;;  %7991 = vmatprep.subr.bf16.mxu0 %v7990_v39  ;;  %v1982_v13 = vrot.slane %v11018_v49, 1  ;;  %v7996_v28 = vpack.c.bf16 %v1519_v11, %v1511_v2  ;;  %v1527_v39 = vld [vmem:[#allocation10 + $0x2a0] sm:$0xff]  ;;  %v7998_v43 = vpack.c.bf16 %v1536_v22, %v1528_v6 }
 0x2f9   : > { %v1420_v57 = vadd.f32 %v9651_v60, %v10975_v23  ;;  %v1366_v48 = vpop.f32.mrb[10].mxu1  ;;  %2087 = vmatmul.mubr.f32.gmra.mrb[18].mxu1 %v11033_v4  ;;  %2526 = vmatprep.mubr.f32.mxu0 %v11022_v59  ;;  %v1984_v8 = vrot.slane %v11022_v59, 1  ;;  %v7672_v60 = vpack.c.bf16 %v1758_v9, %v1750_v30  ;;  %v1551_v6 = vld [vmem:[#allocation10 + $0x360] sm:$0xff]  ;;  %v1568_v9 = vld [vmem:[#allocation10 + $0x3e8] sm:$0xff] }
 0x2fa   : > { %v11040_v25 = vmax.f32 %v1419_v3, 0.0  ;;  %v9652_v1 = vadd.f32 %v1366_v48, %v10950_v14  ;;  %7665 = vmatpush1.bf16.msra.mxu1 %v7664_v54  ;;  %v1368_v26 = vpop.f32.mrb[11].mxu1  ;;  %2527 = vmatmul.mubr.f32.gmra.mrb[30].mxu0 %v11018_v49  ;;  %v1535_v14 = vld [vmem:[#allocation10 + $0x2e0] sm:$0xff]  ;;  %v11055_v42 = vsel %vm465_vm3, %v1978_v38, %v1982_v13  ;;  %v1552_v54 = vld [vmem:[#allocation10 + $0x368] sm:$0xff] }
 0x2fb   : > { %v11044_v32 = vmax.f32 %v1420_v57, 0.0  ;;  %v9653_v33 = vadd.f32 %v1368_v26, %v10955_v17  ;;  %7993 = vmatpush1.bf16.msra.mxu0 %v7992_v55  ;;  %v11048_v34 = vsel %vm465_vm3, %v1980_v45, %v1984_v8  ;;  %7667 = vmatprep.subr.bf16.mxu1 %v7666_v62  ;;  %v1775_v45 = vld [vmem:[#allocation10 + $0xa58] sm:$0xff]  ;;  %v8000_v62 = vpack.c.bf16 %v1535_v14, %v1527_v39 }
 0x2fc   : > { %v1421_v10 = vadd.f32 %v9652_v1, %v10970_v21  ;;  %2092 = vmatprep.mubr.f32.mxu1 %v11048_v34  ;;  %7995 = vmatprep.subr.bf16.mxu0 %v7994_v50  ;;  %v1986_v17 = vrot.slane %v11040_v25, 1  ;;  %v7674_v3 = vpack.c.bf16 %v1775_v45, %v1767_v44  ;;  %v1766_v50 = vld [vmem:[#allocation10 + $0xa10] sm:$0xff]  ;;  %v8002_v48 = vpack.c.bf16 %v1552_v54, %v1544_v53  ;;  %v1783_v26 = vld [vmem:[#allocation10 + $0xa98] sm:$0xff]  ;;  %v1567_v54 = vld [vmem:[#allocation10 + $0x3e0] sm:$0xff] }
 0x2fd   : > { %v1422_v46 = vadd.f32 %v9653_v33, %v10975_v23  ;;  %v1372_v47 = vpop.f32.mrb[12].mxu1  ;;  %2093 = vmatmul.mubr.f32.gmra.mrb[20].mxu1 %v11055_v42  ;;  %2532 = vmatprep.mubr.f32.mxu0 %v11044_v32  ;;  %v1988_v51 = vrot.slane %v11044_v32, 1  ;;  %v7676_v33 = vpack.c.bf16 %v1774_v0, %v1766_v50  ;;  %v1782_v44 = vld [vmem:[#allocation10 + $0xa90] sm:$0xff] }
 0x2fe   : > { %v11062_v55 = vmax.f32 %v1421_v10, 0.0  ;;  %v9654_v38 = vadd.f32 %v1372_v47, %v10957_v15  ;;  %7669 = vmatpush1.bf16.msra.mxu1 %v7668_v27  ;;  %v1374_v56 = vpop.f32.mrb[13].mxu1  ;;  %2533 = vmatmul.mubr.f32.gmra.mrb[32].mxu0 %v11040_v25  ;;  %v11075_v5 = vsel %vm465_vm3, %v1982_v13, %v1986_v17  ;;  %v1791_v27 = vld [vmem:[#allocation10 + $0xad8] sm:$0xff]  ;;  %v1790_v45 = vld [vmem:[#allocation10 + $0xad0] sm:$0xff] }
 0x2ff   : > { %v11066_v63 = vmax.f32 %v1422_v46, 0.0  ;;  %v9655_v2 = vadd.f32 %v1374_v56, %v10962_v61  ;;  %7997 = vmatpush1.bf16.msra.mxu0 %v7996_v28  ;;  %v11070_v11 = vsel %vm465_vm3, %v1984_v8, %v1988_v51  ;;  %7671 = vmatprep.subr.bf16.mxu1 %v7670_v35  ;;  %v1543_v61 = vld [vmem:[#allocation10 + $0x320] sm:$0xff]  ;;  %v1560_v35 = vld [vmem:[#allocation10 + $0x3a8] sm:$0xff]  ;;  %v7678_v53 = vpack.c.bf16 %v1791_v27, %v1783_v26 }
 0x300   : > { %v1423_v15 = vadd.f32 %v9654_v38, %v10970_v21  ;;  %2098 = vmatprep.mubr.f32.mxu1 %v11070_v11  ;;  %7999 = vmatprep.subr.bf16.mxu0 %v7998_v43  ;;  %v1990_v57 = vrot.slane %v11062_v55, 1  ;;  %v8004_v43 = vpack.c.bf16 %v1551_v6, %v1543_v61  ;;  %v1799_v38 = vld [vmem:[#allocation10 + $0xb18] sm:$0xff]  ;;  %v1806_v61 = vld [vmem:[#allocation10 + $0xb50] sm:$0xff]  ;;  %v1575_v6 = vld [vmem:[#allocation10 + $0x420] sm:$0xff] }
 0x301   : > { %v1424_v8 = vadd.f32 %v9655_v2, %v10975_v23  ;;  %v1378_v22 = vpop.f32.mrb[14].mxu1  ;;  %2099 = vmatmul.mubr.f32.gmra.mrb[22].mxu1 %v11075_v5  ;;  %2538 = vmatprep.mubr.f32.mxu0 %v11066_v63  ;;  %v1992_v1 = vrot.slane %v11066_v63, 1  ;;  %v1584_v2 = vld [vmem:[#allocation10 + $0x468] sm:$0xff]  ;;  %v1583_v27 = vld [vmem:[#allocation10 + $0x460] sm:$0xff] }
 0x302   : > { %v11082_v28 = vmax.f32 %v1423_v15, 0.0  ;;  %v9656_v13 = vadd.f32 %v1378_v22, %v10967_v19  ;;  %7673 = vmatpush1.bf16.msra.mxu1 %v7672_v60  ;;  %v1380_v30 = vpop.f32.mrb[15].mxu1  ;;  %2539 = vmatmul.mubr.f32.gmra.mrb[34].mxu0 %v11062_v55  ;;  %v1559_v19 = vld [vmem:[#allocation10 + $0x3a0] sm:$0xff]  ;;  %v11095_v47 = vsel %vm465_vm3, %v1986_v17, %v1990_v57  ;;  %v8006_v60 = vpack.c.bf16 %v1568_v9, %v1560_v35  ;;  %v1600_v35 = vld [vmem:[#allocation10 + $0x4e8] sm:$0xff] }
 0x303   : > { %v11086_v39 = vmax.f32 %v1424_v8, 0.0  ;;  %v9657_v14 = vadd.f32 %v1380_v30, %v10972_v20  ;;  %8001 = vmatpush1.bf16.msra.mxu0 %v8000_v62  ;;  %v11090_v10 = vsel %vm465_vm3, %v1988_v51, %v1992_v1  ;;  %7675 = vmatprep.subr.bf16.mxu1 %v7674_v3  ;;  %v1807_v51 = vld [vmem:[#allocation10 + $0xb58] sm:$0xff]  ;;  %v1576_v62 = vld [vmem:[#allocation10 + $0x428] sm:$0xff]  ;;  %v7680_v3 = vpack.c.bf16 %v1790_v45, %v1782_v44  ;;  %v1814_v44 = vld [vmem:[#allocation10 + $0xb90] sm:$0xff] }
 0x304   : > { %11929 = vst [vmem:[#allocation29_spill] sm:$0xff] %v11082_v28  ;;  %v1425_v46 = vadd.f32 %v9656_v13, %v10970_v21  ;;  %2104 = vmatprep.mubr.f32.mxu1 %v11090_v10  ;;  %8003 = vmatprep.subr.bf16.mxu0 %v8002_v48  ;;  %v1994_v20 = vrot.slane %v11082_v28, 1  ;;  %v8008_v0 = vpack.c.bf16 %v1567_v54, %v1559_v19  ;;  %v1798_v48 = vld [vmem:[#allocation10 + $0xb10] sm:$0xff]  ;;  %v1815_v13 = vld [vmem:[#allocation10 + $0xb98] sm:$0xff]  ;;  %v1591_v19 = vld [vmem:[#allocation10 + $0x4a0] sm:$0xff] }
 0x305   : > { %v1426_v56 = vadd.f32 %v9657_v14, %v10975_v23  ;;  %2105 = vmatmul.mubr.f32.gmra.mrb[24].mxu1 %v11095_v47  ;;  %2544 = vmatprep.mubr.f32.mxu0 %v11086_v39  ;;  %v1996_v21 = vrot.slane %v11086_v39, 1  ;;  %v7682_v15 = vpack.c.bf16 %v1807_v51, %v1799_v38  ;;  %v8010_v26 = vpack.c.bf16 %v1584_v2, %v1576_v62  ;;  %v1823_v30 = vld [vmem:[#allocation10 + $0xbd8] sm:$0xff]  ;;  %v1822_v45 = vld [vmem:[#allocation10 + $0xbd0] sm:$0xff]  ;;  %v1599_v54 = vld [vmem:[#allocation10 + $0x4e0] sm:$0xff] }
 0x306   : > { %v11102_v17 = vmax.f32 %v1425_v46, 0.0  ;;  %7677 = vmatpush1.bf16.msra.mxu1 %v7676_v33  ;;  %2545 = vmatmul.mubr.f32.gmra.mrb[36].mxu0 %v11082_v28  ;;  %v11113_v8 = vsel %vm465_vm3, %v1990_v57, %v1994_v20  ;;  %v1592_v33 = vld [vmem:[#allocation10 + $0x4a8] sm:$0xff]  ;;  %v7684_v9 = vpack.c.bf16 %v1806_v61, %v1798_v48  ;;  %v8012_v57 = vpack.c.bf16 %v1583_v27, %v1575_v6  ;;  %v1831_v38 = vld [vmem:[#allocation10 + $0xc18] sm:$0xff]  ;;  %v1615_v48 = vld [vmem:[#allocation10 + $0x560] sm:$0xff] }
 0x307   : > { %v11105_v50 = vmax.f32 %v1426_v56, 0.0  ;;  %8005 = vmatpush1.bf16.msra.mxu0 %v8004_v43  ;;  %2722 = vmatprep.mubr.f32.mxu0 %v10979_v37  ;;  %v11109_v23 = vsel %vm465_vm3, %v1992_v1, %v1996_v21  ;;  %v7686_v43 = vpack.c.bf16 %v1823_v30, %v1815_v13  ;;  %v1839_v51 = vld [vmem:[#allocation10 + $0xc58] sm:$0xff]  ;;  %v1608_v56 = vld [vmem:[#allocation10 + $0x528] sm:$0xff]  ;;  %v8016_v62 = vpack.c.bf16 %v1599_v54, %v1591_v19 }
 0x308   : > { %11930 = vst [vmem:[#allocation30_spill] sm:$0xff] %v11102_v17  ;;  %2110 = vmatprep.mubr.f32.mxu1 %v11109_v23  ;;  %7679 = vmatprep.subr.bf16.mxu1 %v7678_v53  ;;  %v1998_v22 = vrot.slane %v11102_v17, 1  ;;  %v8014_v53 = vpack.c.bf16 %v1600_v35, %v1592_v33  ;;  %v7690_v2 = vpack.c.bf16 %v1839_v51, %v1831_v38  ;;  %v1847_v61 = vld [vmem:[#allocation10 + $0xc98] sm:$0xff]  ;;  %v1854_v33 = vld [vmem:[#allocation10 + $0xcd0] sm:$0xff]  ;;  %v1623_v35 = vld [vmem:[#allocation10 + $0x5a0] sm:$0xff] }
 0x309   : > { %11931 = vst [vmem:[#allocation31_spill] sm:$0xff] %v11105_v50  ;;  %2111 = vmatmul.mubr.f32.gmra.mrb[26].mxu1 %v11113_v8  ;;  %8007 = vmatprep.subr.bf16.mxu0 %v8006_v60  ;;  %v2000_v1 = vrot.slane %v11105_v50, 1  ;;  %v7688_v60 = vpack.c.bf16 %v1822_v45, %v1814_v44  ;;  %v1855_v6 = vld [vmem:[#allocation10 + $0xcd8] sm:$0xff]  ;;  %v1640_v45 = vld [vmem:[#allocation10 + $0x628] sm:$0xff]  ;;  %v1862_v51 = vld [vmem:[#allocation10 + $0xd10] sm:$0xff] }
 0x30a   : > { %7681 = vmatpush1.bf16.msra.mxu1 %v7680_v3  ;;  %v11123_v46 = vsel %vm465_vm3, %v1994_v20, %v1998_v22  ;;  %v1830_v3 = vld [vmem:[#allocation10 + $0xc10] sm:$0xff]  ;;  %v1624_v22 = vld [vmem:[#allocation10 + $0x5a8] sm:$0xff]  ;;  %v7694_v30 = vpack.c.bf16 %v1855_v6, %v1847_v61  ;;  %v1871_v44 = vld [vmem:[#allocation10 + $0xd58] sm:$0xff] }
 0x30b   : > { %8009 = vmatpush1.bf16.msra.mxu0 %v8008_v0  ;;  %v11119_v14 = vsel %vm465_vm3, %v1996_v21, %v2000_v1  ;;  %7683 = vmatprep.subr.bf16.mxu1 %v7682_v15  ;;  %v1616_v21 = vld [vmem:[#allocation10 + $0x568] sm:$0xff]  ;;  %v1838_v20 = vld [vmem:[#allocation10 + $0xc50] sm:$0xff]  ;;  %v1607_v0 = vld [vmem:[#allocation10 + $0x520] sm:$0xff] }
 0x30c   : > { %2116 = vmatprep.mubr.f32.mxu1 %v11119_v14  ;;  %8011 = vmatprep.subr.bf16.mxu0 %v8010_v26  ;;  %v8018_v15 = vpack.c.bf16 %v1616_v21, %v1608_v56  ;;  %v1632_v26 = vld [vmem:[#allocation10 + $0x5e8] sm:$0xff]  ;;  %v7692_v27 = vpack.c.bf16 %v1838_v20, %v1830_v3  ;;  %v8020_v13 = vpack.c.bf16 %v1615_v48, %v1607_v0  ;;  %v1846_v1 = vld [vmem:[#allocation10 + $0xc90] sm:$0xff]  ;;  %v1639_v21 = vld [vmem:[#allocation10 + $0x620] sm:$0xff] }
 0x30d   : > { %2117 = vmatmul.mubr.f32.gmra.mrb[28].mxu1 %v11123_v46  ;;  %v1648_v19 = vld [vmem:[#allocation10 + $0x668] sm:$0xff]  ;;  %v1870_v56 = vld [vmem:[#allocation10 + $0xd50] sm:$0xff]  ;;  %v1887_v3 = vld [vmem:[#allocation10 + $0xdd8] sm:$0xff] }
 0x30e   : > { %7685 = vmatpush1.bf16.msra.mxu1 %v7684_v9  ;;  %2187 = vmatprep.mubr.f32.mxu1 %v11006_v31  ;;  %v8022_v9 = vpack.c.bf16 %v1632_v26, %v1624_v22  ;;  %v1656_v20 = vld [vmem:[#allocation10 + $0x6a8] sm:$0xff]  ;;  %v1878_v6 = vld [vmem:[#allocation10 + $0xd90] sm:$0xff]  ;;  %v1655_v26 = vld [vmem:[#allocation10 + $0x6a0] sm:$0xff] }
 0x30f   : > { %8013 = vmatpush1.bf16.msra.mxu0 %v8012_v57  ;;  %7687 = vmatprep.subr.bf16.mxu1 %v7686_v43  ;;  %v1631_v57 = vld [vmem:[#allocation10 + $0x5e0] sm:$0xff]  ;;  %v1863_v43 = vld [vmem:[#allocation10 + $0xd18] sm:$0xff]  ;;  %v1664_v0 = vld [vmem:[#allocation10 + $0x6e8] sm:$0xff] }
 0x310   : > { %8015 = vmatprep.subr.bf16.mxu0 %v8014_v53  ;;  %v7696_v53 = vpack.c.bf16 %v1854_v33, %v1846_v1  ;;  %v8024_v54 = vpack.c.bf16 %v1631_v57, %v1623_v35  ;;  %v7698_v38 = vpack.c.bf16 %v1871_v44, %v1863_v43  ;;  %v1886_v22 = vld [vmem:[#allocation10 + $0xdd0] sm:$0xff]  ;;  %v1903_v1 = vld [vmem:[#allocation10 + $0xe58] sm:$0xff]  ;;  %v1672_v33 = vld [vmem:[#allocation10 + $0x728] sm:$0xff] }
 0x311   : > { %v1680_v35 = vld [vmem:[#allocation10 + $0x768] sm:$0xff]  ;;  %v1894_v44 = vld [vmem:[#allocation10 + $0xe10] sm:$0xff] }
 0x312   : > { %7689 = vmatpush1.bf16.msra.mxu1 %v7688_v60  ;;  %v8026_v60 = vpack.c.bf16 %v1648_v19, %v1640_v45  ;;  %v1902_v45 = vld [vmem:[#allocation10 + $0xe50] sm:$0xff]  ;;  %v1671_v19 = vld [vmem:[#allocation10 + $0x720] sm:$0xff] }
 0x313   : > { %8017 = vmatpush1.bf16.msra.mxu0 %v8016_v62  ;;  %7691 = vmatprep.subr.bf16.mxu1 %v7690_v2  ;;  %v1647_v62 = vld [vmem:[#allocation10 + $0x660] sm:$0xff]  ;;  %v1879_v2 = vld [vmem:[#allocation10 + $0xd98] sm:$0xff] }
 0x314   : > { %8019 = vmatprep.subr.bf16.mxu0 %v8018_v15  ;;  %v7700_v15 = vpack.c.bf16 %v1870_v56, %v1862_v51  ;;  %v8028_v48 = vpack.c.bf16 %v1647_v62, %v1639_v21  ;;  %v7702_v61 = vpack.c.bf16 %v1887_v3, %v1879_v2  ;;  %v1919_v51 = vld [vmem:[#allocation10 + $0xed8] sm:$0xff]  ;;  %v1688_v56 = vld [vmem:[#allocation10 + $0x7a8] sm:$0xff]  ;;  %v1910_v3 = vld [vmem:[#allocation10 + $0xe90] sm:$0xff] }
 0x315   : > { %v1696_v21 = vld [vmem:[#allocation10 + $0x7e8] sm:$0xff] }
 0x316   : > { %7693 = vmatpush1.bf16.msra.mxu1 %v7692_v27  ;;  %v8030_v27 = vpack.c.bf16 %v1664_v0, %v1656_v20  ;;  %v1918_v20 = vld [vmem:[#allocation10 + $0xed0] sm:$0xff]  ;;  %v1687_v0 = vld [vmem:[#allocation10 + $0x7a0] sm:$0xff] }
 0x317   : > { %8021 = vmatpush1.bf16.msra.mxu0 %v8020_v13  ;;  %7695 = vmatprep.subr.bf16.mxu1 %v7694_v30  ;;  %v1663_v13 = vld [vmem:[#allocation10 + $0x6e0] sm:$0xff]  ;;  %v1895_v30 = vld [vmem:[#allocation10 + $0xe18] sm:$0xff] }
 0x318   : > { %8023 = vmatprep.subr.bf16.mxu0 %v8022_v9  ;;  %v7704_v9 = vpack.c.bf16 %v1886_v22, %v1878_v6  ;;  %v8032_v57 = vpack.c.bf16 %v1663_v13, %v1655_v26  ;;  %v7706_v43 = vpack.c.bf16 %v1903_v1, %v1895_v30  ;;  %v1935_v6 = vld [vmem:[#allocation10 + $0xf58] sm:$0xff]  ;;  %v2874_v22 = vld [vmem:[#allocation10 + $0x1008] sm:$0xff]  ;;  %v1926_v1 = vld [vmem:[#allocation10 + $0xf10] sm:$0xff] }
 0x319   : > { %v2882_v26 = vld [vmem:[#allocation10 + $0x1048] sm:$0xff] }
 0x31a   : > { %7697 = vmatpush1.bf16.msra.mxu1 %v7696_v53  ;;  %v8034_v53 = vpack.c.bf16 %v1680_v35, %v1672_v33  ;;  %v1934_v33 = vld [vmem:[#allocation10 + $0xf50] sm:$0xff]  ;;  %v8106_v35 = vpack.c.bf16 %v2882_v26, %v2874_v22 }
 0x31b   : > { %8025 = vmatpush1.bf16.msra.mxu0 %v8024_v54  ;;  %7699 = vmatprep.subr.bf16.mxu1 %v7698_v38  ;;  %v1679_v54 = vld [vmem:[#allocation10 + $0x760] sm:$0xff]  ;;  %v1911_v38 = vld [vmem:[#allocation10 + $0xe98] sm:$0xff] }
 0x31c   : > { %8027 = vmatprep.subr.bf16.mxu0 %v8026_v60  ;;  %v7708_v60 = vpack.c.bf16 %v1902_v45, %v1894_v44  ;;  %v8036_v62 = vpack.c.bf16 %v1679_v54, %v1671_v19  ;;  %v7710_v2 = vpack.c.bf16 %v1919_v51, %v1911_v38  ;;  %v1951_v44 = vld [vmem:[#allocation10 + $0xfd8] sm:$0xff]  ;;  %v2890_v45 = vld [vmem:[#allocation10 + $0x1088] sm:$0xff]  ;;  %v1942_v38 = vld [vmem:[#allocation10 + $0xf90] sm:$0xff] }
 0x31d   : > { %v2898_v19 = vld [vmem:[#allocation10 + $0x10c8] sm:$0xff]  ;;  %v1950_v51 = vld [vmem:[#allocation10 + $0xfd0] sm:$0xff] }
 0x31e   : > { %7701 = vmatpush1.bf16.msra.mxu1 %v7700_v15  ;;  %v8038_v15 = vpack.c.bf16 %v1696_v21, %v1688_v56  ;;  %v8110_v21 = vpack.c.bf16 %v2898_v19, %v2890_v45  ;;  %v1737_v19 = vld [vmem:[#allocation10 + $0x928] sm:$0xff] }
 0x31f   : > { %8029 = vmatpush1.bf16.msra.mxu0 %v8028_v48  ;;  %7703 = vmatprep.subr.bf16.mxu1 %v7702_v61  ;;  %v1695_v48 = vld [vmem:[#allocation10 + $0x7e0] sm:$0xff]  ;;  %v1927_v61 = vld [vmem:[#allocation10 + $0xf18] sm:$0xff] }
 0x320   : > { %8031 = vmatprep.subr.bf16.mxu0 %v8030_v27  ;;  %v7712_v27 = vpack.c.bf16 %v1918_v20, %v1910_v3  ;;  %v8040_v13 = vpack.c.bf16 %v1695_v48, %v1687_v0  ;;  %v7714_v30 = vpack.c.bf16 %v1935_v6, %v1927_v61  ;;  %v1713_v3 = vld [vmem:[#allocation10 + $0x868] sm:$0xff]  ;;  %v1704_v61 = vld [vmem:[#allocation10 + $0x820] sm:$0xff] }
 0x321   : > { %v2906_v20 = vld [vmem:[#allocation10 + $0x1108] sm:$0xff]  ;;  %v1712_v6 = vld [vmem:[#allocation10 + $0x860] sm:$0xff] }
 0x322   : > { %7705 = vmatpush1.bf16.msra.mxu1 %v7704_v9  ;;  %v2873_v9 = vld [vmem:[#allocation10 + $0x1000] sm:$0xff]  ;;  %v2914_v0 = vld [vmem:[#allocation10 + $0x1148] sm:$0xff] }
 0x323   : > { %8033 = vmatpush1.bf16.msra.mxu0 %v8032_v57  ;;  %7707 = vmatprep.subr.bf16.mxu1 %v7706_v43  ;;  %v2881_v57 = vld [vmem:[#allocation10 + $0x1040] sm:$0xff]  ;;  %v1943_v43 = vld [vmem:[#allocation10 + $0xf98] sm:$0xff]  ;;  %v8114_v26 = vpack.c.bf16 %v2914_v0, %v2906_v20  ;;  %v1753_v0 = vld [vmem:[#allocation10 + $0x9a8] sm:$0xff] }
 0x324   : > { %8035 = vmatprep.subr.bf16.mxu0 %v8034_v53  ;;  %v7716_v53 = vpack.c.bf16 %v1934_v33, %v1926_v1  ;;  %v8108_v54 = vpack.c.bf16 %v2881_v57, %v2873_v9  ;;  %v7718_v56 = vpack.c.bf16 %v1951_v44, %v1943_v43  ;;  %v2913_v1 = vld [vmem:[#allocation10 + $0x1140] sm:$0xff]  ;;  %v7724_v33 = vpack.c.bf16 %v1712_v6, %v1704_v61  ;;  %v2930_v9 = vld [vmem:[#allocation10 + $0x11c8] sm:$0xff] }
 0x325   : > { %v1720_v43 = vld [vmem:[#allocation10 + $0x8a0] sm:$0xff] }
 0x326   : > { %7709 = vmatpush1.bf16.msra.mxu1 %v7708_v60  ;;  %v2889_v60 = vld [vmem:[#allocation10 + $0x1080] sm:$0xff] }
 0x327   : > { %8037 = vmatpush1.bf16.msra.mxu0 %v8036_v62  ;;  %7711 = vmatprep.subr.bf16.mxu1 %v7710_v2  ;;  %v2897_v62 = vld [vmem:[#allocation10 + $0x10c0] sm:$0xff]  ;;  %v1705_v2 = vld [vmem:[#allocation10 + $0x828] sm:$0xff] }
 0x328   : > { %8039 = vmatprep.subr.bf16.mxu0 %v8038_v15  ;;  %v7720_v15 = vpack.c.bf16 %v1950_v51, %v1942_v38  ;;  %v8112_v48 = vpack.c.bf16 %v2897_v62, %v2889_v60  ;;  %v7722_v22 = vpack.c.bf16 %v1713_v3, %v1705_v2  ;;  %v1728_v44 = vld [vmem:[#allocation10 + $0x8e0] sm:$0xff]  ;;  %v2946_v60 = vld [vmem:[#allocation10 + $0x1248] sm:$0xff] }
 0x329   : > { %v2921_v38 = vld [vmem:[#allocation10 + $0x1180] sm:$0xff] }
 0x32a   : > { %7713 = vmatpush1.bf16.msra.mxu1 %v7712_v27  ;;  %v1721_v27 = vld [vmem:[#allocation10 + $0x8a8] sm:$0xff]  ;;  %v2929_v51 = vld [vmem:[#allocation10 + $0x11c0] sm:$0xff] }
 0x32b   : > { %8041 = vmatpush1.bf16.msra.mxu0 %v8040_v13  ;;  %7715 = vmatprep.subr.bf16.mxu1 %v7714_v30  ;;  %v1729_v13 = vld [vmem:[#allocation10 + $0x8e8] sm:$0xff]  ;;  %v2905_v30 = vld [vmem:[#allocation10 + $0x1100] sm:$0xff]  ;;  %v8120_v20 = vpack.c.bf16 %v2929_v51, %v2921_v38 }
 0x32c   : > { %8107 = vmatprep.subr.bf16.mxu0 %v8106_v35  ;;  %v2922_v35 = vld [vmem:[#allocation10 + $0x1188] sm:$0xff]  ;;  %v7726_v57 = vpack.c.bf16 %v1729_v13, %v1721_v27  ;;  %v8116_v45 = vpack.c.bf16 %v2913_v1, %v2905_v30  ;;  %v1736_v2 = vld [vmem:[#allocation10 + $0x920] sm:$0xff] }
 0x32d   : > { %v1744_v3 = vld [vmem:[#allocation10 + $0x960] sm:$0xff]  ;;  %v2962_v27 = vld [vmem:[#allocation10 + $0x12c8] sm:$0xff] }
 0x32e   : > { %7717 = vmatpush1.bf16.msra.mxu1 %v7716_v53  ;;  %2723 = vmatmul.mubr.f32.vlgmr.msra.gmra.mrb[38].mxu0 %v10981_v40  ;;  %v1745_v53 = vld [vmem:[#allocation10 + $0x968] sm:$0xff]  ;;  %v2937_v61 = vld [vmem:[#allocation10 + $0x1200] sm:$0xff] }
 0x32f   : > { %2728 = vmatprep.mubr.f32.mxu0 %v10989_v58  ;;  %8109 = vmatpush1.bf16.msra.mxu0 %v8108_v54  ;;  %v8118_v54 = vpack.c.bf16 %v2930_v9, %v2922_v35  ;;  %v7730_v62 = vpack.c.bf16 %v1745_v53, %v1737_v19  ;;  %v2945_v6 = vld [vmem:[#allocation10 + $0x1240] sm:$0xff]  ;;  %v1769_v35 = vld [vmem:[#allocation10 + $0xa28] sm:$0xff] }
 0x330   : > { %7719 = vmatprep.subr.bf16.mxu1 %v7718_v56  ;;  %8111 = vmatprep.subr.bf16.mxu0 %v8110_v21  ;;  %v7728_v56 = vpack.c.bf16 %v1728_v44, %v1720_v43  ;;  %v2938_v21 = vld [vmem:[#allocation10 + $0x1208] sm:$0xff]  ;;  %v1752_v30 = vld [vmem:[#allocation10 + $0x9a0] sm:$0xff] }
 0x331   : > { %v1760_v1 = vld [vmem:[#allocation10 + $0x9e0] sm:$0xff]  ;;  %v1777_v9 = vld [vmem:[#allocation10 + $0xa68] sm:$0xff] }
 0x332   : > { %7721 = vmatpush1.bf16.msra.mxu1 %v7720_v15  ;;  %2729 = vmatmul.mubr.f32.gmra.mrb[40].mxu0 %v10986_v52  ;;  %v1761_v15 = vld [vmem:[#allocation10 + $0x9e8] sm:$0xff]  ;;  %v2953_v43 = vld [vmem:[#allocation10 + $0x1280] sm:$0xff] }
 0x333   : > { %2734 = vmatprep.mubr.f32.mxu0 %v11002_v29  ;;  %8113 = vmatpush1.bf16.msra.mxu0 %v8112_v48  ;;  %v8122_v48 = vpack.c.bf16 %v2946_v60, %v2938_v21  ;;  %v7734_v13 = vpack.c.bf16 %v1761_v15, %v1753_v0  ;;  %v2961_v44 = vld [vmem:[#allocation10 + $0x12c0] sm:$0xff]  ;;  %v2970_v19 = vld [vmem:[#allocation10 + $0x1308] sm:$0xff] }
 0x334   : > { %7723 = vmatprep.subr.bf16.mxu1 %v7722_v22  ;;  %8115 = vmatprep.subr.bf16.mxu0 %v8114_v26  ;;  %v7732_v22 = vpack.c.bf16 %v1744_v3, %v1736_v2  ;;  %v2954_v26 = vld [vmem:[#allocation10 + $0x1288] sm:$0xff]  ;;  %v1768_v38 = vld [vmem:[#allocation10 + $0xa20] sm:$0xff] }
 0x335   : > { %2188 = vmatmul.mubr.f32.vlgmr.msra.gmra.mrb[30].mxu1 %v11011_v36  ;;  %v2978_v53 = vld [vmem:[#allocation10 + $0x1348] sm:$0xff]  ;;  %v1776_v51 = vld [vmem:[#allocation10 + $0xa60] sm:$0xff] }
 0x336   : > { %2193 = vmatprep.mubr.f32.mxu1 %v11026_v24  ;;  %7725 = vmatpush1.bf16.msra.mxu1 %v7724_v33  ;;  %v8124_v33 = vpack.c.bf16 %v2945_v6, %v2937_v61  ;;  %v1785_v21 = vld [vmem:[#allocation10 + $0xaa8] sm:$0xff]  ;;  %v2969_v2 = vld [vmem:[#allocation10 + $0x1300] sm:$0xff] }
 0x337   : > { %2735 = vmatmul.mubr.f32.gmra.mrb[42].mxu0 %v10997_v18  ;;  %7727 = vmatprep.subr.bf16.mxu1 %v7726_v57  ;;  %v8126_v57 = vpack.c.bf16 %v2962_v27, %v2954_v26  ;;  %v1793_v60 = vld [vmem:[#allocation10 + $0xae8] sm:$0xff]  ;;  %v2977_v3 = vld [vmem:[#allocation10 + $0x1340] sm:$0xff] }
 0x338   : > { %2740 = vmatprep.mubr.f32.mxu0 %v11022_v59  ;;  %8117 = vmatpush1.bf16.msra.mxu0 %v8116_v45  ;;  %v7736_v45 = vpack.c.bf16 %v1760_v1, %v1752_v30  ;;  %v2986_v0 = vld [vmem:[#allocation10 + $0x1388] sm:$0xff]  ;;  %v7742_v61 = vpack.c.bf16 %v1793_v60, %v1785_v21  ;;  %v1784_v6 = vld [vmem:[#allocation10 + $0xaa0] sm:$0xff]  ;;  %v8132_v26 = vpack.c.bf16 %v2977_v3, %v2969_v2  ;;  %v3132_v30 = vrot.slane %v10979_v37, 2 }
 0x339   : > { %2194 = vmatmul.mubr.f32.gmra.mrb[32].mxu1 %v11033_v4  ;;  %8119 = vmatprep.subr.bf16.mxu0 %v8118_v54  ;;  %v7738_v54 = vpack.c.bf16 %v1777_v9, %v1769_v35  ;;  %v2994_v15 = vld [vmem:[#allocation10 + $0x13c8] sm:$0xff]  ;;  %v2993_v35 = vld [vmem:[#allocation10 + $0x13c0] sm:$0xff] }
 0x33a   : > { %2199 = vmatprep.mubr.f32.mxu1 %v11048_v34  ;;  %7729 = vmatpush1.bf16.msra.mxu1 %v7728_v56  ;;  %v8128_v56 = vpack.c.bf16 %v2961_v44, %v2953_v43  ;;  %v1801_v27 = vld [vmem:[#allocation10 + $0xb28] sm:$0xff]  ;;  %v8134_v1 = vpack.c.bf16 %v2994_v15, %v2986_v0  ;;  %v3001_v21 = vld [vmem:[#allocation10 + $0x1400] sm:$0xff] }
 0x33b   : > { %2741 = vmatmul.mubr.f32.gmra.mrb[44].mxu0 %v11018_v49  ;;  %7731 = vmatprep.subr.bf16.mxu1 %v7730_v62  ;;  %v8130_v62 = vpack.c.bf16 %v2978_v53, %v2970_v19  ;;  %v3010_v43 = vld [vmem:[#allocation10 + $0x1448] sm:$0xff]  ;;  %v1800_v19 = vld [vmem:[#allocation10 + $0xb20] sm:$0xff] }
 0x33c   : > { %2746 = vmatprep.mubr.f32.mxu0 %v11044_v32  ;;  %8121 = vmatpush1.bf16.msra.mxu0 %v8120_v20  ;;  %v7740_v20 = vpack.c.bf16 %v1776_v51, %v1768_v38  ;;  %v1808_v53 = vld [vmem:[#allocation10 + $0xb60] sm:$0xff]  ;;  %v1817_v38 = vld [vmem:[#allocation10 + $0xba8] sm:$0xff] }
 0x33d   : > { %2200 = vmatmul.mubr.f32.gmra.mrb[34].mxu1 %v11055_v42  ;;  %8123 = vmatprep.subr.bf16.mxu0 %v8122_v48  ;;  %v3133_v48 = vrot.slane %v10989_v58, 2  ;;  %v1825_v51 = vld [vmem:[#allocation10 + $0xbe8] sm:$0xff]  ;;  %v3009_v60 = vld [vmem:[#allocation10 + $0x1440] sm:$0xff] }
 0x33e   : > { %2205 = vmatprep.mubr.f32.mxu1 %v11070_v11  ;;  %7733 = vmatpush1.bf16.msra.mxu1 %v7732_v22  ;;  %v1792_v22 = vld [vmem:[#allocation10 + $0xae0] sm:$0xff]  ;;  %v3018_v2 = vld [vmem:[#allocation10 + $0x1488] sm:$0xff] }
 0x33f   : > { %2747 = vmatmul.mubr.f32.gmra.mrb[46].mxu0 %v11040_v25  ;;  %7735 = vmatprep.subr.bf16.mxu1 %v7734_v13  ;;  %v1809_v13 = vld [vmem:[#allocation10 + $0xb68] sm:$0xff]  ;;  %v7744_v9 = vpack.c.bf16 %v1792_v22, %v1784_v6  ;;  %v11155_v44 = vsel %vm736_vm5, %v3132_v30, %v3133_v48  ;;  %v1816_v0 = vld [vmem:[#allocation10 + $0xba0] sm:$0xff] }
 0x340   : > { %2752 = vmatprep.mubr.f32.mxu0 %v11066_v63  ;;  %8125 = vmatpush1.bf16.msra.mxu0 %v8124_v33  ;;  %v2985_v33 = vld [vmem:[#allocation10 + $0x1380] sm:$0xff]  ;;  %11932 = vst [vmem:[#allocation32_spill] sm:$0xff] %v11155_v44  ;;  %v3026_v3 = vld [vmem:[#allocation10 + $0x14c8] sm:$0xff] }
 0x341   : > { %2206 = vmatmul.mubr.f32.gmra.mrb[36].mxu1 %v11075_v5  ;;  %8127 = vmatprep.subr.bf16.mxu0 %v8126_v57  ;;  %v3002_v57 = vld [vmem:[#allocation10 + $0x1408] sm:$0xff]  ;;  %v1824_v15 = vld [vmem:[#allocation10 + $0xbe0] sm:$0xff] }
 0x342   : > { %2211 = vmatprep.mubr.f32.mxu1 %v11090_v10  ;;  %7737 = vmatpush1.bf16.msra.mxu1 %v7736_v45  ;;  %v7746_v45 = vpack.c.bf16 %v1809_v13, %v1801_v27  ;;  %v1833_v6 = vld [vmem:[#allocation10 + $0xc28] sm:$0xff]  ;;  %v3017_v27 = vld [vmem:[#allocation10 + $0x1480] sm:$0xff]  ;;  %v7752_v30 = vpack.c.bf16 %v1824_v15, %v1816_v0 }
 0x343   : > { %2753 = vmatmul.mubr.f32.gmra.mrb[48].mxu0 %v11062_v55  ;;  %7739 = vmatprep.subr.bf16.mxu1 %v7738_v54  ;;  %v8136_v54 = vpack.c.bf16 %v2993_v35, %v2985_v33  ;;  %v1841_v22 = vld [vmem:[#allocation10 + $0xc68] sm:$0xff]  ;;  %v3025_v13 = vld [vmem:[#allocation10 + $0x14c0] sm:$0xff] }
 0x344   : > { %2758 = vmatprep.mubr.f32.mxu0 %v11086_v39  ;;  %8129 = vmatpush1.bf16.msra.mxu0 %v8128_v56  ;;  %v8138_v56 = vpack.c.bf16 %v3010_v43, %v3002_v57  ;;  %v3042_v33 = vld [vmem:[#allocation10 + $0x1548] sm:$0xff]  ;;  %v7754_v35 = vpack.c.bf16 %v1841_v22, %v1833_v6  ;;  %v1840_v57 = vld [vmem:[#allocation10 + $0xc60] sm:$0xff]  ;;  %v8144_v43 = vpack.c.bf16 %v3025_v13, %v3017_v27 }
 0x345   : > { %2212 = vmatmul.mubr.f32.gmra.mrb[38].mxu1 %v11095_v47  ;;  %8131 = vmatprep.subr.bf16.mxu0 %v8130_v62  ;;  %v7748_v62 = vpack.c.bf16 %v1808_v53, %v1800_v19  ;;  %v1857_v19 = vld [vmem:[#allocation10 + $0xce8] sm:$0xff]  ;;  %v3057_v6 = vld [vmem:[#allocation10 + $0x15c0] sm:$0xff] }
 0x346   : > { %2217 = vmatprep.mubr.f32.mxu1 %v11109_v23  ;;  %7741 = vmatpush1.bf16.msra.mxu1 %v7740_v20  ;;  %v7750_v20 = vpack.c.bf16 %v1825_v51, %v1817_v38  ;;  %v3041_v38 = vld [vmem:[#allocation10 + $0x1540] sm:$0xff]  ;;  %v1873_v0 = vld [vmem:[#allocation10 + $0xd68] sm:$0xff] }
 0x347   : > { %2759 = vmatmul.mubr.f32.gmra.mrb[50].mxu0 %v11082_v28  ;;  %7743 = vmatprep.subr.bf16.mxu1 %v7742_v61  ;;  %v8140_v61 = vpack.c.bf16 %v3009_v60, %v3001_v21  ;;  %v3058_v21 = vld [vmem:[#allocation10 + $0x15c8] sm:$0xff] }
 0x348   : > { %8133 = vmatpush1.bf16.msra.mxu0 %v8132_v26  ;;  %3237 = vmatprep.mubr.f32.mxu0 %v11155_v44  ;;  %v8142_v26 = vpack.c.bf16 %v3026_v3, %v3018_v2  ;;  %v1856_v2 = vld [vmem:[#allocation10 + $0xce0] sm:$0xff]  ;;  %v3074_v27 = vld [vmem:[#allocation10 + $0x1648] sm:$0xff] }
 0x349   : > { %2218 = vmatmul.mubr.f32.gmra.mrb[40].mxu1 %v11113_v8  ;;  %8135 = vmatprep.subr.bf16.mxu0 %v8134_v1  ;;  %v3034_v1 = vld [vmem:[#allocation10 + $0x1508] sm:$0xff] }
 0x34a   : > { %2223 = vmatprep.mubr.f32.mxu1 %v11119_v14  ;;  %7745 = vmatpush1.bf16.msra.mxu1 %v7744_v9  ;;  %v1832_v9 = vld [vmem:[#allocation10 + $0xc20] sm:$0xff]  ;;  %v8146_v53 = vpack.c.bf16 %v3042_v33, %v3034_v1 }
 0x34b   : > { %7747 = vmatprep.subr.bf16.mxu1 %v7746_v45  ;;  %v1849_v45 = vld [vmem:[#allocation10 + $0xca8] sm:$0xff]  ;;  %v7756_v51 = vpack.c.bf16 %v1840_v57, %v1832_v9  ;;  %v1872_v1 = vld [vmem:[#allocation10 + $0xd60] sm:$0xff] }
 0x34c   : > { %8137 = vmatpush1.bf16.msra.mxu0 %v8136_v54  ;;  %v3033_v54 = vld [vmem:[#allocation10 + $0x1500] sm:$0xff]  ;;  %v7758_v60 = vpack.c.bf16 %v1857_v19, %v1849_v45  ;;  %v1889_v9 = vld [vmem:[#allocation10 + $0xde8] sm:$0xff] }
 0x34d   : > { %2224 = vmatmul.mubr.f32.gmra.mrb[42].mxu1 %v11123_v46  ;;  %8139 = vmatprep.subr.bf16.mxu0 %v8138_v56  ;;  %v3050_v56 = vld [vmem:[#allocation10 + $0x1588] sm:$0xff]  ;;  %v8148_v3 = vpack.c.bf16 %v3041_v38, %v3033_v54  ;;  %v3073_v45 = vld [vmem:[#allocation10 + $0x1640] sm:$0xff] }
 0x34e   : > { %7749 = vmatpush1.bf16.msra.mxu1 %v7748_v62  ;;  %2294 = vmatprep.mubr.f32.mxu1 %v11006_v31  ;;  %v1848_v62 = vld [vmem:[#allocation10 + $0xca0] sm:$0xff]  ;;  %v8150_v15 = vpack.c.bf16 %v3058_v21, %v3050_v56  ;;  %v3090_v54 = vld [vmem:[#allocation10 + $0x16c8] sm:$0xff] }
 0x34f   : > { %7751 = vmatprep.subr.bf16.mxu1 %v7750_v20  ;;  %v1865_v20 = vld [vmem:[#allocation10 + $0xd28] sm:$0xff]  ;;  %v7760_v22 = vpack.c.bf16 %v1856_v2, %v1848_v62  ;;  %v1888_v56 = vld [vmem:[#allocation10 + $0xde0] sm:$0xff] }
 0x350   : > { %8141 = vmatpush1.bf16.msra.mxu0 %v8140_v61  ;;  %v3049_v61 = vld [vmem:[#allocation10 + $0x1580] sm:$0xff]  ;;  %v7762_v13 = vpack.c.bf16 %v1873_v0, %v1865_v20  ;;  %v1905_v62 = vld [vmem:[#allocation10 + $0xe68] sm:$0xff] }
 0x351   : > { %8143 = vmatprep.subr.bf16.mxu0 %v8142_v26  ;;  %v3066_v26 = vld [vmem:[#allocation10 + $0x1608] sm:$0xff]  ;;  %v8152_v33 = vpack.c.bf16 %v3057_v6, %v3049_v61  ;;  %v3089_v20 = vld [vmem:[#allocation10 + $0x16c0] sm:$0xff] }
 0x352   : > { %7753 = vmatpush1.bf16.msra.mxu1 %v7752_v30  ;;  %v1864_v30 = vld [vmem:[#allocation10 + $0xd20] sm:$0xff]  ;;  %v8154_v57 = vpack.c.bf16 %v3074_v27, %v3066_v26  ;;  %v3106_v61 = vld [vmem:[#allocation10 + $0x1748] sm:$0xff] }
 0x353   : > { %7755 = vmatprep.subr.bf16.mxu1 %v7754_v35  ;;  %v1881_v35 = vld [vmem:[#allocation10 + $0xda8] sm:$0xff]  ;;  %v7764_v19 = vpack.c.bf16 %v1872_v1, %v1864_v30  ;;  %v1904_v26 = vld [vmem:[#allocation10 + $0xe60] sm:$0xff] }
 0x354   : > { %8145 = vmatpush1.bf16.msra.mxu0 %v8144_v43  ;;  %v3065_v43 = vld [vmem:[#allocation10 + $0x1600] sm:$0xff]  ;;  %v7766_v38 = vpack.c.bf16 %v1889_v9, %v1881_v35  ;;  %v1921_v30 = vld [vmem:[#allocation10 + $0xee8] sm:$0xff] }
 0x355   : > { %8147 = vmatprep.subr.bf16.mxu0 %v8146_v53  ;;  %v3082_v53 = vld [vmem:[#allocation10 + $0x1688] sm:$0xff]  ;;  %v8156_v21 = vpack.c.bf16 %v3073_v45, %v3065_v43  ;;  %v3105_v35 = vld [vmem:[#allocation10 + $0x1740] sm:$0xff] }
 0x356   : > { %7757 = vmatpush1.bf16.msra.mxu1 %v7756_v51  ;;  %v1880_v51 = vld [vmem:[#allocation10 + $0xda0] sm:$0xff]  ;;  %v8158_v2 = vpack.c.bf16 %v3090_v54, %v3082_v53  ;;  %v3122_v43 = vld [vmem:[#allocation10 + $0x17c8] sm:$0xff] }
 0x357   : > { %7759 = vmatprep.subr.bf16.mxu1 %v7758_v60  ;;  %v1897_v60 = vld [vmem:[#allocation10 + $0xe28] sm:$0xff]  ;;  %v7768_v0 = vpack.c.bf16 %v1888_v56, %v1880_v51  ;;  %v1920_v53 = vld [vmem:[#allocation10 + $0xee0] sm:$0xff] }
 0x358   : > { %8149 = vmatpush1.bf16.msra.mxu0 %v8148_v3  ;;  %v3081_v3 = vld [vmem:[#allocation10 + $0x1680] sm:$0xff]  ;;  %v7770_v6 = vpack.c.bf16 %v1905_v62, %v1897_v60  ;;  %v1937_v51 = vld [vmem:[#allocation10 + $0xf68] sm:$0xff] }
 0x359   : > { %8151 = vmatprep.subr.bf16.mxu0 %v8150_v15  ;;  %v3098_v15 = vld [vmem:[#allocation10 + $0x1708] sm:$0xff]  ;;  %v8160_v27 = vpack.c.bf16 %v3089_v20, %v3081_v3  ;;  %v3121_v60 = vld [vmem:[#allocation10 + $0x17c0] sm:$0xff] }
 0x35a   : > { %7761 = vmatpush1.bf16.msra.mxu1 %v7760_v22  ;;  %v1896_v22 = vld [vmem:[#allocation10 + $0xe20] sm:$0xff]  ;;  %v8162_v1 = vpack.c.bf16 %v3106_v61, %v3098_v15  ;;  %v2886_v3 = vld [vmem:[#allocation10 + $0x1068] sm:$0xff] }
 0x35b   : > { %7763 = vmatprep.subr.bf16.mxu1 %v7762_v13  ;;  %v1913_v13 = vld [vmem:[#allocation10 + $0xea8] sm:$0xff]  ;;  %v7772_v9 = vpack.c.bf16 %v1904_v26, %v1896_v22  ;;  %v1936_v15 = vld [vmem:[#allocation10 + $0xf60] sm:$0xff] }
 0x35c   : > { %8153 = vmatpush1.bf16.msra.mxu0 %v8152_v33  ;;  %v3097_v33 = vld [vmem:[#allocation10 + $0x1700] sm:$0xff]  ;;  %v7774_v45 = vpack.c.bf16 %v1921_v30, %v1913_v13  ;;  %v1953_v22 = vld [vmem:[#allocation10 + $0xfe8] sm:$0xff] }
 0x35d   : > { %8155 = vmatprep.subr.bf16.mxu0 %v8154_v57  ;;  %v3114_v57 = vld [vmem:[#allocation10 + $0x1788] sm:$0xff]  ;;  %v8164_v54 = vpack.c.bf16 %v3105_v35, %v3097_v33  ;;  %v2885_v13 = vld [vmem:[#allocation10 + $0x1060] sm:$0xff] }
 0x35e   : > { %7765 = vmatpush1.bf16.msra.mxu1 %v7764_v19  ;;  %v1912_v19 = vld [vmem:[#allocation10 + $0xea0] sm:$0xff]  ;;  %v8166_v56 = vpack.c.bf16 %v3122_v43, %v3114_v57  ;;  %v2894_v33 = vld [vmem:[#allocation10 + $0x10a8] sm:$0xff] }
 0x35f   : > { %7767 = vmatprep.subr.bf16.mxu1 %v7766_v38  ;;  %v1929_v38 = vld [vmem:[#allocation10 + $0xf28] sm:$0xff]  ;;  %v7776_v62 = vpack.c.bf16 %v1920_v53, %v1912_v19  ;;  %v1944_v43 = vld [vmem:[#allocation10 + $0xfa0] sm:$0xff]  ;;  %v3129_v19 = vrot.slane %v10981_v40, 2 }
 0x360   : > { %8157 = vmatpush1.bf16.msra.mxu0 %v8156_v21  ;;  %v3113_v21 = vld [vmem:[#allocation10 + $0x1780] sm:$0xff]  ;;  %v7778_v20 = vpack.c.bf16 %v1937_v51, %v1929_v38  ;;  %v2902_v35 = vld [vmem:[#allocation10 + $0x10e8] sm:$0xff]  ;;  %v1715_v38 = vld [vmem:[#allocation10 + $0x878] sm:$0xff] }
 0x361   : > { %8159 = vmatprep.subr.bf16.mxu0 %v8158_v2  ;;  %v2878_v2 = vld [vmem:[#allocation10 + $0x1028] sm:$0xff]  ;;  %v8168_v61 = vpack.c.bf16 %v3121_v60, %v3113_v21  ;;  %v8238_v51 = vpack.c.bf16 %v2902_v35, %v2894_v33  ;;  %v2901_v21 = vld [vmem:[#allocation10 + $0x10e0] sm:$0xff] }
 0x362   : > { %7769 = vmatpush1.bf16.msra.mxu1 %v7768_v0  ;;  %v1928_v0 = vld [vmem:[#allocation10 + $0xf20] sm:$0xff]  ;;  %v8234_v26 = vpack.c.bf16 %v2886_v3, %v2878_v2  ;;  %v3135_v2 = vrot.slane %v10997_v18, 2  ;;  %v2910_v3 = vld [vmem:[#allocation10 + $0x1128] sm:$0xff] }
 0x363   : > { %7771 = vmatprep.subr.bf16.mxu1 %v7770_v6  ;;  %v1945_v6 = vld [vmem:[#allocation10 + $0xfa8] sm:$0xff]  ;;  %v7780_v30 = vpack.c.bf16 %v1936_v15, %v1928_v0  ;;  %v3141_v15 = vrot.slane %v11022_v59, 2  ;;  %v2909_v33 = vld [vmem:[#allocation10 + $0x1120] sm:$0xff] }
 0x364   : > { %8161 = vmatpush1.bf16.msra.mxu0 %v8160_v27  ;;  %v2877_v27 = vld [vmem:[#allocation10 + $0x1020] sm:$0xff]  ;;  %v7782_v57 = vpack.c.bf16 %v1953_v22, %v1945_v6  ;;  %v1706_v6 = vld [vmem:[#allocation10 + $0x830] sm:$0xff] }
 0x365   : > { %8163 = vmatprep.subr.bf16.mxu0 %v8162_v1  ;;  %v3130_v1 = vrot.slane %v10986_v52, 2  ;;  %v8236_v53 = vpack.c.bf16 %v2885_v13, %v2877_v27  ;;  %v1714_v22 = vld [vmem:[#allocation10 + $0x870] sm:$0xff]  ;;  %v1723_v27 = vld [vmem:[#allocation10 + $0x8b8] sm:$0xff]  ;;  %v2917_v35 = vld [vmem:[#allocation10 + $0x1160] sm:$0xff] }
 0x366   : > { %7773 = vmatpush1.bf16.msra.mxu1 %v7772_v9  ;;  %v3137_v9 = vrot.slane %v11002_v29, 2  ;;  %v1731_v13 = vld [vmem:[#allocation10 + $0x8f8] sm:$0xff] }
 0x367   : > { %7775 = vmatprep.subr.bf16.mxu1 %v7774_v45  ;;  %v1952_v45 = vld [vmem:[#allocation10 + $0xfe0] sm:$0xff]  ;;  %v11166_v60 = vsel %vm736_vm5, %v3129_v19, %v3130_v1  ;;  %v2934_v19 = vld [vmem:[#allocation10 + $0x11e8] sm:$0xff] }
 0x368   : > { %8165 = vmatpush1.bf16.msra.mxu0 %v8164_v54  ;;  %v1707_v54 = vld [vmem:[#allocation10 + $0x838] sm:$0xff]  ;;  %v11173_v0 = vsel %vm736_vm5, %v3133_v48, %v3137_v9  ;;  %v11178_v48 = vsel %vm736_vm5, %v3130_v1, %v3135_v2  ;;  %v8244_v1 = vpack.c.bf16 %v2917_v35, %v2909_v33  ;;  %v1738_v35 = vld [vmem:[#allocation10 + $0x930] sm:$0xff] }
 0x369   : > { %8167 = vmatprep.subr.bf16.mxu0 %v8166_v56  ;;  %v2893_v56 = vld [vmem:[#allocation10 + $0x10a0] sm:$0xff] }
 0x36a   : > { %7777 = vmatpush1.bf16.msra.mxu1 %v7776_v62  ;;  %v7784_v62 = vpack.c.bf16 %v1952_v45, %v1944_v43  ;;  %v3139_v43 = vrot.slane %v11018_v49, 2  ;;  %v2926_v45 = vld [vmem:[#allocation10 + $0x11a8] sm:$0xff] }
 0x36b   : > { %7779 = vmatprep.subr.bf16.mxu1 %v7778_v20  ;;  %v2918_v20 = vld [vmem:[#allocation10 + $0x1168] sm:$0xff] }
 0x36c   : > { %8169 = vmatpush1.bf16.msra.mxu0 %v8168_v61  ;;  %v7786_v61 = vpack.c.bf16 %v1715_v38, %v1707_v54  ;;  %v3145_v54 = vrot.slane %v11044_v32, 2  ;;  %v7790_v38 = vpack.c.bf16 %v1731_v13, %v1723_v27  ;;  %v2942_v27 = vld [vmem:[#allocation10 + $0x1228] sm:$0xff] }
 0x36d   : > { %8235 = vmatprep.subr.bf16.mxu0 %v8234_v26  ;;  %v8240_v26 = vpack.c.bf16 %v2901_v21, %v2893_v56  ;;  %v1730_v56 = vld [vmem:[#allocation10 + $0x8f0] sm:$0xff]  ;;  %v1739_v21 = vld [vmem:[#allocation10 + $0x938] sm:$0xff] }
 0x36e   : > { %7781 = vmatpush1.bf16.msra.mxu1 %v7780_v30  ;;  %v8242_v30 = vpack.c.bf16 %v2918_v20, %v2910_v3  ;;  %v8246_v3 = vpack.c.bf16 %v2934_v19, %v2926_v45  ;;  %v2925_v20 = vld [vmem:[#allocation10 + $0x11a0] sm:$0xff]  ;;  %v11195_v13 = vsel %vm736_vm5, %v3141_v15, %v3145_v54  ;;  %v1746_v45 = vld [vmem:[#allocation10 + $0x970] sm:$0xff]  ;;  %v1763_v19 = vld [vmem:[#allocation10 + $0x9f8] sm:$0xff] }
 0x36f   : > { %3238 = vmatmul.mubr.f32.vlgmr.msra.gmra.mrb[24].mxu0 %v11166_v60  ;;  %7783 = vmatprep.subr.bf16.mxu1 %v7782_v57  ;;  %v7788_v57 = vpack.c.bf16 %v1714_v22, %v1706_v6  ;;  %v2933_v6 = vld [vmem:[#allocation10 + $0x11e0] sm:$0xff]  ;;  %v3143_v22 = vrot.slane %v11040_v25, 2 }
 0x370   : > { %3243 = vmatprep.mubr.f32.mxu0 %v11173_v0  ;;  %8237 = vmatpush1.bf16.msra.mxu0 %v8236_v53  ;;  %v11183_v53 = vsel %vm736_vm5, %v3137_v9, %v3141_v15  ;;  %v11190_v9 = vsel %vm736_vm5, %v3135_v2, %v3139_v43  ;;  %v8248_v2 = vpack.c.bf16 %v2933_v6, %v2925_v20 }
 0x371   : > { %8239 = vmatprep.subr.bf16.mxu0 %v8238_v51  ;;  %v1722_v51 = vld [vmem:[#allocation10 + $0x8b0] sm:$0xff]  ;;  %v11202_v15 = vsel %vm736_vm5, %v3139_v43, %v3143_v22 }
 0x372   : > { %7785 = vmatpush1.bf16.msra.mxu1 %v7784_v62  ;;  %v1747_v62 = vld [vmem:[#allocation10 + $0x978] sm:$0xff] }
 0x373   : > { %3244 = vmatmul.mubr.f32.gmra.mrb[26].mxu0 %v11178_v48  ;;  %7787 = vmatprep.subr.bf16.mxu1 %v7786_v61  ;;  %v7792_v61 = vpack.c.bf16 %v1730_v56, %v1722_v51  ;;  %v7794_v33 = vpack.c.bf16 %v1747_v62, %v1739_v21  ;;  %v2941_v56 = vld [vmem:[#allocation10 + $0x1220] sm:$0xff]  ;;  %v3147_v21 = vrot.slane %v11062_v55, 2  ;;  %v2958_v62 = vld [vmem:[#allocation10 + $0x12a8] sm:$0xff] }
 0x374   : > { %3249 = vmatprep.mubr.f32.mxu0 %v11183_v53  ;;  %8241 = vmatpush1.bf16.msra.mxu0 %v8240_v26  ;;  %v2950_v26 = vld [vmem:[#allocation10 + $0x1268] sm:$0xff]  ;;  %v8252_v43 = vpack.c.bf16 %v2949_v12, %v2941_v56 }
 0x375   : > { %2295 = vmatmul.mubr.f32.vlgmr.msra.gmra.mrb[44].mxu1 %v11011_v36  ;;  %8243 = vmatprep.subr.bf16.mxu0 %v8242_v30  ;;  %v3149_v30 = vrot.slane %v11066_v63, 2  ;;  %v8250_v51 = vpack.c.bf16 %v2950_v26, %v2942_v27  ;;  %v1754_v27 = vld [vmem:[#allocation10 + $0x9b0] sm:$0xff] }
 0x376   : > { %2300 = vmatprep.mubr.f32.mxu1 %v11026_v24  ;;  %7789 = vmatpush1.bf16.msra.mxu1 %v7788_v57  ;;  %v1755_v57 = vld [vmem:[#allocation10 + $0x9b8] sm:$0xff]  ;;  %v1762_v26 = vld [vmem:[#allocation10 + $0x9f0] sm:$0xff] }
 0x377   : > { %3250 = vmatmul.mubr.f32.gmra.mrb[28].mxu0 %v11190_v9  ;;  %7791 = vmatprep.subr.bf16.mxu1 %v7790_v38  ;;  %v7796_v38 = vpack.c.bf16 %v1746_v45, %v1738_v35  ;;  %v11207_v20 = vsel %vm736_vm5, %v3145_v54, %v3149_v30  ;;  %v7798_v6 = vpack.c.bf16 %v1763_v19, %v1755_v57  ;;  %v1779_v35 = vld [vmem:[#allocation10 + $0xa78] sm:$0xff]  ;;  %v3151_v57 = vrot.slane %v11082_v28, 2  ;;  %v2974_v19 = vld [vmem:[#allocation10 + $0x1328] sm:$0xff]  ;;  %v2981_v28 = vld [vmem:[#allocation10 + $0x1360] sm:$0xff] }
 0x378   : > { %3255 = vmatprep.mubr.f32.mxu0 %v11195_v13  ;;  %8245 = vmatpush1.bf16.msra.mxu0 %v8244_v1  ;;  %v2966_v1 = vld [vmem:[#allocation10 + $0x12e8] sm:$0xff]  ;;  %v11214_v54 = vsel %vm736_vm5, %v3143_v22, %v3147_v21  ;;  %v8256_v22 = vpack.c.bf16 %v2965_v7, %v2957_v16 }
 0x379   : > { %2301 = vmatmul.mubr.f32.gmra.mrb[46].mxu1 %v11033_v4  ;;  %8247 = vmatprep.subr.bf16.mxu0 %v8246_v3  ;;  %v3153_v3 = vrot.slane %v11086_v39, 2  ;;  %v8254_v45 = vpack.c.bf16 %v2966_v1, %v2958_v62  ;;  %v1770_v62 = vld [vmem:[#allocation10 + $0xa30] sm:$0xff] }
 0x37a   : > { %2306 = vmatprep.mubr.f32.mxu1 %v11048_v34  ;;  %7793 = vmatpush1.bf16.msra.mxu1 %v7792_v61  ;;  %v1771_v61 = vld [vmem:[#allocation10 + $0xa38] sm:$0xff]  ;;  %v1778_v1 = vld [vmem:[#allocation10 + $0xa70] sm:$0xff] }
 0x37b   : > { %3256 = vmatmul.mubr.f32.gmra.mrb[30].mxu0 %v11202_v15  ;;  %7795 = vmatprep.subr.bf16.mxu1 %v7794_v33  ;;  %v7800_v33 = vpack.c.bf16 %v1762_v26, %v1754_v27  ;;  %v11219_v12 = vsel %vm736_vm5, %v3149_v30, %v3153_v3  ;;  %v7802_v56 = vpack.c.bf16 %v1779_v35, %v1771_v61  ;;  %v1795_v27 = vld [vmem:[#allocation10 + $0xaf8] sm:$0xff]  ;;  %v3155_v61 = vrot.slane %v11102_v17, 2  ;;  %v2990_v35 = vld [vmem:[#allocation10 + $0x13a8] sm:$0xff]  ;;  %v2997_v17 = vld [vmem:[#allocation10 + $0x13e0] sm:$0xff] }
 0x37c   : > { %3261 = vmatprep.mubr.f32.mxu0 %v11207_v20  ;;  %8249 = vmatpush1.bf16.msra.mxu0 %v8248_v2  ;;  %v2982_v2 = vld [vmem:[#allocation10 + $0x1368] sm:$0xff]  ;;  %v11226_v30 = vsel %vm736_vm5, %v3147_v21, %v3151_v57  ;;  %v1803_v21 = vld [vmem:[#allocation10 + $0xb38] sm:$0xff] }
 0x37d   : > { %2307 = vmatmul.mubr.f32.gmra.mrb[48].mxu1 %v11055_v42  ;;  %8251 = vmatprep.subr.bf16.mxu0 %v8250_v51  ;;  %v3157_v51 = vrot.slane %v11105_v50, 2  ;;  %v8258_v26 = vpack.c.bf16 %v2982_v2, %v2974_v19  ;;  %11933 = vst [vmem:[#allocation33_spill] sm:$0xff] %v11226_v30  ;;  %v1794_v19 = vld [vmem:[#allocation10 + $0xaf0] sm:$0xff]  ;;  %v1811_v2 = vld [vmem:[#allocation10 + $0xb78] sm:$0xff]  ;;  %v3062_v50 = vld [vmem:[#allocation10 + $0x15e8] sm:$0xff] }
 0x37e   : > { %2312 = vmatprep.mubr.f32.mxu1 %v11070_v11  ;;  %7797 = vmatpush1.bf16.msra.mxu1 %v7796_v38  ;;  %v1787_v38 = vld [vmem:[#allocation10 + $0xab8] sm:$0xff] }
 0x37f   : > { %3262 = vmatmul.mubr.f32.gmra.mrb[32].mxu0 %v11214_v54  ;;  %7799 = vmatprep.subr.bf16.mxu1 %v7798_v6  ;;  %v7804_v6 = vpack.c.bf16 %v1778_v1, %v1770_v62  ;;  %v11231_v16 = vsel %vm736_vm5, %v3153_v3, %v3157_v51  ;;  %v7806_v7 = vpack.c.bf16 %v1795_v27, %v1787_v38  ;;  %v2989_v1 = vld [vmem:[#allocation10 + $0x13a0] sm:$0xff]  ;;  %v3014_v38 = vld [vmem:[#allocation10 + $0x1468] sm:$0xff] }
 0x380   : > { %3267 = vmatprep.mubr.f32.mxu0 %v11219_v12  ;;  %8253 = vmatpush1.bf16.msra.mxu0 %v8252_v43  ;;  %v2998_v43 = vld [vmem:[#allocation10 + $0x13e8] sm:$0xff]  ;;  %11934 = vst [vmem:[#allocation34_spill] sm:$0xff] %v11231_v16  ;;  %v11237_v3 = vsel %vm736_vm5, %v3151_v57, %v3155_v61  ;;  %v8264_v27 = vpack.c.bf16 %v2997_v17, %v2989_v1  ;;  %v3013_v61 = vld [vmem:[#allocation10 + $0x1460] sm:$0xff]  ;;  %v1843_v1 = vld [vmem:[#allocation10 + $0xc78] sm:$0xff] }
 0x381   : > { %2313 = vmatmul.mubr.f32.gmra.mrb[50].mxu1 %v11075_v5  ;;  %8255 = vmatprep.subr.bf16.mxu0 %v8254_v45  ;;  %v1786_v45 = vld [vmem:[#allocation10 + $0xab0] sm:$0xff]  ;;  %v8262_v62 = vpack.c.bf16 %v2998_v43, %v2990_v35  ;;  %11935 = vst [vmem:[#allocation35_spill] sm:$0xff] %v11237_v3  ;;  %v1827_v35 = vld [vmem:[#allocation10 + $0xbf8] sm:$0xff] }
 0x382   : > { %2318 = vmatprep.mubr.f32.mxu1 %v11090_v10  ;;  %7801 = vmatpush1.bf16.msra.mxu1 %v7800_v33  ;;  %v8260_v33 = vpack.c.bf16 %v2981_v28, %v2973_v41  ;;  %v7808_v51 = vpack.c.bf16 %v1794_v19, %v1786_v45  ;;  %v7810_v41 = vpack.c.bf16 %v1811_v2, %v1803_v21  ;;  %v1802_v28 = vld [vmem:[#allocation10 + $0xb30] sm:$0xff]  ;;  %v3030_v45 = vld [vmem:[#allocation10 + $0x14e8] sm:$0xff]  ;;  %v1835_v2 = vld [vmem:[#allocation10 + $0xc38] sm:$0xff] }
 0x383   : > { %3268 = vmatmul.mubr.f32.gmra.mrb[34].mxu0 %v11226_v30  ;;  %7803 = vmatprep.subr.bf16.mxu1 %v7802_v56  ;;  %v3006_v56 = vld [vmem:[#allocation10 + $0x1428] sm:$0xff]  ;;  %v1826_v21 = vld [vmem:[#allocation10 + $0xbf0] sm:$0xff] }
 0x384   : > { %3273 = vmatprep.mubr.f32.mxu0 %v11231_v16  ;;  %8257 = vmatpush1.bf16.msra.mxu0 %v8256_v22  ;;  %v1810_v22 = vld [vmem:[#allocation10 + $0xb70] sm:$0xff]  ;;  %v8266_v57 = vpack.c.bf16 %v3014_v38, %v3006_v56  ;;  %v3021_v56 = vld [vmem:[#allocation10 + $0x14a0] sm:$0xff] }
 0x385   : > { %2319 = vmatmul.mubr.f32.gmra.mrb[52].mxu1 %v11095_v47  ;;  %8259 = vmatprep.subr.bf16.mxu0 %v8258_v26  ;;  %v1819_v26 = vld [vmem:[#allocation10 + $0xbb8] sm:$0xff]  ;;  %v7812_v43 = vpack.c.bf16 %v1810_v22, %v1802_v28  ;;  %v3029_v38 = vld [vmem:[#allocation10 + $0x14e0] sm:$0xff]  ;;  %v3038_v28 = vld [vmem:[#allocation10 + $0x1528] sm:$0xff] }
 0x386   : > { %2324 = vmatprep.mubr.f32.mxu1 %v11109_v23  ;;  %7805 = vmatpush1.bf16.msra.mxu1 %v7804_v6  ;;  %v3005_v6 = vld [vmem:[#allocation10 + $0x1420] sm:$0xff]  ;;  %v7814_v19 = vpack.c.bf16 %v1827_v35, %v1819_v26  ;;  %v3046_v22 = vld [vmem:[#allocation10 + $0x1568] sm:$0xff]  ;;  %v1834_v26 = vld [vmem:[#allocation10 + $0xc30] sm:$0xff] }
 0x387   : > { %3274 = vmatmul.mubr.f32.gmra.mrb[36].mxu0 %v11237_v3  ;;  %7807 = vmatprep.subr.bf16.mxu1 %v7806_v7  ;;  %v3022_v7 = vld [vmem:[#allocation10 + $0x14a8] sm:$0xff]  ;;  %v8268_v17 = vpack.c.bf16 %v3013_v61, %v3005_v6  ;;  %v1842_v35 = vld [vmem:[#allocation10 + $0xc70] sm:$0xff]  ;;  %v1851_v6 = vld [vmem:[#allocation10 + $0xcb8] sm:$0xff] }
 0x388   : > { %8261 = vmatpush1.bf16.msra.mxu0 %v8260_v33  ;;  %3451 = vmatprep.mubr.f32.mxu0 %v11155_v44  ;;  %v1818_v33 = vld [vmem:[#allocation10 + $0xbb0] sm:$0xff]  ;;  %v1859_v61 = vld [vmem:[#allocation10 + $0xcf8] sm:$0xff]  ;;  %v8274_v44 = vpack.c.bf16 %v3046_v22, %v3038_v28  ;;  %v3070_v28 = vld [vmem:[#allocation10 + $0x1628] sm:$0xff] }
 0x389   : > { %2325 = vmatmul.mubr.f32.gmra.mrb[54].mxu1 %v11113_v8  ;;  %8263 = vmatprep.subr.bf16.mxu0 %v8262_v62  ;;  %v8270_v62 = vpack.c.bf16 %v3030_v45, %v3022_v7  ;;  %v3045_v7 = vld [vmem:[#allocation10 + $0x1560] sm:$0xff]  ;;  %v7820_v45 = vpack.c.bf16 %v1842_v35, %v1834_v26  ;;  %v3078_v22 = vld [vmem:[#allocation10 + $0x1668] sm:$0xff]  ;;  %v1866_v26 = vld [vmem:[#allocation10 + $0xd30] sm:$0xff] }
 0x38a   : > { %2330 = vmatprep.mubr.f32.mxu1 %v11119_v14  ;;  %7809 = vmatpush1.bf16.msra.mxu1 %v7808_v51  ;;  %v7816_v51 = vpack.c.bf16 %v1826_v21, %v1818_v33  ;;  %v1850_v33 = vld [vmem:[#allocation10 + $0xcb0] sm:$0xff] }
 0x38b   : > { %7811 = vmatprep.subr.bf16.mxu1 %v7810_v41  ;;  %v7818_v41 = vpack.c.bf16 %v1843_v1, %v1835_v2  ;;  %v1858_v21 = vld [vmem:[#allocation10 + $0xcf0] sm:$0xff]  ;;  %v1867_v2 = vld [vmem:[#allocation10 + $0xd38] sm:$0xff] }
 0x38c   : > { %8265 = vmatpush1.bf16.msra.mxu0 %v8264_v27  ;;  %v8272_v27 = vpack.c.bf16 %v3029_v38, %v3021_v56  ;;  %v1875_v1 = vld [vmem:[#allocation10 + $0xd78] sm:$0xff]  ;;  %v3053_v56 = vld [vmem:[#allocation10 + $0x15a0] sm:$0xff]  ;;  %v1874_v35 = vld [vmem:[#allocation10 + $0xd70] sm:$0xff] }
 0x38d   : > { %2331 = vmatmul.mubr.f32.gmra.mrb[56].mxu1 %v11123_v46  ;;  %8267 = vmatprep.subr.bf16.mxu0 %v8266_v57  ;;  %v3037_v57 = vld [vmem:[#allocation10 + $0x1520] sm:$0xff] }
 0x38e   : > { %7813 = vmatpush1.bf16.msra.mxu1 %v7812_v43  ;;  %2401 = vmatprep.mubr.f32.mxu1 %v11006_v31  ;;  %v3054_v43 = vld [vmem:[#allocation10 + $0x15a8] sm:$0xff]  ;;  %v7822_v31 = vpack.c.bf16 %v1859_v61, %v1851_v6  ;;  %v3061_v38 = vld [vmem:[#allocation10 + $0x15e0] sm:$0xff]  ;;  %v1883_v6 = vld [vmem:[#allocation10 + $0xdb8] sm:$0xff] }
 0x38f   : > { %7815 = vmatprep.subr.bf16.mxu1 %v7814_v19  ;;  %v8276_v19 = vpack.c.bf16 %v3045_v7, %v3037_v57  ;;  %v1891_v61 = vld [vmem:[#allocation10 + $0xdf8] sm:$0xff]  ;;  %v3069_v57 = vld [vmem:[#allocation10 + $0x1620] sm:$0xff] }
 0x390   : > { %8269 = vmatpush1.bf16.msra.mxu0 %v8268_v17  ;;  %v8278_v17 = vpack.c.bf16 %v3062_v50, %v3054_v43  ;;  %v3077_v7 = vld [vmem:[#allocation10 + $0x1660] sm:$0xff]  ;;  %v7828_v50 = vpack.c.bf16 %v1874_v35, %v1866_v26  ;;  %v3094_v43 = vld [vmem:[#allocation10 + $0x16e8] sm:$0xff]  ;;  %v1898_v26 = vld [vmem:[#allocation10 + $0xe30] sm:$0xff] }
 0x391   : > { %8271 = vmatprep.subr.bf16.mxu0 %v8270_v62  ;;  %v7824_v62 = vpack.c.bf16 %v1858_v21, %v1850_v33  ;;  %v1882_v33 = vld [vmem:[#allocation10 + $0xdb0] sm:$0xff] }
 0x392   : > { %7817 = vmatpush1.bf16.msra.mxu1 %v7816_v51  ;;  %v7826_v51 = vpack.c.bf16 %v1875_v1, %v1867_v2  ;;  %v1890_v21 = vld [vmem:[#allocation10 + $0xdf0] sm:$0xff]  ;;  %v1899_v2 = vld [vmem:[#allocation10 + $0xe38] sm:$0xff] }
 0x393   : > { %7819 = vmatprep.subr.bf16.mxu1 %v7818_v41  ;;  %v8280_v41 = vpack.c.bf16 %v3061_v38, %v3053_v56  ;;  %v1907_v1 = vld [vmem:[#allocation10 + $0xe78] sm:$0xff]  ;;  %v3085_v56 = vld [vmem:[#allocation10 + $0x16a0] sm:$0xff]  ;;  %v1906_v35 = vld [vmem:[#allocation10 + $0xe70] sm:$0xff] }
 0x394   : > { %8273 = vmatpush1.bf16.msra.mxu0 %v8272_v27  ;;  %v8282_v27 = vpack.c.bf16 %v3078_v22, %v3070_v28  ;;  %v3093_v38 = vld [vmem:[#allocation10 + $0x16e0] sm:$0xff]  ;;  %v3102_v28 = vld [vmem:[#allocation10 + $0x1728] sm:$0xff] }
 0x395   : > { %8275 = vmatprep.subr.bf16.mxu0 %v8274_v44  ;;  %v3086_v44 = vld [vmem:[#allocation10 + $0x16a8] sm:$0xff] }
 0x396   : > { %7821 = vmatpush1.bf16.msra.mxu1 %v7820_v45  ;;  %v7830_v45 = vpack.c.bf16 %v1891_v61, %v1883_v6  ;;  %v3110_v22 = vld [vmem:[#allocation10 + $0x1768] sm:$0xff]  ;;  %v1915_v6 = vld [vmem:[#allocation10 + $0xeb8] sm:$0xff] }
 0x397   : > { %7823 = vmatprep.subr.bf16.mxu1 %v7822_v31  ;;  %v8284_v31 = vpack.c.bf16 %v3077_v7, %v3069_v57  ;;  %v1923_v61 = vld [vmem:[#allocation10 + $0xef8] sm:$0xff]  ;;  %v3101_v57 = vld [vmem:[#allocation10 + $0x1720] sm:$0xff] }
 0x398   : > { %8277 = vmatpush1.bf16.msra.mxu0 %v8276_v19  ;;  %v8286_v19 = vpack.c.bf16 %v3094_v43, %v3086_v44  ;;  %v3109_v7 = vld [vmem:[#allocation10 + $0x1760] sm:$0xff]  ;;  %v3118_v44 = vld [vmem:[#allocation10 + $0x17a8] sm:$0xff] }
 0x399   : > { %8279 = vmatprep.subr.bf16.mxu0 %v8278_v17  ;;  %v7832_v17 = vpack.c.bf16 %v1890_v21, %v1882_v33  ;;  %v3126_v43 = vld [vmem:[#allocation10 + $0x17e8] sm:$0xff]  ;;  %v1914_v33 = vld [vmem:[#allocation10 + $0xeb0] sm:$0xff] }
 0x39a   : > { %7825 = vmatpush1.bf16.msra.mxu1 %v7824_v62  ;;  %v7834_v62 = vpack.c.bf16 %v1907_v1, %v1899_v2  ;;  %v1922_v21 = vld [vmem:[#allocation10 + $0xef0] sm:$0xff]  ;;  %v1931_v2 = vld [vmem:[#allocation10 + $0xf38] sm:$0xff] }
 0x39b   : > { %7827 = vmatprep.subr.bf16.mxu1 %v7826_v51  ;;  %v8288_v51 = vpack.c.bf16 %v3093_v38, %v3085_v56  ;;  %v1939_v1 = vld [vmem:[#allocation10 + $0xf78] sm:$0xff]  ;;  %v3117_v56 = vld [vmem:[#allocation10 + $0x17a0] sm:$0xff] }
 0x39c   : > { %8281 = vmatpush1.bf16.msra.mxu0 %v8280_v41  ;;  %v8290_v41 = vpack.c.bf16 %v3110_v22, %v3102_v28  ;;  %v3125_v38 = vld [vmem:[#allocation10 + $0x17e0] sm:$0xff]  ;;  %v3659_v28 = vld [vmem:[#allocation10 + $0x1808] sm:$0xff] }
 0x39d   : > { %8283 = vmatprep.subr.bf16.mxu0 %v8282_v27  ;;  %v7836_v27 = vpack.c.bf16 %v1906_v35, %v1898_v26  ;;  %v3667_v22 = vld [vmem:[#allocation10 + $0x1848] sm:$0xff]  ;;  %v1930_v26 = vld [vmem:[#allocation10 + $0xf30] sm:$0xff] }
 0x39e   : > { %7829 = vmatpush1.bf16.msra.mxu1 %v7828_v50  ;;  %v7838_v50 = vpack.c.bf16 %v1923_v61, %v1915_v6  ;;  %v1938_v35 = vld [vmem:[#allocation10 + $0xf70] sm:$0xff]  ;;  %v1947_v6 = vld [vmem:[#allocation10 + $0xfb8] sm:$0xff] }
 0x39f   : > { %7831 = vmatprep.subr.bf16.mxu1 %v7830_v45  ;;  %v8292_v45 = vpack.c.bf16 %v3109_v7, %v3101_v57  ;;  %v1955_v61 = vld [vmem:[#allocation10 + $0xff8] sm:$0xff]  ;;  %v3658_v57 = vld [vmem:[#allocation10 + $0x1800] sm:$0xff] }
 0x3a0   : > { %8285 = vmatpush1.bf16.msra.mxu0 %v8284_v31  ;;  %v8294_v31 = vpack.c.bf16 %v3126_v43, %v3118_v44  ;;  %v3666_v7 = vld [vmem:[#allocation10 + $0x1840] sm:$0xff]  ;;  %v3675_v44 = vld [vmem:[#allocation10 + $0x1888] sm:$0xff] }
 0x3a1   : > { %8287 = vmatprep.subr.bf16.mxu0 %v8286_v19  ;;  %v7840_v19 = vpack.c.bf16 %v1922_v21, %v1914_v33  ;;  %v3683_v43 = vld [vmem:[#allocation10 + $0x18c8] sm:$0xff]  ;;  %v1946_v33 = vld [vmem:[#allocation10 + $0xfb0] sm:$0xff] }
 0x3a2   : > { %7833 = vmatpush1.bf16.msra.mxu1 %v7832_v17  ;;  %v7842_v17 = vpack.c.bf16 %v1939_v1, %v1931_v2  ;;  %v1954_v21 = vld [vmem:[#allocation10 + $0xff0] sm:$0xff]  ;;  %v1446_v2 = vld [vmem:[#allocation10 + $0x18] sm:$0xff] }
 0x3a3   : > { %7835 = vmatprep.subr.bf16.mxu1 %v7834_v62  ;;  %v8296_v62 = vpack.c.bf16 %v3125_v38, %v3117_v56  ;;  %v1454_v1 = vld [vmem:[#allocation10 + $0x58] sm:$0xff]  ;;  %v3674_v56 = vld [vmem:[#allocation10 + $0x1880] sm:$0xff] }
 0x3a4   : > { %8289 = vmatpush1.bf16.msra.mxu0 %v8288_v51  ;;  %v8362_v51 = vpack.c.bf16 %v3667_v22, %v3659_v28  ;;  %v3682_v38 = vld [vmem:[#allocation10 + $0x18c0] sm:$0xff]  ;;  %v3691_v28 = vld [vmem:[#allocation10 + $0x1908] sm:$0xff] }
 0x3a5   : > { %8291 = vmatprep.subr.bf16.mxu0 %v8290_v41  ;;  %v7844_v41 = vpack.c.bf16 %v1938_v35, %v1930_v26  ;;  %v3699_v22 = vld [vmem:[#allocation10 + $0x1948] sm:$0xff]  ;;  %v1453_v26 = vld [vmem:[#allocation10 + $0x50] sm:$0xff]  ;;  %v8368_v35 = vpack.c.bf16 %v3682_v38, %v3674_v56  ;;  %v3714_v56 = vld [vmem:[#allocation10 + $0x19c0] sm:$0xff] }
 0x3a6   : > { %7837 = vmatpush1.bf16.msra.mxu1 %v7836_v27  ;;  %v7846_v27 = vpack.c.bf16 %v1955_v61, %v1947_v6  ;;  %v1470_v6 = vld [vmem:[#allocation10 + $0xd8] sm:$0xff]  ;;  %v8370_v61 = vpack.c.bf16 %v3699_v22, %v3691_v28  ;;  %v3731_v28 = vld [vmem:[#allocation10 + $0x1a48] sm:$0xff] }
 0x3a7   : > { %7839 = vmatprep.subr.bf16.mxu1 %v7838_v50  ;;  %v8364_v50 = vpack.c.bf16 %v3666_v7, %v3658_v57  ;;  %v3698_v57 = vld [vmem:[#allocation10 + $0x1940] sm:$0xff] }
 0x3a8   : > { %8293 = vmatpush1.bf16.msra.mxu0 %v8292_v45  ;;  %v8366_v45 = vpack.c.bf16 %v3683_v43, %v3675_v44  ;;  %v3715_v44 = vld [vmem:[#allocation10 + $0x19c8] sm:$0xff] }
 0x3a9   : > { %8295 = vmatprep.subr.bf16.mxu0 %v8294_v31  ;;  %v7848_v31 = vpack.c.bf16 %v1954_v21, %v1946_v33  ;;  %v1469_v33 = vld [vmem:[#allocation10 + $0xd0] sm:$0xff] }
 0x3aa   : > { %7841 = vmatpush1.bf16.msra.mxu1 %v7840_v19  ;;  %v7914_v19 = vpack.c.bf16 %v1454_v1, %v1446_v2  ;;  %v1486_v2 = vld [vmem:[#allocation10 + $0x158] sm:$0xff] }
 0x3ab   : > { %7843 = vmatprep.subr.bf16.mxu1 %v7842_v17  ;;  %v1445_v17 = vld [vmem:[#allocation10 + $0x10] sm:$0xff] }
 0x3ac   : > { %8297 = vmatpush1.bf16.msra.mxu0 %v8296_v62  ;;  %v1462_v62 = vld [vmem:[#allocation10 + $0x98] sm:$0xff]  ;;  %v7916_v7 = vpack.c.bf16 %v1453_v26, %v1445_v17  ;;  %v1485_v17 = vld [vmem:[#allocation10 + $0x150] sm:$0xff] }
 0x3ad   : > { %8363 = vmatprep.subr.bf16.mxu0 %v8362_v51  ;;  %v3690_v51 = vld [vmem:[#allocation10 + $0x1900] sm:$0xff]  ;;  %v7918_v43 = vpack.c.bf16 %v1470_v6, %v1462_v62  ;;  %v1494_v26 = vld [vmem:[#allocation10 + $0x198] sm:$0xff] }
 0x3ae   : > { %7845 = vmatpush1.bf16.msra.mxu1 %v7844_v41  ;;  %v3707_v41 = vld [vmem:[#allocation10 + $0x1988] sm:$0xff]  ;;  %v8372_v21 = vpack.c.bf16 %v3698_v57, %v3690_v51  ;;  %v3722_v62 = vld [vmem:[#allocation10 + $0x1a00] sm:$0xff] }
 0x3af   : > { %3452 = vmatmul.mubr.f32.vlgmr.msra.gmra.mrb[38].mxu0 %v11166_v60  ;;  %7847 = vmatprep.subr.bf16.mxu1 %v7846_v27  ;;  %v1461_v27 = vld [vmem:[#allocation10 + $0x90] sm:$0xff]  ;;  %v8374_v1 = vpack.c.bf16 %v3715_v44, %v3707_v41  ;;  %v3730_v6 = vld [vmem:[#allocation10 + $0x1a40] sm:$0xff]  ;;  %v3739_v51 = vld [vmem:[#allocation10 + $0x1a88] sm:$0xff] }
 0x3b0   : > { %3457 = vmatprep.mubr.f32.mxu0 %v11173_v0  ;;  %8365 = vmatpush1.bf16.msra.mxu0 %v8364_v50  ;;  %v1478_v50 = vld [vmem:[#allocation10 + $0x118] sm:$0xff]  ;;  %v7920_v38 = vpack.c.bf16 %v1469_v33, %v1461_v27  ;;  %v3747_v57 = vld [vmem:[#allocation10 + $0x1ac8] sm:$0xff]  ;;  %v1493_v41 = vld [vmem:[#allocation10 + $0x190] sm:$0xff] }
 0x3b1   : > { %8367 = vmatprep.subr.bf16.mxu0 %v8366_v45  ;;  %v3706_v45 = vld [vmem:[#allocation10 + $0x1980] sm:$0xff]  ;;  %v7922_v22 = vpack.c.bf16 %v1486_v2, %v1478_v50  ;;  %v1501_v44 = vld [vmem:[#allocation10 + $0x1d0] sm:$0xff]  ;;  %v1518_v27 = vld [vmem:[#allocation10 + $0x258] sm:$0xff] }
 0x3b2   : > { %7849 = vmatpush1.bf16.msra.mxu1 %v7848_v31  ;;  %v3723_v31 = vld [vmem:[#allocation10 + $0x1a08] sm:$0xff]  ;;  %v3738_v33 = vld [vmem:[#allocation10 + $0x1a80] sm:$0xff]  ;;  %v7928_v50 = vpack.c.bf16 %v1501_v44, %v1493_v41 }
 0x3b3   : > { %3458 = vmatmul.mubr.f32.gmra.mrb[40].mxu0 %v11178_v48  ;;  %7915 = vmatprep.subr.bf16.mxu1 %v7914_v19  ;;  %v1477_v19 = vld [vmem:[#allocation10 + $0x110] sm:$0xff]  ;;  %v3755_v2 = vld [vmem:[#allocation10 + $0x1b08] sm:$0xff]  ;;  %v3778_v41 = vld [vmem:[#allocation10 + $0x1bc0] sm:$0xff] }
 0x3b4   : > { %3463 = vmatprep.mubr.f32.mxu0 %v11183_v53  ;;  %8369 = vmatpush1.bf16.msra.mxu0 %v8368_v35  ;;  %v1502_v35 = vld [vmem:[#allocation10 + $0x1d8] sm:$0xff] }
 0x3b5   : > { %2402 = vmatmul.mubr.f32.vlgmr.msra.gmra.mrb[58].mxu1 %v11011_v36  ;;  %8371 = vmatprep.subr.bf16.mxu0 %v8370_v61  ;;  %v8376_v36 = vpack.c.bf16 %v3714_v56, %v3706_v45  ;;  %v7924_v61 = vpack.c.bf16 %v1485_v17, %v1477_v19  ;;  %v1509_v56 = vld [vmem:[#allocation10 + $0x210] sm:$0xff]  ;;  %v3762_v19 = vld [vmem:[#allocation10 + $0x1b40] sm:$0xff] }
 0x3b6   : > { %2407 = vmatprep.mubr.f32.mxu1 %v11026_v24  ;;  %7917 = vmatpush1.bf16.msra.mxu1 %v7916_v7  ;;  %v8378_v24 = vpack.c.bf16 %v3731_v28, %v3723_v31  ;;  %v7926_v7 = vpack.c.bf16 %v1502_v35, %v1494_v26  ;;  %v1526_v31 = vld [vmem:[#allocation10 + $0x298] sm:$0xff]  ;;  %v3779_v26 = vld [vmem:[#allocation10 + $0x1bc8] sm:$0xff]  ;;  %v11889_v35 = vrot.slane %v10989_v58, 3 }
 0x3b7   : > { %3464 = vmatmul.mubr.f32.gmra.mrb[42].mxu0 %v11190_v9  ;;  %7919 = vmatprep.subr.bf16.mxu1 %v7918_v43  ;;  %v1510_v43 = vld [vmem:[#allocation10 + $0x218] sm:$0xff] }
 0x3b8   : > { %3469 = vmatprep.mubr.f32.mxu0 %v11195_v13  ;;  %8373 = vmatpush1.bf16.msra.mxu0 %v8372_v21  ;;  %v3746_v21 = vld [vmem:[#allocation10 + $0x1ac0] sm:$0xff]  ;;  %v7930_v45 = vpack.c.bf16 %v1518_v27, %v1510_v43  ;;  %v1534_v28 = vld [vmem:[#allocation10 + $0x2d8] sm:$0xff]  ;;  %v3795_v43 = vld [vmem:[#allocation10 + $0x1c48] sm:$0xff] }
 0x3b9   : > { %2408 = vmatmul.mubr.f32.gmra.mrb[60].mxu1 %v11033_v4  ;;  %8375 = vmatprep.subr.bf16.mxu0 %v8374_v1  ;;  %v8380_v4 = vpack.c.bf16 %v3730_v6, %v3722_v62  ;;  %v3763_v1 = vld [vmem:[#allocation10 + $0x1b48] sm:$0xff]  ;;  %v1525_v62 = vld [vmem:[#allocation10 + $0x290] sm:$0xff] }
 0x3ba   : > { %2413 = vmatprep.mubr.f32.mxu1 %v11048_v34  ;;  %7921 = vmatpush1.bf16.msra.mxu1 %v7920_v38  ;;  %v8382_v34 = vpack.c.bf16 %v3747_v57, %v3739_v51  ;;  %v1517_v38 = vld [vmem:[#allocation10 + $0x250] sm:$0xff]  ;;  %v1550_v51 = vld [vmem:[#allocation10 + $0x358] sm:$0xff] }
 0x3bb   : > { %3470 = vmatmul.mubr.f32.gmra.mrb[44].mxu0 %v11202_v15  ;;  %7923 = vmatprep.subr.bf16.mxu1 %v7922_v22  ;;  %v3754_v22 = vld [vmem:[#allocation10 + $0x1b00] sm:$0xff]  ;;  %v7932_v17 = vpack.c.bf16 %v1517_v38, %v1509_v56  ;;  %v1533_v6 = vld [vmem:[#allocation10 + $0x2d0] sm:$0xff] }
 0x3bc   : > { %3475 = vmatprep.mubr.f32.mxu0 %v11207_v20  ;;  %8377 = vmatpush1.bf16.msra.mxu0 %v8376_v36  ;;  %v3771_v36 = vld [vmem:[#allocation10 + $0x1b88] sm:$0xff]  ;;  %v7936_v44 = vpack.c.bf16 %v1533_v6, %v1525_v62  ;;  %v3786_v56 = vld [vmem:[#allocation10 + $0x1c00] sm:$0xff] }
 0x3bd   : > { %2414 = vmatmul.mubr.f32.gmra.mrb[62].mxu1 %v11055_v42  ;;  %8379 = vmatprep.subr.bf16.mxu0 %v8378_v24  ;;  %v8384_v42 = vpack.c.bf16 %v3746_v21, %v3738_v33  ;;  %v7934_v24 = vpack.c.bf16 %v1534_v28, %v1526_v31  ;;  %v8390_v57 = vpack.c.bf16 %v3779_v26, %v3771_v36  ;;  %v1549_v33 = vld [vmem:[#allocation10 + $0x350] sm:$0xff]  ;;  %v3794_v38 = vld [vmem:[#allocation10 + $0x1c40] sm:$0xff]  ;;  %v3803_v31 = vld [vmem:[#allocation10 + $0x1c88] sm:$0xff] }
 0x3be   : > { %2419 = vmatprep.mubr.f32.mxu1 %v11070_v11  ;;  %7925 = vmatpush1.bf16.msra.mxu1 %v7924_v61  ;;  %v8386_v11 = vpack.c.bf16 %v3763_v1, %v3755_v2  ;;  %v1542_v61 = vld [vmem:[#allocation10 + $0x318] sm:$0xff]  ;;  %v3811_v28 = vld [vmem:[#allocation10 + $0x1cc8] sm:$0xff]  ;;  %v3802_v62 = vld [vmem:[#allocation10 + $0x1c80] sm:$0xff] }
 0x3bf   : > { %3476 = vmatmul.mubr.f32.gmra.mrb[46].mxu0 %v11214_v54  ;;  %7927 = vmatprep.subr.bf16.mxu1 %v7926_v7  ;;  %v3770_v7 = vld [vmem:[#allocation10 + $0x1b80] sm:$0xff]  ;;  %v1566_v2 = vld [vmem:[#allocation10 + $0x3d8] sm:$0xff] }
 0x3c0   : > { %3481 = vmatprep.mubr.f32.mxu0 %v11219_v12  ;;  %8381 = vmatpush1.bf16.msra.mxu0 %v8380_v4  ;;  %v3787_v4 = vld [vmem:[#allocation10 + $0x1c08] sm:$0xff]  ;;  %v1574_v36 = vld [vmem:[#allocation10 + $0x418] sm:$0xff]  ;;  %v3810_v6 = vld [vmem:[#allocation10 + $0x1cc0] sm:$0xff] }
 0x3c1   : > { %2420 = vmatmul.mubr.f32.gmra.mrb[64].mxu1 %v11075_v5  ;;  %8383 = vmatprep.subr.bf16.mxu0 %v8382_v34  ;;  %v8388_v5 = vpack.c.bf16 %v3762_v19, %v3754_v22  ;;  %v1541_v34 = vld [vmem:[#allocation10 + $0x310] sm:$0xff]  ;;  %v1582_v26 = vld [vmem:[#allocation10 + $0x458] sm:$0xff] }
 0x3c2   : > { %2425 = vmatprep.mubr.f32.mxu1 %v11090_v10  ;;  %7929 = vmatpush1.bf16.msra.mxu1 %v7928_v50  ;;  %v3918_v10 = vrot.slane %v10979_v37, 3  ;;  %v1558_v50 = vld [vmem:[#allocation10 + $0x398] sm:$0xff]  ;;  %v1557_v22 = vld [vmem:[#allocation10 + $0x390] sm:$0xff] }
 0x3c3   : > { %3482 = vmatmul.mubr.f32.gmra.mrb[48].mxu0 %v11226_v30  ;;  %7931 = vmatprep.subr.bf16.mxu1 %v7930_v45  ;;  %v8394_v45 = vpack.c.bf16 %v3795_v43, %v3787_v4  ;;  %v1565_v19 = vld [vmem:[#allocation10 + $0x3d0] sm:$0xff]  ;;  %v1598_v4 = vld [vmem:[#allocation10 + $0x4d8] sm:$0xff] }
 0x3c4   : > { %3487 = vmatprep.mubr.f32.mxu0 %v11231_v16  ;;  %8385 = vmatpush1.bf16.msra.mxu0 %v8384_v42  ;;  %v11273_v27 = vsel %vm3914_vm7, %v3918_v10, %v11889_v35  ;;  %v7940_v42 = vpack.c.bf16 %v1549_v33, %v1541_v34  ;;  %v7946_v10 = vpack.c.bf16 %v1582_v26, %v1574_v36  ;;  %v3818_v34 = vld [vmem:[#allocation10 + $0x1d00] sm:$0xff]  ;;  %v1670_v35 = vld [vmem:[#allocation10 + $0x718] sm:$0xff]  ;;  %v3847_v16 = vld [vmem:[#allocation10 + $0x1de8] sm:$0xff] }
 0x3c5   : > { %2426 = vmatmul.mubr.f32.gmra.mrb[66].mxu1 %v11095_v47  ;;  %8387 = vmatprep.subr.bf16.mxu0 %v8386_v11  ;;  %11936 = vst [vmem:[#allocation36_spill] sm:$0xff] %v11273_v27  ;;  %v7938_v47 = vpack.c.bf16 %v1550_v51, %v1542_v61  ;;  %v7942_v11 = vpack.c.bf16 %v1566_v2, %v1558_v50  ;;  %v3819_v61 = vld [vmem:[#allocation10 + $0x1d08] sm:$0xff]  ;;  %v3826_v33 = vld [vmem:[#allocation10 + $0x1d40] sm:$0xff]  ;;  %v1601_v30 = vld [vmem:[#allocation10 + $0x4f0] sm:$0xff] }
 0x3c6   : > { %2431 = vmatprep.mubr.f32.mxu1 %v11109_v23  ;;  %7933 = vmatpush1.bf16.msra.mxu1 %v7932_v17  ;;  %v8392_v23 = vpack.c.bf16 %v3778_v41, %v3770_v7  ;;  %v3827_v51 = vld [vmem:[#allocation10 + $0x1d48] sm:$0xff]  ;;  %v1581_v7 = vld [vmem:[#allocation10 + $0x450] sm:$0xff]  ;;  %v3842_v36 = vld [vmem:[#allocation10 + $0x1dc0] sm:$0xff] }
 0x3c7   : > { %3488 = vmatmul.mubr.f32.gmra.mrb[50].mxu0 %v11237_v3  ;;  %7935 = vmatprep.subr.bf16.mxu1 %v7934_v24  ;;  %v3835_v50 = vld [vmem:[#allocation10 + $0x1d88] sm:$0xff]  ;;  %v3782_v3 = vld [vmem:[#allocation10 + $0x1be0] sm:$0xff] }
 0x3c8   : > { %8389 = vmatpush1.bf16.msra.mxu0 %v8388_v5  ;;  %4023 = vmatprep.mubr.f32.mxu0 %v11273_v27  ;;  %v11276_v21 = vpop.f32.mrb[16].mxu1  ;;  %v7944_v5 = vpack.c.bf16 %v1565_v19, %v1557_v22  ;;  %v3843_v2 = vld [vmem:[#allocation10 + $0x1dc8] sm:$0xff] }
 0x3c9   : > { %11937 = vst [vmem:[#allocation37_spill] sm:$0xff] %v11276_v21  ;;  %2432 = vmatmul.mubr.f32.gmra.mrb[68].mxu1 %v11113_v8  ;;  %v11279_v1 = vpop.f32.mrb[17].mxu1  ;;  %8391 = vmatprep.subr.bf16.mxu0 %v8390_v57  ;;  %v8396_v8 = vpack.c.bf16 %v3794_v38, %v3786_v56  ;;  %v1573_v57 = vld [vmem:[#allocation10 + $0x410] sm:$0xff]  ;;  %v8406_v19 = vpack.c.bf16 %v3843_v2, %v3835_v50  ;;  %v3775_v21 = vld [vmem:[#allocation10 + $0x1ba8] sm:$0xff] }
 0x3ca   : > { %11938 = vst [vmem:[#allocation38_spill] sm:$0xff] %v11279_v1  ;;  %2437 = vmatprep.mubr.f32.mxu1 %v11119_v14  ;;  %7937 = vmatpush1.bf16.msra.mxu1 %v7936_v44  ;;  %v8398_v14 = vpack.c.bf16 %v3811_v28, %v3803_v31  ;;  %v1590_v44 = vld [vmem:[#allocation10 + $0x498] sm:$0xff]  ;;  %v1589_v56 = vld [vmem:[#allocation10 + $0x490] sm:$0xff]  ;;  %v8404_v31 = vpack.c.bf16 %v3826_v33, %v3818_v34  ;;  %v3867_v33 = vld [vmem:[#allocation10 + $0x1e88] sm:$0xff] }
 0x3cb   : > { %7939 = vmatprep.subr.bf16.mxu1 %v7938_v47  ;;  %v8402_v47 = vpack.c.bf16 %v3827_v51, %v3819_v61  ;;  %v1597_v38 = vld [vmem:[#allocation10 + $0x4d0] sm:$0xff]  ;;  %v1606_v28 = vld [vmem:[#allocation10 + $0x518] sm:$0xff]  ;;  %v3766_v1 = vld [vmem:[#allocation10 + $0x1b60] sm:$0xff] }
 0x3cc   : > { %8393 = vmatpush1.bf16.msra.mxu0 %v8392_v23  ;;  %v11282_v17 = vpop.f32.mrb[18].mxu1  ;;  %v7948_v23 = vpack.c.bf16 %v1581_v7, %v1573_v57  ;;  %v7952_v26 = vpack.c.bf16 %v1597_v38, %v1589_v56  ;;  %v1613_v61 = vld [vmem:[#allocation10 + $0x550] sm:$0xff]  ;;  %v1622_v57 = vld [vmem:[#allocation10 + $0x598] sm:$0xff] }
 0x3cd   : > { %11939 = vst [vmem:[#allocation39_spill] sm:$0xff] %v11282_v17  ;;  %2438 = vmatmul.mubr.f32.gmra.mrb[70].mxu1 %v11123_v46  ;;  %v11285_v24 = vpop.f32.mrb[19].mxu1  ;;  %8395 = vmatprep.subr.bf16.mxu0 %v8394_v45  ;;  %v8400_v46 = vpack.c.bf16 %v3810_v6, %v3802_v62  ;;  %v7950_v45 = vpack.c.bf16 %v1598_v4, %v1590_v44  ;;  %v3859_v62 = vld [vmem:[#allocation10 + $0x1e48] sm:$0xff]  ;;  %v1630_v7 = vld [vmem:[#allocation10 + $0x5d8] sm:$0xff]  ;;  %v3850_v4 = vld [vmem:[#allocation10 + $0x1e00] sm:$0xff] }
 0x3ce   : > { %11940 = vst [vmem:[#allocation40_spill] sm:$0xff] %v11285_v24  ;;  %7941 = vmatpush1.bf16.msra.mxu1 %v7940_v42  ;;  %2615 = vmatprep.mubr.f32.mxu1 %v10979_v37  ;;  %v7958_v50 = vpack.c.bf16 %v1630_v7, %v1622_v57  ;;  %v1621_v2 = vld [vmem:[#allocation10 + $0x590] sm:$0xff]  ;;  %v1654_v7 = vld [vmem:[#allocation10 + $0x698] sm:$0xff]  ;;  %v3758_v17 = vld [vmem:[#allocation10 + $0x1b20] sm:$0xff] }
 0x3cf   : > { %7943 = vmatprep.subr.bf16.mxu1 %v7942_v11  ;;  %v1614_v11 = vld [vmem:[#allocation10 + $0x558] sm:$0xff]  ;;  %v1521_v24 = vld [vmem:[#allocation10 + $0x270] sm:$0xff] }
 0x3d0   : > { %8397 = vmatpush1.bf16.msra.mxu0 %v8396_v8  ;;  %v11288_v41 = vpop.f32.mrb[20].mxu1  ;;  %v3834_v8 = vld [vmem:[#allocation10 + $0x1d80] sm:$0xff]  ;;  %v7954_v6 = vpack.c.bf16 %v1614_v11, %v1606_v28  ;;  %v1646_v28 = vld [vmem:[#allocation10 + $0x658] sm:$0xff] }
 0x3d1   : > { %11941 = vst [vmem:[#allocation41_spill] sm:$0xff] %v11288_v41  ;;  %v11290_v43 = vpop.f32.mrb[21].mxu1  ;;  %8399 = vmatprep.subr.bf16.mxu0 %v8398_v14  ;;  %v3851_v14 = vld [vmem:[#allocation10 + $0x1e08] sm:$0xff] }
 0x3d2   : > { %11942 = vst [vmem:[#allocation42_spill] sm:$0xff] %v11290_v43  ;;  %7945 = vmatpush1.bf16.msra.mxu1 %v7944_v5  ;;  %v1605_v5 = vld [vmem:[#allocation10 + $0x510] sm:$0xff]  ;;  %v8410_v44 = vpack.c.bf16 %v3859_v62, %v3851_v14  ;;  %v3883_v14 = vld [vmem:[#allocation10 + $0x1f08] sm:$0xff]  ;;  %v3750_v43 = vld [vmem:[#allocation10 + $0x1ae0] sm:$0xff] }
 0x3d3   : > { %7947 = vmatprep.subr.bf16.mxu1 %v7946_v10  ;;  %v8408_v10 = vpack.c.bf16 %v3842_v36, %v3834_v8  ;;  %v7956_v34 = vpack.c.bf16 %v1613_v61, %v1605_v5  ;;  %v3866_v8 = vld [vmem:[#allocation10 + $0x1e80] sm:$0xff]  ;;  %v3891_v62 = vld [vmem:[#allocation10 + $0x1f48] sm:$0xff]  ;;  %v1637_v5 = vld [vmem:[#allocation10 + $0x610] sm:$0xff] }
 0x3d4   : > { %8401 = vmatpush1.bf16.msra.mxu0 %v8400_v46  ;;  %v11292_v42 = vpop.f32.mrb[22].mxu1  ;;  %v3874_v36 = vld [vmem:[#allocation10 + $0x1ec0] sm:$0xff]  ;;  %v1645_v61 = vld [vmem:[#allocation10 + $0x650] sm:$0xff]  ;;  %v3759_v41 = vld [vmem:[#allocation10 + $0x1b28] sm:$0xff] }
 0x3d5   : > { %11943 = vst [vmem:[#allocation43_spill] sm:$0xff] %v11292_v42  ;;  %v11294_v22 = vpop.f32.mrb[23].mxu1  ;;  %8403 = vmatprep.subr.bf16.mxu0 %v8402_v47  ;;  %v3858_v47 = vld [vmem:[#allocation10 + $0x1e40] sm:$0xff]  ;;  %v8416_v57 = vpack.c.bf16 %v3874_v36, %v3866_v8  ;;  %v1678_v8 = vld [vmem:[#allocation10 + $0x758] sm:$0xff] }
 0x3d6   : > { %11944 = vst [vmem:[#allocation44_spill] sm:$0xff] %v11294_v22  ;;  %7949 = vmatpush1.bf16.msra.mxu1 %v7948_v23  ;;  %v3875_v23 = vld [vmem:[#allocation10 + $0x1ec8] sm:$0xff]  ;;  %v8412_v38 = vpack.c.bf16 %v3858_v47, %v3850_v4  ;;  %v1662_v4 = vld [vmem:[#allocation10 + $0x6d8] sm:$0xff]  ;;  %v3734_v22 = vld [vmem:[#allocation10 + $0x1a60] sm:$0xff] }
 0x3d7   : > { %7951 = vmatprep.subr.bf16.mxu1 %v7950_v45  ;;  %v1629_v45 = vld [vmem:[#allocation10 + $0x5d0] sm:$0xff]  ;;  %v3742_v42 = vld [vmem:[#allocation10 + $0x1aa0] sm:$0xff] }
 0x3d8   : > { %8405 = vmatpush1.bf16.msra.mxu0 %v8404_v31  ;;  %v11296_v51 = vpop.f32.mrb[24].mxu1  ;;  %v1638_v31 = vld [vmem:[#allocation10 + $0x618] sm:$0xff] }
 0x3d9   : > { %11945 = vst [vmem:[#allocation45_spill] sm:$0xff] %v11296_v51  ;;  %v11298_v46 = vpop.f32.mrb[25].mxu1  ;;  %8407 = vmatprep.subr.bf16.mxu0 %v8406_v19  ;;  %v8414_v19 = vpack.c.bf16 %v3875_v23, %v3867_v33  ;;  %v3882_v33 = vld [vmem:[#allocation10 + $0x1f00] sm:$0xff] }
 0x3da   : > { %11946 = vst [vmem:[#allocation46_spill] sm:$0xff] %v11298_v46  ;;  %7953 = vmatpush1.bf16.msra.mxu1 %v7952_v26  ;;  %v7960_v26 = vpack.c.bf16 %v1629_v45, %v1621_v2  ;;  %v3890_v23 = vld [vmem:[#allocation10 + $0x1f40] sm:$0xff]  ;;  %v3899_v2 = vld [vmem:[#allocation10 + $0x1f88] sm:$0xff] }
 0x3db   : > { %7955 = vmatprep.subr.bf16.mxu1 %v7954_v6  ;;  %v7962_v6 = vpack.c.bf16 %v1646_v28, %v1638_v31  ;;  %v3907_v45 = vld [vmem:[#allocation10 + $0x1fc8] sm:$0xff]  ;;  %v1653_v31 = vld [vmem:[#allocation10 + $0x690] sm:$0xff]  ;;  %v3718_v46 = vld [vmem:[#allocation10 + $0x19e0] sm:$0xff] }
 0x3dc   : > { %8409 = vmatpush1.bf16.msra.mxu0 %v8408_v10  ;;  %v11300_v56 = vpop.f32.mrb[26].mxu1  ;;  %v1661_v28 = vld [vmem:[#allocation10 + $0x6d0] sm:$0xff]  ;;  %v8422_v36 = vpack.c.bf16 %v3907_v45, %v3899_v2  ;;  %v3916_v2 = vrot.slane %v10986_v52, 3  ;;  %v3687_v45 = vld [vmem:[#allocation10 + $0x18e8] sm:$0xff]  ;;  %v3726_v51 = vld [vmem:[#allocation10 + $0x1a20] sm:$0xff] }
 0x3dd   : > { %11947 = vst [vmem:[#allocation47_spill] sm:$0xff] %v11300_v56  ;;  %v11302_v11 = vpop.f32.mrb[27].mxu1  ;;  %8411 = vmatprep.subr.bf16.mxu0 %v8410_v44  ;;  %v8418_v44 = vpack.c.bf16 %v3891_v62, %v3883_v14  ;;  %v3663_v14 = vld [vmem:[#allocation10 + $0x1828] sm:$0xff]  ;;  %v3925_v56 = vrot.slane %v11018_v49, 3 }
 0x3de   : > { %11948 = vst [vmem:[#allocation48_spill] sm:$0xff] %v11302_v11  ;;  %7957 = vmatpush1.bf16.msra.mxu1 %v7956_v34  ;;  %v7964_v34 = vpack.c.bf16 %v1645_v61, %v1637_v5  ;;  %v3671_v62 = vld [vmem:[#allocation10 + $0x1868] sm:$0xff]  ;;  %v1669_v5 = vld [vmem:[#allocation10 + $0x710] sm:$0xff]  ;;  %v3702_v11 = vld [vmem:[#allocation10 + $0x1960] sm:$0xff] }
 0x3df   : > { %7959 = vmatprep.subr.bf16.mxu1 %v7958_v50  ;;  %v7966_v50 = vpack.c.bf16 %v1662_v4, %v1654_v7  ;;  %v1677_v61 = vld [vmem:[#allocation10 + $0x750] sm:$0xff]  ;;  %v1686_v7 = vld [vmem:[#allocation10 + $0x798] sm:$0xff] }
 0x3e0   : > { %8413 = vmatpush1.bf16.msra.mxu0 %v8412_v38  ;;  %v11304_v10 = vpop.f32.mrb[28].mxu1  ;;  %v8420_v38 = vpack.c.bf16 %v3890_v23, %v3882_v33  ;;  %v1694_v4 = vld [vmem:[#allocation10 + $0x7d8] sm:$0xff]  ;;  %v3662_v33 = vld [vmem:[#allocation10 + $0x1820] sm:$0xff] }
 0x3e1   : > { %11949 = vst [vmem:[#allocation49_spill] sm:$0xff] %v11304_v10  ;;  %v11306_v47 = vpop.f32.mrb[29].mxu1  ;;  %8415 = vmatprep.subr.bf16.mxu0 %v8414_v19  ;;  %v3898_v10 = vld [vmem:[#allocation10 + $0x1f80] sm:$0xff]  ;;  %v7968_v19 = vpack.c.bf16 %v1661_v28, %v1653_v31  ;;  %v1685_v31 = vld [vmem:[#allocation10 + $0x790] sm:$0xff] }
 0x3e2   : > { %11950 = vst [vmem:[#allocation50_spill] sm:$0xff] %v11306_v47  ;;  %7961 = vmatpush1.bf16.msra.mxu1 %v7960_v26  ;;  %v3906_v47 = vld [vmem:[#allocation10 + $0x1fc0] sm:$0xff]  ;;  %v7970_v26 = vpack.c.bf16 %v1678_v8, %v1670_v35  ;;  %v7974_v35 = vpack.c.bf16 %v1694_v4, %v1686_v7  ;;  %v1693_v28 = vld [vmem:[#allocation10 + $0x7d0] sm:$0xff]  ;;  %v1458_v8 = vld [vmem:[#allocation10 + $0x78] sm:$0xff] }
 0x3e3   : > { %7963 = vmatprep.subr.bf16.mxu1 %v7962_v6  ;;  %v8424_v6 = vpack.c.bf16 %v3906_v47, %v3898_v10  ;;  %v3670_v23 = vld [vmem:[#allocation10 + $0x1860] sm:$0xff]  ;;  %v3915_v10 = vrot.slane %v10981_v40, 3  ;;  %v3703_v7 = vld [vmem:[#allocation10 + $0x1968] sm:$0xff] }
 0x3e4   : > { %8417 = vmatpush1.bf16.msra.mxu0 %v8416_v57  ;;  %v8490_v57 = vpack.c.bf16 %v3671_v62, %v3663_v14  ;;  %v8492_v47 = vpack.c.bf16 %v3670_v23, %v3662_v33  ;;  %v3686_v14 = vld [vmem:[#allocation10 + $0x18e0] sm:$0xff]  ;;  %v1449_v23 = vld [vmem:[#allocation10 + $0x30] sm:$0xff] }
 0x3e5   : > { %8419 = vmatprep.subr.bf16.mxu0 %v8418_v44  ;;  %v7972_v44 = vpack.c.bf16 %v1677_v61, %v1669_v5  ;;  %v11312_v62 = vsel %vm3914_vm7, %v3915_v10, %v3916_v2  ;;  %v3921_v5 = vrot.slane %v10997_v18, 3  ;;  %v3695_v61 = vld [vmem:[#allocation10 + $0x1928] sm:$0xff]  ;;  %v3694_v10 = vld [vmem:[#allocation10 + $0x1920] sm:$0xff] }
 0x3e6   : > { %7965 = vmatpush1.bf16.msra.mxu1 %v7964_v34  ;;  %v3679_v34 = vld [vmem:[#allocation10 + $0x18a8] sm:$0xff] }
 0x3e7   : > { %7967 = vmatprep.subr.bf16.mxu1 %v7966_v50  ;;  %v3923_v50 = vrot.slane %v11002_v29, 3 }
 0x3e8   : > { %8421 = vmatpush1.bf16.msra.mxu0 %v8420_v38  ;;  %v1450_v38 = vld [vmem:[#allocation10 + $0x38] sm:$0xff] }
 0x3e9   : > { %8423 = vmatprep.subr.bf16.mxu0 %v8422_v36  ;;  %v8494_v36 = vpack.c.bf16 %v3687_v45, %v3679_v34  ;;  %v8042_v33 = vpack.c.bf16 %v1458_v8, %v1450_v38  ;;  %v1466_v45 = vld [vmem:[#allocation10 + $0xb8] sm:$0xff]  ;;  %v3711_v38 = vld [vmem:[#allocation10 + $0x19a8] sm:$0xff] }
 0x3ea   : > { %7969 = vmatpush1.bf16.msra.mxu1 %v7968_v19  ;;  %v3678_v19 = vld [vmem:[#allocation10 + $0x18a0] sm:$0xff]  ;;  %v3719_v8 = vld [vmem:[#allocation10 + $0x19e8] sm:$0xff] }
 0x3eb   : > { %7971 = vmatprep.subr.bf16.mxu1 %v7970_v26  ;;  %v7976_v26 = vpack.c.bf16 %v1693_v28, %v1685_v31  ;;  %v8496_v34 = vpack.c.bf16 %v3686_v14, %v3678_v19  ;;  %v1474_v31 = vld [vmem:[#allocation10 + $0xf8] sm:$0xff]  ;;  %v8498_v28 = vpack.c.bf16 %v3703_v7, %v3695_v61  ;;  %v1465_v14 = vld [vmem:[#allocation10 + $0xb0] sm:$0xff] }
 0x3ec   : > { %8425 = vmatpush1.bf16.msra.mxu0 %v8424_v6  ;;  %v11951_v6 = vrot.slane %v10989_v58, 3  ;;  %v8046_v19 = vpack.c.bf16 %v1474_v31, %v1466_v45  ;;  %v1473_v61 = vld [vmem:[#allocation10 + $0xf0] sm:$0xff]  ;;  %v1490_v7 = vld [vmem:[#allocation10 + $0x178] sm:$0xff]  ;;  %v3929_v45 = vrot.slane %v11040_v25, 3  ;;  %v3727_v31 = vld [vmem:[#allocation10 + $0x1a28] sm:$0xff] }
 0x3ed   : > { %8491 = vmatprep.subr.bf16.mxu0 %v8490_v57  ;;  %v3927_v57 = vrot.slane %v11022_v59, 3 }
 0x3ee   : > { %7973 = vmatpush1.bf16.msra.mxu1 %v7972_v44  ;;  %v11319_v4 = vsel %vm3914_vm7, %v11951_v6, %v3923_v50  ;;  %v1457_v44 = vld [vmem:[#allocation10 + $0x70] sm:$0xff]  ;;  %v11324_v6 = vsel %vm3914_vm7, %v3916_v2, %v3921_v5  ;;  %v8500_v2 = vpack.c.bf16 %v3702_v11, %v3694_v10 }
 0x3ef   : > { %4024 = vmatmul.mubr.f32.vlgmr.msra.gmra.mrb[24].mxu0 %v11312_v62  ;;  %7975 = vmatprep.subr.bf16.mxu1 %v7974_v35  ;;  %v8044_v35 = vpack.c.bf16 %v1457_v44, %v1449_v23  ;;  %v8502_v23 = vpack.c.bf16 %v3719_v8, %v3711_v38  ;;  %v3710_v44 = vld [vmem:[#allocation10 + $0x19a0] sm:$0xff]  ;;  %v1481_v38 = vld [vmem:[#allocation10 + $0x130] sm:$0xff] }
 0x3f0   : > { %4029 = vmatprep.mubr.f32.mxu0 %v11319_v4  ;;  %8493 = vmatpush1.bf16.msra.mxu0 %v8492_v47  ;;  %v11329_v47 = vsel %vm3914_vm7, %v3923_v50, %v3927_v57  ;;  %v11336_v50 = vsel %vm3914_vm7, %v3921_v5, %v3925_v56  ;;  %v1489_v8 = vld [vmem:[#allocation10 + $0x170] sm:$0xff]  ;;  %v8504_v5 = vpack.c.bf16 %v3718_v46, %v3710_v44 }
 0x3f1   : > { %8495 = vmatprep.subr.bf16.mxu0 %v8494_v36  ;;  %v3931_v36 = vrot.slane %v11044_v32, 3 }
 0x3f2   : > { %7977 = vmatpush1.bf16.msra.mxu1 %v7976_v26  ;;  %v1482_v26 = vld [vmem:[#allocation10 + $0x138] sm:$0xff] }
 0x3f3   : > { %4030 = vmatmul.mubr.f32.gmra.mrb[26].mxu0 %v11324_v6  ;;  %8043 = vmatprep.subr.bf16.mxu1 %v8042_v33  ;;  %v8048_v33 = vpack.c.bf16 %v1473_v61, %v1465_v14  ;;  %v11341_v11 = vsel %vm3914_vm7, %v3927_v57, %v3931_v36  ;;  %v8050_v10 = vpack.c.bf16 %v1490_v7, %v1482_v26  ;;  %v1506_v14 = vld [vmem:[#allocation10 + $0x1f8] sm:$0xff]  ;;  %v3933_v26 = vrot.slane %v11062_v55, 3  ;;  %v3743_v7 = vld [vmem:[#allocation10 + $0x1aa8] sm:$0xff] }
 0x3f4   : > { %4035 = vmatprep.mubr.f32.mxu0 %v11329_v47  ;;  %8497 = vmatpush1.bf16.msra.mxu0 %v8496_v34  ;;  %v3735_v34 = vld [vmem:[#allocation10 + $0x1a68] sm:$0xff]  ;;  %v11348_v57 = vsel %vm3914_vm7, %v3925_v56, %v3929_v45  ;;  %v8508_v56 = vpack.c.bf16 %v3734_v22, %v3726_v51 }
 0x3f5   : > { %2616 = vmatmul.mubr.f32.vlgmr.msra.gmra.mrb[30].mxu1 %v10981_v40  ;;  %8499 = vmatprep.subr.bf16.mxu0 %v8498_v28  ;;  %v3935_v28 = vrot.slane %v11066_v63, 3  ;;  %v8506_v61 = vpack.c.bf16 %v3735_v34, %v3727_v31  ;;  %v1497_v31 = vld [vmem:[#allocation10 + $0x1b0] sm:$0xff]  ;;  %v11953_v51 = vld [vmem:[#allocation31_spill] sm:$0xff] }
 0x3f6   : > { %2621 = vmatprep.mubr.f32.mxu1 %v10989_v58  ;;  %8045 = vmatpush1.bf16.msra.mxu1 %v8044_v35  ;;  %v1498_v35 = vld [vmem:[#allocation10 + $0x1b8] sm:$0xff]  ;;  %v1505_v34 = vld [vmem:[#allocation10 + $0x1f0] sm:$0xff] }
 0x3f7   : > { %4036 = vmatmul.mubr.f32.gmra.mrb[28].mxu0 %v11336_v50  ;;  %8047 = vmatprep.subr.bf16.mxu1 %v8046_v19  ;;  %v8052_v19 = vpack.c.bf16 %v1489_v8, %v1481_v38  ;;  %v11353_v46 = vsel %vm3914_vm7, %v3931_v36, %v3935_v28  ;;  %v8054_v44 = vpack.c.bf16 %v1506_v14, %v1498_v35  ;;  %v1522_v38 = vld [vmem:[#allocation10 + $0x278] sm:$0xff] }
 0x3f8   : > { %4041 = vmatprep.mubr.f32.mxu0 %v11341_v11  ;;  %8501 = vmatpush1.bf16.msra.mxu0 %v8500_v2  ;;  %v3751_v2 = vld [vmem:[#allocation10 + $0x1ae8] sm:$0xff]  ;;  %v11360_v36 = vsel %vm3914_vm7, %v3929_v45, %v3933_v26  ;;  %v11952_v35 = vld [vmem:[#allocation29_spill] sm:$0xff]  ;;  %v8512_v45 = vpack.c.bf16 %v3750_v43, %v3742_v42 }
 0x3f9   : > { %2622 = vmatmul.mubr.f32.gmra.mrb[32].mxu1 %v10986_v52  ;;  %8503 = vmatprep.subr.bf16.mxu0 %v8502_v23  ;;  %v3939_v23 = vrot.slane %v11086_v39, 3  ;;  %v8510_v8 = vpack.c.bf16 %v3751_v2, %v3743_v7  ;;  %v3937_v14 = vrot.slane %v11952_v35, 3  ;;  %v1513_v2 = vld [vmem:[#allocation10 + $0x230] sm:$0xff] }
 0x3fa   : > { %2627 = vmatprep.mubr.f32.mxu1 %v11002_v29  ;;  %8049 = vmatpush1.bf16.msra.mxu1 %v8048_v33  ;;  %v1514_v33 = vld [vmem:[#allocation10 + $0x238] sm:$0xff]  ;;  %v1529_v42 = vld [vmem:[#allocation10 + $0x2b0] sm:$0xff] }
 0x3fb   : > { %4042 = vmatmul.mubr.f32.gmra.mrb[30].mxu0 %v11348_v57  ;;  %8051 = vmatprep.subr.bf16.mxu1 %v8050_v10  ;;  %v8056_v10 = vpack.c.bf16 %v1505_v34, %v1497_v31  ;;  %v11365_v22 = vsel %vm3914_vm7, %v3935_v28, %v3939_v23  ;;  %v8058_v7 = vpack.c.bf16 %v1522_v38, %v1514_v33  ;;  %v1538_v31 = vld [vmem:[#allocation10 + $0x2f8] sm:$0xff] }
 0x3fc   : > { %4047 = vmatprep.mubr.f32.mxu0 %v11353_v46  ;;  %8505 = vmatpush1.bf16.msra.mxu0 %v8504_v5  ;;  %v3767_v5 = vld [vmem:[#allocation10 + $0x1b68] sm:$0xff]  ;;  %v11372_v28 = vsel %vm3914_vm7, %v3933_v26, %v3937_v14  ;;  %v11954_v33 = vld [vmem:[#allocation30_spill] sm:$0xff] }
 0x3fd   : > { %2628 = vmatmul.mubr.f32.gmra.mrb[34].mxu1 %v10997_v18  ;;  %8507 = vmatprep.subr.bf16.mxu0 %v8506_v61  ;;  %v3943_v61 = vrot.slane %v11953_v51, 3  ;;  %v8514_v34 = vpack.c.bf16 %v3767_v5, %v3759_v41  ;;  %v3941_v38 = vrot.slane %v11954_v33, 3  ;;  %v1546_v26 = vld [vmem:[#allocation10 + $0x338] sm:$0xff] }
 0x3fe   : > { %2633 = vmatprep.mubr.f32.mxu1 %v11022_v59  ;;  %8053 = vmatpush1.bf16.msra.mxu1 %v8052_v19  ;;  %v1530_v19 = vld [vmem:[#allocation10 + $0x2b8] sm:$0xff] }
 0x3ff   : > { %4048 = vmatmul.mubr.f32.gmra.mrb[32].mxu0 %v11360_v36  ;;  %8055 = vmatprep.subr.bf16.mxu1 %v8054_v44  ;;  %v8060_v44 = vpack.c.bf16 %v1521_v24, %v1513_v2  ;;  %v11377_v43 = vsel %vm3914_vm7, %v3939_v23, %v3943_v61  ;;  %v8062_v41 = vpack.c.bf16 %v1538_v31, %v1530_v19  ;;  %v1554_v5 = vld [vmem:[#allocation10 + $0x378] sm:$0xff]  ;;  %v3774_v2 = vld [vmem:[#allocation10 + $0x1ba0] sm:$0xff]  ;;  %v3799_v19 = vld [vmem:[#allocation10 + $0x1c68] sm:$0xff] }
 0x400   : > { %4053 = vmatprep.mubr.f32.mxu0 %v11365_v22  ;;  %8509 = vmatpush1.bf16.msra.mxu0 %v8508_v56  ;;  %v3783_v56 = vld [vmem:[#allocation10 + $0x1be8] sm:$0xff]  ;;  %v11383_v23 = vsel %vm3914_vm7, %v3937_v14, %v3941_v38  ;;  %v1562_v31 = vld [vmem:[#allocation10 + $0x3b8] sm:$0xff]  ;;  %v3798_v38 = vld [vmem:[#allocation10 + $0x1c60] sm:$0xff] }
 0x401   : > { %2634 = vmatmul.mubr.f32.gmra.mrb[36].mxu1 %v11018_v49  ;;  %8511 = vmatprep.subr.bf16.mxu0 %v8510_v8  ;;  %v1537_v8 = vld [vmem:[#allocation10 + $0x2f0] sm:$0xff]  ;;  %v8518_v24 = vpack.c.bf16 %v3783_v56, %v3775_v21  ;;  %11955 = vst [vmem:[#allocation29_spill] sm:$0xff] %v11383_v23  ;;  %v8520_v21 = vpack.c.bf16 %v3782_v3, %v3774_v2  ;;  %v1586_v2 = vld [vmem:[#allocation10 + $0x478] sm:$0xff] }
 0x402   : > { %2639 = vmatprep.mubr.f32.mxu1 %v11044_v32  ;;  %8057 = vmatpush1.bf16.msra.mxu1 %v8056_v10  ;;  %v8516_v10 = vpack.c.bf16 %v3766_v1, %v3758_v17  ;;  %v8064_v61 = vpack.c.bf16 %v1537_v8, %v1529_v42  ;;  %v8066_v1 = vpack.c.bf16 %v1554_v5, %v1546_v26  ;;  %v1545_v17 = vld [vmem:[#allocation10 + $0x330] sm:$0xff]  ;;  %v3815_v42 = vld [vmem:[#allocation10 + $0x1ce8] sm:$0xff]  ;;  %v1578_v5 = vld [vmem:[#allocation10 + $0x438] sm:$0xff] }
 0x403   : > { %4054 = vmatmul.mubr.f32.gmra.mrb[34].mxu0 %v11372_v28  ;;  %8059 = vmatprep.subr.bf16.mxu1 %v8058_v7  ;;  %v3791_v7 = vld [vmem:[#allocation10 + $0x1c28] sm:$0xff]  ;;  %v1569_v26 = vld [vmem:[#allocation10 + $0x3f0] sm:$0xff] }
 0x404   : > { %4059 = vmatprep.mubr.f32.mxu0 %v11377_v43  ;;  %8513 = vmatpush1.bf16.msra.mxu0 %v8512_v45  ;;  %v1553_v45 = vld [vmem:[#allocation10 + $0x370] sm:$0xff]  ;;  %v8522_v14 = vpack.c.bf16 %v3799_v19, %v3791_v7  ;;  %v3806_v7 = vld [vmem:[#allocation10 + $0x1ca0] sm:$0xff] }
 0x405   : > { %2640 = vmatmul.mubr.f32.gmra.mrb[38].mxu1 %v11040_v25  ;;  %8515 = vmatprep.subr.bf16.mxu0 %v8514_v34  ;;  %v1570_v34 = vld [vmem:[#allocation10 + $0x3f8] sm:$0xff]  ;;  %v8068_v56 = vpack.c.bf16 %v1553_v45, %v1545_v17  ;;  %v3814_v19 = vld [vmem:[#allocation10 + $0x1ce0] sm:$0xff]  ;;  %v3823_v17 = vld [vmem:[#allocation10 + $0x1d28] sm:$0xff] }
 0x406   : > { %2645 = vmatprep.mubr.f32.mxu1 %v11066_v63  ;;  %8061 = vmatpush1.bf16.msra.mxu1 %v8060_v44  ;;  %v3790_v44 = vld [vmem:[#allocation10 + $0x1c20] sm:$0xff]  ;;  %v8070_v8 = vpack.c.bf16 %v1570_v34, %v1562_v31  ;;  %v3831_v45 = vld [vmem:[#allocation10 + $0x1d68] sm:$0xff]  ;;  %v1577_v31 = vld [vmem:[#allocation10 + $0x430] sm:$0xff] }
 0x407   : > { %4060 = vmatmul.mubr.f32.gmra.mrb[36].mxu0 %v11383_v23  ;;  %8063 = vmatprep.subr.bf16.mxu1 %v8062_v41  ;;  %v3807_v41 = vld [vmem:[#allocation10 + $0x1ca8] sm:$0xff]  ;;  %v8524_v3 = vpack.c.bf16 %v3798_v38, %v3790_v44  ;;  %v1585_v34 = vld [vmem:[#allocation10 + $0x470] sm:$0xff]  ;;  %v1594_v44 = vld [vmem:[#allocation10 + $0x4b8] sm:$0xff] }
 0x408   : > { %8517 = vmatpush1.bf16.msra.mxu0 %v8516_v10  ;;  %4237 = vmatprep.mubr.f32.mxu0 %v11273_v27  ;;  %v1561_v10 = vld [vmem:[#allocation10 + $0x3b0] sm:$0xff]  ;;  %v1602_v38 = vld [vmem:[#allocation10 + $0x4f8] sm:$0xff]  ;;  %v8530_v27 = vpack.c.bf16 %v3831_v45, %v3823_v17  ;;  %v3855_v17 = vld [vmem:[#allocation10 + $0x1e28] sm:$0xff] }
 0x409   : > { %2646 = vmatmul.mubr.f32.gmra.mrb[40].mxu1 %v11062_v55  ;;  %8519 = vmatprep.subr.bf16.mxu0 %v8518_v24  ;;  %v8526_v24 = vpack.c.bf16 %v3815_v42, %v3807_v41  ;;  %v3830_v41 = vld [vmem:[#allocation10 + $0x1d60] sm:$0xff]  ;;  %v8076_v42 = vpack.c.bf16 %v1585_v34, %v1577_v31  ;;  %v3863_v45 = vld [vmem:[#allocation10 + $0x1e68] sm:$0xff]  ;;  %v1609_v31 = vld [vmem:[#allocation10 + $0x530] sm:$0xff] }
 0x40a   : > { %2651 = vmatprep.mubr.f32.mxu1 %v11086_v39  ;;  %8065 = vmatpush1.bf16.msra.mxu1 %v8064_v61  ;;  %v8072_v61 = vpack.c.bf16 %v1569_v26, %v1561_v10  ;;  %v8078_v10 = vpack.c.bf16 %v1602_v38, %v1594_v44  ;;  %v1593_v26 = vld [vmem:[#allocation10 + $0x4b0] sm:$0xff]  ;;  %v1626_v44 = vld [vmem:[#allocation10 + $0x5b8] sm:$0xff] }
 0x40b   : > { %8067 = vmatprep.subr.bf16.mxu1 %v8066_v1  ;;  %v8074_v1 = vpack.c.bf16 %v1586_v2, %v1578_v5  ;;  %v1610_v5 = vld [vmem:[#allocation10 + $0x538] sm:$0xff]  ;;  %v1617_v34 = vld [vmem:[#allocation10 + $0x570] sm:$0xff] }
 0x40c   : > { %8521 = vmatpush1.bf16.msra.mxu0 %v8520_v21  ;;  %v8528_v21 = vpack.c.bf16 %v3814_v19, %v3806_v7  ;;  %v1618_v2 = vld [vmem:[#allocation10 + $0x578] sm:$0xff]  ;;  %v3838_v7 = vld [vmem:[#allocation10 + $0x1da0] sm:$0xff] }
 0x40d   : > { %2652 = vmatmul.mubr.f32.gmra.mrb[42].mxu1 %v11952_v35  ;;  %8523 = vmatprep.subr.bf16.mxu0 %v8522_v14  ;;  %v3822_v14 = vld [vmem:[#allocation10 + $0x1d20] sm:$0xff]  ;;  %v1634_v38 = vld [vmem:[#allocation10 + $0x5f8] sm:$0xff] }
 0x40e   : > { %8069 = vmatpush1.bf16.msra.mxu1 %v8068_v56  ;;  %2829 = vmatprep.mubr.f32.mxu1 %v10979_v37  ;;  %v3839_v56 = vld [vmem:[#allocation10 + $0x1da8] sm:$0xff]  ;;  %v3846_v19 = vld [vmem:[#allocation10 + $0x1de0] sm:$0xff] }
 0x40f   : > { %8071 = vmatprep.subr.bf16.mxu1 %v8070_v8  ;;  %v8532_v8 = vpack.c.bf16 %v3830_v41, %v3822_v14  ;;  %v3854_v14 = vld [vmem:[#allocation10 + $0x1e20] sm:$0xff] }
 0x410   : > { %8525 = vmatpush1.bf16.msra.mxu0 %v8524_v3  ;;  %v8534_v3 = vpack.c.bf16 %v3847_v16, %v3839_v56  ;;  %v3862_v41 = vld [vmem:[#allocation10 + $0x1e60] sm:$0xff]  ;;  %v8084_v16 = vpack.c.bf16 %v1617_v34, %v1609_v31  ;;  %v3879_v56 = vld [vmem:[#allocation10 + $0x1ee8] sm:$0xff]  ;;  %v1641_v31 = vld [vmem:[#allocation10 + $0x630] sm:$0xff] }
 0x411   : > { %8527 = vmatprep.subr.bf16.mxu0 %v8526_v24  ;;  %v8080_v24 = vpack.c.bf16 %v1601_v30, %v1593_v26  ;;  %v8086_v30 = vpack.c.bf16 %v1634_v38, %v1626_v44  ;;  %v1633_v26 = vld [vmem:[#allocation10 + $0x5f0] sm:$0xff]  ;;  %v1658_v44 = vld [vmem:[#allocation10 + $0x6b8] sm:$0xff] }
 0x412   : > { %8073 = vmatpush1.bf16.msra.mxu1 %v8072_v61  ;;  %v8082_v61 = vpack.c.bf16 %v1618_v2, %v1610_v5  ;;  %v1642_v5 = vld [vmem:[#allocation10 + $0x638] sm:$0xff]  ;;  %v1649_v34 = vld [vmem:[#allocation10 + $0x670] sm:$0xff] }
 0x413   : > { %8075 = vmatprep.subr.bf16.mxu1 %v8074_v1  ;;  %v8536_v1 = vpack.c.bf16 %v3846_v19, %v3838_v7  ;;  %v1650_v2 = vld [vmem:[#allocation10 + $0x678] sm:$0xff]  ;;  %v3870_v7 = vld [vmem:[#allocation10 + $0x1ea0] sm:$0xff] }
 0x414   : > { %8529 = vmatpush1.bf16.msra.mxu0 %v8528_v21  ;;  %v8538_v21 = vpack.c.bf16 %v3863_v45, %v3855_v17  ;;  %v3878_v19 = vld [vmem:[#allocation10 + $0x1ee0] sm:$0xff]  ;;  %v3887_v17 = vld [vmem:[#allocation10 + $0x1f28] sm:$0xff]  ;;  %v1666_v38 = vld [vmem:[#allocation10 + $0x6f8] sm:$0xff] }
 0x415   : > { %8531 = vmatprep.subr.bf16.mxu0 %v8530_v27  ;;  %v3871_v27 = vld [vmem:[#allocation10 + $0x1ea8] sm:$0xff] }
 0x416   : > { %8077 = vmatpush1.bf16.msra.mxu1 %v8076_v42  ;;  %v1625_v42 = vld [vmem:[#allocation10 + $0x5b0] sm:$0xff]  ;;  %v3895_v45 = vld [vmem:[#allocation10 + $0x1f68] sm:$0xff] }
 0x417   : > { %8079 = vmatprep.subr.bf16.mxu1 %v8078_v10  ;;  %v8540_v10 = vpack.c.bf16 %v3862_v41, %v3854_v14  ;;  %v3886_v14 = vld [vmem:[#allocation10 + $0x1f20] sm:$0xff] }
 0x418   : > { %8533 = vmatpush1.bf16.msra.mxu0 %v8532_v8  ;;  %v8542_v8 = vpack.c.bf16 %v3879_v56, %v3871_v27  ;;  %v3894_v41 = vld [vmem:[#allocation10 + $0x1f60] sm:$0xff]  ;;  %v3903_v27 = vld [vmem:[#allocation10 + $0x1fa8] sm:$0xff] }
 0x419   : > { %8535 = vmatprep.subr.bf16.mxu0 %v8534_v3  ;;  %v8088_v3 = vpack.c.bf16 %v1633_v26, %v1625_v42  ;;  %v3911_v56 = vld [vmem:[#allocation10 + $0x1fe8] sm:$0xff]  ;;  %v1657_v42 = vld [vmem:[#allocation10 + $0x6b0] sm:$0xff] }
 0x41a   : > { %8081 = vmatpush1.bf16.msra.mxu1 %v8080_v24  ;;  %v8090_v24 = vpack.c.bf16 %v1650_v2, %v1642_v5  ;;  %v1665_v26 = vld [vmem:[#allocation10 + $0x6f0] sm:$0xff]  ;;  %v1674_v5 = vld [vmem:[#allocation10 + $0x738] sm:$0xff] }
 0x41b   : > { %8083 = vmatprep.subr.bf16.mxu1 %v8082_v61  ;;  %v8544_v61 = vpack.c.bf16 %v3878_v19, %v3870_v7  ;;  %v1682_v2 = vld [vmem:[#allocation10 + $0x778] sm:$0xff]  ;;  %v3902_v7 = vld [vmem:[#allocation10 + $0x1fa0] sm:$0xff] }
 0x41c   : > { %8537 = vmatpush1.bf16.msra.mxu0 %v8536_v1  ;;  %v8546_v1 = vpack.c.bf16 %v3895_v45, %v3887_v17  ;;  %v3910_v19 = vld [vmem:[#allocation10 + $0x1fe0] sm:$0xff]  ;;  %v4445_v17 = vld [vmem:[#allocation10 + $0x2008] sm:$0xff] }
 0x41d   : > { %8539 = vmatprep.subr.bf16.mxu0 %v8538_v21  ;;  %v8092_v21 = vpack.c.bf16 %v1649_v34, %v1641_v31  ;;  %v4453_v45 = vld [vmem:[#allocation10 + $0x2048] sm:$0xff]  ;;  %v1673_v31 = vld [vmem:[#allocation10 + $0x730] sm:$0xff] }
 0x41e   : > { %8085 = vmatpush1.bf16.msra.mxu1 %v8084_v16  ;;  %v8094_v16 = vpack.c.bf16 %v1666_v38, %v1658_v44  ;;  %v1681_v34 = vld [vmem:[#allocation10 + $0x770] sm:$0xff]  ;;  %v1690_v44 = vld [vmem:[#allocation10 + $0x7b8] sm:$0xff] }
 0x41f   : > { %8087 = vmatprep.subr.bf16.mxu1 %v8086_v30  ;;  %v8548_v30 = vpack.c.bf16 %v3894_v41, %v3886_v14  ;;  %v1698_v38 = vld [vmem:[#allocation10 + $0x7f8] sm:$0xff]  ;;  %v4444_v14 = vld [vmem:[#allocation10 + $0x2000] sm:$0xff] }
 0x420   : > { %8541 = vmatpush1.bf16.msra.mxu0 %v8540_v10  ;;  %v8550_v10 = vpack.c.bf16 %v3911_v56, %v3903_v27  ;;  %v4452_v41 = vld [vmem:[#allocation10 + $0x2040] sm:$0xff]  ;;  %v4461_v27 = vld [vmem:[#allocation10 + $0x2088] sm:$0xff] }
 0x421   : > { %8543 = vmatprep.subr.bf16.mxu0 %v8542_v8  ;;  %v8096_v8 = vpack.c.bf16 %v1665_v26, %v1657_v42  ;;  %v4469_v56 = vld [vmem:[#allocation10 + $0x20c8] sm:$0xff]  ;;  %v1689_v42 = vld [vmem:[#allocation10 + $0x7b0] sm:$0xff] }
 0x422   : > { %8089 = vmatpush1.bf16.msra.mxu1 %v8088_v3  ;;  %v8098_v3 = vpack.c.bf16 %v1682_v2, %v1674_v5  ;;  %v1697_v26 = vld [vmem:[#allocation10 + $0x7f0] sm:$0xff]  ;;  %v2876_v5 = vld [vmem:[#allocation10 + $0x1018] sm:$0xff] }
 0x423   : > { %8091 = vmatprep.subr.bf16.mxu1 %v8090_v24  ;;  %v8552_v24 = vpack.c.bf16 %v3910_v19, %v3902_v7  ;;  %v2884_v2 = vld [vmem:[#allocation10 + $0x1058] sm:$0xff]  ;;  %v4460_v7 = vld [vmem:[#allocation10 + $0x2080] sm:$0xff] }
 0x424   : > { %8545 = vmatpush1.bf16.msra.mxu0 %v8544_v61  ;;  %v8618_v61 = vpack.c.bf16 %v4453_v45, %v4445_v17  ;;  %v4468_v19 = vld [vmem:[#allocation10 + $0x20c0] sm:$0xff]  ;;  %v4477_v17 = vld [vmem:[#allocation10 + $0x2108] sm:$0xff] }
 0x425   : > { %8547 = vmatprep.subr.bf16.mxu0 %v8546_v1  ;;  %v8100_v1 = vpack.c.bf16 %v1681_v34, %v1673_v31  ;;  %v4485_v45 = vld [vmem:[#allocation10 + $0x2148] sm:$0xff]  ;;  %v2883_v31 = vld [vmem:[#allocation10 + $0x1050] sm:$0xff]  ;;  %v8624_v34 = vpack.c.bf16 %v4468_v19, %v4460_v7  ;;  %v4500_v7 = vld [vmem:[#allocation10 + $0x21c0] sm:$0xff] }
 0x426   : > { %8093 = vmatpush1.bf16.msra.mxu1 %v8092_v21  ;;  %v8102_v21 = vpack.c.bf16 %v1698_v38, %v1690_v44  ;;  %v2900_v44 = vld [vmem:[#allocation10 + $0x10d8] sm:$0xff]  ;;  %v8626_v38 = vpack.c.bf16 %v4485_v45, %v4477_v17  ;;  %v4517_v17 = vld [vmem:[#allocation10 + $0x2248] sm:$0xff] }
 0x427   : > { %8095 = vmatprep.subr.bf16.mxu1 %v8094_v16  ;;  %v8620_v16 = vpack.c.bf16 %v4452_v41, %v4444_v14  ;;  %v4484_v14 = vld [vmem:[#allocation10 + $0x2140] sm:$0xff] }
 0x428   : > { %8549 = vmatpush1.bf16.msra.mxu0 %v8548_v30  ;;  %v8622_v30 = vpack.c.bf16 %v4469_v56, %v4461_v27  ;;  %v4501_v27 = vld [vmem:[#allocation10 + $0x21c8] sm:$0xff] }
 0x429   : > { %8551 = vmatprep.subr.bf16.mxu0 %v8550_v10  ;;  %v8104_v10 = vpack.c.bf16 %v1697_v26, %v1689_v42  ;;  %v2899_v42 = vld [vmem:[#allocation10 + $0x10d0] sm:$0xff] }
 0x42a   : > { %8097 = vmatpush1.bf16.msra.mxu1 %v8096_v8  ;;  %v8170_v8 = vpack.c.bf16 %v2884_v2, %v2876_v5  ;;  %v2916_v5 = vld [vmem:[#allocation10 + $0x1158] sm:$0xff] }
 0x42b   : > { %8099 = vmatprep.subr.bf16.mxu1 %v8098_v3  ;;  %v2875_v3 = vld [vmem:[#allocation10 + $0x1010] sm:$0xff] }
 0x42c   : > { %8553 = vmatpush1.bf16.msra.mxu0 %v8552_v24  ;;  %v2892_v24 = vld [vmem:[#allocation10 + $0x1098] sm:$0xff]  ;;  %v8172_v41 = vpack.c.bf16 %v2883_v31, %v2875_v3  ;;  %v2915_v3 = vld [vmem:[#allocation10 + $0x1150] sm:$0xff] }
 0x42d   : > { %8619 = vmatprep.subr.bf16.mxu0 %v8618_v61  ;;  %v4476_v61 = vld [vmem:[#allocation10 + $0x2100] sm:$0xff]  ;;  %v8174_v56 = vpack.c.bf16 %v2900_v44, %v2892_v24  ;;  %v2932_v24 = vld [vmem:[#allocation10 + $0x11d8] sm:$0xff] }
 0x42e   : > { %8101 = vmatpush1.bf16.msra.mxu1 %v8100_v1  ;;  %v4493_v1 = vld [vmem:[#allocation10 + $0x2188] sm:$0xff]  ;;  %v8628_v26 = vpack.c.bf16 %v4484_v14, %v4476_v61  ;;  %v4516_v61 = vld [vmem:[#allocation10 + $0x2240] sm:$0xff] }
 0x42f   : > { %4238 = vmatmul.mubr.f32.vlgmr.msra.gmra.mrb[38].mxu0 %v11312_v62  ;;  %8103 = vmatprep.subr.bf16.mxu1 %v8102_v21  ;;  %v2891_v21 = vld [vmem:[#allocation10 + $0x1090] sm:$0xff]  ;;  %v8630_v2 = vpack.c.bf16 %v4501_v27, %v4493_v1  ;;  %v4533_v1 = vld [vmem:[#allocation10 + $0x22c8] sm:$0xff] }
 0x430   : > { %4243 = vmatprep.mubr.f32.mxu0 %v11319_v4  ;;  %8621 = vmatpush1.bf16.msra.mxu0 %v8620_v16  ;;  %v2908_v16 = vld [vmem:[#allocation10 + $0x1118] sm:$0xff]  ;;  %v8176_v19 = vpack.c.bf16 %v2899_v42, %v2891_v21  ;;  %v2931_v21 = vld [vmem:[#allocation10 + $0x11d0] sm:$0xff] }
 0x431   : > { %8623 = vmatprep.subr.bf16.mxu0 %v8622_v30  ;;  %v4492_v30 = vld [vmem:[#allocation10 + $0x2180] sm:$0xff]  ;;  %v8178_v45 = vpack.c.bf16 %v2916_v5, %v2908_v16  ;;  %v2948_v16 = vld [vmem:[#allocation10 + $0x1258] sm:$0xff] }
 0x432   : > { %8105 = vmatpush1.bf16.msra.mxu1 %v8104_v10  ;;  %v4509_v10 = vld [vmem:[#allocation10 + $0x2208] sm:$0xff]  ;;  %v8632_v31 = vpack.c.bf16 %v4500_v7, %v4492_v30  ;;  %v4532_v30 = vld [vmem:[#allocation10 + $0x22c0] sm:$0xff] }
 0x433   : > { %4244 = vmatmul.mubr.f32.gmra.mrb[40].mxu0 %v11324_v6  ;;  %8171 = vmatprep.subr.bf16.mxu1 %v8170_v8  ;;  %v2907_v8 = vld [vmem:[#allocation10 + $0x1110] sm:$0xff]  ;;  %v8634_v44 = vpack.c.bf16 %v4517_v17, %v4509_v10  ;;  %v4549_v10 = vld [vmem:[#allocation10 + $0x2348] sm:$0xff] }
 0x434   : > { %4249 = vmatprep.mubr.f32.mxu0 %v11329_v47  ;;  %8625 = vmatpush1.bf16.msra.mxu0 %v8624_v34  ;;  %v2924_v34 = vld [vmem:[#allocation10 + $0x1198] sm:$0xff]  ;;  %v8180_v14 = vpack.c.bf16 %v2915_v3, %v2907_v8  ;;  %v2947_v8 = vld [vmem:[#allocation10 + $0x1250] sm:$0xff] }
 0x435   : > { %2830 = vmatmul.mubr.f32.vlgmr.msra.gmra.mrb[58].mxu1 %v10981_v40  ;;  %8627 = vmatprep.subr.bf16.mxu0 %v8626_v38  ;;  %v4508_v38 = vld [vmem:[#allocation10 + $0x2200] sm:$0xff]  ;;  %v8182_v27 = vpack.c.bf16 %v2932_v24, %v2924_v34  ;;  %v2964_v34 = vld [vmem:[#allocation10 + $0x12d8] sm:$0xff] }
 0x436   : > { %2835 = vmatprep.mubr.f32.mxu1 %v10989_v58  ;;  %8173 = vmatpush1.bf16.msra.mxu1 %v8172_v41  ;;  %v4525_v41 = vld [vmem:[#allocation10 + $0x2288] sm:$0xff]  ;;  %v8636_v42 = vpack.c.bf16 %v4516_v61, %v4508_v38  ;;  %v4548_v38 = vld [vmem:[#allocation10 + $0x2340] sm:$0xff] }
 0x437   : > { %4250 = vmatmul.mubr.f32.gmra.mrb[42].mxu0 %v11336_v50  ;;  %8175 = vmatprep.subr.bf16.mxu1 %v8174_v56  ;;  %v2923_v56 = vld [vmem:[#allocation10 + $0x1190] sm:$0xff]  ;;  %v8638_v5 = vpack.c.bf16 %v4533_v1, %v4525_v41  ;;  %v4565_v41 = vld [vmem:[#allocation10 + $0x23c8] sm:$0xff]  ;;  %v11898_v1 = vrot.slane %v10989_v58, 4 }
 0x438   : > { %4255 = vmatprep.mubr.f32.mxu0 %v11341_v11  ;;  %8629 = vmatpush1.bf16.msra.mxu0 %v8628_v26  ;;  %v2940_v26 = vld [vmem:[#allocation10 + $0x1218] sm:$0xff]  ;;  %v8184_v7 = vpack.c.bf16 %v2931_v21, %v2923_v56  ;;  %v2955_v56 = vld [vmem:[#allocation10 + $0x1290] sm:$0xff] }
 0x439   : > { %2836 = vmatmul.mubr.f32.gmra.mrb[60].mxu1 %v10986_v52  ;;  %8631 = vmatprep.subr.bf16.mxu0 %v8630_v2  ;;  %v4524_v2 = vld [vmem:[#allocation10 + $0x2280] sm:$0xff]  ;;  %v8186_v17 = vpack.c.bf16 %v2948_v16, %v2940_v26  ;;  %v2963_v21 = vld [vmem:[#allocation10 + $0x12d0] sm:$0xff]  ;;  %v2972_v26 = vld [vmem:[#allocation10 + $0x1318] sm:$0xff] }
 0x43a   : > { %2841 = vmatprep.mubr.f32.mxu1 %v11002_v29  ;;  %8177 = vmatpush1.bf16.msra.mxu1 %v8176_v19  ;;  %v4541_v19 = vld [vmem:[#allocation10 + $0x2308] sm:$0xff]  ;;  %v8640_v3 = vpack.c.bf16 %v4532_v30, %v4524_v2  ;;  %v2980_v16 = vld [vmem:[#allocation10 + $0x1358] sm:$0xff]  ;;  %v4556_v30 = vld [vmem:[#allocation10 + $0x2380] sm:$0xff] }
 0x43b   : > { %4256 = vmatmul.mubr.f32.gmra.mrb[44].mxu0 %v11348_v57  ;;  %8179 = vmatprep.subr.bf16.mxu1 %v8178_v45  ;;  %v2939_v45 = vld [vmem:[#allocation10 + $0x1210] sm:$0xff]  ;;  %v8642_v24 = vpack.c.bf16 %v4549_v10, %v4541_v19  ;;  %v8192_v19 = vpack.c.bf16 %v2963_v21, %v2955_v56  ;;  %v4573_v10 = vld [vmem:[#allocation10 + $0x2408] sm:$0xff] }
 0x43c   : > { %4261 = vmatprep.mubr.f32.mxu0 %v11353_v46  ;;  %8633 = vmatpush1.bf16.msra.mxu0 %v8632_v31  ;;  %v2956_v31 = vld [vmem:[#allocation10 + $0x1298] sm:$0xff]  ;;  %v8188_v61 = vpack.c.bf16 %v2947_v8, %v2939_v45  ;;  %v8194_v8 = vpack.c.bf16 %v2980_v16, %v2972_v26  ;;  %v4589_v56 = vld [vmem:[#allocation10 + $0x2488] sm:$0xff]  ;;  %v2987_v26 = vld [vmem:[#allocation10 + $0x1390] sm:$0xff] }
 0x43d   : > { %2842 = vmatmul.mubr.f32.gmra.mrb[62].mxu1 %v10997_v18  ;;  %8635 = vmatprep.subr.bf16.mxu0 %v8634_v44  ;;  %v4540_v44 = vld [vmem:[#allocation10 + $0x2300] sm:$0xff]  ;;  %v4597_v21 = vld [vmem:[#allocation10 + $0x24c8] sm:$0xff]  ;;  %v2995_v16 = vld [vmem:[#allocation10 + $0x13d0] sm:$0xff] }
 0x43e   : > { %2847 = vmatprep.mubr.f32.mxu1 %v11022_v59  ;;  %8181 = vmatpush1.bf16.msra.mxu1 %v8180_v14  ;;  %v4557_v14 = vld [vmem:[#allocation10 + $0x2388] sm:$0xff] }
 0x43f   : > { %4262 = vmatmul.mubr.f32.gmra.mrb[46].mxu0 %v11360_v36  ;;  %8183 = vmatprep.subr.bf16.mxu1 %v8182_v27  ;;  %v8190_v27 = vpack.c.bf16 %v2964_v34, %v2956_v31  ;;  %v8646_v2 = vpack.c.bf16 %v4565_v41, %v4557_v14  ;;  %v4572_v14 = vld [vmem:[#allocation10 + $0x2400] sm:$0xff] }
 0x440   : > { %4267 = vmatprep.mubr.f32.mxu0 %v11365_v22  ;;  %8637 = vmatpush1.bf16.msra.mxu0 %v8636_v42  ;;  %v8644_v42 = vpack.c.bf16 %v4548_v38, %v4540_v44  ;;  %v2996_v44 = vld [vmem:[#allocation10 + $0x13d8] sm:$0xff]  ;;  %v4580_v41 = vld [vmem:[#allocation10 + $0x2440] sm:$0xff] }
 0x441   : > { %2848 = vmatmul.mubr.f32.gmra.mrb[64].mxu1 %v11018_v49  ;;  %8639 = vmatprep.subr.bf16.mxu0 %v8638_v5  ;;  %v4704_v5 = vrot.slane %v10979_v37, 4  ;;  %v2979_v37 = vld [vmem:[#allocation10 + $0x1350] sm:$0xff] }
 0x442   : > { %2853 = vmatprep.mubr.f32.mxu1 %v11044_v32  ;;  %8185 = vmatpush1.bf16.msra.mxu1 %v8184_v7  ;;  %v4564_v7 = vld [vmem:[#allocation10 + $0x23c0] sm:$0xff] }
 0x443   : > { %4268 = vmatmul.mubr.f32.gmra.mrb[48].mxu0 %v11372_v28  ;;  %8187 = vmatprep.subr.bf16.mxu1 %v8186_v17  ;;  %v4581_v17 = vld [vmem:[#allocation10 + $0x2448] sm:$0xff]  ;;  %v11419_v45 = vsel %vm4700_vm8, %v4704_v5, %v11898_v1  ;;  %v8648_v34 = vpack.c.bf16 %v4564_v7, %v4556_v30  ;;  %v8652_v30 = vpack.c.bf16 %v4580_v41, %v4572_v14  ;;  %v3004_v7 = vld [vmem:[#allocation10 + $0x1418] sm:$0xff]  ;;  %v3011_v14 = vld [vmem:[#allocation10 + $0x1450] sm:$0xff] }
 0x444   : > { %4273 = vmatprep.mubr.f32.mxu0 %v11377_v43  ;;  %8641 = vmatpush1.bf16.msra.mxu0 %v8640_v3  ;;  %v2971_v3 = vld [vmem:[#allocation10 + $0x1310] sm:$0xff]  ;;  %v3012_v1 = vld [vmem:[#allocation10 + $0x1458] sm:$0xff] }
 0x445   : > { %2854 = vmatmul.mubr.f32.gmra.mrb[66].mxu1 %v11040_v25  ;;  %8643 = vmatprep.subr.bf16.mxu0 %v8642_v24  ;;  %v2988_v24 = vld [vmem:[#allocation10 + $0x1398] sm:$0xff] }
 0x446   : > { %2859 = vmatprep.mubr.f32.mxu1 %v11066_v63  ;;  %8189 = vmatpush1.bf16.msra.mxu1 %v8188_v61  ;;  %v8650_v61 = vpack.c.bf16 %v4581_v17, %v4573_v10  ;;  %v8654_v10 = vpack.c.bf16 %v4597_v21, %v4589_v56  ;;  %v4596_v17 = vld [vmem:[#allocation10 + $0x24c0] sm:$0xff] }
 0x447   : > { %4274 = vmatmul.mubr.f32.gmra.mrb[50].mxu0 %v11383_v23  ;;  %8191 = vmatprep.subr.bf16.mxu1 %v8190_v27  ;;  %v8196_v27 = vpack.c.bf16 %v2979_v37, %v2971_v3  ;;  %v11960_v3 = vld [vmem:[#allocation32_spill] sm:$0xff]  ;;  %v4612_v21 = vld [vmem:[#allocation10 + $0x2540] sm:$0xff] }
 0x448   : > { %8645 = vmatpush1.bf16.msra.mxu0 %v8644_v42  ;;  %4809 = vmatprep.mubr.f32.mxu0 %v11419_v45  ;;  %v11422_v31 = vpop.f32.mrb[44].mxu1  ;;  %v8198_v42 = vpack.c.bf16 %v2996_v44, %v2988_v24  ;;  %v4605_v37 = vld [vmem:[#allocation10 + $0x2508] sm:$0xff]  ;;  %v3003_v44 = vld [vmem:[#allocation10 + $0x1410] sm:$0xff] }
 0x449   : > { %11956 = vst [vmem:[#allocation31_spill] sm:$0xff] %v11422_v31  ;;  %v11424_v38 = vpop.f32.mrb[45].mxu1  ;;  %2860 = vmatmul.mubr.f32.gmra.mrb[68].mxu1 %v11062_v55  ;;  %8647 = vmatprep.subr.bf16.mxu0 %v8646_v2  ;;  %v4613_v24 = vld [vmem:[#allocation10 + $0x2548] sm:$0xff] }
 0x44a   : > { %11957 = vst [vmem:[#allocation30_spill] sm:$0xff] %v11424_v38  ;;  %2865 = vmatprep.mubr.f32.mxu1 %v11086_v39  ;;  %8193 = vmatpush1.bf16.msra.mxu1 %v8192_v19  ;;  %v4588_v19 = vld [vmem:[#allocation10 + $0x2480] sm:$0xff]  ;;  %v3028_v38 = vld [vmem:[#allocation10 + $0x14d8] sm:$0xff]  ;;  %v8658_v56 = vpack.c.bf16 %v4613_v24, %v4605_v37  ;;  %v4629_v31 = vld [vmem:[#allocation10 + $0x25c8] sm:$0xff] }
 0x44b   : > { %8195 = vmatprep.subr.bf16.mxu1 %v8194_v8  ;;  %v8200_v8 = vpack.c.bf16 %v2995_v16, %v2987_v26  ;;  %v8204_v26 = vpack.c.bf16 %v3011_v14, %v3003_v44  ;;  %v4621_v16 = vld [vmem:[#allocation10 + $0x2588] sm:$0xff]  ;;  %v4620_v37 = vld [vmem:[#allocation10 + $0x2580] sm:$0xff] }
 0x44c   : > { %8649 = vmatpush1.bf16.msra.mxu0 %v8648_v34  ;;  %v11428_v5 = vpop.f32.mrb[46].mxu1  ;;  %v8202_v34 = vpack.c.bf16 %v3012_v1, %v3004_v7  ;;  %v3027_v7 = vld [vmem:[#allocation10 + $0x14d0] sm:$0xff]  ;;  %v4628_v24 = vld [vmem:[#allocation10 + $0x25c0] sm:$0xff]  ;;  %v4637_v44 = vld [vmem:[#allocation10 + $0x2608] sm:$0xff] }
 0x44d   : > { %11958 = vst [vmem:[#allocation51_spill] sm:$0xff] %v11428_v5  ;;  %v11430_v2 = vpop.f32.mrb[47].mxu1  ;;  %2866 = vmatmul.mubr.f32.gmra.mrb[70].mxu1 %v11952_v35  ;;  %8651 = vmatprep.subr.bf16.mxu0 %v8650_v61  ;;  %v3020_v5 = vld [vmem:[#allocation10 + $0x1498] sm:$0xff]  ;;  %v4645_v14 = vld [vmem:[#allocation10 + $0x2648] sm:$0xff] }
 0x44e   : > { %11959 = vst [vmem:[#allocation52_spill] sm:$0xff] %v11430_v2  ;;  %8197 = vmatpush1.bf16.msra.mxu1 %v8196_v27  ;;  %3344 = vmatprep.mubr.f32.mxu1 %v11960_v3  ;;  %v8656_v2 = vpack.c.bf16 %v4596_v17, %v4588_v19  ;;  %v4604_v27 = vld [vmem:[#allocation10 + $0x2500] sm:$0xff]  ;;  %v8206_v1 = vpack.c.bf16 %v3028_v38, %v3020_v5  ;;  %v3036_v17 = vld [vmem:[#allocation10 + $0x1518] sm:$0xff]  ;;  %v3035_v5 = vld [vmem:[#allocation10 + $0x1510] sm:$0xff] }
 0x44f   : > { %8199 = vmatprep.subr.bf16.mxu1 %v8198_v42  ;;  %v3019_v42 = vld [vmem:[#allocation10 + $0x1490] sm:$0xff]  ;;  %v8660_v19 = vpack.c.bf16 %v4612_v21, %v4604_v27  ;;  %v8664_v27 = vpack.c.bf16 %v4628_v24, %v4620_v37  ;;  %v3052_v21 = vld [vmem:[#allocation10 + $0x1598] sm:$0xff] }
 0x450   : > { %8653 = vmatpush1.bf16.msra.mxu0 %v8652_v30  ;;  %v11434_v41 = vpop.f32.mrb[48].mxu1  ;;  %v3068_v24 = vld [vmem:[#allocation10 + $0x1618] sm:$0xff] }
 0x451   : > { %11961 = vst [vmem:[#allocation32_spill] sm:$0xff] %v11434_v41  ;;  %v11436_v61 = vpop.f32.mrb[49].mxu1  ;;  %8655 = vmatprep.subr.bf16.mxu0 %v8654_v10  ;;  %v3044_v41 = vld [vmem:[#allocation10 + $0x1558] sm:$0xff]  ;;  %v8662_v10 = vpack.c.bf16 %v4629_v31, %v4621_v16  ;;  %v8666_v31 = vpack.c.bf16 %v4645_v14, %v4637_v44  ;;  %v4644_v16 = vld [vmem:[#allocation10 + $0x2640] sm:$0xff] }
 0x452   : > { %11962 = vst [vmem:[#allocation53_spill] sm:$0xff] %v11436_v61  ;;  %8201 = vmatpush1.bf16.msra.mxu1 %v8200_v8  ;;  %v8208_v8 = vpack.c.bf16 %v3027_v7, %v3019_v42  ;;  %v8210_v38 = vpack.c.bf16 %v3044_v41, %v3036_v17  ;;  %v4653_v42 = vld [vmem:[#allocation10 + $0x2688] sm:$0xff]  ;;  %v3059_v17 = vld [vmem:[#allocation10 + $0x15d0] sm:$0xff]  ;;  %v4652_v44 = vld [vmem:[#allocation10 + $0x2680] sm:$0xff] }
 0x453   : > { %8203 = vmatprep.subr.bf16.mxu1 %v8202_v34  ;;  %v3043_v34 = vld [vmem:[#allocation10 + $0x1550] sm:$0xff]  ;;  %v4661_v7 = vld [vmem:[#allocation10 + $0x26c8] sm:$0xff]  ;;  %v4660_v14 = vld [vmem:[#allocation10 + $0x26c0] sm:$0xff] }
 0x454   : > { %8657 = vmatpush1.bf16.msra.mxu0 %v8656_v2  ;;  %v11438_v30 = vpop.f32.mrb[50].mxu1 }
 0x455   : > { %11963 = vst [vmem:[#allocation54_spill] sm:$0xff] %v11438_v30  ;;  %v11440_v23 = vpop.f32.mrb[51].mxu1  ;;  %8659 = vmatprep.subr.bf16.mxu0 %v8658_v56  ;;  %v3060_v30 = vld [vmem:[#allocation10 + $0x15d8] sm:$0xff]  ;;  %v4636_v56 = vld [vmem:[#allocation10 + $0x2600] sm:$0xff] }
 0x456   : > { %11964 = vst [vmem:[#allocation55_spill] sm:$0xff] %v11440_v23  ;;  %8205 = vmatpush1.bf16.msra.mxu1 %v8204_v26  ;;  %v8212_v26 = vpack.c.bf16 %v3043_v34, %v3035_v5  ;;  %v8214_v41 = vpack.c.bf16 %v3060_v30, %v3052_v21  ;;  %v8668_v37 = vpack.c.bf16 %v4644_v16, %v4636_v56  ;;  %v4669_v5 = vld [vmem:[#allocation10 + $0x2708] sm:$0xff]  ;;  %v3075_v21 = vld [vmem:[#allocation10 + $0x1650] sm:$0xff]  ;;  %v3084_v16 = vld [vmem:[#allocation10 + $0x1698] sm:$0xff] }
 0x457   : > { %8207 = vmatprep.subr.bf16.mxu1 %v8206_v1  ;;  %v3051_v1 = vld [vmem:[#allocation10 + $0x1590] sm:$0xff]  ;;  %v4677_v34 = vld [vmem:[#allocation10 + $0x2748] sm:$0xff]  ;;  %v8672_v56 = vpack.c.bf16 %v4660_v14, %v4652_v44  ;;  %v3108_v44 = vld [vmem:[#allocation10 + $0x1758] sm:$0xff] }
 0x458   : > { %8661 = vmatpush1.bf16.msra.mxu0 %v8660_v19  ;;  %v11442_v2 = vpop.f32.mrb[52].mxu1 }
 0x459   : > { %11965 = vst [vmem:[#allocation56_spill] sm:$0xff] %v11442_v2  ;;  %v11444_v61 = vpop.f32.mrb[53].mxu1  ;;  %8663 = vmatprep.subr.bf16.mxu0 %v8662_v10  ;;  %v3076_v2 = vld [vmem:[#allocation10 + $0x1658] sm:$0xff]  ;;  %v8670_v10 = vpack.c.bf16 %v4661_v7, %v4653_v42  ;;  %v4668_v42 = vld [vmem:[#allocation10 + $0x2700] sm:$0xff] }
 0x45a   : > { %11966 = vst [vmem:[#allocation57_spill] sm:$0xff] %v11444_v61  ;;  %8209 = vmatpush1.bf16.msra.mxu1 %v8208_v8  ;;  %v8216_v8 = vpack.c.bf16 %v3059_v17, %v3051_v1  ;;  %v8218_v30 = vpack.c.bf16 %v3076_v2, %v3068_v24  ;;  %v4676_v7 = vld [vmem:[#allocation10 + $0x2740] sm:$0xff]  ;;  %v4685_v1 = vld [vmem:[#allocation10 + $0x2788] sm:$0xff]  ;;  %v3091_v24 = vld [vmem:[#allocation10 + $0x16d0] sm:$0xff] }
 0x45b   : > { %8211 = vmatprep.subr.bf16.mxu1 %v8210_v38  ;;  %v3067_v38 = vld [vmem:[#allocation10 + $0x1610] sm:$0xff]  ;;  %v4693_v17 = vld [vmem:[#allocation10 + $0x27c8] sm:$0xff] }
 0x45c   : > { %8665 = vmatpush1.bf16.msra.mxu0 %v8664_v27  ;;  %v11446_v19 = vpop.f32.mrb[54].mxu1  ;;  %v8678_v14 = vpack.c.bf16 %v4693_v17, %v4685_v1  ;;  %v4702_v1 = vrot.slane %v10986_v52, 4  ;;  %v4473_v17 = vld [vmem:[#allocation10 + $0x20e8] sm:$0xff] }
 0x45d   : > { %11967 = vst [vmem:[#allocation58_spill] sm:$0xff] %v11446_v19  ;;  %v11448_v23 = vpop.f32.mrb[55].mxu1  ;;  %8667 = vmatprep.subr.bf16.mxu0 %v8666_v31  ;;  %v3092_v19 = vld [vmem:[#allocation10 + $0x16d8] sm:$0xff]  ;;  %v8674_v31 = vpack.c.bf16 %v4677_v34, %v4669_v5  ;;  %v4449_v5 = vld [vmem:[#allocation10 + $0x2028] sm:$0xff] }
 0x45e   : > { %11968 = vst [vmem:[#allocation59_spill] sm:$0xff] %v11448_v23  ;;  %8213 = vmatpush1.bf16.msra.mxu1 %v8212_v26  ;;  %v8220_v26 = vpack.c.bf16 %v3075_v21, %v3067_v38  ;;  %v8222_v2 = vpack.c.bf16 %v3092_v19, %v3084_v16  ;;  %v4684_v23 = vld [vmem:[#allocation10 + $0x2780] sm:$0xff]  ;;  %v4457_v34 = vld [vmem:[#allocation10 + $0x2068] sm:$0xff]  ;;  %v3099_v38 = vld [vmem:[#allocation10 + $0x1710] sm:$0xff] }
 0x45f   : > { %8215 = vmatprep.subr.bf16.mxu1 %v8214_v41  ;;  %v3083_v41 = vld [vmem:[#allocation10 + $0x1690] sm:$0xff]  ;;  %v3124_v16 = vld [vmem:[#allocation10 + $0x17d8] sm:$0xff] }
 0x460   : > { %8669 = vmatpush1.bf16.msra.mxu0 %v8668_v37  ;;  %v11450_v27 = vpop.f32.mrb[56].mxu1  ;;  %v8676_v37 = vpack.c.bf16 %v4676_v7, %v4668_v42  ;;  %v3107_v21 = vld [vmem:[#allocation10 + $0x1750] sm:$0xff]  ;;  %v4448_v42 = vld [vmem:[#allocation10 + $0x2020] sm:$0xff] }
 0x461   : > { %11969 = vst [vmem:[#allocation60_spill] sm:$0xff] %v11450_v27  ;;  %v11452_v61 = vpop.f32.mrb[57].mxu1  ;;  %8671 = vmatprep.subr.bf16.mxu0 %v8670_v10  ;;  %v3100_v27 = vld [vmem:[#allocation10 + $0x1718] sm:$0xff]  ;;  %v8224_v10 = vpack.c.bf16 %v3091_v24, %v3083_v41  ;;  %v4456_v7 = vld [vmem:[#allocation10 + $0x2060] sm:$0xff]  ;;  %v3115_v41 = vld [vmem:[#allocation10 + $0x1790] sm:$0xff] }
 0x462   : > { %11970 = vst [vmem:[#allocation61_spill] sm:$0xff] %v11452_v61  ;;  %8217 = vmatpush1.bf16.msra.mxu1 %v8216_v8  ;;  %v4692_v61 = vld [vmem:[#allocation10 + $0x27c0] sm:$0xff]  ;;  %v8226_v8 = vpack.c.bf16 %v3108_v44, %v3100_v27  ;;  %v3123_v24 = vld [vmem:[#allocation10 + $0x17d0] sm:$0xff]  ;;  %v2888_v44 = vld [vmem:[#allocation10 + $0x1078] sm:$0xff] }
 0x463   : > { %8219 = vmatprep.subr.bf16.mxu1 %v8218_v30  ;;  %v8680_v19 = vpack.c.bf16 %v4692_v61, %v4684_v23  ;;  %v3116_v30 = vld [vmem:[#allocation10 + $0x1798] sm:$0xff]  ;;  %v4701_v23 = vrot.slane %v10981_v40, 4  ;;  %v8748_v61 = vpack.c.bf16 %v4456_v7, %v4448_v42  ;;  %v11971_v40 = vrot.slane %v10989_v58, 4 }
 0x464   : > { %8673 = vmatpush1.bf16.msra.mxu0 %v8672_v56  ;;  %v8746_v56 = vpack.c.bf16 %v4457_v34, %v4449_v5  ;;  %v8230_v27 = vpack.c.bf16 %v3124_v16, %v3116_v30  ;;  %v4472_v5 = vld [vmem:[#allocation10 + $0x20e0] sm:$0xff]  ;;  %v8232_v34 = vpack.c.bf16 %v3123_v24, %v3115_v41  ;;  %v2879_v16 = vld [vmem:[#allocation10 + $0x1030] sm:$0xff]  ;;  %v2904_v7 = vld [vmem:[#allocation10 + $0x10f8] sm:$0xff] }
 0x465   : > { %8675 = vmatprep.subr.bf16.mxu0 %v8674_v31  ;;  %v8228_v31 = vpack.c.bf16 %v3107_v21, %v3099_v38  ;;  %v11458_v52 = vsel %vm4700_vm8, %v4701_v23, %v4702_v1  ;;  %v4489_v38 = vld [vmem:[#allocation10 + $0x2168] sm:$0xff] }
 0x466   : > { %8221 = vmatpush1.bf16.msra.mxu1 %v8220_v26  ;;  %v4465_v26 = vld [vmem:[#allocation10 + $0x20a8] sm:$0xff] }
 0x467   : > { %8223 = vmatprep.subr.bf16.mxu1 %v8222_v2  ;;  %v4709_v2 = vrot.slane %v11002_v29, 4  ;;  %v4707_v29 = vrot.slane %v10997_v18, 4  ;;  %v2896_v18 = vld [vmem:[#allocation10 + $0x10b8] sm:$0xff]  ;;  %v4497_v41 = vld [vmem:[#allocation10 + $0x21a8] sm:$0xff] }
 0x468   : > { %8677 = vmatpush1.bf16.msra.mxu0 %v8676_v37  ;;  %v2880_v37 = vld [vmem:[#allocation10 + $0x1038] sm:$0xff]  ;;  %v4505_v24 = vld [vmem:[#allocation10 + $0x21e8] sm:$0xff] }
 0x469   : > { %8679 = vmatprep.subr.bf16.mxu0 %v8678_v14  ;;  %v8750_v14 = vpack.c.bf16 %v4473_v17, %v4465_v26  ;;  %v11465_v21 = vsel %vm4700_vm8, %v11971_v40, %v4709_v2  ;;  %v8298_v30 = vpack.c.bf16 %v2888_v44, %v2880_v37  ;;  %v4480_v26 = vld [vmem:[#allocation10 + $0x2120] sm:$0xff]  ;;  %v11470_v58 = vsel %vm4700_vm8, %v4702_v1, %v4707_v29  ;;  %v2895_v44 = vld [vmem:[#allocation10 + $0x10b0] sm:$0xff]  ;;  %v4513_v40 = vld [vmem:[#allocation10 + $0x2228] sm:$0xff] }
 0x46a   : > { %8225 = vmatpush1.bf16.msra.mxu1 %v8224_v10  ;;  %v4464_v10 = vld [vmem:[#allocation10 + $0x20a0] sm:$0xff]  ;;  %v8302_v37 = vpack.c.bf16 %v2904_v7, %v2896_v18  ;;  %v2911_v18 = vld [vmem:[#allocation10 + $0x1130] sm:$0xff] }
 0x46b   : > { %8227 = vmatprep.subr.bf16.mxu1 %v8226_v8  ;;  %v4481_v8 = vld [vmem:[#allocation10 + $0x2128] sm:$0xff]  ;;  %v8752_v42 = vpack.c.bf16 %v4472_v5, %v4464_v10  ;;  %v4488_v17 = vld [vmem:[#allocation10 + $0x2160] sm:$0xff]  ;;  %v2912_v10 = vld [vmem:[#allocation10 + $0x1138] sm:$0xff] }
 0x46c   : > { %8681 = vmatpush1.bf16.msra.mxu0 %v8680_v19  ;;  %v4713_v19 = vrot.slane %v11022_v59, 4  ;;  %v4711_v59 = vrot.slane %v11018_v49, 4  ;;  %v8756_v1 = vpack.c.bf16 %v4488_v17, %v4480_v26  ;;  %v2920_v5 = vld [vmem:[#allocation10 + $0x1178] sm:$0xff]  ;;  %v8758_v49 = vpack.c.bf16 %v4505_v24, %v4497_v41  ;;  %v2919_v7 = vld [vmem:[#allocation10 + $0x1170] sm:$0xff]  ;;  %v4512_v17 = vld [vmem:[#allocation10 + $0x2220] sm:$0xff] }
 0x46d   : > { %8747 = vmatprep.subr.bf16.mxu0 %v8746_v56  ;;  %v2887_v56 = vld [vmem:[#allocation10 + $0x1070] sm:$0xff]  ;;  %v2936_v26 = vld [vmem:[#allocation10 + $0x11f8] sm:$0xff]  ;;  %v4719_v41 = vrot.slane %v11062_v55, 4  ;;  %v4529_v24 = vld [vmem:[#allocation10 + $0x22a8] sm:$0xff] }
 0x46e   : > { %8229 = vmatpush1.bf16.msra.mxu1 %v8228_v31  ;;  %v8754_v31 = vpack.c.bf16 %v4489_v38, %v4481_v8  ;;  %v11475_v23 = vsel %vm4700_vm8, %v4709_v2, %v4713_v19  ;;  %v4504_v8 = vld [vmem:[#allocation10 + $0x21e0] sm:$0xff]  ;;  %v4715_v38 = vrot.slane %v11040_v25, 4 }
 0x46f   : > { %4810 = vmatmul.mubr.f32.vlgmr.msra.gmra.mrb[24].mxu0 %v11458_v52  ;;  %8231 = vmatprep.subr.bf16.mxu1 %v8230_v27  ;;  %v8300_v27 = vpack.c.bf16 %v2887_v56, %v2879_v16  ;;  %v4721_v56 = vrot.slane %v11066_v63, 4 }
 0x470   : > { %4815 = vmatprep.mubr.f32.mxu0 %v11465_v21  ;;  %8749 = vmatpush1.bf16.msra.mxu0 %v8748_v61  ;;  %v4717_v61 = vrot.slane %v11044_v32, 4  ;;  %v11482_v32 = vsel %vm4700_vm8, %v4707_v29, %v4711_v59  ;;  %v11494_v63 = vsel %vm4700_vm8, %v4711_v59, %v4715_v38 }
 0x471   : > { %8751 = vmatprep.subr.bf16.mxu0 %v8750_v14  ;;  %v2903_v14 = vld [vmem:[#allocation10 + $0x10f0] sm:$0xff] }
 0x472   : > { %8233 = vmatpush1.bf16.msra.mxu1 %v8232_v34  ;;  %v4496_v34 = vld [vmem:[#allocation10 + $0x21a0] sm:$0xff]  ;;  %v8304_v2 = vpack.c.bf16 %v2903_v14, %v2895_v44  ;;  %v11487_v16 = vsel %vm4700_vm8, %v4713_v19, %v4717_v61  ;;  %v8308_v19 = vpack.c.bf16 %v2919_v7, %v2911_v18  ;;  %v11499_v44 = vsel %vm4700_vm8, %v4717_v61, %v4721_v56 }
 0x473   : > { %4816 = vmatmul.mubr.f32.gmra.mrb[26].mxu0 %v11470_v58  ;;  %8299 = vmatprep.subr.bf16.mxu1 %v8298_v30  ;;  %v4521_v30 = vld [vmem:[#allocation10 + $0x2268] sm:$0xff]  ;;  %v8760_v29 = vpack.c.bf16 %v4504_v8, %v4496_v34  ;;  %v4725_v14 = vrot.slane %v11086_v39, 4  ;;  %v2952_v34 = vld [vmem:[#allocation10 + $0x1278] sm:$0xff]  ;;  %v4528_v8 = vld [vmem:[#allocation10 + $0x22a0] sm:$0xff]  ;;  %v11506_v39 = vsel %vm4700_vm8, %v4715_v38, %v4719_v41  ;;  %v4729_v7 = vrot.slane %v11953_v51, 4 }
 0x474   : > { %4821 = vmatprep.mubr.f32.mxu0 %v11475_v23  ;;  %8753 = vmatpush1.bf16.msra.mxu0 %v8752_v42  ;;  %v8306_v42 = vpack.c.bf16 %v2920_v5, %v2912_v10  ;;  %v8762_v25 = vpack.c.bf16 %v4521_v30, %v4513_v40  ;;  %v2927_v10 = vld [vmem:[#allocation10 + $0x11b0] sm:$0xff]  ;;  %v4723_v40 = vrot.slane %v11952_v35, 4  ;;  %v4545_v30 = vld [vmem:[#allocation10 + $0x2328] sm:$0xff] }
 0x475   : > { %3345 = vmatmul.mubr.f32.vlgmr.msra.gmra.mrb[30].mxu1 %v11166_v60  ;;  %8755 = vmatprep.subr.bf16.mxu0 %v8754_v31  ;;  %v2928_v31 = vld [vmem:[#allocation10 + $0x11b8] sm:$0xff]  ;;  %v2935_v5 = vld [vmem:[#allocation10 + $0x11f0] sm:$0xff]  ;;  %v11511_v18 = vsel %vm4700_vm8, %v4721_v56, %v4725_v14 }
 0x476   : > { %3350 = vmatprep.mubr.f32.mxu1 %v11173_v0  ;;  %8301 = vmatpush1.bf16.msra.mxu1 %v8300_v27  ;;  %v4520_v27 = vld [vmem:[#allocation10 + $0x2260] sm:$0xff]  ;;  %v8312_v61 = vpack.c.bf16 %v2935_v5, %v2927_v10  ;;  %v11518_v51 = vsel %vm4700_vm8, %v4719_v41, %v4723_v40  ;;  %v11523_v10 = vsel %vm4700_vm8, %v4725_v14, %v4729_v7  ;;  %v2976_v41 = vld [vmem:[#allocation10 + $0x1338] sm:$0xff] }
 0x477   : > { %4822 = vmatmul.mubr.f32.gmra.mrb[28].mxu0 %v11482_v32  ;;  %8303 = vmatprep.subr.bf16.mxu1 %v8302_v37  ;;  %v4537_v37 = vld [vmem:[#allocation10 + $0x22e8] sm:$0xff]  ;;  %v8764_v59 = vpack.c.bf16 %v4520_v27, %v4512_v17  ;;  %v2968_v17 = vld [vmem:[#allocation10 + $0x12f8] sm:$0xff]  ;;  %v4544_v27 = vld [vmem:[#allocation10 + $0x2320] sm:$0xff] }
 0x478   : > { %4827 = vmatprep.mubr.f32.mxu0 %v11487_v16  ;;  %8757 = vmatpush1.bf16.msra.mxu0 %v8756_v1  ;;  %v8310_v1 = vpack.c.bf16 %v2936_v26, %v2928_v31  ;;  %v8766_v55 = vpack.c.bf16 %v4537_v37, %v4529_v24  ;;  %v2943_v31 = vld [vmem:[#allocation10 + $0x1230] sm:$0xff]  ;;  %v4727_v24 = vrot.slane %v11954_v33, 4  ;;  %v4561_v37 = vld [vmem:[#allocation10 + $0x23a8] sm:$0xff] }
 0x479   : > { %3351 = vmatmul.mubr.f32.gmra.mrb[32].mxu1 %v11178_v48  ;;  %8759 = vmatprep.subr.bf16.mxu0 %v8758_v49  ;;  %v2944_v49 = vld [vmem:[#allocation10 + $0x1238] sm:$0xff]  ;;  %v2951_v26 = vld [vmem:[#allocation10 + $0x1270] sm:$0xff] }
 0x47a   : > { %3356 = vmatprep.mubr.f32.mxu1 %v11183_v53  ;;  %8305 = vmatpush1.bf16.msra.mxu1 %v8304_v2  ;;  %v4536_v2 = vld [vmem:[#allocation10 + $0x22e0] sm:$0xff]  ;;  %v8316_v56 = vpack.c.bf16 %v2951_v26, %v2943_v31  ;;  %v11529_v14 = vsel %vm4700_vm8, %v4723_v40, %v4727_v24  ;;  %v2983_v31 = vld [vmem:[#allocation10 + $0x1370] sm:$0xff]  ;;  %v4593_v24 = vld [vmem:[#allocation10 + $0x24a8] sm:$0xff] }
 0x47b   : > { %4828 = vmatmul.mubr.f32.gmra.mrb[30].mxu0 %v11494_v63  ;;  %8307 = vmatprep.subr.bf16.mxu1 %v8306_v42  ;;  %v4553_v42 = vld [vmem:[#allocation10 + $0x2368] sm:$0xff]  ;;  %v8768_v38 = vpack.c.bf16 %v4536_v2, %v4528_v8  ;;  %v4560_v8 = vld [vmem:[#allocation10 + $0x23a0] sm:$0xff] }
 0x47c   : > { %4833 = vmatprep.mubr.f32.mxu0 %v11499_v44  ;;  %8761 = vmatpush1.bf16.msra.mxu0 %v8760_v29  ;;  %v8314_v29 = vpack.c.bf16 %v2952_v34, %v2944_v49  ;;  %v8770_v35 = vpack.c.bf16 %v4553_v42, %v4545_v30  ;;  %v2967_v49 = vld [vmem:[#allocation10 + $0x12f0] sm:$0xff]  ;;  %v4568_v2 = vld [vmem:[#allocation10 + $0x23e0] sm:$0xff]  ;;  %v4577_v30 = vld [vmem:[#allocation10 + $0x2428] sm:$0xff] }
 0x47d   : > { %3357 = vmatmul.mubr.f32.gmra.mrb[34].mxu1 %v11190_v9  ;;  %8763 = vmatprep.subr.bf16.mxu0 %v8762_v25  ;;  %v2960_v25 = vld [vmem:[#allocation10 + $0x12b8] sm:$0xff]  ;;  %v4585_v42 = vld [vmem:[#allocation10 + $0x2468] sm:$0xff]  ;;  %v8776_v26 = vpack.c.bf16 %v4568_v2, %v4560_v8  ;;  %v4592_v8 = vld [vmem:[#allocation10 + $0x24a0] sm:$0xff] }
 0x47e   : > { %3362 = vmatprep.mubr.f32.mxu1 %v11195_v13  ;;  %8309 = vmatpush1.bf16.msra.mxu1 %v8308_v19  ;;  %v4552_v19 = vld [vmem:[#allocation10 + $0x2360] sm:$0xff]  ;;  %v8318_v5 = vpack.c.bf16 %v2968_v17, %v2960_v25  ;;  %v3000_v25 = vld [vmem:[#allocation10 + $0x13f8] sm:$0xff]  ;;  %v8778_v40 = vpack.c.bf16 %v4585_v42, %v4577_v30  ;;  %v4609_v30 = vld [vmem:[#allocation10 + $0x2528] sm:$0xff] }
 0x47f   : > { %4834 = vmatmul.mubr.f32.gmra.mrb[32].mxu0 %v11506_v39  ;;  %8311 = vmatprep.subr.bf16.mxu1 %v8310_v1  ;;  %v4569_v1 = vld [vmem:[#allocation10 + $0x23e8] sm:$0xff]  ;;  %v8772_v34 = vpack.c.bf16 %v4552_v19, %v4544_v27  ;;  %v11972_v17 = vld [vmem:[#allocation33_spill] sm:$0xff]  ;;  %v4584_v27 = vld [vmem:[#allocation10 + $0x2460] sm:$0xff] }
 0x480   : > { %4839 = vmatprep.mubr.f32.mxu0 %v11511_v18  ;;  %8765 = vmatpush1.bf16.msra.mxu0 %v8764_v59  ;;  %v2959_v59 = vld [vmem:[#allocation10 + $0x12b0] sm:$0xff]  ;;  %v8774_v33 = vpack.c.bf16 %v4569_v1, %v4561_v37  ;;  %v11973_v19 = vld [vmem:[#allocation34_spill] sm:$0xff]  ;;  %v4601_v37 = vld [vmem:[#allocation10 + $0x24e8] sm:$0xff] }
 0x481   : > { %3363 = vmatmul.mubr.f32.gmra.mrb[36].mxu1 %v11202_v15  ;;  %8767 = vmatprep.subr.bf16.mxu0 %v8766_v55  ;;  %v2984_v55 = vld [vmem:[#allocation10 + $0x1378] sm:$0xff]  ;;  %v4600_v2 = vld [vmem:[#allocation10 + $0x24e0] sm:$0xff]  ;;  %v4617_v42 = vld [vmem:[#allocation10 + $0x2568] sm:$0xff] }
 0x482   : > { %3368 = vmatprep.mubr.f32.mxu1 %v11207_v20  ;;  %8313 = vmatpush1.bf16.msra.mxu1 %v8312_v61  ;;  %v8320_v61 = vpack.c.bf16 %v2967_v49, %v2959_v59  ;;  %v8322_v7 = vpack.c.bf16 %v2984_v55, %v2976_v41  ;;  %v2999_v59 = vld [vmem:[#allocation10 + $0x13f0] sm:$0xff]  ;;  %v3016_v41 = vld [vmem:[#allocation10 + $0x1478] sm:$0xff]  ;;  %v11974_v55 = vld [vmem:[#allocation35_spill] sm:$0xff] }
 0x483   : > { %4840 = vmatmul.mubr.f32.gmra.mrb[34].mxu0 %v11518_v51  ;;  %8315 = vmatprep.subr.bf16.mxu1 %v8314_v29  ;;  %v2975_v29 = vld [vmem:[#allocation10 + $0x1330] sm:$0xff] }
 0x484   : > { %4845 = vmatprep.mubr.f32.mxu0 %v11523_v10  ;;  %8769 = vmatpush1.bf16.msra.mxu0 %v8768_v38  ;;  %v2992_v38 = vld [vmem:[#allocation10 + $0x13b8] sm:$0xff] }
 0x485   : > { %3369 = vmatmul.mubr.f32.gmra.mrb[38].mxu1 %v11214_v54  ;;  %8771 = vmatprep.subr.bf16.mxu0 %v8770_v35  ;;  %v4576_v35 = vld [vmem:[#allocation10 + $0x2420] sm:$0xff]  ;;  %v8326_v1 = vpack.c.bf16 %v3000_v25, %v2992_v38  ;;  %v3024_v38 = vld [vmem:[#allocation10 + $0x14b8] sm:$0xff] }
 0x486   : > { %3374 = vmatprep.mubr.f32.mxu1 %v11219_v12  ;;  %8317 = vmatpush1.bf16.msra.mxu1 %v8316_v56  ;;  %v8324_v56 = vpack.c.bf16 %v2983_v31, %v2975_v29  ;;  %v8780_v49 = vpack.c.bf16 %v4584_v27, %v4576_v35  ;;  %v3007_v29 = vld [vmem:[#allocation10 + $0x1430] sm:$0xff]  ;;  %v3032_v25 = vld [vmem:[#allocation10 + $0x14f8] sm:$0xff]  ;;  %v8786_v35 = vpack.c.bf16 %v4617_v42, %v4609_v30  ;;  %v4616_v27 = vld [vmem:[#allocation10 + $0x2560] sm:$0xff] }
 0x487   : > { %4846 = vmatmul.mubr.f32.gmra.mrb[36].mxu0 %v11529_v14  ;;  %8319 = vmatprep.subr.bf16.mxu1 %v8318_v5  ;;  %v2991_v5 = vld [vmem:[#allocation10 + $0x13b0] sm:$0xff]  ;;  %v4641_v30 = vld [vmem:[#allocation10 + $0x2628] sm:$0xff] }
 0x488   : > { %8773 = vmatpush1.bf16.msra.mxu0 %v8772_v34  ;;  %5023 = vmatprep.mubr.f32.mxu0 %v11419_v45  ;;  %v3008_v34 = vld [vmem:[#allocation10 + $0x1438] sm:$0xff]  ;;  %v3015_v31 = vld [vmem:[#allocation10 + $0x1470] sm:$0xff]  ;;  %v4649_v42 = vld [vmem:[#allocation10 + $0x2668] sm:$0xff] }
 0x489   : > { %3375 = vmatmul.mubr.f32.gmra.mrb[40].mxu1 %v11972_v17  ;;  %8775 = vmatprep.subr.bf16.mxu0 %v8774_v33  ;;  %v8782_v33 = vpack.c.bf16 %v4601_v37, %v4593_v24  ;;  %v8332_v24 = vpack.c.bf16 %v3015_v31, %v3007_v29  ;;  %v4633_v37 = vld [vmem:[#allocation10 + $0x25e8] sm:$0xff]  ;;  %v3039_v29 = vld [vmem:[#allocation10 + $0x1530] sm:$0xff] }
 0x48a   : > { %3380 = vmatprep.mubr.f32.mxu1 %v11973_v19  ;;  %8321 = vmatpush1.bf16.msra.mxu1 %v8320_v61  ;;  %v8328_v61 = vpack.c.bf16 %v2999_v59, %v2991_v5  ;;  %v3023_v5 = vld [vmem:[#allocation10 + $0x14b0] sm:$0xff] }
 0x48b   : > { %8323 = vmatprep.subr.bf16.mxu1 %v8322_v7  ;;  %v8330_v7 = vpack.c.bf16 %v3016_v41, %v3008_v34  ;;  %v3031_v59 = vld [vmem:[#allocation10 + $0x14f0] sm:$0xff]  ;;  %v3040_v34 = vld [vmem:[#allocation10 + $0x1538] sm:$0xff] }
 0x48c   : > { %8777 = vmatpush1.bf16.msra.mxu0 %v8776_v26  ;;  %v8784_v26 = vpack.c.bf16 %v4600_v2, %v4592_v8  ;;  %v3048_v41 = vld [vmem:[#allocation10 + $0x1578] sm:$0xff]  ;;  %v4624_v8 = vld [vmem:[#allocation10 + $0x25a0] sm:$0xff]  ;;  %v3047_v31 = vld [vmem:[#allocation10 + $0x1570] sm:$0xff] }
 0x48d   : > { %3381 = vmatmul.mubr.f32.gmra.mrb[42].mxu1 %v11974_v55  ;;  %8779 = vmatprep.subr.bf16.mxu0 %v8778_v40  ;;  %v4608_v40 = vld [vmem:[#allocation10 + $0x2520] sm:$0xff] }
 0x48e   : > { %8325 = vmatpush1.bf16.msra.mxu1 %v8324_v56  ;;  %3558 = vmatprep.mubr.f32.mxu1 %v11960_v3  ;;  %v4625_v56 = vld [vmem:[#allocation10 + $0x25a8] sm:$0xff]  ;;  %v8334_v3 = vpack.c.bf16 %v3032_v25, %v3024_v38  ;;  %v4632_v2 = vld [vmem:[#allocation10 + $0x25e0] sm:$0xff]  ;;  %v3056_v38 = vld [vmem:[#allocation10 + $0x15b8] sm:$0xff] }
 0x48f   : > { %8327 = vmatprep.subr.bf16.mxu1 %v8326_v1  ;;  %v8788_v1 = vpack.c.bf16 %v4616_v27, %v4608_v40  ;;  %v3064_v25 = vld [vmem:[#allocation10 + $0x15f8] sm:$0xff]  ;;  %v4640_v40 = vld [vmem:[#allocation10 + $0x2620] sm:$0xff] }
 0x490   : > { %8781 = vmatpush1.bf16.msra.mxu0 %v8780_v49  ;;  %v8790_v49 = vpack.c.bf16 %v4633_v37, %v4625_v56  ;;  %v4648_v27 = vld [vmem:[#allocation10 + $0x2660] sm:$0xff]  ;;  %v4657_v56 = vld [vmem:[#allocation10 + $0x26a8] sm:$0xff] }
 0x491   : > { %8783 = vmatprep.subr.bf16.mxu0 %v8782_v33  ;;  %v8336_v33 = vpack.c.bf16 %v3031_v59, %v3023_v5  ;;  %v4665_v37 = vld [vmem:[#allocation10 + $0x26e8] sm:$0xff]  ;;  %v3055_v5 = vld [vmem:[#allocation10 + $0x15b0] sm:$0xff] }
 0x492   : > { %8329 = vmatpush1.bf16.msra.mxu1 %v8328_v61  ;;  %v8338_v61 = vpack.c.bf16 %v3048_v41, %v3040_v34  ;;  %v3063_v59 = vld [vmem:[#allocation10 + $0x15f0] sm:$0xff]  ;;  %v3072_v34 = vld [vmem:[#allocation10 + $0x1638] sm:$0xff] }
 0x493   : > { %8331 = vmatprep.subr.bf16.mxu1 %v8330_v7  ;;  %v8792_v7 = vpack.c.bf16 %v4632_v2, %v4624_v8  ;;  %v3080_v41 = vld [vmem:[#allocation10 + $0x1678] sm:$0xff]  ;;  %v4656_v8 = vld [vmem:[#allocation10 + $0x26a0] sm:$0xff] }
 0x494   : > { %8785 = vmatpush1.bf16.msra.mxu0 %v8784_v26  ;;  %v8794_v26 = vpack.c.bf16 %v4649_v42, %v4641_v30  ;;  %v4664_v2 = vld [vmem:[#allocation10 + $0x26e0] sm:$0xff]  ;;  %v4673_v30 = vld [vmem:[#allocation10 + $0x2728] sm:$0xff] }
 0x495   : > { %8787 = vmatprep.subr.bf16.mxu0 %v8786_v35  ;;  %v8340_v35 = vpack.c.bf16 %v3047_v31, %v3039_v29  ;;  %v4681_v42 = vld [vmem:[#allocation10 + $0x2768] sm:$0xff]  ;;  %v3071_v29 = vld [vmem:[#allocation10 + $0x1630] sm:$0xff] }
 0x496   : > { %8333 = vmatpush1.bf16.msra.mxu1 %v8332_v24  ;;  %v8342_v24 = vpack.c.bf16 %v3064_v25, %v3056_v38  ;;  %v3079_v31 = vld [vmem:[#allocation10 + $0x1670] sm:$0xff]  ;;  %v3088_v38 = vld [vmem:[#allocation10 + $0x16b8] sm:$0xff] }
 0x497   : > { %8335 = vmatprep.subr.bf16.mxu1 %v8334_v3  ;;  %v8796_v3 = vpack.c.bf16 %v4648_v27, %v4640_v40  ;;  %v3096_v25 = vld [vmem:[#allocation10 + $0x16f8] sm:$0xff]  ;;  %v4672_v40 = vld [vmem:[#allocation10 + $0x2720] sm:$0xff] }
 0x498   : > { %8789 = vmatpush1.bf16.msra.mxu0 %v8788_v1  ;;  %v8798_v1 = vpack.c.bf16 %v4665_v37, %v4657_v56  ;;  %v4680_v27 = vld [vmem:[#allocation10 + $0x2760] sm:$0xff]  ;;  %v4689_v56 = vld [vmem:[#allocation10 + $0x27a8] sm:$0xff] }
 0x499   : > { %8791 = vmatprep.subr.bf16.mxu0 %v8790_v49  ;;  %v8344_v49 = vpack.c.bf16 %v3063_v59, %v3055_v5  ;;  %v4697_v37 = vld [vmem:[#allocation10 + $0x27e8] sm:$0xff]  ;;  %v3087_v5 = vld [vmem:[#allocation10 + $0x16b0] sm:$0xff] }
 0x49a   : > { %8337 = vmatpush1.bf16.msra.mxu1 %v8336_v33  ;;  %v8346_v33 = vpack.c.bf16 %v3080_v41, %v3072_v34  ;;  %v3095_v59 = vld [vmem:[#allocation10 + $0x16f0] sm:$0xff]  ;;  %v3104_v34 = vld [vmem:[#allocation10 + $0x1738] sm:$0xff] }
 0x49b   : > { %8339 = vmatprep.subr.bf16.mxu1 %v8338_v61  ;;  %v8800_v61 = vpack.c.bf16 %v4664_v2, %v4656_v8  ;;  %v3112_v41 = vld [vmem:[#allocation10 + $0x1778] sm:$0xff]  ;;  %v4688_v8 = vld [vmem:[#allocation10 + $0x27a0] sm:$0xff] }
 0x49c   : > { %8793 = vmatpush1.bf16.msra.mxu0 %v8792_v7  ;;  %v8802_v7 = vpack.c.bf16 %v4681_v42, %v4673_v30  ;;  %v4696_v2 = vld [vmem:[#allocation10 + $0x27e0] sm:$0xff]  ;;  %v8354_v30 = vpack.c.bf16 %v3112_v41, %v3104_v34  ;;  %v3111_v42 = vld [vmem:[#allocation10 + $0x1770] sm:$0xff]  ;;  %v5479_v34 = vld [vmem:[#allocation13] sm:$0xff] }
 0x49d   : > { %8795 = vmatprep.subr.bf16.mxu0 %v8794_v26  ;;  %v8348_v26 = vpack.c.bf16 %v3079_v31, %v3071_v29  ;;  %v8808_v29 = vpack.c.bf16 %v4696_v2, %v4688_v8  ;;  %v3128_v31 = vld [vmem:[#allocation10 + $0x17f8] sm:$0xff] }
 0x49e   : > { %8341 = vmatpush1.bf16.msra.mxu1 %v8340_v35  ;;  %v8350_v35 = vpack.c.bf16 %v3096_v25, %v3088_v38  ;;  %v3119_v25 = vld [vmem:[#allocation10 + $0x17b0] sm:$0xff]  ;;  %v5485_v41 = vld [vmem:[#allocation13 + $0x30] sm:$0xff] }
 0x49f   : > { %8343 = vmatprep.subr.bf16.mxu1 %v8342_v24  ;;  %v8804_v24 = vpack.c.bf16 %v4680_v27, %v4672_v40  ;;  %v3661_v40 = vld [vmem:[#allocation10 + $0x1818] sm:$0xff]  ;;  %v8876_v2 = vpack.c.bf16 %v5485_v41, %v5479_v34  ;;  %v3708_v41 = vld [vmem:[#allocation10 + $0x1990] sm:$0xff] }
 0x4a0   : > { %8797 = vmatpush1.bf16.msra.mxu0 %v8796_v3  ;;  %v8806_v3 = vpack.c.bf16 %v4697_v37, %v4689_v56  ;;  %v3669_v27 = vld [vmem:[#allocation10 + $0x1858] sm:$0xff]  ;;  %v3660_v56 = vld [vmem:[#allocation10 + $0x1810] sm:$0xff] }
 0x4a1   : > { %8799 = vmatprep.subr.bf16.mxu0 %v8798_v1  ;;  %v8352_v1 = vpack.c.bf16 %v3095_v59, %v3087_v5  ;;  %v5480_v37 = vld [vmem:[#allocation13 + $0x8] sm:$0xff]  ;;  %v8426_v5 = vpack.c.bf16 %v3669_v27, %v3661_v40  ;;  %v3685_v8 = vld [vmem:[#allocation10 + $0x18d8] sm:$0xff] }
 0x4a2   : > { %8345 = vmatpush1.bf16.msra.mxu1 %v8344_v49  ;;  %v3103_v49 = vld [vmem:[#allocation10 + $0x1730] sm:$0xff]  ;;  %v5497_v27 = vld [vmem:[#allocation13 + $0x90] sm:$0xff] }
 0x4a3   : > { %8347 = vmatprep.subr.bf16.mxu1 %v8346_v33  ;;  %v3120_v33 = vld [vmem:[#allocation10 + $0x17b8] sm:$0xff]  ;;  %v3668_v59 = vld [vmem:[#allocation10 + $0x1850] sm:$0xff] }
 0x4a4   : > { %8801 = vmatpush1.bf16.msra.mxu0 %v8800_v61  ;;  %v8356_v61 = vpack.c.bf16 %v3111_v42, %v3103_v49  ;;  %v8358_v38 = vpack.c.bf16 %v3128_v31, %v3120_v33  ;;  %v5498_v49 = vld [vmem:[#allocation13 + $0x98] sm:$0xff]  ;;  %v3684_v33 = vld [vmem:[#allocation10 + $0x18d0] sm:$0xff] }
 0x4a5   : > { %8803 = vmatprep.subr.bf16.mxu0 %v8802_v7  ;;  %v3127_v7 = vld [vmem:[#allocation10 + $0x17f0] sm:$0xff] }
 0x4a6   : > { %8349 = vmatpush1.bf16.msra.mxu1 %v8348_v26  ;;  %v8360_v26 = vpack.c.bf16 %v3127_v7, %v3119_v25  ;;  %v5491_v25 = vld [vmem:[#allocation13 + $0x60] sm:$0xff]  ;;  %v3692_v40 = vld [vmem:[#allocation10 + $0x1910] sm:$0xff] }
 0x4a7   : > { %8351 = vmatprep.subr.bf16.mxu1 %v8350_v35  ;;  %v5486_v35 = vld [vmem:[#allocation13 + $0x38] sm:$0xff] }
 0x4a8   : > { %8805 = vmatpush1.bf16.msra.mxu0 %v8804_v24  ;;  %v8874_v24 = vpack.c.bf16 %v5486_v35, %v5480_v37  ;;  %v8880_v37 = vpack.c.bf16 %v5497_v27, %v5491_v25  ;;  %v5504_v35 = vld [vmem:[#allocation13 + $0xc8] sm:$0xff]  ;;  %v5534_v27 = vld [vmem:[#allocation13 + $0x1b8] sm:$0xff] }
 0x4a9   : > { %8807 = vmatprep.subr.bf16.mxu0 %v8806_v3  ;;  %v3677_v3 = vld [vmem:[#allocation10 + $0x1898] sm:$0xff]  ;;  %v3732_v25 = vld [vmem:[#allocation10 + $0x1a50] sm:$0xff] }
 0x4aa   : > { %8353 = vmatpush1.bf16.msra.mxu1 %v8352_v1  ;;  %v8428_v1 = vpack.c.bf16 %v3668_v59, %v3660_v56  ;;  %v8430_v42 = vpack.c.bf16 %v3685_v8, %v3677_v3  ;;  %v3700_v56 = vld [vmem:[#allocation10 + $0x1950] sm:$0xff]  ;;  %v3709_v59 = vld [vmem:[#allocation10 + $0x1998] sm:$0xff] }
 0x4ab   : > { %8355 = vmatprep.subr.bf16.mxu1 %v8354_v30  ;;  %v5492_v30 = vld [vmem:[#allocation13 + $0x68] sm:$0xff]  ;;  %v8436_v34 = vpack.c.bf16 %v3700_v56, %v3692_v40  ;;  %v5509_v3 = vld [vmem:[#allocation13 + $0xf0] sm:$0xff] }
 0x4ac   : > { %8809 = vmatpush1.bf16.msra.mxu0 %v8808_v29  ;;  %v3676_v29 = vld [vmem:[#allocation10 + $0x1890] sm:$0xff]  ;;  %v8878_v31 = vpack.c.bf16 %v5498_v49, %v5492_v30  ;;  %v5522_v49 = vld [vmem:[#allocation13 + $0x158] sm:$0xff] }
 0x4ad   : > { %8875 = vmatprep.subr.bf16.mxu0 %v8874_v24  ;;  %v8432_v7 = vpack.c.bf16 %v3684_v33, %v3676_v29  ;;  %v5516_v30 = vld [vmem:[#allocation13 + $0x128] sm:$0xff] }
 0x4ae   : > { %8357 = vmatpush1.bf16.msra.mxu1 %v8356_v61  ;;  %v3693_v61 = vld [vmem:[#allocation10 + $0x1918] sm:$0xff]  ;;  %v8886_v29 = vpack.c.bf16 %v5522_v49, %v5516_v30  ;;  %v5528_v40 = vld [vmem:[#allocation13 + $0x188] sm:$0xff]  ;;  %v5546_v30 = vld [vmem:[#allocation13 + $0x218] sm:$0xff] }
 0x4af   : > { %5024 = vmatmul.mubr.f32.vlgmr.msra.gmra.mrb[38].mxu0 %v11458_v52  ;;  %8359 = vmatprep.subr.bf16.mxu1 %v8358_v38  ;;  %v3701_v38 = vld [vmem:[#allocation10 + $0x1958] sm:$0xff]  ;;  %v8890_v56 = vpack.c.bf16 %v5534_v27, %v5528_v40  ;;  %v5552_v40 = vld [vmem:[#allocation13 + $0x248] sm:$0xff]  ;;  %v5558_v27 = vld [vmem:[#allocation13 + $0x278] sm:$0xff] }
 0x4b0   : > { %5029 = vmatprep.mubr.f32.mxu0 %v11465_v21  ;;  %8877 = vmatpush1.bf16.msra.mxu0 %v8876_v2  ;;  %v3716_v2 = vld [vmem:[#allocation10 + $0x19d0] sm:$0xff] }
 0x4b1   : > { %8879 = vmatprep.subr.bf16.mxu0 %v8878_v31  ;;  %v8440_v33 = vpack.c.bf16 %v3716_v2, %v3708_v41  ;;  %v3724_v31 = vld [vmem:[#allocation10 + $0x1a10] sm:$0xff]  ;;  %v3773_v41 = vld [vmem:[#allocation10 + $0x1b98] sm:$0xff] }
 0x4b2   : > { %8361 = vmatpush1.bf16.msra.mxu1 %v8360_v26  ;;  %v8434_v26 = vpack.c.bf16 %v3701_v38, %v3693_v61  ;;  %v5521_v61 = vld [vmem:[#allocation13 + $0x150] sm:$0xff] }
 0x4b3   : > { %5030 = vmatmul.mubr.f32.gmra.mrb[40].mxu0 %v11470_v58  ;;  %8427 = vmatprep.subr.bf16.mxu1 %v8426_v5  ;;  %v5510_v5 = vld [vmem:[#allocation13 + $0xf8] sm:$0xff] }
 0x4b4   : > { %5035 = vmatprep.mubr.f32.mxu0 %v11475_v23  ;;  %v8882_v24 = vpack.c.bf16 %v5510_v5, %v5504_v35  ;;  %8881 = vmatpush1.bf16.msra.mxu0 %v8880_v37  ;;  %v3740_v35 = vld [vmem:[#allocation10 + $0x1a90] sm:$0xff] }
 0x4b5   : > { %3559 = vmatmul.mubr.f32.vlgmr.msra.gmra.mrb[58].mxu1 %v11166_v60  ;;  %v3717_v60 = vld [vmem:[#allocation10 + $0x19d8] sm:$0xff]  ;;  %v3748_v5 = vld [vmem:[#allocation10 + $0x1ad0] sm:$0xff] }
 0x4b6   : > { %3564 = vmatprep.mubr.f32.mxu1 %v11173_v0  ;;  %8429 = vmatpush1.bf16.msra.mxu1 %v8428_v1  ;;  %v5503_v0 = vld [vmem:[#allocation13 + $0xc0] sm:$0xff]  ;;  %v8438_v8 = vpack.c.bf16 %v3717_v60, %v3709_v59  ;;  %v3757_v59 = vld [vmem:[#allocation10 + $0x1b18] sm:$0xff] }
 0x4b7   : > { %5036 = vmatmul.mubr.f32.gmra.mrb[42].mxu0 %v11482_v32  ;;  %8431 = vmatprep.subr.bf16.mxu1 %v8430_v42  ;;  %v8884_v1 = vpack.c.bf16 %v5509_v3, %v5503_v0  ;;  %v3725_v42 = vld [vmem:[#allocation10 + $0x1a18] sm:$0xff]  ;;  %v3764_v0 = vld [vmem:[#allocation10 + $0x1b50] sm:$0xff] }
 0x4b8   : > { %5041 = vmatprep.mubr.f32.mxu0 %v11487_v16  ;;  %8883 = vmatprep.subr.bf16.mxu0 %v8882_v24  ;;  %v3765_v60 = vld [vmem:[#allocation10 + $0x1b58] sm:$0xff]  ;;  %v3756_v24 = vld [vmem:[#allocation10 + $0x1b10] sm:$0xff] }
 0x4b9   : > { %3565 = vmatmul.mubr.f32.gmra.mrb[60].mxu1 %v11178_v48  ;;  %v3733_v48 = vld [vmem:[#allocation10 + $0x1a58] sm:$0xff]  ;;  %8885 = vmatpush1.bf16.msra.mxu0 %v8884_v1  ;;  %v5540_v1 = vld [vmem:[#allocation13 + $0x1e8] sm:$0xff] }
 0x4ba   : > { %3570 = vmatprep.mubr.f32.mxu1 %v11183_v53  ;;  %8433 = vmatpush1.bf16.msra.mxu1 %v8432_v7  ;;  %v5515_v53 = vld [vmem:[#allocation13 + $0x120] sm:$0xff]  ;;  %v8442_v38 = vpack.c.bf16 %v3733_v48, %v3725_v42  ;;  %v3781_v3 = vld [vmem:[#allocation10 + $0x1bd8] sm:$0xff]  ;;  %v3772_v42 = vld [vmem:[#allocation10 + $0x1b90] sm:$0xff] }
 0x4bb   : > { %5042 = vmatmul.mubr.f32.gmra.mrb[44].mxu0 %v11494_v63  ;;  %8435 = vmatprep.subr.bf16.mxu1 %v8434_v26  ;;  %v8888_v7 = vpack.c.bf16 %v5521_v61, %v5515_v53  ;;  %v3741_v26 = vld [vmem:[#allocation10 + $0x1a98] sm:$0xff]  ;;  %v8454_v49 = vpack.c.bf16 %v3781_v3, %v3773_v41  ;;  %v3780_v48 = vld [vmem:[#allocation10 + $0x1bd0] sm:$0xff]  ;;  %v5563_v41 = vld [vmem:[#allocation13 + $0x2a0] sm:$0xff] }
 0x4bc   : > { %5047 = vmatprep.mubr.f32.mxu0 %v11499_v44  ;;  %8887 = vmatprep.subr.bf16.mxu0 %v8886_v29  ;;  %v3789_v29 = vld [vmem:[#allocation10 + $0x1c18] sm:$0xff]  ;;  %v3788_v61 = vld [vmem:[#allocation10 + $0x1c10] sm:$0xff] }
 0x4bd   : > { %3571 = vmatmul.mubr.f32.gmra.mrb[62].mxu1 %v11190_v9  ;;  %v3749_v9 = vld [vmem:[#allocation10 + $0x1ad8] sm:$0xff]  ;;  %8889 = vmatpush1.bf16.msra.mxu0 %v8888_v7 }
 0x4be   : > { %3576 = vmatprep.mubr.f32.mxu1 %v11195_v13  ;;  %8437 = vmatpush1.bf16.msra.mxu1 %v8436_v34  ;;  %v8444_v13 = vpack.c.bf16 %v3732_v25, %v3724_v31  ;;  %v8446_v37 = vpack.c.bf16 %v3749_v9, %v3741_v26  ;;  %v5527_v34 = vld [vmem:[#allocation13 + $0x180] sm:$0xff]  ;;  %v3797_v53 = vld [vmem:[#allocation10 + $0x1c58] sm:$0xff]  ;;  %v8456_v31 = vpack.c.bf16 %v3780_v48, %v3772_v42  ;;  %v3796_v25 = vld [vmem:[#allocation10 + $0x1c50] sm:$0xff] }
 0x4bf   : > { %5048 = vmatmul.mubr.f32.gmra.mrb[46].mxu0 %v11506_v39  ;;  %8439 = vmatprep.subr.bf16.mxu1 %v8438_v8  ;;  %v5533_v8 = vld [vmem:[#allocation13 + $0x1b0] sm:$0xff] }
 0x4c0   : > { %5053 = vmatprep.mubr.f32.mxu0 %v11511_v18  ;;  %8891 = vmatprep.subr.bf16.mxu0 %v8890_v56  ;;  %v8892_v2 = vpack.c.bf16 %v5533_v8, %v5527_v34  ;;  %v3805_v26 = vld [vmem:[#allocation10 + $0x1c98] sm:$0xff]  ;;  %v8898_v56 = vpack.c.bf16 %v5558_v27, %v5552_v40  ;;  %v3820_v8 = vld [vmem:[#allocation10 + $0x1d10] sm:$0xff]  ;;  %v5594_v40 = vld [vmem:[#allocation13 + $0x398] sm:$0xff] }
 0x4c1   : > { %3577 = vmatmul.mubr.f32.gmra.mrb[64].mxu1 %v11202_v15  ;;  %v8448_v15 = vpack.c.bf16 %v3748_v5, %v3740_v35  ;;  %v3813_v9 = vld [vmem:[#allocation10 + $0x1cd8] sm:$0xff] }
 0x4c2   : > { %3582 = vmatprep.mubr.f32.mxu1 %v11207_v20  ;;  %8441 = vmatpush1.bf16.msra.mxu1 %v8440_v33  ;;  %v8450_v20 = vpack.c.bf16 %v3765_v60, %v3757_v59  ;;  %v5539_v33 = vld [vmem:[#allocation13 + $0x1e0] sm:$0xff]  ;;  %v5557_v35 = vld [vmem:[#allocation13 + $0x270] sm:$0xff]  ;;  %v8462_v5 = vpack.c.bf16 %v3813_v9, %v3805_v26  ;;  %v3812_v59 = vld [vmem:[#allocation10 + $0x1cd0] sm:$0xff] }
 0x4c3   : > { %5054 = vmatmul.mubr.f32.gmra.mrb[48].mxu0 %v11518_v51  ;;  %8443 = vmatprep.subr.bf16.mxu1 %v8442_v38  ;;  %v8458_v38 = vpack.c.bf16 %v3797_v53, %v3789_v29  ;;  %v3837_v42 = vld [vmem:[#allocation10 + $0x1d98] sm:$0xff]  ;;  %v5575_v53 = vld [vmem:[#allocation13 + $0x300] sm:$0xff] }
 0x4c4   : > { %5059 = vmatprep.mubr.f32.mxu0 %v11523_v10  ;;  %8893 = vmatpush1.bf16.msra.mxu0 %v8892_v2  ;;  %v5569_v2 = vld [vmem:[#allocation13 + $0x2d0] sm:$0xff] }
 0x4c5   : > { %3583 = vmatmul.mubr.f32.gmra.mrb[66].mxu1 %v11214_v54  ;;  %v8452_v54 = vpack.c.bf16 %v3764_v0, %v3756_v24  ;;  %v3821_v24 = vld [vmem:[#allocation10 + $0x1d18] sm:$0xff] }
 0x4c6   : > { %3588 = vmatprep.mubr.f32.mxu1 %v11219_v12  ;;  %8445 = vmatpush1.bf16.msra.mxu1 %v8444_v13  ;;  %v8894_v12 = vpack.c.bf16 %v5546_v30, %v5540_v1  ;;  %v5551_v13 = vld [vmem:[#allocation13 + $0x240] sm:$0xff]  ;;  %v3829_v0 = vld [vmem:[#allocation10 + $0x1d58] sm:$0xff]  ;;  %v3828_v30 = vld [vmem:[#allocation10 + $0x1d50] sm:$0xff] }
 0x4c7   : > { %5060 = vmatmul.mubr.f32.gmra.mrb[50].mxu0 %v11529_v14  ;;  %8447 = vmatprep.subr.bf16.mxu1 %v8446_v37  ;;  %v3804_v37 = vld [vmem:[#allocation10 + $0x1c90] sm:$0xff]  ;;  %v8900_v60 = vpack.c.bf16 %v5557_v35, %v5551_v13  ;;  %v8466_v1 = vpack.c.bf16 %v3829_v0, %v3821_v24  ;;  %v3845_v48 = vld [vmem:[#allocation10 + $0x1dd8] sm:$0xff] }
 0x4c8   : > { %8895 = vmatprep.subr.bf16.mxu0 %v8894_v12  ;;  %v8464_v3 = vpack.c.bf16 %v3812_v59, %v3804_v37  ;;  %v5576_v12 = vld [vmem:[#allocation13 + $0x308] sm:$0xff]  ;;  %v3853_v27 = vld [vmem:[#allocation10 + $0x1e18] sm:$0xff] }
 0x4c9   : > { %3589 = vmatmul.mubr.f32.gmra.mrb[68].mxu1 %v11972_v17  ;;  %v11975_v17 = vld [vmem:[#allocation36_spill] sm:$0xff]  ;;  %v3861_v26 = vld [vmem:[#allocation10 + $0x1e58] sm:$0xff] }
 0x4ca   : > { %3594 = vmatprep.mubr.f32.mxu1 %v11973_v19  ;;  %8449 = vmatpush1.bf16.msra.mxu1 %v8448_v15  ;;  %v5545_v19 = vld [vmem:[#allocation13 + $0x210] sm:$0xff]  ;;  %v5564_v15 = vld [vmem:[#allocation13 + $0x2a8] sm:$0xff]  ;;  %v8474_v35 = vpack.c.bf16 %v3861_v26, %v3853_v27 }
 0x4cb   : > { %8451 = vmatprep.subr.bf16.mxu1 %v8450_v20  ;;  %v8896_v7 = vpack.c.bf16 %v5545_v19, %v5539_v33  ;;  %v5570_v20 = vld [vmem:[#allocation13 + $0x2d8] sm:$0xff]  ;;  %v8468_v33 = vpack.c.bf16 %v3828_v30, %v3820_v8  ;;  %v8470_v19 = vpack.c.bf16 %v3845_v48, %v3837_v42  ;;  %v5593_v37 = vld [vmem:[#allocation13 + $0x390] sm:$0xff]  ;;  %v3876_v8 = vld [vmem:[#allocation10 + $0x1ed0] sm:$0xff] }
 0x4cc   : > { %v8902_v34 = vpack.c.bf16 %v5570_v20, %v5564_v15  ;;  %v5606_v15 = vld [vmem:[#allocation13 + $0x3f8] sm:$0xff]  ;;  %v3869_v20 = vld [vmem:[#allocation10 + $0x1e98] sm:$0xff] }
 0x4cd   : > { %3595 = vmatmul.mubr.f32.gmra.mrb[70].mxu1 %v11974_v55  ;;  %8897 = vmatpush1.bf16.msra.mxu0 %v8896_v7  ;;  %v8460_v55 = vpack.c.bf16 %v3796_v25, %v3788_v61  ;;  %v5581_v61 = vld [vmem:[#allocation13 + $0x330] sm:$0xff]  ;;  %v5588_v7 = vld [vmem:[#allocation13 + $0x368] sm:$0xff] }
 0x4ce   : > { %8453 = vmatpush1.bf16.msra.mxu1 %v8452_v54  ;;  %4130 = vmatprep.mubr.f32.mxu1 %v11975_v17  ;;  %v8904_v54 = vpack.c.bf16 %v5569_v2, %v5563_v41  ;;  %v8908_v25 = vpack.c.bf16 %v5581_v61, %v5575_v53  ;;  %v8910_v9 = vpack.c.bf16 %v5594_v40, %v5588_v7  ;;  %v3877_v24 = vld [vmem:[#allocation10 + $0x1ed8] sm:$0xff]  ;;  %v3664_v7 = vld [vmem:[#allocation10 + $0x1830] sm:$0xff] }
 0x4cf   : > { %8455 = vmatprep.subr.bf16.mxu1 %v8454_v49  ;;  %8899 = vmatprep.subr.bf16.mxu0 %v8898_v56  ;;  %v5582_v49 = vld [vmem:[#allocation13 + $0x338] sm:$0xff]  ;;  %v5587_v56 = vld [vmem:[#allocation13 + $0x360] sm:$0xff]  ;;  %v8478_v41 = vpack.c.bf16 %v3877_v24, %v3869_v20  ;;  %v3885_v2 = vld [vmem:[#allocation10 + $0x1f18] sm:$0xff] }
 0x4d0   : > { %v8906_v29 = vpack.c.bf16 %v5582_v49, %v5576_v12  ;;  %v8912_v59 = vpack.c.bf16 %v5593_v37, %v5587_v56  ;;  %v3884_v12 = vld [vmem:[#allocation10 + $0x1f10] sm:$0xff]  ;;  %v3901_v42 = vld [vmem:[#allocation10 + $0x1f98] sm:$0xff] }
 0x4d1   : > { %8901 = vmatpush1.bf16.msra.mxu0 %v8900_v60  ;;  %v5600_v60 = vld [vmem:[#allocation13 + $0x3c8] sm:$0xff]  ;;  %v3909_v48 = vld [vmem:[#allocation10 + $0x1fd8] sm:$0xff] }
 0x4d2   : > { %8457 = vmatpush1.bf16.msra.mxu1 %v8456_v31  ;;  %8903 = vmatprep.subr.bf16.mxu0 %v8902_v34  ;;  %v3836_v31 = vld [vmem:[#allocation10 + $0x1d90] sm:$0xff]  ;;  %v8914_v0 = vpack.c.bf16 %v5606_v15, %v5600_v60  ;;  %v8486_v53 = vpack.c.bf16 %v3909_v48, %v3901_v42  ;;  %v3665_v61 = vld [vmem:[#allocation10 + $0x1838] sm:$0xff]  ;;  %v5635_v48 = vld [vmem:[#allocation13 + $0x4e0] sm:$0xff] }
 0x4d3   : > { %8459 = vmatprep.subr.bf16.mxu1 %v8458_v38  ;;  %v3844_v38 = vld [vmem:[#allocation10 + $0x1dd0] sm:$0xff]  ;;  %v5605_v27 = vld [vmem:[#allocation13 + $0x3f0] sm:$0xff] }
 0x4d4   : > { %v8472_v13 = vpack.c.bf16 %v3844_v38, %v3836_v31  ;;  %v3892_v49 = vld [vmem:[#allocation10 + $0x1f50] sm:$0xff]  ;;  %v5599_v38 = vld [vmem:[#allocation13 + $0x3c0] sm:$0xff]  ;;  %v3689_v37 = vld [vmem:[#allocation10 + $0x18f8] sm:$0xff] }
 0x4d5   : > { %8905 = vmatpush1.bf16.msra.mxu0 %v8904_v54  ;;  %v3908_v31 = vld [vmem:[#allocation10 + $0x1fd0] sm:$0xff]  ;;  %v8916_v56 = vpack.c.bf16 %v5605_v27, %v5599_v38  ;;  %v3721_v38 = vld [vmem:[#allocation10 + $0x19f8] sm:$0xff] }
 0x4d6   : > { %8461 = vmatpush1.bf16.msra.mxu1 %v8460_v55  ;;  %8907 = vmatprep.subr.bf16.mxu0 %v8906_v29  ;;  %v3852_v55 = vld [vmem:[#allocation10 + $0x1e10] sm:$0xff]  ;;  %v8484_v29 = vpack.c.bf16 %v3892_v49, %v3884_v12  ;;  %v5642_v12 = vld [vmem:[#allocation13 + $0x518] sm:$0xff] }
 0x4d7   : > { %8463 = vmatprep.subr.bf16.mxu1 %v8462_v5  ;;  %v3860_v5 = vld [vmem:[#allocation10 + $0x1e50] sm:$0xff] }
 0x4d8   : > { %v8476_v34 = vpack.c.bf16 %v3860_v5, %v3852_v55  ;;  %v3672_v40 = vld [vmem:[#allocation10 + $0x1870] sm:$0xff]  ;;  %v5618_v55 = vld [vmem:[#allocation13 + $0x458] sm:$0xff]  ;;  %v5611_v5 = vld [vmem:[#allocation13 + $0x420] sm:$0xff] }
 0x4d9   : > { %8909 = vmatpush1.bf16.msra.mxu0 %v8908_v25  ;;  %v5624_v15 = vld [vmem:[#allocation13 + $0x488] sm:$0xff]  ;;  %v8556_v20 = vpack.c.bf16 %v3672_v40, %v3664_v7  ;;  %v5654_v7 = vld [vmem:[#allocation13 + $0x578] sm:$0xff] }
 0x4da   : > { %8465 = vmatpush1.bf16.msra.mxu1 %v8464_v3  ;;  %8911 = vmatprep.subr.bf16.mxu0 %v8910_v9  ;;  %v3868_v3 = vld [vmem:[#allocation10 + $0x1e90] sm:$0xff]  ;;  %v3681_v9 = vld [vmem:[#allocation10 + $0x18b8] sm:$0xff] }
 0x4db   : > { %8467 = vmatprep.subr.bf16.mxu1 %v8466_v1  ;;  %v3893_v1 = vld [vmem:[#allocation10 + $0x1f58] sm:$0xff]  ;;  %v8480_v30 = vpack.c.bf16 %v3876_v8, %v3868_v3  ;;  %v3680_v24 = vld [vmem:[#allocation10 + $0x18b0] sm:$0xff] }
 0x4dc   : > { %v8482_v54 = vpack.c.bf16 %v3893_v1, %v3885_v2  ;;  %v3697_v3 = vld [vmem:[#allocation10 + $0x1938] sm:$0xff]  ;;  %v5623_v2 = vld [vmem:[#allocation13 + $0x480] sm:$0xff] }
 0x4dd   : > { %8913 = vmatpush1.bf16.msra.mxu0 %v8912_v59  ;;  %v5617_v59 = vld [vmem:[#allocation13 + $0x450] sm:$0xff] }
 0x4de   : > { %8469 = vmatpush1.bf16.msra.mxu1 %v8468_v33  ;;  %8915 = vmatprep.subr.bf16.mxu0 %v8914_v0  ;;  %v3900_v33 = vld [vmem:[#allocation10 + $0x1f90] sm:$0xff]  ;;  %v8920_v60 = vpack.c.bf16 %v5617_v59, %v5611_v5  ;;  %v5629_v1 = vld [vmem:[#allocation13 + $0x4b0] sm:$0xff] }
 0x4df   : > { %8471 = vmatprep.subr.bf16.mxu1 %v8470_v19  ;;  %v3673_v19 = vld [vmem:[#allocation10 + $0x1878] sm:$0xff]  ;;  %v8488_v25 = vpack.c.bf16 %v3908_v31, %v3900_v33  ;;  %v3688_v0 = vld [vmem:[#allocation10 + $0x18f0] sm:$0xff]  ;;  %v8924_v49 = vpack.c.bf16 %v5629_v1, %v5623_v2 }
 0x4e0   : > { %v8554_v26 = vpack.c.bf16 %v3673_v19, %v3665_v61  ;;  %v8560_v42 = vpack.c.bf16 %v3688_v0, %v3680_v24  ;;  %v3696_v33 = vld [vmem:[#allocation10 + $0x1930] sm:$0xff]  ;;  %v3713_v61 = vld [vmem:[#allocation10 + $0x19b8] sm:$0xff]  ;;  %v5659_v24 = vld [vmem:[#allocation13 + $0x5a0] sm:$0xff] }
 0x4e1   : > { %8917 = vmatpush1.bf16.msra.mxu0 %v8916_v56  ;;  %v3704_v31 = vld [vmem:[#allocation10 + $0x1970] sm:$0xff]  ;;  %v8566_v56 = vpack.c.bf16 %v3721_v38, %v3713_v61  ;;  %v3737_v5 = vld [vmem:[#allocation10 + $0x1a78] sm:$0xff] }
 0x4e2   : > { %8473 = vmatpush1.bf16.msra.mxu1 %v8472_v13  ;;  %v5612_v13 = vld [vmem:[#allocation13 + $0x428] sm:$0xff]  ;;  %v8564_v27 = vpack.c.bf16 %v3704_v31, %v3696_v33  ;;  %v5665_v0 = vld [vmem:[#allocation13 + $0x5d0] sm:$0xff] }
 0x4e3   : > { %8475 = vmatprep.subr.bf16.mxu1 %v8474_v35  ;;  %v8918_v35 = vpack.c.bf16 %v5618_v55, %v5612_v13  ;;  %v3712_v13 = vld [vmem:[#allocation10 + $0x19b0] sm:$0xff]  ;;  %v3745_v2 = vld [vmem:[#allocation10 + $0x1ab8] sm:$0xff] }
 0x4e4   : > { %v3720_v55 = vld [vmem:[#allocation10 + $0x19f0] sm:$0xff]  ;;  %v3753_v1 = vld [vmem:[#allocation10 + $0x1af8] sm:$0xff] }
 0x4e5   : > { %8919 = vmatprep.subr.bf16.mxu0 %v8918_v35  ;;  %v5660_v59 = vld [vmem:[#allocation13 + $0x5a8] sm:$0xff]  ;;  %v3785_v38 = vld [vmem:[#allocation10 + $0x1bf8] sm:$0xff] }
 0x4e6   : > { %8477 = vmatpush1.bf16.msra.mxu1 %v8476_v34  ;;  %v5630_v34 = vld [vmem:[#allocation13 + $0x4b8] sm:$0xff]  ;;  %8921 = vmatpush1.bf16.msra.mxu0 %v8920_v60  ;;  %v3760_v31 = vld [vmem:[#allocation10 + $0x1b30] sm:$0xff] }
 0x4e7   : > { %8479 = vmatprep.subr.bf16.mxu1 %v8478_v41  ;;  %v8558_v41 = vpack.c.bf16 %v3689_v37, %v3681_v9  ;;  %v8922_v8 = vpack.c.bf16 %v5630_v34, %v5624_v15  ;;  %v5653_v9 = vld [vmem:[#allocation13 + $0x570] sm:$0xff]  ;;  %v5666_v60 = vld [vmem:[#allocation13 + $0x5d8] sm:$0xff]  ;;  %v3768_v61 = vld [vmem:[#allocation10 + $0x1b70] sm:$0xff] }
 0x4e8   : > { %v3729_v37 = vld [vmem:[#allocation10 + $0x1a38] sm:$0xff] }
 0x4e9   : > { %8923 = vmatprep.subr.bf16.mxu0 %v8922_v8  ;;  %v8570_v34 = vpack.c.bf16 %v3737_v5, %v3729_v37  ;;  %v8934_v8 = vpack.c.bf16 %v5666_v60, %v5660_v59  ;;  %v3792_v37 = vld [vmem:[#allocation10 + $0x1c30] sm:$0xff]  ;;  %v3809_v5 = vld [vmem:[#allocation10 + $0x1cb8] sm:$0xff] }
 0x4ea   : > { %8481 = vmatpush1.bf16.msra.mxu1 %v8480_v30  ;;  %v3705_v30 = vld [vmem:[#allocation10 + $0x1978] sm:$0xff]  ;;  %8925 = vmatpush1.bf16.msra.mxu0 %v8924_v49  ;;  %v3744_v49 = vld [vmem:[#allocation10 + $0x1ab0] sm:$0xff] }
 0x4eb   : > { %8483 = vmatprep.subr.bf16.mxu1 %v8482_v54  ;;  %v5636_v54 = vld [vmem:[#allocation13 + $0x4e8] sm:$0xff]  ;;  %v3817_v59 = vld [vmem:[#allocation10 + $0x1cf8] sm:$0xff] }
 0x4ec   : > { %v8926_v19 = vpack.c.bf16 %v5642_v12, %v5636_v54  ;;  %v8574_v12 = vpack.c.bf16 %v3753_v1, %v3745_v2  ;;  %v3841_v2 = vld [vmem:[#allocation10 + $0x1db8] sm:$0xff] }
 0x4ed   : > { %v3849_v1 = vld [vmem:[#allocation10 + $0x1df8] sm:$0xff] }
 0x4ee   : > { %8485 = vmatpush1.bf16.msra.mxu1 %v8484_v29  ;;  %v5641_v29 = vld [vmem:[#allocation13 + $0x510] sm:$0xff]  ;;  %8927 = vmatprep.subr.bf16.mxu0 %v8926_v19 }
 0x4ef   : > { %8487 = vmatprep.subr.bf16.mxu1 %v8486_v53  ;;  %v8562_v53 = vpack.c.bf16 %v3705_v30, %v3697_v3  ;;  %v8928_v40 = vpack.c.bf16 %v5641_v29, %v5635_v48  ;;  %v3736_v3 = vld [vmem:[#allocation10 + $0x1a70] sm:$0xff]  ;;  %v8936_v30 = vpack.c.bf16 %v5665_v0, %v5659_v24  ;;  %v3761_v48 = vld [vmem:[#allocation10 + $0x1b38] sm:$0xff] }
 0x4f0   : > { %v3769_v29 = vld [vmem:[#allocation10 + $0x1b78] sm:$0xff]  ;;  %v3816_v24 = vld [vmem:[#allocation10 + $0x1cf0] sm:$0xff] }
 0x4f1   : > { %8929 = vmatpush1.bf16.msra.mxu0 %v8928_v40  ;;  %v8578_v33 = vpack.c.bf16 %v3769_v29, %v3761_v48  ;;  %v3777_v19 = vld [vmem:[#allocation10 + $0x1bb8] sm:$0xff]  ;;  %v3776_v40 = vld [vmem:[#allocation10 + $0x1bb0] sm:$0xff] }
 0x4f2   : > { %8489 = vmatpush1.bf16.msra.mxu1 %v8488_v25  ;;  %v5648_v25 = vld [vmem:[#allocation13 + $0x548] sm:$0xff]  ;;  %v3825_v0 = vld [vmem:[#allocation10 + $0x1d38] sm:$0xff] }
 0x4f3   : > { %8555 = vmatprep.subr.bf16.mxu1 %v8554_v26  ;;  %v5647_v26 = vld [vmem:[#allocation13 + $0x540] sm:$0xff]  ;;  %v8930_v35 = vpack.c.bf16 %v5654_v7, %v5648_v25  ;;  %v8580_v25 = vpack.c.bf16 %v3768_v61, %v3760_v31  ;;  %v8582_v7 = vpack.c.bf16 %v3785_v38, %v3777_v19  ;;  %v3865_v48 = vld [vmem:[#allocation10 + $0x1e78] sm:$0xff]  ;;  %v3864_v31 = vld [vmem:[#allocation10 + $0x1e70] sm:$0xff] }
 0x4f4   : > { %v8932_v15 = vpack.c.bf16 %v5653_v9, %v5647_v26  ;;  %v3793_v26 = vld [vmem:[#allocation10 + $0x1c38] sm:$0xff] }
 0x4f5   : > { %4131 = vmatmul.mubr.f32.vlgmr.msra.gmra.mrb[30].mxu1 %v11312_v62  ;;  %8931 = vmatprep.subr.bf16.mxu0 %v8930_v35  ;;  %v3801_v9 = vld [vmem:[#allocation10 + $0x1c78] sm:$0xff]  ;;  %v3800_v35 = vld [vmem:[#allocation10 + $0x1c70] sm:$0xff] }
 0x4f6   : > { %4136 = vmatprep.mubr.f32.mxu1 %v11319_v4  ;;  %8557 = vmatpush1.bf16.msra.mxu1 %v8556_v20  ;;  %v8568_v20 = vpack.c.bf16 %v3720_v55, %v3712_v13  ;;  %v8586_v55 = vpack.c.bf16 %v3801_v9, %v3793_v26  ;;  %v8588_v60 = vpack.c.bf16 %v3800_v35, %v3792_v37  ;;  %v3873_v61 = vld [vmem:[#allocation10 + $0x1eb8] sm:$0xff]  ;;  %v3896_v37 = vld [vmem:[#allocation10 + $0x1f70] sm:$0xff] }
 0x4f7   : > { %8559 = vmatprep.subr.bf16.mxu1 %v8558_v41  ;;  %v3728_v41 = vld [vmem:[#allocation10 + $0x1a30] sm:$0xff]  ;;  %8933 = vmatpush1.bf16.msra.mxu0 %v8932_v15  ;;  %v8590_v15 = vpack.c.bf16 %v3817_v59, %v3809_v5  ;;  %v3881_v19 = vld [vmem:[#allocation10 + $0x1ef8] sm:$0xff] }
 0x4f8   : > { %v8572_v54 = vpack.c.bf16 %v3736_v3, %v3728_v41  ;;  %8935 = vmatprep.subr.bf16.mxu0 %v8934_v8  ;;  %v3832_v8 = vld [vmem:[#allocation10 + $0x1d70] sm:$0xff]  ;;  %v3897_v26 = vld [vmem:[#allocation10 + $0x1f78] sm:$0xff] }
 0x4f9   : > { %4137 = vmatmul.mubr.f32.gmra.mrb[32].mxu1 %v11324_v6  ;;  %v3905_v35 = vld [vmem:[#allocation10 + $0x1fb8] sm:$0xff] }
 0x4fa   : > { %4142 = vmatprep.mubr.f32.mxu1 %v11329_v47  ;;  %8561 = vmatpush1.bf16.msra.mxu1 %v8560_v42  ;;  %v3752_v42 = vld [vmem:[#allocation10 + $0x1af0] sm:$0xff]  ;;  %v3913_v5 = vld [vmem:[#allocation10 + $0x1ff8] sm:$0xff] }
 0x4fb   : > { %8563 = vmatprep.subr.bf16.mxu1 %v8562_v53  ;;  %8937 = vmatpush1.bf16.msra.mxu0 %v8936_v30  ;;  %v8576_v53 = vpack.c.bf16 %v3752_v42, %v3744_v49  ;;  %v3848_v49 = vld [vmem:[#allocation10 + $0x1df0] sm:$0xff]  ;;  %v3857_v42 = vld [vmem:[#allocation10 + $0x1e38] sm:$0xff] }
 0x4fd   : > { %4143 = vmatmul.mubr.f32.gmra.mrb[34].mxu1 %v11336_v50 }
 0x4fe   : > { %4148 = vmatprep.mubr.f32.mxu1 %v11341_v11  ;;  %8565 = vmatpush1.bf16.msra.mxu1 %v8564_v27  ;;  %v3784_v27 = vld [vmem:[#allocation10 + $0x1bf0] sm:$0xff] }
 0x4ff   : > { %8567 = vmatprep.subr.bf16.mxu1 %v8566_v56  ;;  %v11976_v56 = vld [vmem:[#allocation29_spill] sm:$0xff]  ;;  %v8584_v13 = vpack.c.bf16 %v3784_v27, %v3776_v40 }
 0x500   : > { %v3880_v40 = vld [vmem:[#allocation10 + $0x1ef0] sm:$0xff]  ;;  %v3889_v27 = vld [vmem:[#allocation10 + $0x1f38] sm:$0xff] }
 0x501   : > { %4149 = vmatmul.mubr.f32.gmra.mrb[36].mxu1 %v11348_v57 }
 0x502   : > { %4154 = vmatprep.mubr.f32.mxu1 %v11353_v46  ;;  %8569 = vmatpush1.bf16.msra.mxu1 %v8568_v20  ;;  %v3808_v20 = vld [vmem:[#allocation10 + $0x1cb0] sm:$0xff] }
 0x503   : > { %8571 = vmatprep.subr.bf16.mxu1 %v8570_v34  ;;  %v3833_v34 = vld [vmem:[#allocation10 + $0x1d78] sm:$0xff]  ;;  %v8592_v41 = vpack.c.bf16 %v3816_v24, %v3808_v20  ;;  %v3912_v20 = vld [vmem:[#allocation10 + $0x1ff0] sm:$0xff] }
 0x504   : > { %v8594_v3 = vpack.c.bf16 %v3833_v34, %v3825_v0  ;;  %v4447_v24 = vld [vmem:[#allocation10 + $0x2018] sm:$0xff] }
 0x505   : > { %4155 = vmatmul.mubr.f32.gmra.mrb[38].mxu1 %v11360_v36  ;;  %v4455_v0 = vld [vmem:[#allocation10 + $0x2058] sm:$0xff] }
 0x506   : > { %4160 = vmatprep.mubr.f32.mxu1 %v11365_v22  ;;  %8573 = vmatpush1.bf16.msra.mxu1 %v8572_v54  ;;  %v8598_v54 = vpack.c.bf16 %v3849_v1, %v3841_v2  ;;  %v4471_v2 = vld [vmem:[#allocation10 + $0x20d8] sm:$0xff] }
 0x507   : > { %8575 = vmatprep.subr.bf16.mxu1 %v8574_v12  ;;  %v3840_v12 = vld [vmem:[#allocation10 + $0x1db0] sm:$0xff] }
 0x508   : > { %v8600_v29 = vpack.c.bf16 %v3848_v49, %v3840_v12  ;;  %v4470_v12 = vld [vmem:[#allocation10 + $0x20d0] sm:$0xff]  ;;  %v4479_v49 = vld [vmem:[#allocation10 + $0x2118] sm:$0xff] }
 0x509   : > { %4161 = vmatmul.mubr.f32.gmra.mrb[40].mxu1 %v11372_v28 }
 0x50a   : > { %4166 = vmatprep.mubr.f32.mxu1 %v11377_v43  ;;  %8577 = vmatpush1.bf16.msra.mxu1 %v8576_v53  ;;  %v8602_v53 = vpack.c.bf16 %v3865_v48, %v3857_v42  ;;  %v4487_v42 = vld [vmem:[#allocation10 + $0x2158] sm:$0xff] }
 0x50b   : > { %8579 = vmatprep.subr.bf16.mxu1 %v8578_v33  ;;  %v3856_v33 = vld [vmem:[#allocation10 + $0x1e30] sm:$0xff] }
 0x50c   : > { %v8604_v38 = vpack.c.bf16 %v3864_v31, %v3856_v33  ;;  %v4486_v33 = vld [vmem:[#allocation10 + $0x2150] sm:$0xff]  ;;  %v4495_v31 = vld [vmem:[#allocation10 + $0x2198] sm:$0xff] }
 0x50d   : > { %4167 = vmatmul.mubr.f32.gmra.mrb[42].mxu1 %v11976_v56 }
 0x50e   : > { %8581 = vmatpush1.bf16.msra.mxu1 %v8580_v25  ;;  %4344 = vmatprep.mubr.f32.mxu1 %v11975_v17  ;;  %v3824_v17 = vld [vmem:[#allocation10 + $0x1d30] sm:$0xff]  ;;  %v8606_v25 = vpack.c.bf16 %v3881_v19, %v3873_v61  ;;  %v4503_v61 = vld [vmem:[#allocation10 + $0x21d8] sm:$0xff] }
 0x50f   : > { %8583 = vmatprep.subr.bf16.mxu1 %v8582_v7  ;;  %v8596_v30 = vpack.c.bf16 %v3832_v8, %v3824_v17  ;;  %v3872_v7 = vld [vmem:[#allocation10 + $0x1eb0] sm:$0xff]  ;;  %v4463_v8 = vld [vmem:[#allocation10 + $0x2098] sm:$0xff] }
 0x510   : > { %v8608_v9 = vpack.c.bf16 %v3880_v40, %v3872_v7  ;;  %v4454_v17 = vld [vmem:[#allocation10 + $0x2050] sm:$0xff]  ;;  %v4511_v7 = vld [vmem:[#allocation10 + $0x2218] sm:$0xff] }
 0x512   : > { %8585 = vmatpush1.bf16.msra.mxu1 %v8584_v13  ;;  %v8610_v13 = vpack.c.bf16 %v3897_v26, %v3889_v27  ;;  %v4510_v26 = vld [vmem:[#allocation10 + $0x2210] sm:$0xff] }
 0x513   : > { %8587 = vmatprep.subr.bf16.mxu1 %v8586_v55  ;;  %v3888_v55 = vld [vmem:[#allocation10 + $0x1f30] sm:$0xff] }
 0x514   : > { %v8612_v59 = vpack.c.bf16 %v3896_v37, %v3888_v55 }
 0x516   : > { %8589 = vmatpush1.bf16.msra.mxu1 %v8588_v60  ;;  %v8614_v60 = vpack.c.bf16 %v3913_v5, %v3905_v35 }
 0x517   : > { %8591 = vmatprep.subr.bf16.mxu1 %v8590_v15  ;;  %v3904_v15 = vld [vmem:[#allocation10 + $0x1fb0] sm:$0xff] }
 0x518   : > { %v8616_v34 = vpack.c.bf16 %v3912_v20, %v3904_v15  ;;  %v4526_v15 = vld [vmem:[#allocation10 + $0x2290] sm:$0xff] }
 0x519   : > { %v4534_v20 = vld [vmem:[#allocation10 + $0x22d0] sm:$0xff] }
 0x51a   : > { %8593 = vmatpush1.bf16.msra.mxu1 %v8592_v41  ;;  %v8682_v41 = vpack.c.bf16 %v4455_v0, %v4447_v24  ;;  %v11979_v24 = vld [vmem:[#allocation38_spill] sm:$0xff] }
 0x51b   : > { %8595 = vmatprep.subr.bf16.mxu1 %v8594_v3  ;;  %v4446_v3 = vld [vmem:[#allocation10 + $0x2010] sm:$0xff] }
 0x51c   : > { %v8684_v1 = vpack.c.bf16 %v4454_v17, %v4446_v3  ;;  %v8704_v17 = vpack.c.bf16 %v4534_v20, %v4526_v15  ;;  %v11985_v20 = vld [vmem:[#allocation43_spill] sm:$0xff] }
 0x51e   : > { %8597 = vmatpush1.bf16.msra.mxu1 %v8596_v30  ;;  %v8686_v30 = vpack.c.bf16 %v4471_v2, %v4463_v8  ;;  %v11981_v2 = vld [vmem:[#allocation39_spill] sm:$0xff] }
 0x51f   : > { %8599 = vmatprep.subr.bf16.mxu1 %v8598_v54  ;;  %v4462_v54 = vld [vmem:[#allocation10 + $0x2090] sm:$0xff] }
 0x520   : > { %v8688_v48 = vpack.c.bf16 %v4470_v12, %v4462_v54  ;;  %v4542_v12 = vld [vmem:[#allocation10 + $0x2310] sm:$0xff] }
 0x522   : > { %8601 = vmatpush1.bf16.msra.mxu1 %v8600_v29  ;;  %v8690_v29 = vpack.c.bf16 %v4487_v42, %v4479_v49  ;;  %v4550_v49 = vld [vmem:[#allocation10 + $0x2350] sm:$0xff] }
 0x523   : > { %8603 = vmatprep.subr.bf16.mxu1 %v8602_v53  ;;  %v4478_v53 = vld [vmem:[#allocation10 + $0x2110] sm:$0xff] }
 0x524   : > { %v8692_v19 = vpack.c.bf16 %v4486_v33, %v4478_v53  ;;  %v4559_v53 = vld [vmem:[#allocation10 + $0x2398] sm:$0xff] }
 0x526   : > { %8605 = vmatpush1.bf16.msra.mxu1 %v8604_v38  ;;  %v8694_v38 = vpack.c.bf16 %v4503_v61, %v4495_v31  ;;  %v8708_v61 = vpack.c.bf16 %v4550_v49, %v4542_v12 }
 0x527   : > { %8607 = vmatprep.subr.bf16.mxu1 %v8606_v25  ;;  %v4494_v25 = vld [vmem:[#allocation10 + $0x2190] sm:$0xff] }
 0x52a   : > { %8609 = vmatpush1.bf16.msra.mxu1 %v8608_v9  ;;  %v11584_v9 = vld [vmem:[#allocation11] sm:$0xff] }
 0x52b   : > { %8611 = vmatprep.subr.bf16.mxu1 %v8610_v13  ;;  %v4535_v13 = vld [vmem:[#allocation10 + $0x22d8] sm:$0xff] }
 0x52e   : > { %8613 = vmatpush1.bf16.msra.mxu1 %v8612_v59 }
 0x52f   : > { %8615 = vmatprep.subr.bf16.mxu1 %v8614_v60 }
 0x532   : > { %8617 = vmatpush1.bf16.msra.mxu1 %v8616_v34  ;;  %v11980_v34 = vld [vmem:[#allocation28_spill] sm:$0xff] }
 0x533   : > { %8683 = vmatprep.subr.bf16.mxu1 %v8682_v41  ;;  %v4551_v41 = vld [vmem:[#allocation10 + $0x2358] sm:$0xff] }
 0x535   : > { %4345 = vmatmul.mubr.f32.vlgmr.msra.gmra.mrb[58].mxu1 %v11312_v62  ;;  %v4502_v62 = vld [vmem:[#allocation10 + $0x21d0] sm:$0xff] }
 0x536   : > { %4350 = vmatprep.mubr.f32.mxu1 %v11319_v4  ;;  %8685 = vmatpush1.bf16.msra.mxu1 %v8684_v1  ;;  %v4519_v4 = vld [vmem:[#allocation10 + $0x2258] sm:$0xff]  ;;  %v8696_v40 = vpack.c.bf16 %v4502_v62, %v4494_v25 }
 0x537   : > { %8687 = vmatprep.subr.bf16.mxu1 %v8686_v30  ;;  %v8698_v27 = vpack.c.bf16 %v4519_v4, %v4511_v7  ;;  %v11983_v25 = vld [vmem:[#allocation41_spill] sm:$0xff] }
 0x539   : > { %4351 = vmatmul.mubr.f32.gmra.mrb[60].mxu1 %v11324_v6  ;;  %v4518_v6 = vld [vmem:[#allocation10 + $0x2250] sm:$0xff] }
 0x53a   : > { %4356 = vmatprep.mubr.f32.mxu1 %v11329_v47  ;;  %8689 = vmatpush1.bf16.msra.mxu1 %v8688_v48  ;;  %v4527_v47 = vld [vmem:[#allocation10 + $0x2298] sm:$0xff]  ;;  %v8700_v37 = vpack.c.bf16 %v4518_v6, %v4510_v26  ;;  %v11982_v48 = vld [vmem:[#allocation40_spill] sm:$0xff] }
 0x53b   : > { %8691 = vmatprep.subr.bf16.mxu1 %v8690_v29  ;;  %v8702_v60 = vpack.c.bf16 %v4535_v13, %v4527_v47  ;;  %v11984_v47 = vld [vmem:[#allocation42_spill] sm:$0xff] }
 0x53c   : > { %v4575_v13 = vld [vmem:[#allocation10 + $0x2418] sm:$0xff] }
 0x53d   : > { %4357 = vmatmul.mubr.f32.gmra.mrb[62].mxu1 %v11336_v50  ;;  %v11977_v50 = vld [vmem:[#allocation37_spill] sm:$0xff] }
 0x53e   : > { %4362 = vmatprep.mubr.f32.mxu1 %v11341_v11  ;;  %8693 = vmatpush1.bf16.msra.mxu1 %v8692_v19  ;;  %v11978_v11 = vld [vmem:[#allocation27_spill] sm:$0xff] }
 0x53f   : > { %8695 = vmatprep.subr.bf16.mxu1 %v8694_v38  ;;  %v11591_v5 = vrot.slane %v11584_v9, %v11978_v11 }
 0x541   : > { %4363 = vmatmul.mubr.f32.gmra.mrb[64].mxu1 %v11348_v57  ;;  %v11596_v57 = vrot.slane %v11584_v9, %v11980_v34 }
 0x542   : > { %v4811_v55 = vpop.f32.mrb[24].mxu0  ;;  %4368 = vmatprep.mubr.f32.mxu1 %v11353_v46  ;;  %8697 = vmatpush1.bf16.msra.mxu1 %v8696_v40  ;;  %v4543_v46 = vld [vmem:[#allocation10 + $0x2318] sm:$0xff]  ;;  %v4558_v40 = vld [vmem:[#allocation10 + $0x2390] sm:$0xff] }
 0x543   : > { %v9658_v35 = vadd.f32 %v4811_v55, %v11977_v50  ;;  %v4813_v59 = vpop.f32.mrb[25].mxu0  ;;  %8699 = vmatprep.subr.bf16.mxu1 %v8698_v27  ;;  %v8706_v54 = vpack.c.bf16 %v4551_v41, %v4543_v46  ;;  %v4566_v27 = vld [vmem:[#allocation10 + $0x23d0] sm:$0xff]  ;;  %v4583_v55 = vld [vmem:[#allocation10 + $0x2458] sm:$0xff] }
 0x544   : > { %v9659_v0 = vadd.f32 %v4813_v59, %v11979_v24  ;;  %v8714_v46 = vpack.c.bf16 %v4583_v55, %v4575_v13  ;;  %v4574_v41 = vld [vmem:[#allocation10 + $0x2410] sm:$0xff]  ;;  %v11989_v13 = vld [vmem:[#allocation47_spill] sm:$0xff] }
 0x545   : > { %4369 = vmatmul.mubr.f32.gmra.mrb[66].mxu1 %v11360_v36  ;;  %v5271_v8 = vadd.f32 %v9658_v35, %v11591_v5  ;;  %v4567_v36 = vld [vmem:[#allocation10 + $0x23d8] sm:$0xff] }
 0x546   : > { %v4817_v3 = vpop.f32.mrb[26].mxu0  ;;  %4374 = vmatprep.mubr.f32.mxu1 %v11365_v22  ;;  %8701 = vmatpush1.bf16.msra.mxu1 %v8700_v37  ;;  %v5272_v42 = vadd.f32 %v9659_v0, %v11596_v57  ;;  %v8710_v4 = vpack.c.bf16 %v4567_v36, %v4559_v53  ;;  %v11987_v53 = vld [vmem:[#allocation45_spill] sm:$0xff] }
 0x547   : > { %v9660_v1 = vadd.f32 %v4817_v3, %v11981_v2  ;;  %v4819_v30 = vpop.f32.mrb[27].mxu0  ;;  %8703 = vmatprep.subr.bf16.mxu1 %v8702_v60  ;;  %v5327_v19 = vmax.f32 %v5271_v8, 0.0  ;;  %v8712_v60 = vpack.c.bf16 %v4566_v27, %v4558_v40  ;;  %v4582_v3 = vld [vmem:[#allocation10 + $0x2450] sm:$0xff] }
 0x548   : > { %v9661_v29 = vadd.f32 %v4819_v30, %v11982_v48  ;;  %v5328_v26 = vmax.f32 %v5272_v42, 0.0  ;;  %v11986_v8 = vld [vmem:[#allocation44_spill] sm:$0xff]  ;;  %v8716_v48 = vpack.c.bf16 %v4582_v3, %v4574_v41 }
 0x549   : > { %v5279_v33 = vadd.f32 %v9660_v1, %v11591_v5  ;;  %4375 = vmatmul.mubr.f32.gmra.mrb[68].mxu1 %v11372_v28  ;;  %v4599_v1 = vld [vmem:[#allocation10 + $0x24d8] sm:$0xff] }
 0x54a   : > { %v5280_v22 = vadd.f32 %v9661_v29, %v11596_v57  ;;  %v4823_v31 = vpop.f32.mrb[28].mxu0  ;;  %4380 = vmatprep.mubr.f32.mxu1 %v11377_v43  ;;  %8705 = vmatpush1.bf16.msra.mxu1 %v8704_v17 }
 0x54b   : > { %v5335_v38 = vmax.f32 %v5279_v33, 0.0  ;;  %v9662_v62 = vadd.f32 %v4823_v31, %v11983_v25  ;;  %v4825_v7 = vpop.f32.mrb[29].mxu0  ;;  %8707 = vmatprep.subr.bf16.mxu1 %v8706_v54  ;;  %v4590_v31 = vld [vmem:[#allocation10 + $0x2490] sm:$0xff] }
 0x54c   : > { %v5336_v6 = vmax.f32 %v5280_v22, 0.0  ;;  %v9663_v28 = vadd.f32 %v4825_v7, %v11984_v47  ;;  %v4615_v7 = vld [vmem:[#allocation10 + $0x2558] sm:$0xff] }
 0x54d   : > { %v5383_v37 = vmax.f32 %v5327_v19, %v5335_v38  ;;  %v5287_v43 = vadd.f32 %v9662_v62, %v11591_v5  ;;  %4381 = vmatmul.mubr.f32.gmra.mrb[70].mxu1 %v11976_v56  ;;  %v4591_v56 = vld [vmem:[#allocation10 + $0x2498] sm:$0xff] }
 0x54e   : > { %v5395_v50 = vmax.f32 %v5328_v26, %v5336_v6  ;;  %v5288_v35 = vadd.f32 %v9663_v28, %v11596_v57  ;;  %v4829_v59 = vpop.f32.mrb[30].mxu0  ;;  %8709 = vmatpush1.bf16.msra.mxu1 %v8708_v61  ;;  %4916 = vmatprep.mubr.f32.mxu1 %v11419_v45  ;;  %v8718_v22 = vpack.c.bf16 %v4599_v1, %v4591_v56  ;;  %v4598_v61 = vld [vmem:[#allocation10 + $0x24d0] sm:$0xff]  ;;  %v11988_v38 = vld [vmem:[#allocation46_spill] sm:$0xff] }
 0x54f   : > { %v5343_v15 = vmax.f32 %v5287_v43, 0.0  ;;  %v9664_v24 = vadd.f32 %v4829_v59, %v11985_v20  ;;  %v4831_v0 = vpop.f32.mrb[31].mxu0  ;;  %8711 = vmatprep.subr.bf16.mxu1 %v8710_v4  ;;  %v4607_v62 = vld [vmem:[#allocation10 + $0x2518] sm:$0xff]  ;;  %v8720_v47 = vpack.c.bf16 %v4598_v61, %v4590_v31 }
 0x550   : > { %v5344_v17 = vmax.f32 %v5288_v35, 0.0  ;;  %v9665_v2 = vadd.f32 %v4831_v0, %v11986_v8  ;;  %v8722_v43 = vpack.c.bf16 %v4615_v7, %v4607_v62  ;;  %v4614_v35 = vld [vmem:[#allocation10 + $0x2550] sm:$0xff]  ;;  %v4623_v20 = vld [vmem:[#allocation10 + $0x2598] sm:$0xff] }
 0x551   : > { %v5384_v30 = vmax.f32 %v5383_v37, %v5343_v15  ;;  %v5295_v54 = vadd.f32 %v9664_v24, %v11591_v5  ;;  %v4631_v24 = vld [vmem:[#allocation10 + $0x25d8] sm:$0xff]  ;;  %v4638_v62 = vld [vmem:[#allocation10 + $0x2610] sm:$0xff] }
 0x552   : > { %v5396_v12 = vmax.f32 %v5395_v50, %v5344_v17  ;;  %v5296_v49 = vadd.f32 %v9665_v2, %v11596_v57  ;;  %v4835_v42 = vpop.f32.mrb[32].mxu0  ;;  %8713 = vmatpush1.bf16.msra.mxu1 %v8712_v60  ;;  %v4606_v50 = vld [vmem:[#allocation10 + $0x2510] sm:$0xff] }
 0x553   : > { %v5351_v29 = vmax.f32 %v5295_v54, 0.0  ;;  %v9666_v36 = vadd.f32 %v4835_v42, %v11987_v53  ;;  %v4837_v33 = vpop.f32.mrb[33].mxu0  ;;  %8715 = vmatprep.subr.bf16.mxu1 %v8714_v46  ;;  %v11990_v60 = vld [vmem:[#allocation48_spill] sm:$0xff]  ;;  %v8724_v8 = vpack.c.bf16 %v4614_v35, %v4606_v50  ;;  %v11991_v56 = vld [vmem:[#allocation49_spill] sm:$0xff]  ;;  %v8726_v54 = vpack.c.bf16 %v4631_v24, %v4623_v20 }
 0x554   : > { %v5352_v19 = vmax.f32 %v5296_v49, 0.0  ;;  %v9667_v25 = vadd.f32 %v4837_v33, %v11988_v38  ;;  %v4630_v49 = vld [vmem:[#allocation10 + $0x25d0] sm:$0xff]  ;;  %v4639_v53 = vld [vmem:[#allocation10 + $0x2618] sm:$0xff] }
 0x555   : > { %v5385_v4 = vmax.f32 %v5384_v30, %v5351_v29  ;;  %v5303_v40 = vadd.f32 %v9666_v36, %v11591_v5  ;;  %v4647_v36 = vld [vmem:[#allocation10 + $0x2658] sm:$0xff]  ;;  %v4646_v7 = vld [vmem:[#allocation10 + $0x2650] sm:$0xff] }
 0x556   : > { %v5397_v27 = vmax.f32 %v5396_v12, %v5352_v19  ;;  %v5304_v26 = vadd.f32 %v9667_v25, %v11596_v57  ;;  %v4841_v6 = vpop.f32.mrb[34].mxu0  ;;  %8717 = vmatpush1.bf16.msra.mxu1 %v8716_v48  ;;  %v4622_v12 = vld [vmem:[#allocation10 + $0x2590] sm:$0xff]  ;;  %v11992_v48 = vld [vmem:[#allocation50_spill] sm:$0xff]  ;;  %v8730_v25 = vpack.c.bf16 %v4647_v36, %v4639_v53 }
 0x557   : > { %v5359_v28 = vmax.f32 %v5303_v40, 0.0  ;;  %v9668_v55 = vadd.f32 %v4841_v6, %v11989_v13  ;;  %v4843_v37 = vpop.f32.mrb[35].mxu0  ;;  %8719 = vmatprep.subr.bf16.mxu1 %v8718_v22  ;;  %v8728_v19 = vpack.c.bf16 %v4630_v49, %v4622_v12  ;;  %v4655_v40 = vld [vmem:[#allocation10 + $0x2698] sm:$0xff]  ;;  %v4654_v13 = vld [vmem:[#allocation10 + $0x2690] sm:$0xff] }
 0x558   : > { %v5360_v59 = vmax.f32 %v5304_v26, 0.0  ;;  %v9669_v15 = vadd.f32 %v4843_v37, %v11990_v60  ;;  %v4671_v37 = vld [vmem:[#allocation10 + $0x2718] sm:$0xff]  ;;  %v4670_v20 = vld [vmem:[#allocation10 + $0x2710] sm:$0xff] }
 0x559   : > { %v5386_v0 = vmax.f32 %v5385_v4, %v5359_v28  ;;  %v5311_v46 = vadd.f32 %v9668_v55, %v11591_v5  ;;  %v4662_v55 = vld [vmem:[#allocation10 + $0x26d0] sm:$0xff]  ;;  %v4451_v12 = vld [vmem:[#allocation10 + $0x2038] sm:$0xff] }
 0x55a   : > { %v5398_v41 = vmax.f32 %v5397_v27, %v5360_v59  ;;  %v5312_v3 = vadd.f32 %v9669_v15, %v11596_v57  ;;  %v4847_v17 = vpop.f32.mrb[36].mxu0  ;;  %8721 = vmatpush1.bf16.msra.mxu1 %v8720_v47  ;;  %v4663_v27 = vld [vmem:[#allocation10 + $0x26d8] sm:$0xff]  ;;  %v8732_v47 = vpack.c.bf16 %v4646_v7, %v4638_v62  ;;  %v8736_v59 = vpack.c.bf16 %v4662_v55, %v4654_v13  ;;  %v4678_v24 = vld [vmem:[#allocation10 + $0x2750] sm:$0xff] }
 0x55b   : > { %v5367_v2 = vmax.f32 %v5311_v46, 0.0  ;;  %v9670_v1 = vadd.f32 %v4847_v17, %v11991_v56  ;;  %v4849_v30 = vpop.f32.mrb[37].mxu0  ;;  %8723 = vmatprep.subr.bf16.mxu1 %v8722_v43  ;;  %v4679_v43 = vld [vmem:[#allocation10 + $0x2758] sm:$0xff]  ;;  %v8740_v17 = vpack.c.bf16 %v4678_v24, %v4670_v20  ;;  %v4450_v36 = vld [vmem:[#allocation10 + $0x2030] sm:$0xff] }
 0x55c   : > { %v5368_v42 = vmax.f32 %v5312_v3, 0.0  ;;  %v9671_v29 = vadd.f32 %v4849_v30, %v11992_v48  ;;  %v8738_v15 = vpack.c.bf16 %v4679_v43, %v4671_v37  ;;  %v4687_v46 = vld [vmem:[#allocation10 + $0x2798] sm:$0xff]  ;;  %v4694_v30 = vld [vmem:[#allocation10 + $0x27d0] sm:$0xff] }
 0x55d   : > { %v5387_v33 = vmax.f32 %v5386_v0, %v5367_v2  ;;  %v5319_v22 = vadd.f32 %v9670_v1, %v11591_v5  ;;  %v8734_v5 = vpack.c.bf16 %v4663_v27, %v4655_v40  ;;  %v4686_v1 = vld [vmem:[#allocation10 + $0x2790] sm:$0xff]  ;;  %v4459_v49 = vld [vmem:[#allocation10 + $0x2078] sm:$0xff]  ;;  %v5678_v40 = vld [vmem:[#allocation13 + $0x638] sm:$0xff] }
 0x55e   : > { %v5399_v31 = vmax.f32 %v5398_v41, %v5368_v42  ;;  %v5320_v61 = vadd.f32 %v9671_v29, %v11596_v57  ;;  %8725 = vmatpush1.bf16.msra.mxu1 %v8724_v8  ;;  %v4695_v41 = vld [vmem:[#allocation10 + $0x27d8] sm:$0xff]  ;;  %v8744_v48 = vpack.c.bf16 %v4694_v30, %v4686_v1  ;;  %v8810_v53 = vpack.c.bf16 %v4459_v49, %v4451_v12  ;;  %v4490_v13 = vld [vmem:[#allocation10 + $0x2170] sm:$0xff] }
 0x55f   : > { %v5375_v38 = vmax.f32 %v5319_v22, 0.0  ;;  %8727 = vmatprep.subr.bf16.mxu1 %v8726_v54  ;;  %v8742_v56 = vpack.c.bf16 %v4695_v41, %v4687_v46  ;;  %v4467_v22 = vld [vmem:[#allocation10 + $0x20b8] sm:$0xff]  ;;  %v5696_v24 = vld [vmem:[#allocation13 + $0x6c8] sm:$0xff] }
 0x560   : > { %v5376_v4 = vmax.f32 %v5320_v61, 0.0  ;;  %v4483_v62 = vld [vmem:[#allocation10 + $0x2138] sm:$0xff]  ;;  %v4498_v41 = vld [vmem:[#allocation10 + $0x21b0] sm:$0xff] }
 0x561   : > { %v5388_v26 = vmax.f32 %v5387_v33, %v5375_v38  ;;  %v4458_v33 = vld [vmem:[#allocation10 + $0x2070] sm:$0xff]  ;;  %v4491_v7 = vld [vmem:[#allocation10 + $0x2178] sm:$0xff] }
 0x562   : > { %v5400_v6 = vmax.f32 %v5399_v31, %v5376_v4  ;;  %8729 = vmatpush1.bf16.msra.mxu1 %v8728_v19  ;;  %v4475_v31 = vld [vmem:[#allocation10 + $0x20f8] sm:$0xff]  ;;  %v8812_v61 = vpack.c.bf16 %v4458_v33, %v4450_v36  ;;  %v4466_v38 = vld [vmem:[#allocation10 + $0x20b0] sm:$0xff]  ;;  %v5714_v36 = vld [vmem:[#allocation13 + $0x758] sm:$0xff] }
 0x563   : > { %v5389_v28 = vrot.slane %v5388_v26, 4  ;;  %8731 = vmatprep.subr.bf16.mxu1 %v8730_v25  ;;  %v8814_v19 = vpack.c.bf16 %v4475_v31, %v4467_v22  ;;  %v4474_v25 = vld [vmem:[#allocation10 + $0x20f0] sm:$0xff]  ;;  %v4499_v37 = vld [vmem:[#allocation10 + $0x21b8] sm:$0xff] }
 0x564   : > { %v5401_v57 = vrot.slane %v5400_v6, 4  ;;  %v5672_v4 = vld [vmem:[#allocation13 + $0x608] sm:$0xff]  ;;  %v8816_v27 = vpack.c.bf16 %v4474_v25, %v4466_v38  ;;  %v4507_v43 = vld [vmem:[#allocation10 + $0x21f8] sm:$0xff] }
 0x565   : > { %v5390_v50 = vmax.f32 %v5388_v26, %v5389_v28  ;;  %v8938_v26 = vpack.c.bf16 %v5678_v40, %v5672_v4  ;;  %v8818_v28 = vpack.c.bf16 %v4491_v7, %v4483_v62  ;;  %v8822_v46 = vpack.c.bf16 %v4507_v43, %v4499_v37  ;;  %v5701_v1 = vld [vmem:[#allocation13 + $0x6f0] sm:$0xff]  ;;  %v4522_v22 = vld [vmem:[#allocation10 + $0x2270] sm:$0xff]  ;;  %v5719_v43 = vld [vmem:[#allocation13 + $0x780] sm:$0xff] }
 0x566   : > { %v5402_v35 = vmax.f32 %v5400_v6, %v5401_v57  ;;  %8733 = vmatpush1.bf16.msra.mxu1 %v8732_v47  ;;  %v5671_v6 = vld [vmem:[#allocation13 + $0x600] sm:$0xff]  ;;  %v5677_v47 = vld [vmem:[#allocation13 + $0x630] sm:$0xff]  ;;  %v5684_v57 = vld [vmem:[#allocation13 + $0x668] sm:$0xff] }
 0x567   : > { %v5391_v60 = vrot.slane %v5390_v50, 2  ;;  %8735 = vmatprep.subr.bf16.mxu1 %v8734_v5  ;;  %v4482_v5 = vld [vmem:[#allocation10 + $0x2130] sm:$0xff]  ;;  %v8940_v55 = vpack.c.bf16 %v5677_v47, %v5671_v6  ;;  %8939 = vmatprep.subr.bf16.mxu0 %v8938_v26  ;;  %v4531_v25 = vld [vmem:[#allocation10 + $0x22b8] sm:$0xff]  ;;  %v5726_v47 = vld [vmem:[#allocation13 + $0x7b8] sm:$0xff] }
 0x568   : > { %v5403_v0 = vrot.slane %v5402_v35, 2  ;;  %v4539_v62 = vld [vmem:[#allocation10 + $0x22f8] sm:$0xff]  ;;  %v4530_v26 = vld [vmem:[#allocation10 + $0x22b0] sm:$0xff] }
 0x569   : > { %v5392_v3 = vmax.f32 %v5390_v50, %v5391_v60  ;;  %v5690_v50 = vld [vmem:[#allocation13 + $0x698] sm:$0xff]  ;;  %v5689_v60 = vld [vmem:[#allocation13 + $0x690] sm:$0xff]  ;;  %v5720_v6 = vld [vmem:[#allocation13 + $0x788] sm:$0xff] }
 0x56a   : > { %8737 = vmatpush1.bf16.msra.mxu1 %v8736_v59  ;;  %v5404_v8 = vmax.f32 %v5402_v35, %v5403_v0  ;;  %v8942_v35 = vpack.c.bf16 %v5690_v50, %v5684_v57  ;;  %v5683_v59 = vld [vmem:[#allocation13 + $0x660] sm:$0xff]  ;;  %v5702_v0 = vld [vmem:[#allocation13 + $0x6f8] sm:$0xff]  ;;  %v4538_v57 = vld [vmem:[#allocation10 + $0x22f0] sm:$0xff]  ;;  %v8954_v37 = vpack.c.bf16 %v5726_v47, %v5720_v6 }
 0x56b   : > { %v5393_v2 = vrot.slane %v5392_v3, 1  ;;  %8739 = vmatprep.subr.bf16.mxu1 %v8738_v15  ;;  %v8820_v15 = vpack.c.bf16 %v4490_v13, %v4482_v5  ;;  %v8944_v20 = vpack.c.bf16 %v5689_v60, %v5683_v59  ;;  %v5725_v50 = vld [vmem:[#allocation13 + $0x7b0] sm:$0xff] }
 0x56c   : > { %v5405_v54 = vrot.slane %v5404_v8, 1 }
 0x56d   : > { %v11632_v29 = vmax.f32 %v5392_v3, %v5393_v2  ;;  %v4506_v3 = vld [vmem:[#allocation10 + $0x21f0] sm:$0xff]  ;;  %v4515_v2 = vld [vmem:[#allocation10 + $0x2238] sm:$0xff] }
 0x56e   : > { %8741 = vmatpush1.bf16.msra.mxu1 %v8740_v17  ;;  %v11630_v42 = vmax.f32 %v5404_v8, %v5405_v54  ;;  %v8946_v17 = vpack.c.bf16 %v5702_v0, %v5696_v24  ;;  %v5695_v8 = vld [vmem:[#allocation13 + $0x6c0] sm:$0xff]  ;;  %v11993_v54 = vld [vmem:[#allocation26_spill] sm:$0xff]  ;;  %v8824_v49 = vpack.c.bf16 %v4506_v3, %v4498_v41  ;;  %v8956_v24 = vpack.c.bf16 %v5725_v50, %v5719_v43 }
 0x56f   : > { %8743 = vmatprep.subr.bf16.mxu1 %v8742_v56  ;;  %v4523_v56 = vld [vmem:[#allocation10 + $0x2278] sm:$0xff]  ;;  %v8948_v30 = vpack.c.bf16 %v5701_v1, %v5695_v8  ;;  %v5249_v12 = vsub.s32 4, %v11993_v54  ;;  %v5253_v38 = vsub.s32 5, %v11993_v54  ;;  %v11996_v3 = vld [vmem:[#allocation51_spill] sm:$0xff] }
 0x570   : > { %6343 = vmatprep.mubr.f32.mxu0 %v11630_v42  ;;  %v8826_v33 = vpack.c.bf16 %v4523_v56, %v4515_v2  ;;  %v4554_v56 = vld [vmem:[#allocation10 + $0x2370] sm:$0xff] }
 0x571   : > { %6344 = vmatmul.mubr.f32.vlgmr.msra.gmra.mrb[52].mxu0 %v11632_v29  ;;  %v11648_v40 = vrot.slane %v11584_v9, %v5249_v12  ;;  %v11656_v60 = vrot.slane %v11584_v9, %v5253_v38  ;;  %v4546_v9 = vld [vmem:[#allocation10 + $0x2330] sm:$0xff] }
 0x572   : > { %8745 = vmatpush1.bf16.msra.mxu1 %v8744_v48  ;;  %8941 = vmatpush1.bf16.msra.mxu0 %v8940_v55  ;;  %v4514_v48 = vld [vmem:[#allocation10 + $0x2230] sm:$0xff]  ;;  %v8830_v55 = vpack.c.bf16 %v4539_v62, %v4531_v25 }
 0x573   : > { %8811 = vmatprep.subr.bf16.mxu1 %v8810_v53  ;;  %8943 = vmatprep.subr.bf16.mxu0 %v8942_v35  ;;  %v5708_v53 = vld [vmem:[#allocation13 + $0x728] sm:$0xff]  ;;  %v11995_v35 = vld [vmem:[#allocation30_spill] sm:$0xff] }
 0x574   : > { %v8950_v31 = vpack.c.bf16 %v5714_v36, %v5708_v53  ;;  %v4571_v53 = vld [vmem:[#allocation10 + $0x23f8] sm:$0xff]  ;;  %v11998_v25 = vld [vmem:[#allocation32_spill] sm:$0xff] }
 0x575   : > { %4917 = vmatmul.mubr.f32.vlgmr.msra.gmra.mrb[30].mxu1 %v11458_v52 }
 0x576   : > { %4922 = vmatprep.mubr.f32.mxu1 %v11465_v21  ;;  %8813 = vmatpush1.bf16.msra.mxu1 %v8812_v61  ;;  %v5707_v61 = vld [vmem:[#allocation13 + $0x720] sm:$0xff] }
 0x577   : > { %8815 = vmatprep.subr.bf16.mxu1 %v8814_v19  ;;  %8945 = vmatpush1.bf16.msra.mxu0 %v8944_v20  ;;  %v5713_v19 = vld [vmem:[#allocation13 + $0x750] sm:$0xff] }
 0x578   : > { %8947 = vmatprep.subr.bf16.mxu0 %v8946_v17  ;;  %v8952_v7 = vpack.c.bf16 %v5713_v19, %v5707_v61  ;;  %v4555_v20 = vld [vmem:[#allocation10 + $0x2378] sm:$0xff] }
 0x579   : > { %4923 = vmatmul.mubr.f32.gmra.mrb[32].mxu1 %v11470_v58 }
 0x57a   : > { %4928 = vmatprep.mubr.f32.mxu1 %v11475_v23  ;;  %8817 = vmatpush1.bf16.msra.mxu1 %v8816_v27  ;;  %v8828_v27 = vpack.c.bf16 %v4522_v22, %v4514_v48  ;;  %v4563_v48 = vld [vmem:[#allocation10 + $0x23b8] sm:$0xff] }
 0x57b   : > { %8819 = vmatprep.subr.bf16.mxu1 %v8818_v28  ;;  %8949 = vmatpush1.bf16.msra.mxu0 %v8948_v30  ;;  %v11994_v28 = vld [vmem:[#allocation31_spill] sm:$0xff]  ;;  %v11997_v30 = vld [vmem:[#allocation52_spill] sm:$0xff] }
 0x57c   : > { %8951 = vmatprep.subr.bf16.mxu0 %v8950_v31  ;;  %v8836_v31 = vpack.c.bf16 %v4554_v56, %v4546_v9  ;;  %v4595_v9 = vld [vmem:[#allocation10 + $0x24b8] sm:$0xff] }
 0x57d   : > { %4929 = vmatmul.mubr.f32.gmra.mrb[34].mxu1 %v11482_v32  ;;  %v4603_v56 = vld [vmem:[#allocation10 + $0x24f8] sm:$0xff] }
 0x57e   : > { %4934 = vmatprep.mubr.f32.mxu1 %v11487_v16  ;;  %8821 = vmatpush1.bf16.msra.mxu1 %v8820_v15  ;;  %v4547_v15 = vld [vmem:[#allocation10 + $0x2338] sm:$0xff] }
 0x57f   : > { %8823 = vmatprep.subr.bf16.mxu1 %v8822_v46  ;;  %8953 = vmatpush1.bf16.msra.mxu0 %v8952_v7  ;;  %v8832_v46 = vpack.c.bf16 %v4538_v57, %v4530_v26  ;;  %v8834_v2 = vpack.c.bf16 %v4555_v20, %v4547_v15  ;;  %v4570_v26 = vld [vmem:[#allocation10 + $0x23f0] sm:$0xff]  ;;  %v12000_v20 = vld [vmem:[#allocation54_spill] sm:$0xff] }
 0x580   : > { %8955 = vmatprep.subr.bf16.mxu0 %v8954_v37 }
 0x581   : > { %4935 = vmatmul.mubr.f32.gmra.mrb[36].mxu1 %v11494_v63 }
 0x582   : > { %v5025_v4 = vpop.f32.mrb[38].mxu0  ;;  %4940 = vmatprep.mubr.f32.mxu1 %v11499_v44  ;;  %8825 = vmatpush1.bf16.msra.mxu1 %v8824_v49 }
 0x583   : > { %v9672_v5 = vadd.f32 %v5025_v4, %v11994_v28  ;;  %v5027_v13 = vpop.f32.mrb[39].mxu0  ;;  %8827 = vmatprep.subr.bf16.mxu1 %v8826_v33  ;;  %8957 = vmatpush1.bf16.msra.mxu0 %v8956_v24  ;;  %v8838_v4 = vpack.c.bf16 %v4571_v53, %v4563_v48  ;;  %v11999_v28 = vld [vmem:[#allocation53_spill] sm:$0xff] }
 0x584   : > { %v9673_v59 = vadd.f32 %v5027_v13, %v11995_v35  ;;  %v4579_v13 = vld [vmem:[#allocation10 + $0x2438] sm:$0xff] }
 0x585   : > { %4941 = vmatmul.mubr.f32.gmra.mrb[38].mxu1 %v11506_v39  ;;  %v5275_v41 = vadd.f32 %v9672_v5, %v11648_v40 }
 0x586   : > { %v5031_v0 = vpop.f32.mrb[40].mxu0  ;;  %4946 = vmatprep.mubr.f32.mxu1 %v11511_v18  ;;  %8829 = vmatpush1.bf16.msra.mxu1 %v8828_v27  ;;  %v5276_v1 = vadd.f32 %v9673_v59, %v11656_v60  ;;  %v4562_v27 = vld [vmem:[#allocation10 + $0x23b0] sm:$0xff] }
 0x587   : > { %v9674_v17 = vadd.f32 %v5031_v0, %v11996_v3  ;;  %v5033_v8 = vpop.f32.mrb[41].mxu0  ;;  %8831 = vmatprep.subr.bf16.mxu1 %v8830_v55  ;;  %v5331_v61 = vmax.f32 %v5275_v41, 0.0  ;;  %v4587_v55 = vld [vmem:[#allocation10 + $0x2478] sm:$0xff]  ;;  %v8840_v59 = vpack.c.bf16 %v4570_v26, %v4562_v27  ;;  %v4578_v41 = vld [vmem:[#allocation10 + $0x2430] sm:$0xff] }
 0x588   : > { %v9675_v49 = vadd.f32 %v5033_v8, %v11997_v30  ;;  %v5332_v6 = vmax.f32 %v5276_v1, 0.0  ;;  %v4586_v3 = vld [vmem:[#allocation10 + $0x2470] sm:$0xff]  ;;  %v12001_v8 = vld [vmem:[#allocation55_spill] sm:$0xff]  ;;  %v4611_v27 = vld [vmem:[#allocation10 + $0x2538] sm:$0xff] }
 0x589   : > { %v5283_v36 = vadd.f32 %v9674_v17, %v11648_v40  ;;  %4947 = vmatmul.mubr.f32.gmra.mrb[40].mxu1 %v11518_v51  ;;  %v8844_v53 = vpack.c.bf16 %v4586_v3, %v4578_v41  ;;  %v4619_v26 = vld [vmem:[#allocation10 + $0x2578] sm:$0xff] }
 0x58a   : > { %v5284_v33 = vadd.f32 %v9675_v49, %v11656_v60  ;;  %v5037_v22 = vpop.f32.mrb[42].mxu0  ;;  %4952 = vmatprep.mubr.f32.mxu1 %v11523_v10  ;;  %8833 = vmatpush1.bf16.msra.mxu1 %v8832_v46  ;;  %v8842_v46 = vpack.c.bf16 %v4587_v55, %v4579_v13  ;;  %v4635_v41 = vld [vmem:[#allocation10 + $0x25f8] sm:$0xff] }
 0x58b   : > { %v5339_v19 = vmax.f32 %v5283_v36, 0.0  ;;  %v9676_v62 = vadd.f32 %v5037_v22, %v11998_v25  ;;  %v5039_v7 = vpop.f32.mrb[43].mxu0  ;;  %8835 = vmatprep.subr.bf16.mxu1 %v8834_v2  ;;  %v4602_v25 = vld [vmem:[#allocation10 + $0x24f0] sm:$0xff] }
 0x58c   : > { %v5340_v47 = vmax.f32 %v5284_v33, 0.0  ;;  %v9677_v5 = vadd.f32 %v5039_v7, %v11999_v28  ;;  %v12002_v33 = vld [vmem:[#allocation56_spill] sm:$0xff]  ;;  %v12003_v7 = vld [vmem:[#allocation57_spill] sm:$0xff] }
 0x58d   : > { %v5431_v57 = vmax.f32 %v5331_v61, %v5339_v19  ;;  %v5291_v37 = vadd.f32 %v9676_v62, %v11648_v40  ;;  %4953 = vmatmul.mubr.f32.gmra.mrb[42].mxu1 %v11529_v14  ;;  %v8846_v61 = vpack.c.bf16 %v4603_v56, %v4595_v9  ;;  %v4594_v19 = vld [vmem:[#allocation10 + $0x24b0] sm:$0xff] }
 0x58e   : > { %v5443_v43 = vmax.f32 %v5332_v6, %v5340_v47  ;;  %v5292_v50 = vadd.f32 %v9677_v5, %v11656_v60  ;;  %v5043_v35 = vpop.f32.mrb[44].mxu0  ;;  %8837 = vmatpush1.bf16.msra.mxu1 %v8836_v31  ;;  %5130 = vmatprep.mubr.f32.mxu1 %v11419_v45  ;;  %v8848_v55 = vpack.c.bf16 %v4602_v25, %v4594_v19  ;;  %v4651_v19 = vld [vmem:[#allocation10 + $0x2678] sm:$0xff] }
 0x58f   : > { %v5347_v15 = vmax.f32 %v5291_v37, 0.0  ;;  %v9678_v24 = vadd.f32 %v5043_v35, %v12000_v20  ;;  %v5045_v0 = vpop.f32.mrb[45].mxu0  ;;  %8839 = vmatprep.subr.bf16.mxu1 %v8838_v4  ;;  %v12004_v37 = vld [vmem:[#allocation58_spill] sm:$0xff]  ;;  %v8850_v35 = vpack.c.bf16 %v4619_v26, %v4611_v27 }
 0x590   : > { %v5348_v17 = vmax.f32 %v5292_v50, 0.0  ;;  %v9679_v2 = vadd.f32 %v5045_v0, %v12001_v8 }
 0x591   : > { %v5432_v1 = vmax.f32 %v5431_v57, %v5347_v15  ;;  %v5299_v30 = vadd.f32 %v9678_v24, %v11648_v40  ;;  %v4618_v15 = vld [vmem:[#allocation10 + $0x2570] sm:$0xff]  ;;  %v12005_v24 = vld [vmem:[#allocation59_spill] sm:$0xff] }
 0x592   : > { %v5444_v49 = vmax.f32 %v5443_v43, %v5348_v17  ;;  %v5300_v45 = vadd.f32 %v9679_v2, %v11656_v60  ;;  %v5049_v48 = vpop.f32.mrb[46].mxu0  ;;  %8841 = vmatpush1.bf16.msra.mxu1 %v8840_v59  ;;  %v4610_v59 = vld [vmem:[#allocation10 + $0x2530] sm:$0xff] }
 0x593   : > { %v5355_v36 = vmax.f32 %v5299_v30, 0.0  ;;  %v9680_v22 = vadd.f32 %v5049_v48, %v12002_v33  ;;  %v5051_v31 = vpop.f32.mrb[47].mxu0  ;;  %8843 = vmatprep.subr.bf16.mxu1 %v8842_v46  ;;  %v4627_v46 = vld [vmem:[#allocation10 + $0x25b8] sm:$0xff]  ;;  %v8852_v56 = vpack.c.bf16 %v4618_v15, %v4610_v59  ;;  %v12006_v30 = vld [vmem:[#allocation60_spill] sm:$0xff] }
 0x594   : > { %v5356_v62 = vmax.f32 %v5300_v45, 0.0  ;;  %v9681_v4 = vadd.f32 %v5051_v31, %v12003_v7  ;;  %v8854_v48 = vpack.c.bf16 %v4635_v41, %v4627_v46  ;;  %v4683_v59 = vld [vmem:[#allocation10 + $0x2778] sm:$0xff] }
 0x595   : > { %v5433_v6 = vmax.f32 %v5432_v1, %v5355_v36  ;;  %v5307_v47 = vadd.f32 %v9680_v22, %v11648_v40  ;;  %v4634_v36 = vld [vmem:[#allocation10 + $0x25f0] sm:$0xff]  ;;  %v4691_v46 = vld [vmem:[#allocation10 + $0x27b8] sm:$0xff] }
 0x596   : > { %v5445_v28 = vmax.f32 %v5444_v49, %v5356_v62  ;;  %v5308_v5 = vadd.f32 %v9681_v4, %v11656_v60  ;;  %v5055_v13 = vpop.f32.mrb[48].mxu0  ;;  %8845 = vmatpush1.bf16.msra.mxu1 %v8844_v53  ;;  %v4626_v53 = vld [vmem:[#allocation10 + $0x25b0] sm:$0xff]  ;;  %v4699_v41 = vld [vmem:[#allocation10 + $0x27f8] sm:$0xff] }
 0x597   : > { %v5363_v57 = vmax.f32 %v5307_v47, 0.0  ;;  %v9682_v43 = vadd.f32 %v5055_v13, %v12004_v37  ;;  %v5057_v50 = vpop.f32.mrb[49].mxu0  ;;  %8847 = vmatprep.subr.bf16.mxu1 %v8846_v61  ;;  %v12007_v22 = vld [vmem:[#allocation61_spill] sm:$0xff]  ;;  %v8856_v27 = vpack.c.bf16 %v4634_v36, %v4626_v53 }
 0x598   : > { %v5364_v20 = vmax.f32 %v5308_v5, 0.0  ;;  %v9683_v0 = vadd.f32 %v5057_v50, %v12005_v24  ;;  %v4643_v61 = vld [vmem:[#allocation10 + $0x2638] sm:$0xff]  ;;  %v4642_v47 = vld [vmem:[#allocation10 + $0x2630] sm:$0xff] }
 0x599   : > { %v5434_v3 = vmax.f32 %v5433_v6, %v5363_v57  ;;  %v5315_v17 = vadd.f32 %v9682_v43, %v11648_v40  ;;  %v8858_v6 = vpack.c.bf16 %v4651_v19, %v4643_v61  ;;  %v4659_v13 = vld [vmem:[#allocation10 + $0x26b8] sm:$0xff]  ;;  %v4658_v50 = vld [vmem:[#allocation10 + $0x26b0] sm:$0xff]  ;;  %v5506_v61 = vld [vmem:[#allocation13 + $0xd8] sm:$0xff] }
 0x59a   : > { %v5446_v8 = vmax.f32 %v5445_v28, %v5364_v20  ;;  %v5316_v2 = vadd.f32 %v9683_v0, %v11656_v60  ;;  %v5061_v9 = vpop.f32.mrb[50].mxu0  ;;  %8849 = vmatpush1.bf16.msra.mxu1 %v8848_v55  ;;  %v4650_v28 = vld [vmem:[#allocation10 + $0x2670] sm:$0xff]  ;;  %v4667_v55 = vld [vmem:[#allocation10 + $0x26f8] sm:$0xff] }
 0x59b   : > { %v5371_v1 = vmax.f32 %v5315_v17, 0.0  ;;  %v9684_v49 = vadd.f32 %v5061_v9, %v12006_v30  ;;  %v5063_v45 = vpop.f32.mrb[51].mxu0  ;;  %8851 = vmatprep.subr.bf16.mxu1 %v8850_v35  ;;  %v8860_v43 = vpack.c.bf16 %v4650_v28, %v4642_v47  ;;  %v4675_v35 = vld [vmem:[#allocation10 + $0x2738] sm:$0xff]  ;;  %v4674_v24 = vld [vmem:[#allocation10 + $0x2730] sm:$0xff]  ;;  %v8870_v17 = vpack.c.bf16 %v4699_v41, %v4691_v46  ;;  %v5482_v9 = vld [vmem:[#allocation13 + $0x18] sm:$0xff] }
 0x59c   : > { %v5372_v33 = vmax.f32 %v5316_v2, 0.0  ;;  %v9685_v31 = vadd.f32 %v5063_v45, %v12007_v22  ;;  %v8866_v20 = vpack.c.bf16 %v4683_v59, %v4675_v35  ;;  %v4682_v0 = vld [vmem:[#allocation10 + $0x2770] sm:$0xff]  ;;  %v5487_v45 = vld [vmem:[#allocation13 + $0x40] sm:$0xff]  ;;  %v5493_v22 = vld [vmem:[#allocation13 + $0x70] sm:$0xff] }
 0x59d   : > { %v5435_v25 = vmax.f32 %v5434_v3, %v5371_v1  ;;  %v5323_v62 = vadd.f32 %v9684_v49, %v11648_v40  ;;  %v8862_v40 = vpack.c.bf16 %v4667_v55, %v4659_v13  ;;  %v8868_v3 = vpack.c.bf16 %v4682_v0, %v4674_v24  ;;  %v4698_v2 = vld [vmem:[#allocation10 + $0x27f0] sm:$0xff]  ;;  %v5481_v49 = vld [vmem:[#allocation13 + $0x10] sm:$0xff]  ;;  %v5554_v59 = vld [vmem:[#allocation13 + $0x258] sm:$0xff] }
 0x59e   : > { %v5447_v7 = vmax.f32 %v5446_v8, %v5372_v33  ;;  %v5324_v4 = vadd.f32 %v9685_v31, %v11656_v60  ;;  %8853 = vmatpush1.bf16.msra.mxu1 %v8852_v56  ;;  %v4666_v60 = vld [vmem:[#allocation10 + $0x26f0] sm:$0xff]  ;;  %v9132_v36 = vpack.c.bf16 %v5487_v45, %v5481_v49  ;;  %v5499_v31 = vld [vmem:[#allocation13 + $0xa0] sm:$0xff]  ;;  %v5517_v28 = vld [vmem:[#allocation13 + $0x130] sm:$0xff] }
 0x59f   : > { %v5379_v26 = vmax.f32 %v5323_v62, 0.0  ;;  %8855 = vmatprep.subr.bf16.mxu1 %v8854_v48  ;;  %v8864_v15 = vpack.c.bf16 %v4666_v60, %v4658_v50  ;;  %v4690_v8 = vld [vmem:[#allocation10 + $0x27b0] sm:$0xff]  ;;  %v5494_v48 = vld [vmem:[#allocation13 + $0x78] sm:$0xff]  ;;  %v5541_v35 = vld [vmem:[#allocation13 + $0x1f0] sm:$0xff] }
 0x5a0   : > { %v5380_v5 = vmax.f32 %v5324_v4, 0.0  ;;  %v5488_v56 = vld [vmem:[#allocation13 + $0x48] sm:$0xff]  ;;  %v8872_v1 = vpack.c.bf16 %v4698_v2, %v4690_v8  ;;  %v5511_v4 = vld [vmem:[#allocation13 + $0x100] sm:$0xff]  ;;  %v5553_v24 = vld [vmem:[#allocation13 + $0x250] sm:$0xff] }
 0x5a1   : > { %v11690_v57 = vmax.f32 %v5435_v25, %v5379_v26  ;;  %v9130_v30 = vpack.c.bf16 %v5488_v56, %v5482_v9  ;;  %v5500_v53 = vld [vmem:[#allocation13 + $0xa8] sm:$0xff]  ;;  %v9136_v25 = vpack.c.bf16 %v5499_v31, %v5493_v22  ;;  %v5566_v0 = vld [vmem:[#allocation13 + $0x2b8] sm:$0xff]  ;;  %v5565_v41 = vld [vmem:[#allocation13 + $0x2b0] sm:$0xff] }
 0x5a2   : > { %v11692_v37 = vmax.f32 %v5447_v7, %v5380_v5  ;;  %8857 = vmatpush1.bf16.msra.mxu1 %v8856_v27  ;;  %v9134_v33 = vpack.c.bf16 %v5500_v53, %v5494_v48  ;;  %v5512_v19 = vld [vmem:[#allocation13 + $0x108] sm:$0xff]  ;;  %v5505_v7 = vld [vmem:[#allocation13 + $0xd0] sm:$0xff]  ;;  %v5518_v27 = vld [vmem:[#allocation13 + $0x138] sm:$0xff] }
 0x5a3   : > { %8859 = vmatprep.subr.bf16.mxu1 %v8858_v6  ;;  %v9138_v62 = vpack.c.bf16 %v5512_v19, %v5506_v61  ;;  %v5524_v26 = vld [vmem:[#allocation13 + $0x168] sm:$0xff]  ;;  %v9140_v6 = vpack.c.bf16 %v5511_v4, %v5505_v7  ;;  %v5530_v5 = vld [vmem:[#allocation13 + $0x198] sm:$0xff]  ;;  %v5731_v56 = vld [vmem:[#allocation13 + $0x7e0] sm:$0xff] }
 0x5a4   : > { %v9142_v47 = vpack.c.bf16 %v5524_v26, %v5518_v27  ;;  %v5738_v8 = vld [vmem:[#allocation13 + $0x818] sm:$0xff]  ;;  %v5584_v2 = vld [vmem:[#allocation13 + $0x348] sm:$0xff]  ;;  %v5577_v49 = vld [vmem:[#allocation13 + $0x310] sm:$0xff] }
 0x5a5   : > { %v5583_v45 = vld [vmem:[#allocation13 + $0x340] sm:$0xff]  ;;  %v5590_v48 = vld [vmem:[#allocation13 + $0x378] sm:$0xff]  ;;  %v5596_v53 = vld [vmem:[#allocation13 + $0x3a8] sm:$0xff] }
 0x5a6   : > { %8861 = vmatpush1.bf16.msra.mxu1 %v8860_v43  ;;  %v5529_v43 = vld [vmem:[#allocation13 + $0x190] sm:$0xff]  ;;  %v9164_v22 = vpack.c.bf16 %v5583_v45, %v5577_v49  ;;  %v5743_v61 = vld [vmem:[#allocation13 + $0x840] sm:$0xff]  ;;  %v9166_v19 = vpack.c.bf16 %v5596_v53, %v5590_v48  ;;  %v5602_v4 = vld [vmem:[#allocation13 + $0x3d8] sm:$0xff] }
 0x5a7   : > { %8863 = vmatprep.subr.bf16.mxu1 %v8862_v40  ;;  %v5542_v40 = vld [vmem:[#allocation13 + $0x1f8] sm:$0xff]  ;;  %v5608_v27 = vld [vmem:[#allocation13 + $0x408] sm:$0xff]  ;;  %v5791_v45 = vld [vmem:[#allocation13 + $0x9c0] sm:$0xff] }
 0x5a8   : > { %v5756_v26 = vld [vmem:[#allocation13 + $0x8a8] sm:$0xff]  ;;  %v5797_v48 = vld [vmem:[#allocation13 + $0x9f0] sm:$0xff] }
 0x5aa   : > { %8865 = vmatpush1.bf16.msra.mxu1 %v8864_v15 }
 0x5ab   : > { %8867 = vmatprep.subr.bf16.mxu1 %v8866_v20 }
 0x5ae   : > { %8869 = vmatpush1.bf16.msra.mxu1 %v8868_v3  ;;  %v5571_v3 = vld [vmem:[#allocation13 + $0x2e0] sm:$0xff] }
 0x5af   : > { %8871 = vmatprep.subr.bf16.mxu1 %v8870_v17  ;;  %v5578_v17 = vld [vmem:[#allocation13 + $0x318] sm:$0xff] }
 0x5b2   : > { %8873 = vmatpush1.bf16.msra.mxu1 %v8872_v1  ;;  %v5737_v1 = vld [vmem:[#allocation13 + $0x810] sm:$0xff] }
 0x5b3   : > { %9131 = vmatprep.subr.bf16.mxu1 %v9130_v30  ;;  %v8960_v30 = vpack.c.bf16 %v5737_v1, %v5731_v56  ;;  %v5638_v56 = vld [vmem:[#allocation13 + $0x4f8] sm:$0xff]  ;;  %v5644_v1 = vld [vmem:[#allocation13 + $0x528] sm:$0xff] }
 0x5b4   : > { %v9182_v53 = vpack.c.bf16 %v5644_v1, %v5638_v56  ;;  %v5697_v56 = vld [vmem:[#allocation13 + $0x6d0] sm:$0xff]  ;;  %v5703_v1 = vld [vmem:[#allocation13 + $0x700] sm:$0xff] }
 0x5b5   : > { %5131 = vmatmul.mubr.f32.vlgmr.msra.gmra.mrb[58].mxu1 %v11458_v52  ;;  %v5523_v52 = vld [vmem:[#allocation13 + $0x160] sm:$0xff] }
 0x5b6   : > { %5136 = vmatprep.mubr.f32.mxu1 %v11465_v21  ;;  %9133 = vmatpush1.bf16.msra.mxu1 %v9132_v36  ;;  %v5536_v21 = vld [vmem:[#allocation13 + $0x1c8] sm:$0xff]  ;;  %v9144_v13 = vpack.c.bf16 %v5523_v52, %v5517_v28  ;;  %v5755_v52 = vld [vmem:[#allocation13 + $0x8a0] sm:$0xff] }
 0x5b7   : > { %9135 = vmatprep.subr.bf16.mxu1 %v9134_v33  ;;  %v9146_v55 = vpack.c.bf16 %v5536_v21, %v5530_v5  ;;  %v5744_v36 = vld [vmem:[#allocation13 + $0x848] sm:$0xff]  ;;  %v5750_v33 = vld [vmem:[#allocation13 + $0x878] sm:$0xff]  ;;  %v5761_v5 = vld [vmem:[#allocation13 + $0x8d0] sm:$0xff]  ;;  %v9170_v21 = vpack.c.bf16 %v5608_v27, %v5602_v4 }
 0x5b8   : > { %v8962_v31 = vpack.c.bf16 %v5750_v33, %v5744_v36  ;;  %v5637_v36 = vld [vmem:[#allocation13 + $0x4f0] sm:$0xff]  ;;  %v5643_v33 = vld [vmem:[#allocation13 + $0x520] sm:$0xff]  ;;  %v5668_v4 = vld [vmem:[#allocation13 + $0x5e8] sm:$0xff] }
 0x5b9   : > { %5137 = vmatmul.mubr.f32.gmra.mrb[60].mxu1 %v11470_v58  ;;  %v5535_v58 = vld [vmem:[#allocation13 + $0x1c0] sm:$0xff] }
 0x5ba   : > { %5142 = vmatprep.mubr.f32.mxu1 %v11475_v23  ;;  %9137 = vmatpush1.bf16.msra.mxu1 %v9136_v25  ;;  %v5548_v23 = vld [vmem:[#allocation13 + $0x228] sm:$0xff]  ;;  %v9148_v50 = vpack.c.bf16 %v5535_v58, %v5529_v43  ;;  %v5589_v25 = vld [vmem:[#allocation13 + $0x370] sm:$0xff]  ;;  %v8968_v43 = vpack.c.bf16 %v5761_v5, %v5755_v52  ;;  %v5614_v58 = vld [vmem:[#allocation13 + $0x438] sm:$0xff] }
 0x5bb   : > { %9139 = vmatprep.subr.bf16.mxu1 %v9138_v62  ;;  %v9150_v60 = vpack.c.bf16 %v5548_v23, %v5542_v40  ;;  %v5595_v62 = vld [vmem:[#allocation13 + $0x3a0] sm:$0xff]  ;;  %v5620_v40 = vld [vmem:[#allocation13 + $0x468] sm:$0xff] }
 0x5bc   : > { %v5768_v23 = vld [vmem:[#allocation13 + $0x908] sm:$0xff] }
 0x5bd   : > { %5143 = vmatmul.mubr.f32.gmra.mrb[62].mxu1 %v11482_v32  ;;  %v5547_v32 = vld [vmem:[#allocation13 + $0x220] sm:$0xff]  ;;  %v5680_v52 = vld [vmem:[#allocation13 + $0x648] sm:$0xff] }
 0x5be   : > { %5148 = vmatprep.mubr.f32.mxu1 %v11487_v16  ;;  %9141 = vmatpush1.bf16.msra.mxu1 %v9140_v6  ;;  %v5560_v16 = vld [vmem:[#allocation13 + $0x288] sm:$0xff]  ;;  %v9152_v15 = vpack.c.bf16 %v5547_v32, %v5541_v35  ;;  %v5762_v6 = vld [vmem:[#allocation13 + $0x8d8] sm:$0xff]  ;;  %v5767_v32 = vld [vmem:[#allocation13 + $0x900] sm:$0xff] }
 0x5bf   : > { %9143 = vmatprep.subr.bf16.mxu1 %v9142_v47  ;;  %v9154_v20 = vpack.c.bf16 %v5560_v16, %v5554_v59  ;;  %v9168_v47 = vpack.c.bf16 %v5595_v62, %v5589_v25  ;;  %v8966_v28 = vpack.c.bf16 %v5762_v6, %v5756_v26  ;;  %v5773_v59 = vld [vmem:[#allocation13 + $0x930] sm:$0xff]  ;;  %v9174_v16 = vpack.c.bf16 %v5620_v40, %v5614_v58  ;;  %v5655_v62 = vld [vmem:[#allocation13 + $0x580] sm:$0xff]  ;;  %v5804_v58 = vld [vmem:[#allocation13 + $0xa28] sm:$0xff] }
 0x5c0   : > { %v5649_v25 = vld [vmem:[#allocation13 + $0x550] sm:$0xff]  ;;  %v5810_v40 = vld [vmem:[#allocation13 + $0xa58] sm:$0xff] }
 0x5c1   : > { %5149 = vmatmul.mubr.f32.gmra.mrb[64].mxu1 %v11494_v63  ;;  %v5559_v63 = vld [vmem:[#allocation13 + $0x280] sm:$0xff]  ;;  %v9188_v27 = vpack.c.bf16 %v5655_v62, %v5649_v25  ;;  %v5661_v6 = vld [vmem:[#allocation13 + $0x5b0] sm:$0xff] }
 0x5c2   : > { %5154 = vmatprep.mubr.f32.mxu1 %v11499_v44  ;;  %9145 = vmatpush1.bf16.msra.mxu1 %v9144_v13  ;;  %v5572_v44 = vld [vmem:[#allocation13 + $0x2e8] sm:$0xff]  ;;  %v9156_v46 = vpack.c.bf16 %v5559_v63, %v5553_v24  ;;  %v5601_v13 = vld [vmem:[#allocation13 + $0x3d0] sm:$0xff]  ;;  %v8972_v24 = vpack.c.bf16 %v5773_v59, %v5767_v32  ;;  %v5626_v63 = vld [vmem:[#allocation13 + $0x498] sm:$0xff] }
 0x5c3   : > { %9147 = vmatprep.subr.bf16.mxu1 %v9146_v55  ;;  %v5607_v55 = vld [vmem:[#allocation13 + $0x400] sm:$0xff]  ;;  %v5816_v59 = vld [vmem:[#allocation13 + $0xa88] sm:$0xff]  ;;  %v5709_v25 = vld [vmem:[#allocation13 + $0x730] sm:$0xff] }
 0x5c4   : > { %v5715_v62 = vld [vmem:[#allocation13 + $0x760] sm:$0xff] }
 0x5c5   : > { %5155 = vmatmul.mubr.f32.gmra.mrb[66].mxu1 %v11506_v39  ;;  %v9158_v39 = vpack.c.bf16 %v5572_v44, %v5566_v0  ;;  %v5632_v0 = vld [vmem:[#allocation13 + $0x4c8] sm:$0xff] }
 0x5c6   : > { %5160 = vmatprep.mubr.f32.mxu1 %v11511_v18  ;;  %9149 = vmatpush1.bf16.msra.mxu1 %v9148_v50  ;;  %v5732_v18 = vld [vmem:[#allocation13 + $0x7e8] sm:$0xff]  ;;  %v5774_v50 = vld [vmem:[#allocation13 + $0x938] sm:$0xff] }
 0x5c7   : > { %9151 = vmatprep.subr.bf16.mxu1 %v9150_v60  ;;  %v8958_v9 = vpack.c.bf16 %v5738_v8, %v5732_v18  ;;  %v9172_v60 = vpack.c.bf16 %v5607_v55, %v5601_v13  ;;  %v8970_v35 = vpack.c.bf16 %v5774_v50, %v5768_v23  ;;  %v5780_v44 = vld [vmem:[#allocation13 + $0x968] sm:$0xff]  ;;  %v9178_v18 = vpack.c.bf16 %v5632_v0, %v5626_v63  ;;  %v5625_v8 = vld [vmem:[#allocation13 + $0x490] sm:$0xff]  ;;  %v5679_v13 = vld [vmem:[#allocation13 + $0x640] sm:$0xff] }
 0x5c8   : > { %v5692_v23 = vld [vmem:[#allocation13 + $0x6a8] sm:$0xff]  ;;  %v8982_v50 = vpack.c.bf16 %v5810_v40, %v5804_v58  ;;  %v5698_v0 = vld [vmem:[#allocation13 + $0x6d8] sm:$0xff] }
 0x5c9   : > { %5161 = vmatmul.mubr.f32.gmra.mrb[68].mxu1 %v11518_v51  ;;  %v9160_v51 = vpack.c.bf16 %v5571_v3, %v5565_v41  ;;  %8959 = vmatprep.subr.bf16.mxu0 %v8958_v9  ;;  %v5734_v58 = vld [vmem:[#allocation13 + $0x7f8] sm:$0xff]  ;;  %v5740_v40 = vld [vmem:[#allocation13 + $0x828] sm:$0xff] }
 0x5ca   : > { %5166 = vmatprep.mubr.f32.mxu1 %v11523_v10  ;;  %9153 = vmatpush1.bf16.msra.mxu1 %v9152_v15  ;;  %v9162_v10 = vpack.c.bf16 %v5584_v2, %v5578_v17  ;;  %v5613_v15 = vld [vmem:[#allocation13 + $0x430] sm:$0xff]  ;;  %v5631_v2 = vld [vmem:[#allocation13 + $0x4c0] sm:$0xff] }
 0x5cb   : > { %9155 = vmatprep.subr.bf16.mxu1 %v9154_v20  ;;  %8961 = vmatpush1.bf16.msra.mxu0 %v8960_v30  ;;  %v5619_v20 = vld [vmem:[#allocation13 + $0x460] sm:$0xff]  ;;  %v5785_v17 = vld [vmem:[#allocation13 + $0x990] sm:$0xff]  ;;  %v5792_v30 = vld [vmem:[#allocation13 + $0x9c8] sm:$0xff] }
 0x5cc   : > { %8963 = vmatprep.subr.bf16.mxu0 %v8962_v31  ;;  %v9176_v41 = vpack.c.bf16 %v5619_v20, %v5613_v15  ;;  %v5650_v31 = vld [vmem:[#allocation13 + $0x558] sm:$0xff]  ;;  %v5685_v15 = vld [vmem:[#allocation13 + $0x670] sm:$0xff]  ;;  %v5691_v20 = vld [vmem:[#allocation13 + $0x6a0] sm:$0xff] }
 0x5cd   : > { %5167 = vmatmul.mubr.f32.gmra.mrb[70].mxu1 %v11529_v14  ;;  %v5749_v14 = vld [vmem:[#allocation13 + $0x870] sm:$0xff] }
 0x5ce   : > { %9157 = vmatpush1.bf16.msra.mxu1 %v9156_v46  ;;  %6627 = vmatprep.mubr.f32.mxu1 %v11630_v42  ;;  %v8964_v7 = vpack.c.bf16 %v5749_v14, %v5743_v61  ;;  %v5786_v46 = vld [vmem:[#allocation13 + $0x998] sm:$0xff]  ;;  %v5656_v61 = vld [vmem:[#allocation13 + $0x588] sm:$0xff]  ;;  %v9184_v14 = vpack.c.bf16 %v5643_v33, %v5637_v36  ;;  %v5839_v33 = vld [vmem:[#allocation13 + $0xb40] sm:$0xff] }
 0x5cf   : > { %9159 = vmatprep.subr.bf16.mxu1 %v9158_v39  ;;  %v8974_v3 = vpack.c.bf16 %v5786_v46, %v5780_v44  ;;  %v5779_v39 = vld [vmem:[#allocation13 + $0x960] sm:$0xff] }
 0x5d0   : > { %8965 = vmatpush1.bf16.msra.mxu0 %v8964_v7  ;;  %v8976_v9 = vpack.c.bf16 %v5785_v17, %v5779_v39  ;;  %v5662_v7 = vld [vmem:[#allocation13 + $0x5b8] sm:$0xff]  ;;  %v5815_v46 = vld [vmem:[#allocation13 + $0xa80] sm:$0xff]  ;;  %v5828_v17 = vld [vmem:[#allocation13 + $0xae8] sm:$0xff] }
 0x5d1   : > { %8967 = vmatprep.subr.bf16.mxu0 %v8966_v28  ;;  %v9190_v26 = vpack.c.bf16 %v5668_v4, %v5662_v7  ;;  %v5674_v28 = vld [vmem:[#allocation13 + $0x618] sm:$0xff] }
 0x5d2   : > { %9161 = vmatpush1.bf16.msra.mxu1 %v9160_v51  ;;  %v5798_v51 = vld [vmem:[#allocation13 + $0x9f8] sm:$0xff]  ;;  %v9194_v55 = vpack.c.bf16 %v5680_v52, %v5674_v28  ;;  %v5864_v28 = vld [vmem:[#allocation13 + $0xc08] sm:$0xff] }
 0x5d3   : > { %9163 = vmatprep.subr.bf16.mxu1 %v9162_v10  ;;  %v9180_v10 = vpack.c.bf16 %v5631_v2, %v5625_v8  ;;  %v8978_v49 = vpack.c.bf16 %v5798_v51, %v5792_v30  ;;  %v5827_v2 = vld [vmem:[#allocation13 + $0xae0] sm:$0xff]  ;;  %v5833_v30 = vld [vmem:[#allocation13 + $0xb10] sm:$0xff]  ;;  %v5722_v7 = vld [vmem:[#allocation13 + $0x798] sm:$0xff] }
 0x5d4   : > { %8969 = vmatpush1.bf16.msra.mxu0 %v8968_v43  ;;  %v5686_v43 = vld [vmem:[#allocation13 + $0x678] sm:$0xff] }
 0x5d5   : > { %8971 = vmatprep.subr.bf16.mxu0 %v8970_v35  ;;  %v5809_v35 = vld [vmem:[#allocation13 + $0xa50] sm:$0xff]  ;;  %v9198_v63 = vpack.c.bf16 %v5692_v23, %v5686_v43  ;;  %v5870_v52 = vld [vmem:[#allocation13 + $0xc38] sm:$0xff] }
 0x5d6   : > { %9165 = vmatpush1.bf16.msra.mxu1 %v9164_v22  ;;  %v8980_v22 = vpack.c.bf16 %v5797_v48, %v5791_v45  ;;  %v5840_v45 = vld [vmem:[#allocation13 + $0xb48] sm:$0xff]  ;;  %v5846_v48 = vld [vmem:[#allocation13 + $0xb78] sm:$0xff]  ;;  %v9002_v23 = vpack.c.bf16 %v5870_v52, %v5864_v28  ;;  %v5823_v28 = vld [vmem:[#allocation13 + $0xac0] sm:$0xff] }
 0x5d7   : > { %9167 = vmatprep.subr.bf16.mxu1 %v9166_v19  ;;  %v9186_v19 = vpack.c.bf16 %v5656_v61, %v5650_v31  ;;  %v8994_v36 = vpack.c.bf16 %v5846_v48, %v5840_v45  ;;  %v5852_v31 = vld [vmem:[#allocation13 + $0xba8] sm:$0xff]  ;;  %v9204_v61 = vpack.c.bf16 %v5703_v1, %v5697_v56  ;;  %v5775_v56 = vld [vmem:[#allocation13 + $0x940] sm:$0xff]  ;;  %v5782_v1 = vld [vmem:[#allocation13 + $0x978] sm:$0xff] }
 0x5d8   : > { %8973 = vmatpush1.bf16.msra.mxu0 %v8972_v24  ;;  %v5822_v24 = vld [vmem:[#allocation13 + $0xab8] sm:$0xff]  ;;  %v5787_v45 = vld [vmem:[#allocation13 + $0x9a0] sm:$0xff] }
 0x5d9   : > { %8975 = vmatprep.subr.bf16.mxu0 %v8974_v3  ;;  %v8986_v44 = vpack.c.bf16 %v5822_v24, %v5816_v59  ;;  %v5704_v3 = vld [vmem:[#allocation13 + $0x708] sm:$0xff]  ;;  %v5746_v59 = vld [vmem:[#allocation13 + $0x858] sm:$0xff]  ;;  %v5745_v24 = vld [vmem:[#allocation13 + $0x850] sm:$0xff] }
 0x5da   : > { %9169 = vmatpush1.bf16.msra.mxu1 %v9168_v47  ;;  %v5667_v47 = vld [vmem:[#allocation13 + $0x5e0] sm:$0xff]  ;;  %v9202_v51 = vpack.c.bf16 %v5704_v3, %v5698_v0  ;;  %v5758_v0 = vld [vmem:[#allocation13 + $0x8b8] sm:$0xff]  ;;  %v5757_v3 = vld [vmem:[#allocation13 + $0x8b0] sm:$0xff] }
 0x5db   : > { %9171 = vmatprep.subr.bf16.mxu1 %v9170_v21  ;;  %v9192_v5 = vpack.c.bf16 %v5667_v47, %v5661_v6  ;;  %v5673_v21 = vld [vmem:[#allocation13 + $0x610] sm:$0xff]  ;;  %v5851_v6 = vld [vmem:[#allocation13 + $0xba0] sm:$0xff]  ;;  %v5794_v48 = vld [vmem:[#allocation13 + $0x9d8] sm:$0xff] }
 0x5dc   : > { %8977 = vmatpush1.bf16.msra.mxu0 %v8976_v9  ;;  %v9200_v9 = vpack.c.bf16 %v5691_v20, %v5685_v15  ;;  %v5857_v47 = vld [vmem:[#allocation13 + $0xbd0] sm:$0xff]  ;;  %v5830_v52 = vld [vmem:[#allocation13 + $0xaf8] sm:$0xff] }
 0x5dd   : > { %8979 = vmatprep.subr.bf16.mxu0 %v8978_v49  ;;  %v8992_v49 = vpack.c.bf16 %v5833_v30, %v5827_v2  ;;  %v9000_v43 = vpack.c.bf16 %v5857_v47, %v5851_v6  ;;  %v5788_v30 = vld [vmem:[#allocation13 + $0x9a8] sm:$0xff]  ;;  %v5817_v47 = vld [vmem:[#allocation13 + $0xa90] sm:$0xff] }
 0x5de   : > { %9173 = vmatpush1.bf16.msra.mxu1 %v9172_v60  ;;  %v5803_v60 = vld [vmem:[#allocation13 + $0xa20] sm:$0xff] }
 0x5df   : > { %9175 = vmatprep.subr.bf16.mxu1 %v9174_v16  ;;  %v8984_v32 = vpack.c.bf16 %v5809_v35, %v5803_v60  ;;  %v9196_v16 = vpack.c.bf16 %v5679_v13, %v5673_v21  ;;  %v5721_v13 = vld [vmem:[#allocation13 + $0x790] sm:$0xff]  ;;  %v9214_v60 = vpack.c.bf16 %v5740_v40, %v5734_v58  ;;  %v5842_v58 = vld [vmem:[#allocation13 + $0xb58] sm:$0xff]  ;;  %v5848_v40 = vld [vmem:[#allocation13 + $0xb88] sm:$0xff] }
 0x5e0   : > { %8981 = vmatpush1.bf16.msra.mxu0 %v8980_v22  ;;  %v5845_v22 = vld [vmem:[#allocation13 + $0xb70] sm:$0xff] }
 0x5e1   : > { %8983 = vmatprep.subr.bf16.mxu0 %v8982_v50  ;;  %v8996_v4 = vpack.c.bf16 %v5845_v22, %v5839_v33  ;;  %v5733_v35 = vld [vmem:[#allocation13 + $0x7f0] sm:$0xff] }
 0x5e2   : > { %9177 = vmatpush1.bf16.msra.mxu1 %v9176_v41  ;;  %v5821_v41 = vld [vmem:[#allocation13 + $0xab0] sm:$0xff] }
 0x5e3   : > { %9179 = vmatprep.subr.bf16.mxu1 %v9178_v18  ;;  %v8988_v39 = vpack.c.bf16 %v5821_v41, %v5815_v46  ;;  %v5834_v18 = vld [vmem:[#allocation13 + $0xb18] sm:$0xff]  ;;  %v5793_v22 = vld [vmem:[#allocation13 + $0x9d0] sm:$0xff] }
 0x5e4   : > { %8985 = vmatpush1.bf16.msra.mxu0 %v8984_v32  ;;  %v8990_v8 = vpack.c.bf16 %v5834_v18, %v5828_v17  ;;  %v5739_v32 = vld [vmem:[#allocation13 + $0x820] sm:$0xff]  ;;  %v5770_v17 = vld [vmem:[#allocation13 + $0x918] sm:$0xff]  ;;  %v5776_v18 = vld [vmem:[#allocation13 + $0x948] sm:$0xff] }
 0x5e5   : > { %8987 = vmatprep.subr.bf16.mxu0 %v8986_v44  ;;  %v9216_v15 = vpack.c.bf16 %v5739_v32, %v5733_v35  ;;  %v5764_v44 = vld [vmem:[#allocation13 + $0x8e8] sm:$0xff]  ;;  %v9226_v2 = vpack.c.bf16 %v5776_v18, %v5770_v17  ;;  %v5847_v35 = vld [vmem:[#allocation13 + $0xb80] sm:$0xff]  ;;  %v5854_v32 = vld [vmem:[#allocation13 + $0xbb8] sm:$0xff] }
 0x5e6   : > { %9181 = vmatpush1.bf16.msra.mxu1 %v9180_v10  ;;  %v5710_v10 = vld [vmem:[#allocation13 + $0x738] sm:$0xff]  ;;  %v9222_v41 = vpack.c.bf16 %v5764_v44, %v5758_v0  ;;  %v5872_v0 = vld [vmem:[#allocation13 + $0xc48] sm:$0xff] }
 0x5e7   : > { %9183 = vmatprep.subr.bf16.mxu1 %v9182_v53  ;;  %v5716_v53 = vld [vmem:[#allocation13 + $0x768] sm:$0xff] }
 0x5e8   : > { %8989 = vmatpush1.bf16.msra.mxu0 %v8988_v39  ;;  %v5763_v39 = vld [vmem:[#allocation13 + $0x8e0] sm:$0xff] }
 0x5e9   : > { %8991 = vmatprep.subr.bf16.mxu0 %v8990_v8  ;;  %v9224_v8 = vpack.c.bf16 %v5763_v39, %v5757_v3  ;;  %v5245_v3 = vsub.s32 3, %v11993_v54  ;;  %v11711_v39 = vld [vmem:[#allocation11] sm:$0xff] }
 0x5ea   : > { %9185 = vmatpush1.bf16.msra.mxu1 %v9184_v14  ;;  %v5858_v14 = vld [vmem:[#allocation13 + $0xbd8] sm:$0xff] }
 0x5eb   : > { %9187 = vmatprep.subr.bf16.mxu1 %v9186_v19  ;;  %v9206_v19 = vpack.c.bf16 %v5716_v53, %v5710_v10  ;;  %v9230_v10 = vpack.c.bf16 %v5788_v30, %v5782_v1  ;;  %v5800_v53 = vld [vmem:[#allocation13 + $0xa08] sm:$0xff] }
 0x5ec   : > { %8993 = vmatpush1.bf16.msra.mxu0 %v8992_v49  ;;  %v5781_v49 = vld [vmem:[#allocation13 + $0x970] sm:$0xff]  ;;  %v9234_v33 = vpack.c.bf16 %v5800_v53, %v5794_v48 }
 0x5ed   : > { %8995 = vmatprep.subr.bf16.mxu0 %v8994_v36  ;;  %v9232_v36 = vpack.c.bf16 %v5787_v45, %v5781_v49 }
 0x5ee   : > { %9189 = vmatpush1.bf16.msra.mxu1 %v9188_v27  ;;  %v5728_v27 = vld [vmem:[#allocation13 + $0x7c8] sm:$0xff] }
 0x5ef   : > { %9191 = vmatprep.subr.bf16.mxu1 %v9190_v26  ;;  %v8998_v26 = vpack.c.bf16 %v5858_v14, %v5852_v31  ;;  %v9210_v21 = vpack.c.bf16 %v5728_v27, %v5722_v7  ;;  %v5799_v31 = vld [vmem:[#allocation13 + $0xa00] sm:$0xff]  ;;  %v5812_v14 = vld [vmem:[#allocation13 + $0xa68] sm:$0xff] }
 0x5f0   : > { %8997 = vmatpush1.bf16.msra.mxu0 %v8996_v4  ;;  %v5811_v7 = vld [vmem:[#allocation13 + $0xa60] sm:$0xff]  ;;  %v5818_v4 = vld [vmem:[#allocation13 + $0xa98] sm:$0xff]  ;;  %v5824_v27 = vld [vmem:[#allocation13 + $0xac8] sm:$0xff] }
 0x5f1   : > { %8999 = vmatprep.subr.bf16.mxu0 %v8998_v26  ;;  %v9242_v6 = vpack.c.bf16 %v5824_v27, %v5818_v4 }
 0x5f2   : > { %9193 = vmatpush1.bf16.msra.mxu1 %v9192_v5  ;;  %v9208_v5 = vpack.c.bf16 %v5715_v62, %v5709_v25  ;;  %v5805_v62 = vld [vmem:[#allocation13 + $0xa30] sm:$0xff] }
 0x5f3   : > { %9195 = vmatprep.subr.bf16.mxu1 %v9194_v55  ;;  %v5727_v55 = vld [vmem:[#allocation13 + $0x7c0] sm:$0xff]  ;;  %v9240_v26 = vpack.c.bf16 %v5811_v7, %v5805_v62 }
 0x5f4   : > { %v9212_v50 = vpack.c.bf16 %v5727_v55, %v5721_v13  ;;  %9001 = vmatpush1.bf16.msra.mxu0 %v9000_v43  ;;  %v5829_v55 = vld [vmem:[#allocation13 + $0xaf0] sm:$0xff]  ;;  %v5835_v43 = vld [vmem:[#allocation13 + $0xb20] sm:$0xff] }
 0x5f5   : > { %6628 = vmatmul.mubr.f32.vlgmr.msra.gmra.mrb[72].mxu1 %v11632_v29  ;;  %9003 = vmatprep.subr.bf16.mxu0 %v9002_v23  ;;  %v9248_v23 = vpack.c.bf16 %v5835_v43, %v5829_v55 }
 0x5f6   : > { %9197 = vmatpush1.bf16.msra.mxu1 %v9196_v16  ;;  %v5752_v16 = vld [vmem:[#allocation13 + $0x888] sm:$0xff] }
 0x5f7   : > { %9199 = vmatprep.subr.bf16.mxu1 %v9198_v63  ;;  %v9218_v20 = vpack.c.bf16 %v5752_v16, %v5746_v59  ;;  %v5751_v63 = vld [vmem:[#allocation13 + $0x880] sm:$0xff]  ;;  %v5860_v59 = vld [vmem:[#allocation13 + $0xbe8] sm:$0xff] }
 0x5f8   : > { %v9220_v46 = vpack.c.bf16 %v5751_v63, %v5745_v24  ;;  %v5859_v24 = vld [vmem:[#allocation13 + $0xbe0] sm:$0xff]  ;;  %v5866_v63 = vld [vmem:[#allocation13 + $0xc18] sm:$0xff] }
 0x5fa   : > { %9201 = vmatpush1.bf16.msra.mxu1 %v9200_v9  ;;  %v5769_v9 = vld [vmem:[#allocation13 + $0x910] sm:$0xff] }
 0x5fb   : > { %9203 = vmatprep.subr.bf16.mxu1 %v9202_v51  ;;  %v9228_v51 = vpack.c.bf16 %v5775_v56, %v5769_v9 }
 0x5fe   : > { %9205 = vmatpush1.bf16.msra.mxu1 %v9204_v61  ;;  %v5806_v61 = vld [vmem:[#allocation13 + $0xa38] sm:$0xff] }
 0x5ff   : > { %9207 = vmatprep.subr.bf16.mxu1 %v9206_v19  ;;  %v9236_v19 = vpack.c.bf16 %v5799_v31, %v5793_v22  ;;  %v9238_v25 = vpack.c.bf16 %v5812_v14, %v5806_v61 }
 0x602   : > { %9209 = vmatpush1.bf16.msra.mxu1 %v9208_v5  ;;  %v5836_v5 = vld [vmem:[#allocation13 + $0xb28] sm:$0xff] }
 0x603   : > { %9211 = vmatprep.subr.bf16.mxu1 %v9210_v21  ;;  %v9244_v21 = vpack.c.bf16 %v5823_v28, %v5817_v47  ;;  %v9246_v13 = vpack.c.bf16 %v5836_v5, %v5830_v52 }
 0x606   : > { %9213 = vmatpush1.bf16.msra.mxu1 %v9212_v50  ;;  %v9250_v50 = vpack.c.bf16 %v5848_v40, %v5842_v58 }
 0x607   : > { %9215 = vmatprep.subr.bf16.mxu1 %v9214_v60  ;;  %v5841_v60 = vld [vmem:[#allocation13 + $0xb50] sm:$0xff] }
 0x608   : > { %v9252_v16 = vpack.c.bf16 %v5847_v35, %v5841_v60 }
 0x60a   : > { %9217 = vmatpush1.bf16.msra.mxu1 %v9216_v15  ;;  %v9254_v15 = vpack.c.bf16 %v5860_v59, %v5854_v32 }
 0x60b   : > { %9219 = vmatprep.subr.bf16.mxu1 %v9218_v20  ;;  %v5853_v20 = vld [vmem:[#allocation13 + $0xbb0] sm:$0xff] }
 0x60c   : > { %v9256_v44 = vpack.c.bf16 %v5859_v24, %v5853_v20  ;;  %v5449_v24 = vrot.slane %v11692_v37, 4 }
 0x60e   : > { %9221 = vmatpush1.bf16.msra.mxu1 %v9220_v46  ;;  %v9258_v46 = vpack.c.bf16 %v5872_v0, %v5866_v63 }
 0x60f   : > { %9223 = vmatprep.subr.bf16.mxu1 %v9222_v41  ;;  %v5241_v41 = vsub.s32 2, %v11993_v54 }
 0x611   : > { %v5242_v17 = vrot.slane %v11711_v39, %v5241_v41 }
 0x612   : > { %9225 = vmatpush1.bf16.msra.mxu1 %v9224_v8  ;;  %v5246_v8 = vrot.slane %v11711_v39, %v5245_v3 }
 0x613   : > { %9227 = vmatprep.subr.bf16.mxu1 %v9226_v2 }
 0x616   : > { %9229 = vmatpush1.bf16.msra.mxu1 %v9228_v51 }
 0x617   : > { %9231 = vmatprep.subr.bf16.mxu1 %v9230_v10 }
 0x61a   : > { %9233 = vmatpush1.bf16.msra.mxu1 %v9232_v36 }
 0x61b   : > { %9235 = vmatprep.subr.bf16.mxu1 %v9234_v33 }
 0x61e   : > { %9237 = vmatpush1.bf16.msra.mxu1 %v9236_v19 }
 0x61f   : > { %9239 = vmatprep.subr.bf16.mxu1 %v9238_v25 }
 0x622   : > { %9241 = vmatpush1.bf16.msra.mxu1 %v9240_v26 }
 0x623   : > { %9243 = vmatprep.subr.bf16.mxu1 %v9242_v6 }
 0x626   : > { %9245 = vmatpush1.bf16.msra.mxu1 %v9244_v21 }
 0x627   : > { %9247 = vmatprep.subr.bf16.mxu1 %v9246_v13 }
 0x62a   : > { %9249 = vmatpush1.bf16.msra.mxu1 %v9248_v23 }
 0x62b   : > { %9251 = vmatprep.subr.bf16.mxu1 %v9250_v50 }
 0x62e   : > { %9253 = vmatpush1.bf16.msra.mxu1 %v9252_v16 }
 0x62f   : > { %9255 = vmatprep.subr.bf16.mxu1 %v9254_v15 }
 0x632   : > { %9257 = vmatpush1.bf16.msra.mxu1 %v9256_v44 }
 0x633   : > { %9259 = vmatprep.subr.bf16.mxu1 %v9258_v46 }
 0x648   : > { %v4918_v18 = vpop.f32.mrb[30].mxu1 }
 0x649   : > { %v4920_v2 = vpop.f32.mrb[31].mxu1  ;;  %v5273_v9 = vadd.f32 %v5242_v17, %v4918_v18 }
 0x64a   : > { %v5274_v56 = vadd.f32 %v5246_v8, %v4920_v2 }
 0x64b   : > { %v5329_v49 = vmax.f32 %v5273_v9, 0.0 }
 0x64c   : > { %v4924_v1 = vpop.f32.mrb[32].mxu1  ;;  %v5330_v48 = vmax.f32 %v5274_v56, 0.0  ;;  %v5450_v56 = vmax.f32 %v11692_v37, %v5449_v24  ;;  %v5889_v24 = vld [vmem:[#allocation13 + $0xcd0] sm:$0xff] }
 0x64d   : > { %v5281_v30 = vadd.f32 %v5242_v17, %v4924_v1  ;;  %v4926_v51 = vpop.f32.mrb[33].mxu1 }
 0x64e   : > { %v5282_v10 = vadd.f32 %v5246_v8, %v4926_v51 }
 0x64f   : > { %v5337_v45 = vmax.f32 %v5281_v30, 0.0 }
 0x650   : > { %v5338_v53 = vmax.f32 %v5282_v10, 0.0  ;;  %v4930_v36 = vpop.f32.mrb[34].mxu1 }
 0x651   : > { %v5407_v33 = vmax.f32 %v5329_v49, %v5337_v45  ;;  %v5289_v22 = vadd.f32 %v5242_v17, %v4930_v36  ;;  %v4932_v31 = vpop.f32.mrb[35].mxu1  ;;  %v5451_v45 = vrot.slane %v5450_v56, 2 }
 0x652   : > { %v5419_v61 = vmax.f32 %v5330_v48, %v5338_v53  ;;  %v5290_v14 = vadd.f32 %v5246_v8, %v4932_v31 }
 0x653   : > { %v5345_v19 = vmax.f32 %v5289_v22, 0.0  ;;  %v5452_v22 = vmax.f32 %v5450_v56, %v5451_v45  ;;  %v5899_v56 = vld [vmem:[#allocation13 + $0xd20] sm:$0xff]  ;;  %v5912_v45 = vld [vmem:[#allocation13 + $0xd88] sm:$0xff] }
 0x654   : > { %v5346_v25 = vmax.f32 %v5290_v14, 0.0  ;;  %v4936_v62 = vpop.f32.mrb[36].mxu1  ;;  %v5869_v14 = vld [vmem:[#allocation13 + $0xc30] sm:$0xff] }
 0x655   : > { %v5408_v7 = vmax.f32 %v5407_v33, %v5345_v19  ;;  %v5297_v4 = vadd.f32 %v5242_v17, %v4936_v62  ;;  %v4938_v27 = vpop.f32.mrb[37].mxu1  ;;  %v5871_v19 = vld [vmem:[#allocation13 + $0xc40] sm:$0xff]  ;;  %v5876_v62 = vld [vmem:[#allocation13 + $0xc68] sm:$0xff]  ;;  %v5453_v37 = vrot.slane %v5452_v22, 1 }
 0x656   : > { %v5420_v26 = vmax.f32 %v5419_v61, %v5346_v25  ;;  %v5298_v6 = vadd.f32 %v5246_v8, %v4938_v27  ;;  %v5884_v27 = vld [vmem:[#allocation13 + $0xca8] sm:$0xff] }
 0x657   : > { %v5353_v47 = vmax.f32 %v5297_v4, 0.0  ;;  %v5878_v4 = vld [vmem:[#allocation13 + $0xc78] sm:$0xff] }
 0x658   : > { %v5354_v28 = vmax.f32 %v5298_v6, 0.0  ;;  %v4942_v52 = vpop.f32.mrb[38].mxu1 }
 0x659   : > { %v5409_v5 = vmax.f32 %v5408_v7, %v5353_v47  ;;  %v5305_v21 = vadd.f32 %v5242_v17, %v4942_v52  ;;  %v4944_v13 = vpop.f32.mrb[39].mxu1  ;;  %v5882_v7 = vld [vmem:[#allocation13 + $0xc98] sm:$0xff]  ;;  %v5881_v52 = vld [vmem:[#allocation13 + $0xc90] sm:$0xff] }
 0x65a   : > { %v5421_v55 = vmax.f32 %v5420_v26, %v5354_v28  ;;  %v5306_v43 = vadd.f32 %v5246_v8, %v4944_v13  ;;  %v5875_v28 = vld [vmem:[#allocation13 + $0xc60] sm:$0xff] }
 0x65b   : > { %v5361_v58 = vmax.f32 %v5305_v21, 0.0  ;;  %v5877_v21 = vld [vmem:[#allocation13 + $0xc70] sm:$0xff]  ;;  %v5883_v13 = vld [vmem:[#allocation13 + $0xca0] sm:$0xff] }
 0x65c   : > { %v5362_v40 = vmax.f32 %v5306_v43, 0.0  ;;  %v4948_v23 = vpop.f32.mrb[40].mxu1  ;;  %v9006_v43 = vpack.c.bf16 %v5882_v7, %v5876_v62  ;;  %v5930_v62 = vld [vmem:[#allocation13 + $0xe18] sm:$0xff]  ;;  %v5932_v7 = vld [vmem:[#allocation13 + $0xe28] sm:$0xff] }
 0x65d   : > { %v5410_v50 = vmax.f32 %v5409_v5, %v5361_v58  ;;  %v5313_v60 = vadd.f32 %v5242_v17, %v4948_v23  ;;  %v4950_v35 = vpop.f32.mrb[41].mxu1  ;;  %v9262_v58 = vpack.c.bf16 %v5884_v27, %v5878_v4  ;;  %v5890_v23 = vld [vmem:[#allocation13 + $0xcd8] sm:$0xff] }
 0x65e   : > { %v5422_v32 = vmax.f32 %v5421_v55, %v5362_v40  ;;  %v5314_v59 = vadd.f32 %v5246_v8, %v4950_v35  ;;  %v5888_v55 = vld [vmem:[#allocation13 + $0xcc8] sm:$0xff]  ;;  %v5894_v40 = vld [vmem:[#allocation13 + $0xcf8] sm:$0xff]  ;;  %v9008_v35 = vpack.c.bf16 %v5881_v52, %v5875_v28  ;;  %v5257_v28 = vsub.s32 6, %v11993_v54 }
 0x65f   : > { %v5369_v16 = vmax.f32 %v5313_v60, 0.0  ;;  %v11729_v60 = vmax.f32 %v5452_v22, %v5453_v37  ;;  %v5926_v37 = vld [vmem:[#allocation13 + $0xdf8] sm:$0xff] }
 0x660   : > { %v5370_v15 = vmax.f32 %v5314_v59, 0.0  ;;  %v4954_v20 = vpop.f32.mrb[42].mxu1  ;;  %v5887_v59 = vld [vmem:[#allocation13 + $0xcc0] sm:$0xff] }
 0x661   : > { %v5411_v63 = vmax.f32 %v5410_v50, %v5369_v16  ;;  %v5321_v0 = vadd.f32 %v5242_v17, %v4954_v20  ;;  %v4956_v44 = vpop.f32.mrb[43].mxu1  ;;  %v5863_v17 = vld [vmem:[#allocation13 + $0xc00] sm:$0xff]  ;;  %v5896_v50 = vld [vmem:[#allocation13 + $0xd08] sm:$0xff]  ;;  %v5893_v16 = vld [vmem:[#allocation13 + $0xcf0] sm:$0xff] }
 0x662   : > { %v5423_v46 = vmax.f32 %v5422_v32, %v5370_v15  ;;  %v5322_v18 = vadd.f32 %v5246_v8, %v4956_v44  ;;  %v5865_v8 = vld [vmem:[#allocation13 + $0xc10] sm:$0xff]  ;;  %v9004_v6 = vpack.c.bf16 %v5869_v14, %v5863_v17  ;;  %v9264_v32 = vpack.c.bf16 %v5883_v13, %v5877_v21  ;;  %v5906_v44 = vld [vmem:[#allocation13 + $0xd58] sm:$0xff] }
 0x663   : > { %v5377_v2 = vmax.f32 %v5321_v0, 0.0  ;;  %v9260_v47 = vpack.c.bf16 %v5871_v19, %v5865_v8  ;;  %v9010_v15 = vpack.c.bf16 %v5894_v40, %v5888_v55  ;;  %v9266_v20 = vpack.c.bf16 %v5896_v50, %v5890_v23  ;;  %v5900_v0 = vld [vmem:[#allocation13 + $0xd28] sm:$0xff]  ;;  %v5917_v17 = vld [vmem:[#allocation13 + $0xdb0] sm:$0xff]  ;;  %v5919_v19 = vld [vmem:[#allocation13 + $0xdc0] sm:$0xff] }
 0x664   : > { %v5378_v9 = vmax.f32 %v5322_v18, 0.0  ;;  %v5908_v18 = vld [vmem:[#allocation13 + $0xd68] sm:$0xff]  ;;  %v5913_v8 = vld [vmem:[#allocation13 + $0xd90] sm:$0xff]  ;;  %v9278_v21 = vpack.c.bf16 %v5932_v7, %v5926_v37  ;;  %v5931_v55 = vld [vmem:[#allocation13 + $0xe20] sm:$0xff] }
 0x665   : > { %v5412_v1 = vmax.f32 %v5411_v63, %v5377_v2  ;;  %v5895_v63 = vld [vmem:[#allocation13 + $0xd00] sm:$0xff]  ;;  %v9012_v2 = vpack.c.bf16 %v5893_v16, %v5887_v59  ;;  %v9276_v27 = vpack.c.bf16 %v5919_v19, %v5913_v8  ;;  %v5925_v13 = vld [vmem:[#allocation13 + $0xdf0] sm:$0xff]  ;;  %v5942_v40 = vld [vmem:[#allocation13 + $0xe78] sm:$0xff] }
 0x666   : > { %v5424_v30 = vmax.f32 %v5423_v46, %v5378_v9  ;;  %v5902_v46 = vld [vmem:[#allocation13 + $0xd38] sm:$0xff]  ;;  %v9268_v9 = vpack.c.bf16 %v5895_v63, %v5889_v24  ;;  %v5944_v50 = vld [vmem:[#allocation13 + $0xe88] sm:$0xff]  ;;  %v5935_v59 = vld [vmem:[#allocation13 + $0xe40] sm:$0xff] }
 0x667   : > { %v5413_v51 = vrot.slane %v5412_v1, 4  ;;  %v5938_v23 = vld [vmem:[#allocation13 + $0xe58] sm:$0xff]  ;;  %v5941_v16 = vld [vmem:[#allocation13 + $0xe70] sm:$0xff]  ;;  %v5959_v7 = vld [vmem:[#allocation13 + $0xf00] sm:$0xff] }
 0x668   : > { %v5425_v10 = vrot.slane %v5424_v30, 4  ;;  %v9282_v24 = vpack.c.bf16 %v5944_v50, %v5938_v23  ;;  %v5937_v63 = vld [vmem:[#allocation13 + $0xe50] sm:$0xff]  ;;  %v5974_v23 = vld [vmem:[#allocation13 + $0xf78] sm:$0xff]  ;;  %v5980_v50 = vld [vmem:[#allocation13 + $0xfa8] sm:$0xff] }
 0x669   : > { %v5414_v49 = vmax.f32 %v5412_v1, %v5413_v51  ;;  %v5905_v1 = vld [vmem:[#allocation13 + $0xd50] sm:$0xff]  ;;  %v9270_v51 = vpack.c.bf16 %v5908_v18, %v5902_v46 }
 0x66a   : > { %v5426_v48 = vmax.f32 %v5424_v30, %v5425_v10  ;;  %v9014_v30 = vpack.c.bf16 %v5906_v44, %v5900_v0  ;;  %v5901_v10 = vld [vmem:[#allocation13 + $0xd30] sm:$0xff]  ;;  %v5943_v0 = vld [vmem:[#allocation13 + $0xe80] sm:$0xff]  ;;  %v5948_v44 = vld [vmem:[#allocation13 + $0xea8] sm:$0xff] }
 0x66b   : > { %v5415_v53 = vrot.slane %v5414_v49, 2 }
 0x66c   : > { %v5427_v36 = vrot.slane %v5426_v48, 2 }
 0x66d   : > { %v5416_v33 = vmax.f32 %v5414_v49, %v5415_v53  ;;  %v5907_v49 = vld [vmem:[#allocation13 + $0xd60] sm:$0xff]  ;;  %v5914_v53 = vld [vmem:[#allocation13 + $0xd98] sm:$0xff] }
 0x66e   : > { %v5428_v31 = vmax.f32 %v5426_v48, %v5427_v36  ;;  %v5918_v48 = vld [vmem:[#allocation13 + $0xdb8] sm:$0xff]  ;;  %v5920_v36 = vld [vmem:[#allocation13 + $0xdc8] sm:$0xff]  ;;  %v9272_v22 = vpack.c.bf16 %v5907_v49, %v5901_v10  ;;  %v5947_v10 = vld [vmem:[#allocation13 + $0xea0] sm:$0xff] }
 0x66f   : > { %v5417_v61 = vrot.slane %v5416_v33, 1  ;;  %v9274_v14 = vpack.c.bf16 %v5920_v36, %v5914_v53  ;;  %v5953_v49 = vld [vmem:[#allocation13 + $0xed0] sm:$0xff] }
 0x670   : > { %v5429_v25 = vrot.slane %v5428_v31, 1  ;;  %v5949_v36 = vld [vmem:[#allocation13 + $0xeb0] sm:$0xff] }
 0x671   : > { %v11723_v5 = vmax.f32 %v5416_v33, %v5417_v61  ;;  %v9016_v33 = vpack.c.bf16 %v5905_v1, %v5899_v56  ;;  %v9018_v61 = vpack.c.bf16 %v5918_v48, %v5912_v45  ;;  %v5956_v56 = vld [vmem:[#allocation13 + $0xee8] sm:$0xff] }
 0x672   : > { %v11721_v26 = vmax.f32 %v5428_v31, %v5429_v25  ;;  %v5911_v31 = vld [vmem:[#allocation13 + $0xd80] sm:$0xff]  ;;  %v5924_v25 = vld [vmem:[#allocation13 + $0xde8] sm:$0xff] }
 0x673   : > { %v9020_v4 = vpack.c.bf16 %v5917_v17, %v5911_v31  ;;  %v9022_v52 = vpack.c.bf16 %v5930_v62, %v5924_v25  ;;  %v5966_v17 = vld [vmem:[#allocation13 + $0xf38] sm:$0xff]  ;;  %v9032_v62 = vpack.c.bf16 %v5953_v49, %v5947_v10 }
 0x674   : > { %6414 = vmatprep.mubr.f32.mxu0 %v11721_v26  ;;  %6698 = vmatprep.mubr.f32.mxu1 %v11721_v26  ;;  %v5990_v49 = vld [vmem:[#allocation13 + $0xff8] sm:$0xff] }
 0x675   : > { %6415 = vmatmul.mubr.f32.vlgmr.msra.gmra.mrb[52].mxu0 %v11723_v5  ;;  %6699 = vmatmul.mubr.f32.vlgmr.msra.gmra.mrb[72].mxu1 %v11723_v5 }
 0x676   : > { %9005 = vmatpush1.bf16.msra.mxu0 %v9004_v6  ;;  %9261 = vmatpush1.bf16.msra.mxu1 %v9260_v47  ;;  %v5923_v6 = vld [vmem:[#allocation13 + $0xde0] sm:$0xff]  ;;  %v5929_v47 = vld [vmem:[#allocation13 + $0xe10] sm:$0xff] }
 0x677   : > { %6485 = vmatprep.mubr.f32.mxu0 %v11729_v60  ;;  %6769 = vmatprep.mubr.f32.mxu1 %v11729_v60 }
 0x678   : > { %9007 = vmatprep.subr.bf16.mxu0 %v9006_v43  ;;  %9263 = vmatprep.subr.bf16.mxu1 %v9262_v58  ;;  %v5936_v43 = vld [vmem:[#allocation13 + $0xe48] sm:$0xff]  ;;  %v5261_v58 = vsub.s32 7, %v11993_v54 }
 0x67a   : > { %9009 = vmatpush1.bf16.msra.mxu0 %v9008_v35  ;;  %9265 = vmatpush1.bf16.msra.mxu1 %v9264_v32  ;;  %v9024_v35 = vpack.c.bf16 %v5929_v47, %v5923_v6  ;;  %v9280_v32 = vpack.c.bf16 %v5931_v55, %v5925_v13  ;;  %v11739_v18 = vrot.slane %v11711_v39, %v5261_v58  ;;  %v5972_v13 = vld [vmem:[#allocation13 + $0xf68] sm:$0xff] }
 0x67b   : > { %9011 = vmatprep.subr.bf16.mxu0 %v9010_v15  ;;  %9267 = vmatprep.subr.bf16.mxu1 %v9266_v20  ;;  %v11736_v15 = vrot.slane %v11711_v39, %v5257_v28  ;;  %v9026_v20 = vpack.c.bf16 %v5942_v40, %v5936_v43  ;;  %v5960_v39 = vld [vmem:[#allocation13 + $0xf08] sm:$0xff]  ;;  %v5978_v40 = vld [vmem:[#allocation13 + $0xf98] sm:$0xff] }
 0x67c   : > { %v9034_v47 = vpack.c.bf16 %v5966_v17, %v5960_v39 }
 0x67e   : > { %9013 = vmatpush1.bf16.msra.mxu0 %v9012_v2  ;;  %9269 = vmatpush1.bf16.msra.mxu1 %v9268_v9  ;;  %v5954_v2 = vld [vmem:[#allocation13 + $0xed8] sm:$0xff] }
 0x67f   : > { %9015 = vmatprep.subr.bf16.mxu0 %v9014_v30  ;;  %9271 = vmatprep.subr.bf16.mxu1 %v9270_v51  ;;  %v5950_v9 = vld [vmem:[#allocation13 + $0xeb8] sm:$0xff]  ;;  %v9028_v30 = vpack.c.bf16 %v5941_v16, %v5935_v59  ;;  %v9284_v51 = vpack.c.bf16 %v5943_v0, %v5937_v63  ;;  %v9030_v48 = vpack.c.bf16 %v5954_v2, %v5948_v44  ;;  %v5971_v0 = vld [vmem:[#allocation13 + $0xf60] sm:$0xff]  ;;  %v5977_v44 = vld [vmem:[#allocation13 + $0xf90] sm:$0xff] }
 0x680   : > { %v9286_v53 = vpack.c.bf16 %v5956_v56, %v5950_v9  ;;  %v9038_v2 = vpack.c.bf16 %v5978_v40, %v5972_v13  ;;  %v9294_v9 = vpack.c.bf16 %v5980_v50, %v5974_v23  ;;  %v5973_v56 = vld [vmem:[#allocation13 + $0xf70] sm:$0xff]  ;;  %v9040_v39 = vpack.c.bf16 %v5977_v44, %v5971_v0  ;;  %v5995_v23 = vld [vmem:[#allocation13 + $0x1020] sm:$0xff]  ;;  %v6014_v44 = vld [vmem:[#allocation13 + $0x10b8] sm:$0xff] }
 0x681   : > { %v6001_v50 = vld [vmem:[#allocation13 + $0x1050] sm:$0xff] }
 0x682   : > { %9017 = vmatpush1.bf16.msra.mxu0 %v9016_v33  ;;  %9273 = vmatpush1.bf16.msra.mxu1 %v9272_v22  ;;  %v5955_v33 = vld [vmem:[#allocation13 + $0xee0] sm:$0xff] }
 0x683   : > { %9019 = vmatprep.subr.bf16.mxu0 %v9018_v61  ;;  %9275 = vmatprep.subr.bf16.mxu1 %v9274_v14  ;;  %v5962_v61 = vld [vmem:[#allocation13 + $0xf18] sm:$0xff]  ;;  %v5968_v14 = vld [vmem:[#allocation13 + $0xf48] sm:$0xff]  ;;  %v9288_v37 = vpack.c.bf16 %v5955_v33, %v5949_v36 }
 0x684   : > { %v9290_v28 = vpack.c.bf16 %v5968_v14, %v5962_v61  ;;  %v5983_v61 = vld [vmem:[#allocation13 + $0xfc0] sm:$0xff]  ;;  %v5989_v14 = vld [vmem:[#allocation13 + $0xff0] sm:$0xff] }
 0x686   : > { %9021 = vmatpush1.bf16.msra.mxu0 %v9020_v4  ;;  %9277 = vmatpush1.bf16.msra.mxu1 %v9276_v27  ;;  %v5965_v4 = vld [vmem:[#allocation13 + $0xf30] sm:$0xff] }
 0x687   : > { %9023 = vmatprep.subr.bf16.mxu0 %v9022_v52  ;;  %9279 = vmatprep.subr.bf16.mxu1 %v9278_v21  ;;  %v5961_v52 = vld [vmem:[#allocation13 + $0xf10] sm:$0xff]  ;;  %v5967_v21 = vld [vmem:[#allocation13 + $0xf40] sm:$0xff]  ;;  %v9036_v16 = vpack.c.bf16 %v5965_v4, %v5959_v7  ;;  %v5996_v7 = vld [vmem:[#allocation13 + $0x1028] sm:$0xff] }
 0x688   : > { %v5132_v46 = vpop.f32.mrb[58].mxu1  ;;  %v9292_v63 = vpack.c.bf16 %v5967_v21, %v5961_v52 }
 0x689   : > { %v5134_v1 = vpop.f32.mrb[59].mxu1  ;;  %v5277_v45 = vadd.f32 %v11736_v15, %v5132_v46 }
 0x68a   : > { %9025 = vmatpush1.bf16.msra.mxu0 %v9024_v35  ;;  %9281 = vmatpush1.bf16.msra.mxu1 %v9280_v32  ;;  %v5278_v22 = vadd.f32 %v11739_v18, %v5134_v1  ;;  %v5979_v1 = vld [vmem:[#allocation13 + $0xfa0] sm:$0xff] }
 0x68b   : > { %9027 = vmatprep.subr.bf16.mxu0 %v9026_v20  ;;  %9283 = vmatprep.subr.bf16.mxu1 %v9282_v24  ;;  %v5333_v27 = vmax.f32 %v5277_v45, 0.0  ;;  %v5986_v45 = vld [vmem:[#allocation13 + $0xfd8] sm:$0xff]  ;;  %v9296_v17 = vpack.c.bf16 %v5979_v1, %v5973_v56 }
 0x68c   : > { %v5138_v31 = vpop.f32.mrb[60].mxu1  ;;  %v5334_v55 = vmax.f32 %v5278_v22, 0.0 }
 0x68d   : > { %v5285_v8 = vadd.f32 %v11736_v15, %v5138_v31  ;;  %v5140_v19 = vpop.f32.mrb[61].mxu1 }
 0x68e   : > { %v5286_v25 = vadd.f32 %v11739_v18, %v5140_v19  ;;  %9029 = vmatpush1.bf16.msra.mxu0 %v9028_v30  ;;  %9285 = vmatpush1.bf16.msra.mxu1 %v9284_v51  ;;  %v5984_v30 = vld [vmem:[#allocation13 + $0xfc8] sm:$0xff] }
 0x68f   : > { %v5341_v6 = vmax.f32 %v5285_v8, 0.0  ;;  %9031 = vmatprep.subr.bf16.mxu0 %v9030_v48  ;;  %9287 = vmatprep.subr.bf16.mxu1 %v9286_v53  ;;  %v5992_v48 = vld [vmem:[#allocation13 + $0x1008] sm:$0xff]  ;;  %v9042_v19 = vpack.c.bf16 %v5990_v49, %v5984_v30  ;;  %v9048_v30 = vpack.c.bf16 %v6001_v50, %v5995_v23  ;;  %v6038_v50 = vld [vmem:[#allocation13 + $0x1178] sm:$0xff] }
 0x690   : > { %v5342_v43 = vmax.f32 %v5286_v25, 0.0  ;;  %v5144_v58 = vpop.f32.mrb[62].mxu1  ;;  %v9298_v25 = vpack.c.bf16 %v5992_v48, %v5986_v45  ;;  %v6007_v45 = vld [vmem:[#allocation13 + $0x1080] sm:$0xff]  ;;  %v6013_v48 = vld [vmem:[#allocation13 + $0x10b0] sm:$0xff] }
 0x691   : > { %v5455_v35 = vmax.f32 %v5333_v27, %v5341_v6  ;;  %v5293_v32 = vadd.f32 %v11736_v15, %v5144_v58  ;;  %v5146_v59 = vpop.f32.mrb[63].mxu1  ;;  %v6002_v6 = vld [vmem:[#allocation13 + $0x1058] sm:$0xff] }
 0x692   : > { %v5467_v20 = vmax.f32 %v5334_v55, %v5342_v43  ;;  %v5294_v24 = vadd.f32 %v11739_v18, %v5146_v59  ;;  %9033 = vmatpush1.bf16.msra.mxu0 %v9032_v62  ;;  %9289 = vmatpush1.bf16.msra.mxu1 %v9288_v37  ;;  %v5985_v62 = vld [vmem:[#allocation13 + $0xfd0] sm:$0xff]  ;;  %v5991_v37 = vld [vmem:[#allocation13 + $0x1000] sm:$0xff]  ;;  %v9044_v55 = vpack.c.bf16 %v5989_v14, %v5983_v61 }
 0x693   : > { %v5349_v46 = vmax.f32 %v5293_v32, 0.0  ;;  %9035 = vmatprep.subr.bf16.mxu0 %v9034_v47  ;;  %9291 = vmatprep.subr.bf16.mxu1 %v9290_v28  ;;  %v5998_v47 = vld [vmem:[#allocation13 + $0x1038] sm:$0xff]  ;;  %v6004_v28 = vld [vmem:[#allocation13 + $0x1068] sm:$0xff]  ;;  %v9300_v40 = vpack.c.bf16 %v5991_v37, %v5985_v62  ;;  %v9046_v32 = vpack.c.bf16 %v6002_v6, %v5996_v7 }
 0x694   : > { %v5350_v51 = vmax.f32 %v5294_v24, 0.0  ;;  %v5150_v10 = vpop.f32.mrb[64].mxu1  ;;  %v9302_v59 = vpack.c.bf16 %v6004_v28, %v5998_v47  ;;  %v6008_v24 = vld [vmem:[#allocation13 + $0x1088] sm:$0xff]  ;;  %v6019_v28 = vld [vmem:[#allocation13 + $0x10e0] sm:$0xff] }
 0x695   : > { %v5456_v53 = vmax.f32 %v5455_v35, %v5349_v46  ;;  %v5301_v36 = vadd.f32 %v11736_v15, %v5150_v10  ;;  %v5152_v33 = vpop.f32.mrb[65].mxu1  ;;  %v6010_v46 = vld [vmem:[#allocation13 + $0x1098] sm:$0xff] }
 0x696   : > { %v5468_v22 = vmax.f32 %v5467_v20, %v5350_v51  ;;  %v5302_v31 = vadd.f32 %v11739_v18, %v5152_v33  ;;  %9037 = vmatpush1.bf16.msra.mxu0 %v9036_v16  ;;  %9293 = vmatpush1.bf16.msra.mxu1 %v9292_v63  ;;  %v5997_v16 = vld [vmem:[#allocation13 + $0x1030] sm:$0xff]  ;;  %v6003_v20 = vld [vmem:[#allocation13 + $0x1060] sm:$0xff]  ;;  %v9050_v33 = vpack.c.bf16 %v6014_v44, %v6008_v24 }
 0x697   : > { %v5357_v8 = vmax.f32 %v5301_v36, 0.0  ;;  %9039 = vmatprep.subr.bf16.mxu0 %v9038_v2  ;;  %9295 = vmatprep.subr.bf16.mxu1 %v9294_v9  ;;  %v6016_v2 = vld [vmem:[#allocation13 + $0x10c8] sm:$0xff]  ;;  %v9304_v49 = vpack.c.bf16 %v6003_v20, %v5997_v16  ;;  %v6037_v24 = vld [vmem:[#allocation13 + $0x1170] sm:$0xff] }
 0x698   : > { %v5358_v4 = vmax.f32 %v5302_v31, 0.0  ;;  %v5156_v27 = vpop.f32.mrb[66].mxu1  ;;  %v6015_v31 = vld [vmem:[#allocation13 + $0x10c0] sm:$0xff] }
 0x699   : > { %v5457_v52 = vmax.f32 %v5456_v53, %v5357_v8  ;;  %v5309_v21 = vadd.f32 %v11736_v15, %v5156_v27  ;;  %v5158_v13 = vpop.f32.mrb[67].mxu1  ;;  %v5437_v53 = vrot.slane %v11690_v57, 4  ;;  %v6026_v8 = vld [vmem:[#allocation13 + $0x1118] sm:$0xff] }
 0x69a   : > { %v5469_v43 = vmax.f32 %v5468_v22, %v5358_v4  ;;  %v5310_v58 = vadd.f32 %v11739_v18, %v5158_v13  ;;  %9041 = vmatpush1.bf16.msra.mxu0 %v9040_v39  ;;  %9297 = vmatpush1.bf16.msra.mxu1 %v9296_v17  ;;  %v9306_v39 = vpack.c.bf16 %v6016_v2, %v6010_v46  ;;  %v6009_v22 = vld [vmem:[#allocation13 + $0x1090] sm:$0xff]  ;;  %v6020_v17 = vld [vmem:[#allocation13 + $0x10e8] sm:$0xff]  ;;  %v6039_v2 = vld [vmem:[#allocation13 + $0x1180] sm:$0xff] }
 0x69b   : > { %v5365_v35 = vmax.f32 %v5309_v21, 0.0  ;;  %9043 = vmatprep.subr.bf16.mxu0 %v9042_v19  ;;  %9299 = vmatprep.subr.bf16.mxu1 %v9298_v25  ;;  %v6022_v19 = vld [vmem:[#allocation13 + $0x10f8] sm:$0xff]  ;;  %v6028_v25 = vld [vmem:[#allocation13 + $0x1128] sm:$0xff]  ;;  %v9052_v4 = vpack.c.bf16 %v6013_v48, %v6007_v45  ;;  %v9308_v47 = vpack.c.bf16 %v6015_v31, %v6009_v22  ;;  %v5438_v21 = vmax.f32 %v11690_v57, %v5437_v53  ;;  %v6031_v57 = vld [vmem:[#allocation13 + $0x1140] sm:$0xff] }
 0x69c   : > { %v5366_v63 = vmax.f32 %v5310_v58, 0.0  ;;  %v5162_v0 = vpop.f32.mrb[68].mxu1  ;;  %v6021_v58 = vld [vmem:[#allocation13 + $0x10f0] sm:$0xff]  ;;  %v6043_v48 = vld [vmem:[#allocation13 + $0x11a0] sm:$0xff] }
 0x69d   : > { %v5458_v9 = vmax.f32 %v5457_v52, %v5365_v35  ;;  %v5317_v56 = vadd.f32 %v11736_v15, %v5162_v0  ;;  %v5164_v1 = vpop.f32.mrb[69].mxu1  ;;  %v6025_v52 = vld [vmem:[#allocation13 + $0x1110] sm:$0xff]  ;;  %v6034_v35 = vld [vmem:[#allocation13 + $0x1158] sm:$0xff]  ;;  %v6051_v31 = vld [vmem:[#allocation13 + $0x11e0] sm:$0xff] }
 0x69e   : > { %v5470_v51 = vmax.f32 %v5469_v43, %v5366_v63  ;;  %v5318_v10 = vadd.f32 %v11739_v18, %v5164_v1  ;;  %9045 = vmatpush1.bf16.msra.mxu0 %v9044_v55  ;;  %9301 = vmatpush1.bf16.msra.mxu1 %v9300_v40  ;;  %v9054_v55 = vpack.c.bf16 %v6026_v8, %v6020_v17  ;;  %v6027_v40 = vld [vmem:[#allocation13 + $0x1120] sm:$0xff]  ;;  %v5439_v63 = vrot.slane %v5438_v21, 2  ;;  %v6033_v46 = vld [vmem:[#allocation13 + $0x1150] sm:$0xff]  ;;  %v6050_v1 = vld [vmem:[#allocation13 + $0x11d8] sm:$0xff] }
 0x69f   : > { %v5373_v36 = vmax.f32 %v5317_v56, 0.0  ;;  %9047 = vmatprep.subr.bf16.mxu0 %v9046_v32  ;;  %9303 = vmatprep.subr.bf16.mxu1 %v9302_v59  ;;  %v9310_v43 = vpack.c.bf16 %v6028_v25, %v6022_v19  ;;  %v6040_v32 = vld [vmem:[#allocation13 + $0x1188] sm:$0xff]  ;;  %v9056_v16 = vpack.c.bf16 %v6025_v52, %v6019_v28  ;;  %v9312_v20 = vpack.c.bf16 %v6027_v40, %v6021_v58  ;;  %v6049_v53 = vld [vmem:[#allocation13 + $0x11d0] sm:$0xff]  ;;  %v6058_v8 = vld [vmem:[#allocation13 + $0x1218] sm:$0xff] }
 0x6a0   : > { %v5374_v61 = vmax.f32 %v5318_v10, 0.0  ;;  %v5168_v14 = vpop.f32.mrb[70].mxu1  ;;  %v9314_v44 = vpack.c.bf16 %v6040_v32, %v6034_v35  ;;  %v9316_v45 = vpack.c.bf16 %v6039_v2, %v6033_v46  ;;  %v6045_v22 = vld [vmem:[#allocation13 + $0x11b0] sm:$0xff]  ;;  %v6056_v17 = vld [vmem:[#allocation13 + $0x1208] sm:$0xff]  ;;  %v9064_v25 = vpack.c.bf16 %v6049_v53, %v6043_v48  ;;  %v6067_v35 = vld [vmem:[#allocation13 + $0x1260] sm:$0xff] }
 0x6a1   : > { %v5459_v62 = vmax.f32 %v5458_v9, %v5373_v36  ;;  %v5325_v37 = vadd.f32 %v11736_v15, %v5168_v14  ;;  %v5170_v7 = vpop.f32.mrb[71].mxu1  ;;  %v6032_v15 = vld [vmem:[#allocation13 + $0x1148] sm:$0xff]  ;;  %v5440_v36 = vmax.f32 %v5438_v21, %v5439_v63  ;;  %v6062_v14 = vld [vmem:[#allocation13 + $0x1238] sm:$0xff]  ;;  %v6057_v52 = vld [vmem:[#allocation13 + $0x1210] sm:$0xff] }
 0x6a2   : > { %v5471_v27 = vmax.f32 %v5470_v51, %v5374_v61  ;;  %v5326_v6 = vadd.f32 %v11739_v18, %v5170_v7  ;;  %9049 = vmatpush1.bf16.msra.mxu0 %v9048_v30  ;;  %9305 = vmatpush1.bf16.msra.mxu1 %v9304_v49  ;;  %v9058_v0 = vpack.c.bf16 %v6038_v50, %v6032_v15  ;;  %v6044_v9 = vld [vmem:[#allocation13 + $0x11a8] sm:$0xff]  ;;  %v6046_v30 = vld [vmem:[#allocation13 + $0x11b8] sm:$0xff]  ;;  %v6063_v21 = vld [vmem:[#allocation13 + $0x1240] sm:$0xff] }
 0x6a3   : > { %v5381_v13 = vmax.f32 %v5325_v37, 0.0  ;;  %9051 = vmatprep.subr.bf16.mxu0 %v9050_v33  ;;  %9307 = vmatprep.subr.bf16.mxu1 %v9306_v39  ;;  %v6052_v51 = vld [vmem:[#allocation13 + $0x11e8] sm:$0xff]  ;;  %v9060_v49 = vpack.c.bf16 %v6037_v24, %v6031_v57  ;;  %v9062_v33 = vpack.c.bf16 %v6050_v1, %v6044_v9  ;;  %v5441_v7 = vrot.slane %v5440_v36, 1  ;;  %v6073_v32 = vld [vmem:[#allocation13 + $0x1290] sm:$0xff]  ;;  %v6075_v57 = vld [vmem:[#allocation13 + $0x12a0] sm:$0xff] }
 0x6a4   : > { %v5382_v23 = vmax.f32 %v5326_v6, 0.0  ;;  %v9318_v39 = vpack.c.bf16 %v6052_v51, %v6046_v30  ;;  %v6064_v19 = vld [vmem:[#allocation13 + $0x1248] sm:$0xff]  ;;  %v6055_v6 = vld [vmem:[#allocation13 + $0x1200] sm:$0xff]  ;;  %v9324_v50 = vpack.c.bf16 %v6063_v21, %v6057_v52  ;;  %v6086_v63 = vld [vmem:[#allocation13 + $0x12f8] sm:$0xff]  ;;  %v9072_v46 = vpack.c.bf16 %v6073_v32, %v6067_v35 }
 0x6a5   : > { %v11757_v18 = vmax.f32 %v5459_v62, %v5381_v13  ;;  %v9320_v62 = vpack.c.bf16 %v6051_v31, %v6045_v22  ;;  %v6068_v13 = vld [vmem:[#allocation13 + $0x1268] sm:$0xff]  ;;  %v6085_v1 = vld [vmem:[#allocation13 + $0x12f0] sm:$0xff]  ;;  %v6094_v48 = vld [vmem:[#allocation13 + $0x1338] sm:$0xff] }
 0x6a6   : > { %v5472_v59 = vmax.f32 %v5471_v27, %v5382_v23  ;;  %9053 = vmatpush1.bf16.msra.mxu0 %v9052_v4  ;;  %9309 = vmatpush1.bf16.msra.mxu1 %v9308_v47  ;;  %v9066_v4 = vpack.c.bf16 %v6062_v14, %v6056_v17  ;;  %v9322_v27 = vpack.c.bf16 %v6064_v19, %v6058_v8  ;;  %v6061_v47 = vld [vmem:[#allocation13 + $0x1230] sm:$0xff]  ;;  %v6076_v58 = vld [vmem:[#allocation13 + $0x12a8] sm:$0xff]  ;;  %v6091_v22 = vld [vmem:[#allocation13 + $0x1320] sm:$0xff] }
 0x6a7   : > { %9055 = vmatprep.subr.bf16.mxu0 %v9054_v55  ;;  %9311 = vmatprep.subr.bf16.mxu1 %v9310_v43  ;;  %v6074_v55 = vld [vmem:[#allocation13 + $0x1298] sm:$0xff]  ;;  %v9068_v40 = vpack.c.bf16 %v6061_v47, %v6055_v6  ;;  %v11761_v23 = vmax.f32 %v5440_v36, %v5441_v7  ;;  %v6080_v24 = vld [vmem:[#allocation13 + $0x12c8] sm:$0xff]  ;;  %v6081_v30 = vld [vmem:[#allocation13 + $0x12d0] sm:$0xff] }
 0x6a8   : > { %v5473_v56 = vrot.slane %v5472_v59, 4  ;;  %v6070_v43 = vld [vmem:[#allocation13 + $0x1278] sm:$0xff]  ;;  %v9074_v9 = vpack.c.bf16 %v6086_v63, %v6080_v24  ;;  %v6100_v53 = vld [vmem:[#allocation13 + $0x1368] sm:$0xff]  ;;  %v6097_v31 = vld [vmem:[#allocation13 + $0x1350] sm:$0xff] }
 0x6a9   : > { %v6093_v17 = vld [vmem:[#allocation13 + $0x1330] sm:$0xff]  ;;  %v6099_v14 = vld [vmem:[#allocation13 + $0x1360] sm:$0xff]  ;;  %v6104_v8 = vld [vmem:[#allocation13 + $0x1388] sm:$0xff] }
 0x6aa   : > { %v5474_v10 = vmax.f32 %v5472_v59, %v5473_v56  ;;  %9057 = vmatpush1.bf16.msra.mxu0 %v9056_v16  ;;  %9313 = vmatpush1.bf16.msra.mxu1 %v9312_v20  ;;  %v6069_v59 = vld [vmem:[#allocation13 + $0x1270] sm:$0xff]  ;;  %v9070_v16 = vpack.c.bf16 %v6074_v55, %v6068_v13  ;;  %v9326_v20 = vpack.c.bf16 %v6076_v58, %v6070_v43  ;;  %v6079_v56 = vld [vmem:[#allocation13 + $0x12c0] sm:$0xff]  ;;  %v6110_v19 = vld [vmem:[#allocation13 + $0x13b8] sm:$0xff] }
 0x6ab   : > { %9059 = vmatprep.subr.bf16.mxu0 %v9058_v0  ;;  %9315 = vmatprep.subr.bf16.mxu1 %v9314_v44  ;;  %v6082_v0 = vld [vmem:[#allocation13 + $0x12d8] sm:$0xff]  ;;  %v6088_v44 = vld [vmem:[#allocation13 + $0x1308] sm:$0xff]  ;;  %v9328_v2 = vpack.c.bf16 %v6075_v57, %v6069_v59  ;;  %v9076_v36 = vpack.c.bf16 %v6085_v1, %v6079_v56  ;;  %v9336_v7 = vpack.c.bf16 %v6099_v14, %v6093_v17  ;;  %v6109_v6 = vld [vmem:[#allocation13 + $0x13b0] sm:$0xff] }
 0x6ac   : > { %v5475_v61 = vrot.slane %v5474_v10, 2  ;;  %v9330_v51 = vpack.c.bf16 %v6088_v44, %v6082_v0  ;;  %v6105_v47 = vld [vmem:[#allocation13 + $0x1390] sm:$0xff]  ;;  %v6111_v52 = vld [vmem:[#allocation13 + $0x13c0] sm:$0xff]  ;;  %v6116_v21 = vld [vmem:[#allocation13 + $0x13e8] sm:$0xff] }
 0x6ad   : > { %v6122_v13 = vld [vmem:[#allocation13 + $0x1418] sm:$0xff]  ;;  %v6124_v43 = vld [vmem:[#allocation13 + $0x1428] sm:$0xff]  ;;  %v6115_v35 = vld [vmem:[#allocation13 + $0x13e0] sm:$0xff] }
 0x6ae   : > { %9061 = vmatpush1.bf16.msra.mxu0 %v9060_v49  ;;  %9317 = vmatpush1.bf16.msra.mxu1 %v9316_v45  ;;  %v5476_v37 = vmax.f32 %v5474_v10, %v5475_v61  ;;  %v6087_v10 = vld [vmem:[#allocation13 + $0x1300] sm:$0xff]  ;;  %v6092_v49 = vld [vmem:[#allocation13 + $0x1328] sm:$0xff]  ;;  %v6098_v45 = vld [vmem:[#allocation13 + $0x1358] sm:$0xff]  ;;  %v9334_v61 = vpack.c.bf16 %v6100_v53, %v6094_v48 }
 0x6af   : > { %9063 = vmatprep.subr.bf16.mxu0 %v9062_v33  ;;  %9319 = vmatprep.subr.bf16.mxu1 %v9318_v39  ;;  %v9332_v33 = vpack.c.bf16 %v6087_v10, %v6081_v30  ;;  %v9078_v39 = vpack.c.bf16 %v6098_v45, %v6092_v49  ;;  %v6118_v55 = vld [vmem:[#allocation13 + $0x13f8] sm:$0xff]  ;;  %v6121_v32 = vld [vmem:[#allocation13 + $0x1410] sm:$0xff]  ;;  %v6128_v57 = vld [vmem:[#allocation13 + $0x1448] sm:$0xff] }
 0x6b0   : > { %v5477_v28 = vrot.slane %v5476_v37, 1  ;;  %v6117_v59 = vld [vmem:[#allocation13 + $0x13f0] sm:$0xff]  ;;  %v6134_v24 = vld [vmem:[#allocation13 + $0x1478] sm:$0xff]  ;;  %v6136_v0 = vld [vmem:[#allocation13 + $0x1488] sm:$0xff]  ;;  %v9088_v44 = vpack.c.bf16 %v6121_v32, %v6115_v35 }
 0x6b1   : > { %v6130_v63 = vld [vmem:[#allocation13 + $0x1458] sm:$0xff]  ;;  %v6133_v56 = vld [vmem:[#allocation13 + $0x1470] sm:$0xff]  ;;  %v6140_v10 = vld [vmem:[#allocation13 + $0x14a8] sm:$0xff] }
 0x6b2   : > { %9065 = vmatpush1.bf16.msra.mxu0 %v9064_v25  ;;  %9321 = vmatpush1.bf16.msra.mxu1 %v9320_v62  ;;  %v11759_v15 = vmax.f32 %v5476_v37, %v5477_v28  ;;  %v6106_v25 = vld [vmem:[#allocation13 + $0x1398] sm:$0xff]  ;;  %v6112_v62 = vld [vmem:[#allocation13 + $0x13c8] sm:$0xff]  ;;  %v9080_v37 = vpack.c.bf16 %v6097_v31, %v6091_v22  ;;  %v6129_v1 = vld [vmem:[#allocation13 + $0x1450] sm:$0xff]  ;;  %v9346_v30 = vpack.c.bf16 %v6136_v0, %v6130_v63 }
 0x6b3   : > { %9067 = vmatprep.subr.bf16.mxu0 %v9066_v4  ;;  %9323 = vmatprep.subr.bf16.mxu1 %v9322_v27  ;;  %v9082_v4 = vpack.c.bf16 %v6110_v19, %v6104_v8  ;;  %v6103_v27 = vld [vmem:[#allocation13 + $0x1380] sm:$0xff]  ;;  %v9338_v28 = vpack.c.bf16 %v6112_v62, %v6106_v25  ;;  %v6146_v49 = vld [vmem:[#allocation13 + $0x14d8] sm:$0xff]  ;;  %v6148_v48 = vld [vmem:[#allocation13 + $0x14e8] sm:$0xff] }
 0x6b4   : > { %v9084_v58 = vpack.c.bf16 %v6109_v6, %v6103_v27  ;;  %v6142_v45 = vld [vmem:[#allocation13 + $0x14b8] sm:$0xff]  ;;  %v6145_v22 = vld [vmem:[#allocation13 + $0x14d0] sm:$0xff]  ;;  %v6152_v14 = vld [vmem:[#allocation13 + $0x1508] sm:$0xff] }
 0x6b5   : > { %6486 = vmatmul.mubr.f32.vlgmr.msra.gmra.mrb[52].mxu0 %v11761_v23  ;;  %6770 = vmatmul.mubr.f32.vlgmr.msra.gmra.mrb[72].mxu1 %v11761_v23  ;;  %v6141_v31 = vld [vmem:[#allocation13 + $0x14b0] sm:$0xff]  ;;  %v9350_v17 = vpack.c.bf16 %v6148_v48, %v6142_v45  ;;  %v6158_v8 = vld [vmem:[#allocation13 + $0x1538] sm:$0xff]  ;;  %v6160_v25 = vld [vmem:[#allocation13 + $0x1548] sm:$0xff] }
 0x6b6   : > { %9069 = vmatpush1.bf16.msra.mxu0 %v9068_v40  ;;  %6556 = vmatprep.mubr.f32.mxu0 %v11759_v15  ;;  %v9340_v40 = vpack.c.bf16 %v6111_v52, %v6105_v47  ;;  %v6154_v19 = vld [vmem:[#allocation13 + $0x1518] sm:$0xff]  ;;  %v6157_v27 = vld [vmem:[#allocation13 + $0x1530] sm:$0xff]  ;;  %v6164_v52 = vld [vmem:[#allocation13 + $0x1568] sm:$0xff] }
 0x6b7   : > { %9325 = vmatpush1.bf16.msra.mxu1 %v9324_v50  ;;  %6840 = vmatprep.mubr.f32.mxu1 %v11759_v15  ;;  %v9086_v50 = vpack.c.bf16 %v6122_v13, %v6116_v21  ;;  %v6153_v6 = vld [vmem:[#allocation13 + $0x1510] sm:$0xff]  ;;  %v9354_v47 = vpack.c.bf16 %v6160_v25, %v6154_v19  ;;  %v6170_v21 = vld [vmem:[#allocation13 + $0x1598] sm:$0xff]  ;;  %v6184_v63 = vld [vmem:[#allocation13 + $0x1608] sm:$0xff] }
 0x6b8   : > { %9071 = vmatprep.subr.bf16.mxu0 %v9070_v16  ;;  %9327 = vmatprep.subr.bf16.mxu1 %v9326_v20  ;;  %v9342_v16 = vpack.c.bf16 %v6124_v43, %v6118_v55  ;;  %v6123_v20 = vld [vmem:[#allocation13 + $0x1420] sm:$0xff]  ;;  %v6166_v13 = vld [vmem:[#allocation13 + $0x1578] sm:$0xff]  ;;  %v6172_v55 = vld [vmem:[#allocation13 + $0x15a8] sm:$0xff] }
 0x6b9   : > { %v6169_v35 = vld [vmem:[#allocation13 + $0x1590] sm:$0xff]  ;;  %v6196_v45 = vld [vmem:[#allocation13 + $0x1668] sm:$0xff] }
 0x6ba   : > { %9073 = vmatpush1.bf16.msra.mxu0 %v9072_v46  ;;  %v9344_v46 = vpack.c.bf16 %v6123_v20, %v6117_v59  ;;  %v6165_v32 = vld [vmem:[#allocation13 + $0x1570] sm:$0xff]  ;;  %v9358_v59 = vpack.c.bf16 %v6172_v55, %v6166_v13  ;;  %v6176_v20 = vld [vmem:[#allocation13 + $0x15c8] sm:$0xff]  ;;  %v6214_v13 = vld [vmem:[#allocation13 + $0x16f8] sm:$0xff] }
 0x6bb   : > { %9329 = vmatpush1.bf16.msra.mxu1 %v9328_v2  ;;  %9075 = vmatprep.subr.bf16.mxu0 %v9074_v9  ;;  %v9090_v2 = vpack.c.bf16 %v6134_v24, %v6128_v57  ;;  %v6127_v9 = vld [vmem:[#allocation13 + $0x1440] sm:$0xff]  ;;  %v6182_v57 = vld [vmem:[#allocation13 + $0x15f8] sm:$0xff]  ;;  %v6208_v19 = vld [vmem:[#allocation13 + $0x16c8] sm:$0xff] }
 0x6bc   : > { %9331 = vmatprep.subr.bf16.mxu1 %v9330_v51  ;;  %v6135_v51 = vld [vmem:[#allocation13 + $0x1480] sm:$0xff]  ;;  %v9092_v53 = vpack.c.bf16 %v6133_v56, %v6127_v9  ;;  %v6178_v24 = vld [vmem:[#allocation13 + $0x15d8] sm:$0xff]  ;;  %v6181_v9 = vld [vmem:[#allocation13 + $0x15f0] sm:$0xff] }
 0x6bd   : > { %v6177_v56 = vld [vmem:[#allocation13 + $0x15d0] sm:$0xff]  ;;  %v6220_v55 = vld [vmem:[#allocation13 + $0x1728] sm:$0xff] }
 0x6be   : > { %9077 = vmatpush1.bf16.msra.mxu0 %v9076_v36  ;;  %v9348_v36 = vpack.c.bf16 %v6135_v51, %v6129_v1  ;;  %v9362_v1 = vpack.c.bf16 %v6184_v63, %v6178_v24  ;;  %v6188_v51 = vld [vmem:[#allocation13 + $0x1628] sm:$0xff]  ;;  %v6230_v24 = vld [vmem:[#allocation13 + $0x1778] sm:$0xff] }
 0x6bf   : > { %9333 = vmatpush1.bf16.msra.mxu1 %v9332_v33  ;;  %9079 = vmatprep.subr.bf16.mxu0 %v9078_v39  ;;  %v9094_v33 = vpack.c.bf16 %v6146_v49, %v6140_v10  ;;  %v6139_v39 = vld [vmem:[#allocation13 + $0x14a0] sm:$0xff]  ;;  %v6194_v10 = vld [vmem:[#allocation13 + $0x1658] sm:$0xff] }
 0x6c0   : > { %9335 = vmatprep.subr.bf16.mxu1 %v9334_v61  ;;  %v6147_v61 = vld [vmem:[#allocation13 + $0x14e0] sm:$0xff]  ;;  %v9096_v62 = vpack.c.bf16 %v6145_v22, %v6139_v39  ;;  %v6190_v49 = vld [vmem:[#allocation13 + $0x1638] sm:$0xff]  ;;  %v6193_v39 = vld [vmem:[#allocation13 + $0x1650] sm:$0xff] }
 0x6c1   : > { %v6189_v22 = vld [vmem:[#allocation13 + $0x1630] sm:$0xff]  ;;  %v6226_v63 = vld [vmem:[#allocation13 + $0x1758] sm:$0xff] }
 0x6c2   : > { %9081 = vmatpush1.bf16.msra.mxu0 %v9080_v37  ;;  %v9352_v37 = vpack.c.bf16 %v6147_v61, %v6141_v31  ;;  %v9366_v31 = vpack.c.bf16 %v6196_v45, %v6190_v49  ;;  %v6200_v61 = vld [vmem:[#allocation13 + $0x1688] sm:$0xff]  ;;  %v6242_v49 = vld [vmem:[#allocation13 + $0x17d8] sm:$0xff] }
 0x6c3   : > { %9337 = vmatpush1.bf16.msra.mxu1 %v9336_v7  ;;  %9083 = vmatprep.subr.bf16.mxu0 %v9082_v4  ;;  %v9098_v7 = vpack.c.bf16 %v6158_v8, %v6152_v14  ;;  %v6151_v4 = vld [vmem:[#allocation13 + $0x1500] sm:$0xff]  ;;  %v6206_v14 = vld [vmem:[#allocation13 + $0x16b8] sm:$0xff] }
 0x6c4   : > { %9339 = vmatprep.subr.bf16.mxu1 %v9338_v28  ;;  %v6159_v28 = vld [vmem:[#allocation13 + $0x1540] sm:$0xff]  ;;  %v9100_v43 = vpack.c.bf16 %v6157_v27, %v6151_v4  ;;  %v6202_v8 = vld [vmem:[#allocation13 + $0x1698] sm:$0xff]  ;;  %v6205_v27 = vld [vmem:[#allocation13 + $0x16b0] sm:$0xff] }
 0x6c5   : > { %v6199_v4 = vld [vmem:[#allocation13 + $0x1680] sm:$0xff]  ;;  %v6238_v45 = vld [vmem:[#allocation13 + $0x17b8] sm:$0xff] }
 0x6c6   : > { %9085 = vmatpush1.bf16.msra.mxu0 %v9084_v58  ;;  %v9356_v58 = vpack.c.bf16 %v6159_v28, %v6153_v6  ;;  %v6201_v6 = vld [vmem:[#allocation13 + $0x1690] sm:$0xff]  ;;  %v6207_v28 = vld [vmem:[#allocation13 + $0x16c0] sm:$0xff] }
 0x6c7   : > { %9341 = vmatpush1.bf16.msra.mxu1 %v9340_v40  ;;  %9087 = vmatprep.subr.bf16.mxu0 %v9086_v50  ;;  %v9102_v40 = vpack.c.bf16 %v6170_v21, %v6164_v52  ;;  %v6163_v50 = vld [vmem:[#allocation13 + $0x1560] sm:$0xff]  ;;  %v6212_v52 = vld [vmem:[#allocation13 + $0x16e8] sm:$0xff]  ;;  %v6218_v21 = vld [vmem:[#allocation13 + $0x1718] sm:$0xff] }
 0x6c8   : > { %9343 = vmatprep.subr.bf16.mxu1 %v9342_v16  ;;  %v6171_v16 = vld [vmem:[#allocation13 + $0x15a0] sm:$0xff]  ;;  %v9104_v0 = vpack.c.bf16 %v6169_v35, %v6163_v50  ;;  %v9118_v50 = vpack.c.bf16 %v6218_v21, %v6212_v52 }
 0x6c9   : > { %v6211_v35 = vld [vmem:[#allocation13 + $0x16e0] sm:$0xff] }
 0x6ca   : > { %9089 = vmatpush1.bf16.msra.mxu0 %v9088_v44  ;;  %v9360_v44 = vpack.c.bf16 %v6171_v16, %v6165_v32  ;;  %v6217_v32 = vld [vmem:[#allocation13 + $0x1710] sm:$0xff]  ;;  %v9374_v16 = vpack.c.bf16 %v6220_v55, %v6214_v13  ;;  %v5495_v13 = vld [vmem:[#allocation13 + $0x80] sm:$0xff] }
 0x6cb   : > { %9345 = vmatpush1.bf16.msra.mxu1 %v9344_v46  ;;  %9091 = vmatprep.subr.bf16.mxu0 %v9090_v2  ;;  %v9106_v46 = vpack.c.bf16 %v6182_v57, %v6176_v20  ;;  %v6175_v2 = vld [vmem:[#allocation13 + $0x15c0] sm:$0xff]  ;;  %v6224_v57 = vld [vmem:[#allocation13 + $0x1748] sm:$0xff]  ;;  %v5501_v55 = vld [vmem:[#allocation13 + $0xb0] sm:$0xff] }
 0x6cc   : > { %9347 = vmatprep.subr.bf16.mxu1 %v9346_v30  ;;  %v6183_v30 = vld [vmem:[#allocation13 + $0x1600] sm:$0xff]  ;;  %v9108_v48 = vpack.c.bf16 %v6181_v9, %v6175_v2  ;;  %v9122_v2 = vpack.c.bf16 %v6230_v24, %v6224_v57 }
 0x6cd   : > { %v6219_v20 = vld [vmem:[#allocation13 + $0x1720] sm:$0xff] }
 0x6ce   : > { %9093 = vmatpush1.bf16.msra.mxu0 %v9092_v53  ;;  %v9364_v53 = vpack.c.bf16 %v6183_v30, %v6177_v56  ;;  %v6223_v9 = vld [vmem:[#allocation13 + $0x1740] sm:$0xff]  ;;  %v6229_v56 = vld [vmem:[#allocation13 + $0x1770] sm:$0xff] }
 0x6cf   : > { %9349 = vmatpush1.bf16.msra.mxu1 %v9348_v36  ;;  %9095 = vmatprep.subr.bf16.mxu0 %v9094_v33  ;;  %v9110_v36 = vpack.c.bf16 %v6194_v10, %v6188_v51  ;;  %v6187_v33 = vld [vmem:[#allocation13 + $0x1620] sm:$0xff]  ;;  %v6236_v10 = vld [vmem:[#allocation13 + $0x17a8] sm:$0xff] }
 0x6d0   : > { %9351 = vmatprep.subr.bf16.mxu1 %v9350_v17  ;;  %v6195_v17 = vld [vmem:[#allocation13 + $0x1660] sm:$0xff]  ;;  %v9112_v25 = vpack.c.bf16 %v6193_v39, %v6187_v33  ;;  %v9126_v39 = vpack.c.bf16 %v6242_v49, %v6236_v10  ;;  %v5549_v10 = vld [vmem:[#allocation13 + $0x230] sm:$0xff]  ;;  %v5556_v49 = vld [vmem:[#allocation13 + $0x268] sm:$0xff] }
 0x6d1   : > { %v6231_v51 = vld [vmem:[#allocation13 + $0x1780] sm:$0xff] }
 0x6d2   : > { %9097 = vmatpush1.bf16.msra.mxu0 %v9096_v62  ;;  %v5461_v62 = vrot.slane %v11757_v18, 4  ;;  %v5519_v24 = vld [vmem:[#allocation13 + $0x140] sm:$0xff] }
 0x6d3   : > { %9353 = vmatpush1.bf16.msra.mxu1 %v9352_v37  ;;  %9099 = vmatprep.subr.bf16.mxu0 %v9098_v7  ;;  %v9368_v37 = vpack.c.bf16 %v6195_v17, %v6189_v22  ;;  %v9114_v7 = vpack.c.bf16 %v6206_v14, %v6200_v61  ;;  %v6235_v22 = vld [vmem:[#allocation13 + $0x17a0] sm:$0xff]  ;;  %v6237_v17 = vld [vmem:[#allocation13 + $0x17b0] sm:$0xff] }
 0x6d4   : > { %9355 = vmatprep.subr.bf16.mxu1 %v9354_v47  ;;  %v9370_v47 = vpack.c.bf16 %v6208_v19, %v6202_v8  ;;  %v6243_v14 = vld [vmem:[#allocation13 + $0x17e0] sm:$0xff]  ;;  %v5484_v8 = vld [vmem:[#allocation13 + $0x28] sm:$0xff]  ;;  %v5490_v19 = vld [vmem:[#allocation13 + $0x58] sm:$0xff] }
 0x6d6   : > { %9101 = vmatpush1.bf16.msra.mxu0 %v9100_v43  ;;  %v9116_v43 = vpack.c.bf16 %v6205_v27, %v6199_v4  ;;  %v5483_v4 = vld [vmem:[#allocation13 + $0x20] sm:$0xff]  ;;  %v5489_v27 = vld [vmem:[#allocation13 + $0x50] sm:$0xff] }
 0x6d7   : > { %9357 = vmatpush1.bf16.msra.mxu1 %v9356_v58  ;;  %9103 = vmatprep.subr.bf16.mxu0 %v9102_v40  ;;  %v5462_v58 = vmax.f32 %v11757_v18, %v5461_v62  ;;  %v9372_v40 = vpack.c.bf16 %v6207_v28, %v6201_v6  ;;  %v5496_v6 = vld [vmem:[#allocation13 + $0x88] sm:$0xff]  ;;  %v9388_v28 = vpack.c.bf16 %v5489_v27, %v5483_v4  ;;  %v5598_v27 = vld [vmem:[#allocation13 + $0x3b8] sm:$0xff] }
 0x6d8   : > { %9359 = vmatprep.subr.bf16.mxu1 %v9358_v59  ;;  %v6213_v59 = vld [vmem:[#allocation13 + $0x16f0] sm:$0xff]  ;;  %v5592_v4 = vld [vmem:[#allocation13 + $0x388] sm:$0xff] }
 0x6d9   : > { %v9376_v18 = vpack.c.bf16 %v6219_v20, %v6213_v59  ;;  %v5520_v59 = vld [vmem:[#allocation13 + $0x148] sm:$0xff] }
 0x6da   : > { %9105 = vmatpush1.bf16.msra.mxu0 %v9104_v0  ;;  %v6232_v0 = vld [vmem:[#allocation13 + $0x1788] sm:$0xff] }
 0x6db   : > { %9361 = vmatpush1.bf16.msra.mxu1 %v9360_v44  ;;  %9107 = vmatprep.subr.bf16.mxu0 %v9106_v46  ;;  %v9120_v44 = vpack.c.bf16 %v6217_v32, %v6211_v35  ;;  %v5463_v46 = vrot.slane %v5462_v58, 2  ;;  %v9378_v30 = vpack.c.bf16 %v6232_v0, %v6226_v63  ;;  %v5507_v35 = vld [vmem:[#allocation13 + $0xe0] sm:$0xff]  ;;  %v5513_v32 = vld [vmem:[#allocation13 + $0x110] sm:$0xff]  ;;  %v5532_v0 = vld [vmem:[#allocation13 + $0x1a8] sm:$0xff] }
 0x6dc   : > { %9363 = vmatprep.subr.bf16.mxu1 %v9362_v1  ;;  %v6225_v1 = vld [vmem:[#allocation13 + $0x1750] sm:$0xff]  ;;  %v9396_v20 = vpack.c.bf16 %v5513_v32, %v5507_v35  ;;  %v5616_v35 = vld [vmem:[#allocation13 + $0x448] sm:$0xff]  ;;  %v5622_v32 = vld [vmem:[#allocation13 + $0x478] sm:$0xff] }
 0x6dd   : > { %v9380_v33 = vpack.c.bf16 %v6231_v51, %v6225_v1  ;;  %v5525_v63 = vld [vmem:[#allocation13 + $0x170] sm:$0xff]  ;;  %v5543_v51 = vld [vmem:[#allocation13 + $0x200] sm:$0xff] }
 0x6de   : > { %9109 = vmatpush1.bf16.msra.mxu0 %v9108_v48  ;;  %v6244_v48 = vld [vmem:[#allocation13 + $0x17e8] sm:$0xff] }
 0x6df   : > { %9365 = vmatpush1.bf16.msra.mxu1 %v9364_v53  ;;  %9111 = vmatprep.subr.bf16.mxu0 %v9110_v36  ;;  %v9124_v53 = vpack.c.bf16 %v6229_v56, %v6223_v9  ;;  %v5464_v36 = vmax.f32 %v5462_v58, %v5463_v46  ;;  %v9382_v61 = vpack.c.bf16 %v6244_v48, %v6238_v45  ;;  %v5514_v58 = vld [vmem:[#allocation13 + $0x118] sm:$0xff]  ;;  %v5544_v9 = vld [vmem:[#allocation13 + $0x208] sm:$0xff] }
 0x6e0   : > { %9367 = vmatprep.subr.bf16.mxu1 %v9366_v31  ;;  %v6241_v31 = vld [vmem:[#allocation13 + $0x17d0] sm:$0xff]  ;;  %v9400_v46 = vpack.c.bf16 %v5525_v63, %v5519_v24  ;;  %v5550_v56 = vld [vmem:[#allocation13 + $0x238] sm:$0xff]  ;;  %v9408_v48 = vpack.c.bf16 %v5549_v10, %v5543_v51  ;;  %v5628_v24 = vld [vmem:[#allocation13 + $0x4a8] sm:$0xff] }
 0x6e1   : > { %v5465_v62 = vrot.slane %v5464_v36, 1  ;;  %v5562_v45 = vld [vmem:[#allocation13 + $0x298] sm:$0xff]  ;;  %v5652_v51 = vld [vmem:[#allocation13 + $0x568] sm:$0xff] }
 0x6e2   : > { %9113 = vmatpush1.bf16.msra.mxu0 %v9112_v25  ;;  %v9128_v25 = vpack.c.bf16 %v6241_v31, %v6235_v22  ;;  %v5574_v22 = vld [vmem:[#allocation13 + $0x2f8] sm:$0xff] }
 0x6e3   : > { %9369 = vmatpush1.bf16.msra.mxu1 %v9368_v37  ;;  %9115 = vmatprep.subr.bf16.mxu0 %v9114_v7  ;;  %v9384_v37 = vpack.c.bf16 %v6243_v14, %v6237_v17  ;;  %v9386_v7 = vpack.c.bf16 %v5490_v19, %v5484_v8  ;;  %v11769_v52 = vmax.f32 %v5464_v36, %v5465_v62  ;;  %v5555_v36 = vld [vmem:[#allocation13 + $0x260] sm:$0xff]  ;;  %v5573_v14 = vld [vmem:[#allocation13 + $0x2f0] sm:$0xff]  ;;  %v5580_v8 = vld [vmem:[#allocation13 + $0x328] sm:$0xff] }
 0x6e4   : > { %9371 = vmatprep.subr.bf16.mxu1 %v9370_v47  ;;  %v5502_v47 = vld [vmem:[#allocation13 + $0xb8] sm:$0xff] }
 0x6e5   : > { %v9390_v21 = vpack.c.bf16 %v5502_v47, %v5496_v6  ;;  %v5586_v19 = vld [vmem:[#allocation13 + $0x358] sm:$0xff]  ;;  %v9422_v47 = vpack.c.bf16 %v5598_v27, %v5592_v4 }
 0x6e6   : > { %9117 = vmatpush1.bf16.msra.mxu0 %v9116_v43  ;;  %v5508_v43 = vld [vmem:[#allocation13 + $0xe8] sm:$0xff]  ;;  %v9418_v62 = vpack.c.bf16 %v5586_v19, %v5580_v8  ;;  %v5634_v63 = vld [vmem:[#allocation13 + $0x4d8] sm:$0xff] }
 0x6e7   : > { %9373 = vmatpush1.bf16.msra.mxu1 %v9372_v40  ;;  %9119 = vmatprep.subr.bf16.mxu0 %v9118_v50  ;;  %v9392_v40 = vpack.c.bf16 %v5501_v55, %v5495_v13  ;;  %v9394_v50 = vpack.c.bf16 %v5514_v58, %v5508_v43  ;;  %v5604_v13 = vld [vmem:[#allocation13 + $0x3e8] sm:$0xff]  ;;  %v5610_v55 = vld [vmem:[#allocation13 + $0x418] sm:$0xff] }
 0x6e8   : > { %9375 = vmatprep.subr.bf16.mxu1 %v9374_v16  ;;  %v5526_v16 = vld [vmem:[#allocation13 + $0x178] sm:$0xff]  ;;  %v9426_v58 = vpack.c.bf16 %v5610_v55, %v5604_v13 }
 0x6e9   : > { %v9398_v57 = vpack.c.bf16 %v5526_v16, %v5520_v59  ;;  %v9430_v16 = vpack.c.bf16 %v5622_v32, %v5616_v35  ;;  %v5658_v10 = vld [vmem:[#allocation13 + $0x598] sm:$0xff] }
 0x6ea   : > { %9121 = vmatpush1.bf16.msra.mxu0 %v9120_v44  ;;  %v5538_v44 = vld [vmem:[#allocation13 + $0x1d8] sm:$0xff] }
 0x6eb   : > { %9377 = vmatpush1.bf16.msra.mxu1 %v9376_v18  ;;  %9123 = vmatprep.subr.bf16.mxu0 %v9122_v2  ;;  %v9402_v18 = vpack.c.bf16 %v5538_v44, %v5532_v0  ;;  %v5531_v2 = vld [vmem:[#allocation13 + $0x1a0] sm:$0xff]  ;;  %v9434_v44 = vpack.c.bf16 %v5634_v63, %v5628_v24  ;;  %v5729_v63 = vld [vmem:[#allocation13 + $0x7d0] sm:$0xff] }
 0x6ec   : > { %9379 = vmatprep.subr.bf16.mxu1 %v9378_v30  ;;  %v9406_v30 = vpack.c.bf16 %v5550_v56, %v5544_v9 }
 0x6ee   : > { %9125 = vmatpush1.bf16.msra.mxu0 %v9124_v53  ;;  %v9410_v53 = vpack.c.bf16 %v5562_v45, %v5556_v49  ;;  %v9442_v45 = vpack.c.bf16 %v5658_v10, %v5652_v51  ;;  %v5747_v51 = vld [vmem:[#allocation13 + $0x860] sm:$0xff]  ;;  %v5753_v10 = vld [vmem:[#allocation13 + $0x890] sm:$0xff] }
 0x6ef   : > { %9381 = vmatpush1.bf16.msra.mxu1 %v9380_v33  ;;  %9127 = vmatprep.subr.bf16.mxu0 %v9126_v39  ;;  %v5561_v33 = vld [vmem:[#allocation13 + $0x290] sm:$0xff]  ;;  %v5568_v39 = vld [vmem:[#allocation13 + $0x2c8] sm:$0xff] }
 0x6f0   : > { %9383 = vmatprep.subr.bf16.mxu1 %v9382_v61  ;;  %v9412_v31 = vpack.c.bf16 %v5561_v33, %v5555_v36  ;;  %v9414_v17 = vpack.c.bf16 %v5574_v22, %v5568_v39  ;;  %v5567_v61 = vld [vmem:[#allocation13 + $0x2c0] sm:$0xff]  ;;  %v5664_v36 = vld [vmem:[#allocation13 + $0x5c8] sm:$0xff]  ;;  %v5670_v33 = vld [vmem:[#allocation13 + $0x5f8] sm:$0xff] }
 0x6f1   : > { %v9446_v22 = vpack.c.bf16 %v5670_v33, %v5664_v36  ;;  %v5759_v36 = vld [vmem:[#allocation13 + $0x8c0] sm:$0xff]  ;;  %v5765_v33 = vld [vmem:[#allocation13 + $0x8f0] sm:$0xff] }
 0x6f2   : > { %9129 = vmatpush1.bf16.msra.mxu0 %v9128_v25  ;;  %v9416_v25 = vpack.c.bf16 %v5573_v14, %v5567_v61  ;;  %v5676_v61 = vld [vmem:[#allocation13 + $0x628] sm:$0xff]  ;;  %v5682_v14 = vld [vmem:[#allocation13 + $0x658] sm:$0xff] }
 0x6f3   : > { %9385 = vmatpush1.bf16.msra.mxu1 %v9384_v37  ;;  %9387 = vmatprep.subr.bf16.mxu0 %v9386_v7  ;;  %v5579_v37 = vld [vmem:[#allocation13 + $0x320] sm:$0xff]  ;;  %v5585_v7 = vld [vmem:[#allocation13 + $0x350] sm:$0xff]  ;;  %v9450_v19 = vpack.c.bf16 %v5682_v14, %v5676_v61 }
 0x6f4   : > { %v9420_v6 = vpack.c.bf16 %v5585_v7, %v5579_v37  ;;  %v5688_v37 = vld [vmem:[#allocation13 + $0x688] sm:$0xff]  ;;  %v5694_v7 = vld [vmem:[#allocation13 + $0x6b8] sm:$0xff]  ;;  %v5771_v61 = vld [vmem:[#allocation13 + $0x920] sm:$0xff] }
 0x6f5   : > { %6557 = vmatmul.mubr.f32.vlgmr.msra.gmra.mrb[52].mxu0 %v11769_v52  ;;  %v9454_v27 = vpack.c.bf16 %v5694_v7, %v5688_v37  ;;  %v5777_v14 = vld [vmem:[#allocation13 + $0x950] sm:$0xff]  ;;  %v5783_v37 = vld [vmem:[#allocation13 + $0x980] sm:$0xff] }
 0x6f6   : > { %6841 = vmatmul.mubr.f32.vlgmr.msra.gmra.mrb[72].mxu1 %v11769_v52  ;;  %9389 = vmatpush1.bf16.msra.mxu0 %v9388_v28  ;;  %v5591_v28 = vld [vmem:[#allocation13 + $0x380] sm:$0xff]  ;;  %v5789_v7 = vld [vmem:[#allocation13 + $0x9b0] sm:$0xff] }
 0x6f7   : > { %6911 = vmatprep.mubr.f32.mxu0 %v11630_v42  ;;  %9391 = vmatprep.subr.bf16.mxu0 %v9390_v21  ;;  %v5537_v42 = vld [vmem:[#allocation13 + $0x1d0] sm:$0xff] }
 0x6f8   : > { %v9404_v1 = vpack.c.bf16 %v5537_v42, %v5531_v2  ;;  %v5597_v21 = vld [vmem:[#allocation13 + $0x3b0] sm:$0xff]  ;;  %v5640_v2 = vld [vmem:[#allocation13 + $0x508] sm:$0xff]  ;;  %v5646_v42 = vld [vmem:[#allocation13 + $0x538] sm:$0xff] }
 0x6f9   : > { %v9424_v43 = vpack.c.bf16 %v5597_v21, %v5591_v28  ;;  %v9438_v56 = vpack.c.bf16 %v5646_v42, %v5640_v2  ;;  %v5700_v28 = vld [vmem:[#allocation13 + $0x6e8] sm:$0xff]  ;;  %v5706_v21 = vld [vmem:[#allocation13 + $0x718] sm:$0xff]  ;;  %v5735_v2 = vld [vmem:[#allocation13 + $0x800] sm:$0xff] }
 0x6fa   : > { %9393 = vmatpush1.bf16.msra.mxu0 %v9392_v40  ;;  %v5603_v40 = vld [vmem:[#allocation13 + $0x3e0] sm:$0xff]  ;;  %v9458_v55 = vpack.c.bf16 %v5706_v21, %v5700_v28  ;;  %v5741_v42 = vld [vmem:[#allocation13 + $0x830] sm:$0xff] }
 0x6fb   : > { %9395 = vmatprep.subr.bf16.mxu0 %v9394_v50  ;;  %v5609_v50 = vld [vmem:[#allocation13 + $0x410] sm:$0xff]  ;;  %v5795_v28 = vld [vmem:[#allocation13 + $0x9e0] sm:$0xff] }
 0x6fc   : > { %v9428_v59 = vpack.c.bf16 %v5609_v50, %v5603_v40  ;;  %v5712_v40 = vld [vmem:[#allocation13 + $0x748] sm:$0xff]  ;;  %v5718_v50 = vld [vmem:[#allocation13 + $0x778] sm:$0xff]  ;;  %v5801_v21 = vld [vmem:[#allocation13 + $0xa10] sm:$0xff] }
 0x6fd   : > { %v9462_v32 = vpack.c.bf16 %v5718_v50, %v5712_v40  ;;  %v5807_v40 = vld [vmem:[#allocation13 + $0xa40] sm:$0xff]  ;;  %v5813_v50 = vld [vmem:[#allocation13 + $0xa70] sm:$0xff] }
 0x6fe   : > { %9397 = vmatpush1.bf16.msra.mxu0 %v9396_v20  ;;  %v5615_v20 = vld [vmem:[#allocation13 + $0x440] sm:$0xff] }
 0x6ff   : > { %9399 = vmatprep.subr.bf16.mxu0 %v9398_v57  ;;  %v5621_v57 = vld [vmem:[#allocation13 + $0x470] sm:$0xff] }
 0x700   : > { %v9432_v0 = vpack.c.bf16 %v5621_v57, %v5615_v20  ;;  %v5724_v20 = vld [vmem:[#allocation13 + $0x7a8] sm:$0xff]  ;;  %v5730_v57 = vld [vmem:[#allocation13 + $0x7d8] sm:$0xff] }
 0x701   : > { %v9466_v24 = vpack.c.bf16 %v5730_v57, %v5724_v20  ;;  %v5819_v20 = vld [vmem:[#allocation13 + $0xaa0] sm:$0xff]  ;;  %v5825_v57 = vld [vmem:[#allocation13 + $0xad0] sm:$0xff] }
 0x702   : > { %9401 = vmatpush1.bf16.msra.mxu0 %v9400_v46  ;;  %v5627_v46 = vld [vmem:[#allocation13 + $0x4a0] sm:$0xff] }
 0x703   : > { %9403 = vmatprep.subr.bf16.mxu0 %v9402_v18  ;;  %v5633_v18 = vld [vmem:[#allocation13 + $0x4d0] sm:$0xff] }
 0x704   : > { %v9436_v9 = vpack.c.bf16 %v5633_v18, %v5627_v46 }
 0x706   : > { %9405 = vmatpush1.bf16.msra.mxu0 %v9404_v1  ;;  %v5639_v1 = vld [vmem:[#allocation13 + $0x500] sm:$0xff] }
 0x707   : > { %9407 = vmatprep.subr.bf16.mxu0 %v9406_v30  ;;  %v5645_v30 = vld [vmem:[#allocation13 + $0x530] sm:$0xff] }
 0x708   : > { %v9440_v49 = vpack.c.bf16 %v5645_v30, %v5639_v1  ;;  %v9472_v1 = vpack.c.bf16 %v5741_v42, %v5735_v2 }
 0x70a   : > { %9409 = vmatpush1.bf16.msra.mxu0 %v9408_v48  ;;  %v5651_v48 = vld [vmem:[#allocation13 + $0x560] sm:$0xff] }
 0x70b   : > { %9411 = vmatprep.subr.bf16.mxu0 %v9410_v53  ;;  %v5657_v53 = vld [vmem:[#allocation13 + $0x590] sm:$0xff] }
 0x70c   : > { %v9444_v39 = vpack.c.bf16 %v5657_v53, %v5651_v48  ;;  %v9476_v48 = vpack.c.bf16 %v5753_v10, %v5747_v51 }
 0x70e   : > { %9413 = vmatpush1.bf16.msra.mxu0 %v9412_v31  ;;  %v5663_v31 = vld [vmem:[#allocation13 + $0x5c0] sm:$0xff] }
 0x70f   : > { %9415 = vmatprep.subr.bf16.mxu0 %v9414_v17  ;;  %v5669_v17 = vld [vmem:[#allocation13 + $0x5f0] sm:$0xff] }
 0x710   : > { %v9448_v8 = vpack.c.bf16 %v5669_v17, %v5663_v31  ;;  %v9480_v31 = vpack.c.bf16 %v5765_v33, %v5759_v36 }
 0x712   : > { %9417 = vmatpush1.bf16.msra.mxu0 %v9416_v25  ;;  %v5675_v25 = vld [vmem:[#allocation13 + $0x620] sm:$0xff] }
 0x713   : > { %9419 = vmatprep.subr.bf16.mxu0 %v9418_v62  ;;  %v5681_v62 = vld [vmem:[#allocation13 + $0x650] sm:$0xff] }
 0x714   : > { %v9452_v4 = vpack.c.bf16 %v5681_v62, %v5675_v25  ;;  %v9484_v25 = vpack.c.bf16 %v5777_v14, %v5771_v61 }
 0x716   : > { %9421 = vmatpush1.bf16.msra.mxu0 %v9420_v6  ;;  %v5687_v6 = vld [vmem:[#allocation13 + $0x680] sm:$0xff] }
 0x717   : > { %9423 = vmatprep.subr.bf16.mxu0 %v9422_v47  ;;  %v5693_v47 = vld [vmem:[#allocation13 + $0x6b0] sm:$0xff] }
 0x718   : > { %v9456_v13 = vpack.c.bf16 %v5693_v47, %v5687_v6  ;;  %v9488_v6 = vpack.c.bf16 %v5789_v7, %v5783_v37 }
 0x71a   : > { %9425 = vmatpush1.bf16.msra.mxu0 %v9424_v43  ;;  %v5699_v43 = vld [vmem:[#allocation13 + $0x6e0] sm:$0xff] }
 0x71b   : > { %9427 = vmatprep.subr.bf16.mxu0 %v9426_v58  ;;  %v5705_v58 = vld [vmem:[#allocation13 + $0x710] sm:$0xff] }
 0x71c   : > { %v9460_v35 = vpack.c.bf16 %v5705_v58, %v5699_v43  ;;  %v9492_v43 = vpack.c.bf16 %v5801_v21, %v5795_v28 }
 0x71e   : > { %9429 = vmatpush1.bf16.msra.mxu0 %v9428_v59  ;;  %v5711_v59 = vld [vmem:[#allocation13 + $0x740] sm:$0xff] }
 0x71f   : > { %9431 = vmatprep.subr.bf16.mxu0 %v9430_v16  ;;  %v5717_v16 = vld [vmem:[#allocation13 + $0x770] sm:$0xff] }
 0x722   : > { %9433 = vmatpush1.bf16.msra.mxu0 %v9432_v0  ;;  %v5736_v0 = vld [vmem:[#allocation13 + $0x808] sm:$0xff] }
 0x723   : > { %9435 = vmatprep.subr.bf16.mxu0 %v9434_v44  ;;  %v5742_v44 = vld [vmem:[#allocation13 + $0x838] sm:$0xff] }
 0x724   : > { %v9470_v18 = vpack.c.bf16 %v5742_v44, %v5736_v0  ;;  %v5831_v0 = vld [vmem:[#allocation13 + $0xb00] sm:$0xff]  ;;  %v5837_v44 = vld [vmem:[#allocation13 + $0xb30] sm:$0xff] }
 0x725   : > { %v9504_v2 = vpack.c.bf16 %v5837_v44, %v5831_v0  ;;  %v5939_v0 = vld [vmem:[#allocation13 + $0xe60] sm:$0xff]  ;;  %v5945_v44 = vld [vmem:[#allocation13 + $0xe90] sm:$0xff] }
 0x726   : > { %9437 = vmatpush1.bf16.msra.mxu0 %v9436_v9  ;;  %v5748_v9 = vld [vmem:[#allocation13 + $0x868] sm:$0xff] }
 0x727   : > { %9439 = vmatprep.subr.bf16.mxu0 %v9438_v56  ;;  %v5754_v56 = vld [vmem:[#allocation13 + $0x898] sm:$0xff] }
 0x728   : > { %v9474_v30 = vpack.c.bf16 %v5754_v56, %v5748_v9  ;;  %v5843_v9 = vld [vmem:[#allocation13 + $0xb60] sm:$0xff]  ;;  %v5849_v56 = vld [vmem:[#allocation13 + $0xb90] sm:$0xff] }
 0x729   : > { %v9508_v51 = vpack.c.bf16 %v5849_v56, %v5843_v9  ;;  %v5951_v9 = vld [vmem:[#allocation13 + $0xec0] sm:$0xff]  ;;  %v5957_v56 = vld [vmem:[#allocation13 + $0xef0] sm:$0xff] }
 0x72a   : > { %9441 = vmatpush1.bf16.msra.mxu0 %v9440_v49  ;;  %v5760_v49 = vld [vmem:[#allocation13 + $0x8c8] sm:$0xff] }
 0x72b   : > { %9443 = vmatprep.subr.bf16.mxu0 %v9442_v45  ;;  %v5766_v45 = vld [vmem:[#allocation13 + $0x8f8] sm:$0xff] }
 0x72c   : > { %v9478_v53 = vpack.c.bf16 %v5766_v45, %v5760_v49  ;;  %v5855_v49 = vld [vmem:[#allocation13 + $0xbc0] sm:$0xff]  ;;  %v5861_v45 = vld [vmem:[#allocation13 + $0xbf0] sm:$0xff] }
 0x72d   : > { %v9512_v36 = vpack.c.bf16 %v5861_v45, %v5855_v49  ;;  %v5963_v49 = vld [vmem:[#allocation13 + $0xf20] sm:$0xff]  ;;  %v5969_v45 = vld [vmem:[#allocation13 + $0xf50] sm:$0xff] }
 0x72e   : > { %9445 = vmatpush1.bf16.msra.mxu0 %v9444_v39  ;;  %v5772_v39 = vld [vmem:[#allocation13 + $0x928] sm:$0xff] }
 0x72f   : > { %9447 = vmatprep.subr.bf16.mxu0 %v9446_v22  ;;  %v5778_v22 = vld [vmem:[#allocation13 + $0x958] sm:$0xff] }
 0x730   : > { %v9482_v17 = vpack.c.bf16 %v5778_v22, %v5772_v39  ;;  %v5867_v39 = vld [vmem:[#allocation13 + $0xc20] sm:$0xff]  ;;  %v5873_v22 = vld [vmem:[#allocation13 + $0xc50] sm:$0xff] }
 0x731   : > { %v9516_v61 = vpack.c.bf16 %v5873_v22, %v5867_v39  ;;  %v5975_v39 = vld [vmem:[#allocation13 + $0xf80] sm:$0xff]  ;;  %v5981_v22 = vld [vmem:[#allocation13 + $0xfb0] sm:$0xff] }
 0x732   : > { %9449 = vmatpush1.bf16.msra.mxu0 %v9448_v8  ;;  %v5784_v8 = vld [vmem:[#allocation13 + $0x988] sm:$0xff] }
 0x733   : > { %9451 = vmatprep.subr.bf16.mxu0 %v9450_v19  ;;  %v5790_v19 = vld [vmem:[#allocation13 + $0x9b8] sm:$0xff] }
 0x734   : > { %v9486_v62 = vpack.c.bf16 %v5790_v19, %v5784_v8  ;;  %v5879_v8 = vld [vmem:[#allocation13 + $0xc80] sm:$0xff]  ;;  %v5885_v19 = vld [vmem:[#allocation13 + $0xcb0] sm:$0xff] }
 0x735   : > { %6912 = vmatmul.mubr.f32.vlgmr.msra.gmra.mrb[54].mxu0 %v11632_v29  ;;  %v9464_v29 = vpack.c.bf16 %v5717_v16, %v5711_v59  ;;  %v9496_v59 = vpack.c.bf16 %v5813_v50, %v5807_v40  ;;  %v9520_v37 = vpack.c.bf16 %v5885_v19, %v5879_v8  ;;  %v5921_v50 = vld [vmem:[#allocation13 + $0xdd0] sm:$0xff]  ;;  %v5987_v8 = vld [vmem:[#allocation13 + $0xfe0] sm:$0xff] }
 0x736   : > { %9453 = vmatpush1.bf16.msra.mxu0 %v9452_v4  ;;  %6982 = vmatprep.mubr.f32.mxu0 %v11721_v26  ;;  %v5723_v26 = vld [vmem:[#allocation13 + $0x7a0] sm:$0xff]  ;;  %v5796_v4 = vld [vmem:[#allocation13 + $0x9e8] sm:$0xff]  ;;  %v5993_v19 = vld [vmem:[#allocation13 + $0x1010] sm:$0xff] }
 0x737   : > { %9455 = vmatprep.subr.bf16.mxu0 %v9454_v27  ;;  %v9468_v46 = vpack.c.bf16 %v5729_v63, %v5723_v26  ;;  %v5802_v27 = vld [vmem:[#allocation13 + $0xa18] sm:$0xff]  ;;  %v9500_v26 = vpack.c.bf16 %v5825_v57, %v5819_v20  ;;  %v5927_v20 = vld [vmem:[#allocation13 + $0xe00] sm:$0xff]  ;;  %v5933_v57 = vld [vmem:[#allocation13 + $0xe30] sm:$0xff] }
 0x738   : > { %v9490_v47 = vpack.c.bf16 %v5802_v27, %v5796_v4  ;;  %v5891_v4 = vld [vmem:[#allocation13 + $0xce0] sm:$0xff]  ;;  %v5897_v27 = vld [vmem:[#allocation13 + $0xd10] sm:$0xff] }
 0x739   : > { %v9524_v28 = vpack.c.bf16 %v5897_v27, %v5891_v4  ;;  %v5999_v4 = vld [vmem:[#allocation13 + $0x1040] sm:$0xff]  ;;  %v6005_v27 = vld [vmem:[#allocation13 + $0x1070] sm:$0xff] }
 0x73a   : > { %9457 = vmatpush1.bf16.msra.mxu0 %v9456_v13  ;;  %v5808_v13 = vld [vmem:[#allocation13 + $0xa48] sm:$0xff] }
 0x73b   : > { %9459 = vmatprep.subr.bf16.mxu0 %v9458_v55  ;;  %v5814_v55 = vld [vmem:[#allocation13 + $0xa78] sm:$0xff] }
 0x73c   : > { %v9494_v58 = vpack.c.bf16 %v5814_v55, %v5808_v13  ;;  %v5903_v13 = vld [vmem:[#allocation13 + $0xd40] sm:$0xff]  ;;  %v5909_v55 = vld [vmem:[#allocation13 + $0xd70] sm:$0xff] }
 0x73e   : > { %9461 = vmatpush1.bf16.msra.mxu0 %v9460_v35  ;;  %v5820_v35 = vld [vmem:[#allocation13 + $0xaa8] sm:$0xff] }
 0x73f   : > { %9463 = vmatprep.subr.bf16.mxu0 %v9462_v32  ;;  %v5826_v32 = vld [vmem:[#allocation13 + $0xad8] sm:$0xff] }
 0x740   : > { %v9498_v16 = vpack.c.bf16 %v5826_v32, %v5820_v35  ;;  %v5928_v35 = vld [vmem:[#allocation13 + $0xe08] sm:$0xff]  ;;  %v5934_v32 = vld [vmem:[#allocation13 + $0xe38] sm:$0xff] }
 0x742   : > { %9465 = vmatpush1.bf16.msra.mxu0 %v9464_v29  ;;  %v5832_v29 = vld [vmem:[#allocation13 + $0xb08] sm:$0xff] }
 0x743   : > { %9467 = vmatprep.subr.bf16.mxu0 %v9466_v24  ;;  %v5838_v24 = vld [vmem:[#allocation13 + $0xb38] sm:$0xff] }
 0x744   : > { %v9502_v63 = vpack.c.bf16 %v5838_v24, %v5832_v29  ;;  %v5940_v29 = vld [vmem:[#allocation13 + $0xe68] sm:$0xff]  ;;  %v5946_v24 = vld [vmem:[#allocation13 + $0xe98] sm:$0xff] }
 0x746   : > { %9469 = vmatpush1.bf16.msra.mxu0 %v9468_v46  ;;  %v5844_v46 = vld [vmem:[#allocation13 + $0xb68] sm:$0xff] }
 0x747   : > { %9471 = vmatprep.subr.bf16.mxu0 %v9470_v18  ;;  %v5850_v18 = vld [vmem:[#allocation13 + $0xb98] sm:$0xff] }
 0x748   : > { %v9506_v42 = vpack.c.bf16 %v5850_v18, %v5844_v46  ;;  %v5952_v46 = vld [vmem:[#allocation13 + $0xec8] sm:$0xff]  ;;  %v5958_v18 = vld [vmem:[#allocation13 + $0xef8] sm:$0xff] }
 0x74a   : > { %9473 = vmatpush1.bf16.msra.mxu0 %v9472_v1  ;;  %v5856_v1 = vld [vmem:[#allocation13 + $0xbc8] sm:$0xff] }
 0x74b   : > { %9475 = vmatprep.subr.bf16.mxu0 %v9474_v30  ;;  %v5862_v30 = vld [vmem:[#allocation13 + $0xbf8] sm:$0xff] }
 0x74c   : > { %v9510_v10 = vpack.c.bf16 %v5862_v30, %v5856_v1  ;;  %v5964_v1 = vld [vmem:[#allocation13 + $0xf28] sm:$0xff]  ;;  %v5970_v30 = vld [vmem:[#allocation13 + $0xf58] sm:$0xff] }
 0x74e   : > { %9477 = vmatpush1.bf16.msra.mxu0 %v9476_v48  ;;  %v5868_v48 = vld [vmem:[#allocation13 + $0xc28] sm:$0xff] }
 0x74f   : > { %9479 = vmatprep.subr.bf16.mxu0 %v9478_v53  ;;  %v5874_v53 = vld [vmem:[#allocation13 + $0xc58] sm:$0xff] }
 0x750   : > { %v9514_v33 = vpack.c.bf16 %v5874_v53, %v5868_v48  ;;  %v5976_v48 = vld [vmem:[#allocation13 + $0xf88] sm:$0xff]  ;;  %v5982_v53 = vld [vmem:[#allocation13 + $0xfb8] sm:$0xff] }
 0x752   : > { %9481 = vmatpush1.bf16.msra.mxu0 %v9480_v31  ;;  %v5880_v31 = vld [vmem:[#allocation13 + $0xc88] sm:$0xff] }
 0x753   : > { %9483 = vmatprep.subr.bf16.mxu0 %v9482_v17  ;;  %v5886_v17 = vld [vmem:[#allocation13 + $0xcb8] sm:$0xff] }
 0x754   : > { %v9518_v14 = vpack.c.bf16 %v5886_v17, %v5880_v31  ;;  %v5988_v31 = vld [vmem:[#allocation13 + $0xfe8] sm:$0xff]  ;;  %v5994_v17 = vld [vmem:[#allocation13 + $0x1018] sm:$0xff] }
 0x756   : > { %9485 = vmatpush1.bf16.msra.mxu0 %v9484_v25  ;;  %v5892_v25 = vld [vmem:[#allocation13 + $0xce8] sm:$0xff] }
 0x757   : > { %9487 = vmatprep.subr.bf16.mxu0 %v9486_v62  ;;  %v5898_v62 = vld [vmem:[#allocation13 + $0xd18] sm:$0xff] }
 0x758   : > { %v9522_v7 = vpack.c.bf16 %v5898_v62, %v5892_v25  ;;  %v6000_v25 = vld [vmem:[#allocation13 + $0x1048] sm:$0xff]  ;;  %v6006_v62 = vld [vmem:[#allocation13 + $0x1078] sm:$0xff] }
 0x75a   : > { %9489 = vmatpush1.bf16.msra.mxu0 %v9488_v6  ;;  %v5904_v6 = vld [vmem:[#allocation13 + $0xd48] sm:$0xff] }
 0x75b   : > { %9491 = vmatprep.subr.bf16.mxu0 %v9490_v47  ;;  %v5910_v47 = vld [vmem:[#allocation13 + $0xd78] sm:$0xff] }
 0x75c   : > { %v9526_v21 = vpack.c.bf16 %v5910_v47, %v5904_v6  ;;  %v6012_v6 = vld [vmem:[#allocation13 + $0x10a8] sm:$0xff]  ;;  %v6018_v47 = vld [vmem:[#allocation13 + $0x10d8] sm:$0xff] }
 0x75e   : > { %9493 = vmatpush1.bf16.msra.mxu0 %v9492_v43  ;;  %v5916_v43 = vld [vmem:[#allocation13 + $0xda8] sm:$0xff] }
 0x75f   : > { %9495 = vmatprep.subr.bf16.mxu0 %v9494_v58  ;;  %v5922_v58 = vld [vmem:[#allocation13 + $0xdd8] sm:$0xff] }
 0x760   : > { %v9530_v40 = vpack.c.bf16 %v5922_v58, %v5916_v43  ;;  %v6024_v43 = vld [vmem:[#allocation13 + $0x1108] sm:$0xff]  ;;  %v6030_v58 = vld [vmem:[#allocation13 + $0x1138] sm:$0xff] }
 0x762   : > { %9497 = vmatpush1.bf16.msra.mxu0 %v9496_v59 }
 0x763   : > { %9499 = vmatprep.subr.bf16.mxu0 %v9498_v16  ;;  %v9534_v16 = vpack.c.bf16 %v5934_v32, %v5928_v35  ;;  %v6036_v35 = vld [vmem:[#allocation13 + $0x1168] sm:$0xff]  ;;  %v6042_v32 = vld [vmem:[#allocation13 + $0x1198] sm:$0xff] }
 0x766   : > { %9501 = vmatpush1.bf16.msra.mxu0 %v9500_v26  ;;  %v9536_v26 = vpack.c.bf16 %v5933_v57, %v5927_v20  ;;  %v6035_v20 = vld [vmem:[#allocation13 + $0x1160] sm:$0xff]  ;;  %v6041_v57 = vld [vmem:[#allocation13 + $0x1190] sm:$0xff] }
 0x767   : > { %9503 = vmatprep.subr.bf16.mxu0 %v9502_v63  ;;  %v9538_v63 = vpack.c.bf16 %v5946_v24, %v5940_v29  ;;  %v6048_v29 = vld [vmem:[#allocation13 + $0x11c8] sm:$0xff]  ;;  %v6054_v24 = vld [vmem:[#allocation13 + $0x11f8] sm:$0xff] }
 0x76a   : > { %9505 = vmatpush1.bf16.msra.mxu0 %v9504_v2  ;;  %v9540_v2 = vpack.c.bf16 %v5945_v44, %v5939_v0  ;;  %v6047_v0 = vld [vmem:[#allocation13 + $0x11c0] sm:$0xff]  ;;  %v6053_v44 = vld [vmem:[#allocation13 + $0x11f0] sm:$0xff] }
 0x76b   : > { %9507 = vmatprep.subr.bf16.mxu0 %v9506_v42  ;;  %v9542_v42 = vpack.c.bf16 %v5958_v18, %v5952_v46  ;;  %v6060_v46 = vld [vmem:[#allocation13 + $0x1228] sm:$0xff]  ;;  %v6066_v18 = vld [vmem:[#allocation13 + $0x1258] sm:$0xff] }
 0x76e   : > { %9509 = vmatpush1.bf16.msra.mxu0 %v9508_v51  ;;  %v9544_v51 = vpack.c.bf16 %v5957_v56, %v5951_v9  ;;  %v6059_v9 = vld [vmem:[#allocation13 + $0x1220] sm:$0xff]  ;;  %v6065_v56 = vld [vmem:[#allocation13 + $0x1250] sm:$0xff] }
 0x76f   : > { %9511 = vmatprep.subr.bf16.mxu0 %v9510_v10  ;;  %v9546_v10 = vpack.c.bf16 %v5970_v30, %v5964_v1  ;;  %v6072_v1 = vld [vmem:[#allocation13 + $0x1288] sm:$0xff]  ;;  %v6078_v30 = vld [vmem:[#allocation13 + $0x12b8] sm:$0xff] }
 0x772   : > { %9513 = vmatpush1.bf16.msra.mxu0 %v9512_v36  ;;  %v9548_v36 = vpack.c.bf16 %v5969_v45, %v5963_v49  ;;  %v6071_v49 = vld [vmem:[#allocation13 + $0x1280] sm:$0xff]  ;;  %v6077_v45 = vld [vmem:[#allocation13 + $0x12b0] sm:$0xff] }
 0x773   : > { %9515 = vmatprep.subr.bf16.mxu0 %v9514_v33  ;;  %v9550_v33 = vpack.c.bf16 %v5982_v53, %v5976_v48  ;;  %v6084_v48 = vld [vmem:[#allocation13 + $0x12e8] sm:$0xff]  ;;  %v6090_v53 = vld [vmem:[#allocation13 + $0x1318] sm:$0xff] }
 0x775   : > { %6983 = vmatmul.mubr.f32.vlgmr.msra.gmra.mrb[54].mxu0 %v11723_v5  ;;  %v9528_v5 = vpack.c.bf16 %v5909_v55, %v5903_v13  ;;  %v6011_v13 = vld [vmem:[#allocation13 + $0x10a0] sm:$0xff]  ;;  %v6017_v55 = vld [vmem:[#allocation13 + $0x10d0] sm:$0xff] }
 0x776   : > { %9517 = vmatpush1.bf16.msra.mxu0 %v9516_v61  ;;  %7053 = vmatprep.mubr.f32.mxu0 %v11729_v60  ;;  %v5915_v60 = vld [vmem:[#allocation13 + $0xda0] sm:$0xff]  ;;  %v9552_v61 = vpack.c.bf16 %v5981_v22, %v5975_v39  ;;  %v6089_v22 = vld [vmem:[#allocation13 + $0x1310] sm:$0xff] }
 0x777   : > { %9519 = vmatprep.subr.bf16.mxu0 %v9518_v14  ;;  %v9532_v59 = vpack.c.bf16 %v5921_v50, %v5915_v60  ;;  %v9554_v14 = vpack.c.bf16 %v5994_v17, %v5988_v31  ;;  %v6023_v60 = vld [vmem:[#allocation13 + $0x1100] sm:$0xff]  ;;  %v6029_v50 = vld [vmem:[#allocation13 + $0x1130] sm:$0xff]  ;;  %v6096_v31 = vld [vmem:[#allocation13 + $0x1348] sm:$0xff] }
 0x778   : > { %v6083_v39 = vld [vmem:[#allocation13 + $0x12e0] sm:$0xff]  ;;  %v6102_v17 = vld [vmem:[#allocation13 + $0x1378] sm:$0xff] }
 0x77a   : > { %9521 = vmatpush1.bf16.msra.mxu0 %v9520_v37  ;;  %v9556_v37 = vpack.c.bf16 %v5993_v19, %v5987_v8  ;;  %v6095_v8 = vld [vmem:[#allocation13 + $0x1340] sm:$0xff]  ;;  %v6101_v19 = vld [vmem:[#allocation13 + $0x1370] sm:$0xff] }
 0x77b   : > { %9523 = vmatprep.subr.bf16.mxu0 %v9522_v7  ;;  %v9558_v7 = vpack.c.bf16 %v6006_v62, %v6000_v25  ;;  %v6108_v25 = vld [vmem:[#allocation13 + $0x13a8] sm:$0xff]  ;;  %v6114_v62 = vld [vmem:[#allocation13 + $0x13d8] sm:$0xff] }
 0x77e   : > { %9525 = vmatpush1.bf16.msra.mxu0 %v9524_v28  ;;  %v9560_v28 = vpack.c.bf16 %v6005_v27, %v5999_v4  ;;  %v6120_v4 = vld [vmem:[#allocation13 + $0x1408] sm:$0xff]  ;;  %v6126_v27 = vld [vmem:[#allocation13 + $0x1438] sm:$0xff] }
 0x77f   : > { %9527 = vmatprep.subr.bf16.mxu0 %v9526_v21  ;;  %v9562_v21 = vpack.c.bf16 %v6018_v47, %v6012_v6  ;;  %v11780_v47 = vld [vmem:[#allocation14] sm:$0x3f] }
 0x782   : > { %9529 = vmatpush1.bf16.msra.mxu0 %v9528_v5  ;;  %v9564_v5 = vpack.c.bf16 %v6017_v55, %v6011_v13  ;;  %v6125_v13 = vld [vmem:[#allocation13 + $0x1430] sm:$0xff]  ;;  %v10398_v55 = vmov 1966171168  }
 0x783   : > { %9531 = vmatprep.subr.bf16.mxu0 %v9530_v40  ;;  %v9566_v40 = vpack.c.bf16 %v6030_v58, %v6024_v43  ;;  %v7147_v43 = vunpack.c.l.s4 %v10398_v55  ;;  %v6132_v58 = vld [vmem:[#allocation13 + $0x1468] sm:$0xff]  ;;  %v6191_v55 = vld [vmem:[#allocation13 + $0x1640] sm:$0xff] }
 0x786   : > { %9533 = vmatpush1.bf16.msra.mxu0 %v9532_v59  ;;  %v9568_v59 = vpack.c.bf16 %v6029_v50, %v6023_v60  ;;  %v6260_v60 = vrot.slane %v11780_v47, %v5241_v41  ;;  %v6256_v50 = vrot.slane %v11780_v47, %v11980_v34 }
 0x787   : > { %9535 = vmatprep.subr.bf16.mxu0 %v9534_v16  ;;  %v9570_v16 = vpack.c.bf16 %v6042_v32, %v6036_v35  ;;  %v6264_v32 = vrot.slane %v11780_v47, %v5245_v3 }
 0x78a   : > { %9537 = vmatpush1.bf16.msra.mxu0 %v9536_v26  ;;  %v9572_v26 = vpack.c.bf16 %v6041_v57, %v6035_v20  ;;  %v6137_v20 = vld [vmem:[#allocation13 + $0x1490] sm:$0xff] }
 0x78b   : > { %9539 = vmatprep.subr.bf16.mxu0 %v9538_v63  ;;  %v9574_v63 = vpack.c.bf16 %v6054_v24, %v6048_v29  ;;  %v7148_v29 = vunpack.c.0.s8 %v7147_v43  ;;  %v6150_v24 = vld [vmem:[#allocation13 + $0x14f8] sm:$0xff]  ;;  %v6197_v43 = vld [vmem:[#allocation13 + $0x1670] sm:$0xff] }
 0x78e   : > { %9541 = vmatpush1.bf16.msra.mxu0 %v9540_v2  ;;  %v9576_v2 = vpack.c.bf16 %v6053_v44, %v6047_v0 }
 0x78f   : > { %9543 = vmatprep.subr.bf16.mxu0 %v9542_v42  ;;  %v9578_v42 = vpack.c.bf16 %v6066_v18, %v6060_v46 }
 0x792   : > { %9545 = vmatpush1.bf16.msra.mxu0 %v9544_v51  ;;  %v9580_v51 = vpack.c.bf16 %v6065_v56, %v6059_v9  ;;  %v6149_v9 = vld [vmem:[#allocation13 + $0x14f0] sm:$0xff] }
 0x793   : > { %9547 = vmatprep.subr.bf16.mxu0 %v9546_v10  ;;  %v9582_v10 = vpack.c.bf16 %v6078_v30, %v6072_v1  ;;  %v11793_v30 = vsub.s32 %v7148_v29, %v11993_v54  ;;  %v6221_v29 = vld [vmem:[#allocation13 + $0x1730] sm:$0xff] }
 0x796   : > { %9549 = vmatpush1.bf16.msra.mxu0 %v9548_v36  ;;  %v9584_v36 = vpack.c.bf16 %v6077_v45, %v6071_v49 }
 0x797   : > { %9551 = vmatprep.subr.bf16.mxu0 %v9550_v33  ;;  %v9586_v33 = vpack.c.bf16 %v6090_v53, %v6084_v48 }
 0x79a   : > { %9553 = vmatpush1.bf16.msra.mxu0 %v9552_v61  ;;  %v9588_v61 = vpack.c.bf16 %v6089_v22, %v6083_v39  ;;  %v6161_v39 = vld [vmem:[#allocation13 + $0x1550] sm:$0xff] }
 0x79b   : > { %9555 = vmatprep.subr.bf16.mxu0 %v9554_v14  ;;  %v9590_v14 = vpack.c.bf16 %v6102_v17, %v6096_v31  ;;  %v6168_v31 = vld [vmem:[#allocation13 + $0x1588] sm:$0xff]  ;;  %v6174_v17 = vld [vmem:[#allocation13 + $0x15b8] sm:$0xff] }
 0x79e   : > { %9557 = vmatpush1.bf16.msra.mxu0 %v9556_v37  ;;  %v9594_v37 = vpack.c.bf16 %v6114_v62, %v6108_v25  ;;  %v6167_v25 = vld [vmem:[#allocation13 + $0x1580] sm:$0xff]  ;;  %v6173_v62 = vld [vmem:[#allocation13 + $0x15b0] sm:$0xff] }
 0x79f   : > { %9559 = vmatprep.subr.bf16.mxu0 %v9558_v7  ;;  %v6113_v7 = vld [vmem:[#allocation13 + $0x13d0] sm:$0xff] }
 0x7a2   : > { %9561 = vmatpush1.bf16.msra.mxu0 %v9560_v28  ;;  %v9598_v28 = vpack.c.bf16 %v6126_v27, %v6120_v4  ;;  %v6179_v4 = vld [vmem:[#allocation13 + $0x15e0] sm:$0xff]  ;;  %v6185_v27 = vld [vmem:[#allocation13 + $0x1610] sm:$0xff] }
 0x7a3   : > { %9563 = vmatprep.subr.bf16.mxu0 %v9562_v21  ;;  %v6119_v21 = vld [vmem:[#allocation13 + $0x1400] sm:$0xff] }
 0x7a4   : > { %v9600_v35 = vpack.c.bf16 %v6125_v13, %v6119_v21  ;;  %v9620_v21 = vpack.c.bf16 %v6185_v27, %v6179_v4 }
 0x7a6   : > { %9565 = vmatpush1.bf16.msra.mxu0 %v9564_v5  ;;  %v6138_v5 = vld [vmem:[#allocation13 + $0x1498] sm:$0xff] }
 0x7a7   : > { %9567 = vmatprep.subr.bf16.mxu0 %v9566_v40  ;;  %v6252_v40 = vrot.slane %v11780_v47, %v11978_v11  ;;  %v6144_v11 = vld [vmem:[#allocation13 + $0x14c8] sm:$0xff] }
 0x7a8   : > { %v9606_v3 = vpack.c.bf16 %v6150_v24, %v6144_v11  ;;  %v6228_v11 = vld [vmem:[#allocation13 + $0x1768] sm:$0xff]  ;;  %v6234_v24 = vld [vmem:[#allocation13 + $0x1798] sm:$0xff] }
 0x7aa   : > { %9569 = vmatpush1.bf16.msra.mxu0 %v9568_v59  ;;  %v9602_v59 = vpack.c.bf16 %v6138_v5, %v6132_v58  ;;  %v6204_v58 = vld [vmem:[#allocation13 + $0x16a8] sm:$0xff]  ;;  %v6210_v5 = vld [vmem:[#allocation13 + $0x16d8] sm:$0xff] }
 0x7ab   : > { %9571 = vmatprep.subr.bf16.mxu0 %v9570_v16  ;;  %v6131_v16 = vld [vmem:[#allocation13 + $0x1460] sm:$0xff] }
 0x7ac   : > { %v9604_v34 = vpack.c.bf16 %v6137_v20, %v6131_v16 }
 0x7ae   : > { %9573 = vmatpush1.bf16.msra.mxu0 %v9572_v26 }
 0x7af   : > { %9575 = vmatprep.subr.bf16.mxu0 %v9574_v63 }
 0x7b2   : > { %9577 = vmatpush1.bf16.msra.mxu0 %v9576_v2 }
 0x7b3   : > { %9579 = vmatprep.subr.bf16.mxu0 %v9578_v42  ;;  %v6143_v42 = vld [vmem:[#allocation13 + $0x14c0] sm:$0xff] }
 0x7b4   : > { %v9608_v48 = vpack.c.bf16 %v6149_v9, %v6143_v42  ;;  %v6268_v9 = vrot.slane %v11780_v47, %v5249_v12 }
 0x7b5   : > { %7054 = vmatmul.mubr.f32.vlgmr.msra.gmra.mrb[54].mxu0 %v11761_v23  ;;  %v9592_v23 = vpack.c.bf16 %v6101_v19, %v6095_v8  ;;  %v9614_v19 = vpack.c.bf16 %v6174_v17, %v6168_v31 }
 0x7b6   : > { %9581 = vmatpush1.bf16.msra.mxu0 %v9580_v51  ;;  %7124 = vmatprep.mubr.f32.mxu0 %v11759_v15  ;;  %v6107_v15 = vld [vmem:[#allocation13 + $0x13a0] sm:$0xff]  ;;  %v6156_v51 = vld [vmem:[#allocation13 + $0x1528] sm:$0xff] }
 0x7b7   : > { %9583 = vmatprep.subr.bf16.mxu0 %v9582_v10  ;;  %v9596_v6 = vpack.c.bf16 %v6113_v7, %v6107_v15  ;;  %v6162_v10 = vld [vmem:[#allocation13 + $0x1558] sm:$0xff]  ;;  %v9616_v15 = vpack.c.bf16 %v6173_v62, %v6167_v25 }
 0x7ba   : > { %9585 = vmatpush1.bf16.msra.mxu0 %v9584_v36  ;;  %v9610_v36 = vpack.c.bf16 %v6162_v10, %v6156_v51 }
 0x7bb   : > { %9587 = vmatprep.subr.bf16.mxu0 %v9586_v33  ;;  %v6155_v33 = vld [vmem:[#allocation13 + $0x1520] sm:$0xff] }
 0x7be   : > { %9589 = vmatpush1.bf16.msra.mxu0 %v9588_v61 }
 0x7bf   : > { %9591 = vmatprep.subr.bf16.mxu0 %v9590_v14  ;;  %v9612_v14 = vpack.c.bf16 %v6161_v39, %v6155_v33 }
 0x7c2   : > { %9593 = vmatpush1.bf16.msra.mxu0 %v9592_v23  ;;  %v6180_v23 = vld [vmem:[#allocation13 + $0x15e8] sm:$0xff] }
 0x7c3   : > { %9595 = vmatprep.subr.bf16.mxu0 %v9594_v37  ;;  %v6186_v37 = vld [vmem:[#allocation13 + $0x1618] sm:$0xff] }
 0x7c4   : > { %v9618_v7 = vpack.c.bf16 %v6186_v37, %v6180_v23 }
 0x7c6   : > { %9597 = vmatpush1.bf16.msra.mxu0 %v9596_v6  ;;  %v6192_v6 = vld [vmem:[#allocation13 + $0x1648] sm:$0xff] }
 0x7c7   : > { %9599 = vmatprep.subr.bf16.mxu0 %v9598_v28  ;;  %v6198_v28 = vld [vmem:[#allocation13 + $0x1678] sm:$0xff] }
 0x7c8   : > { %v6558_v57 = vpop.f32.mrb[52].mxu0  ;;  %v9622_v13 = vpack.c.bf16 %v6198_v28, %v6192_v6 }
 0x7c9   : > { %v9686_v26 = vadd.f32 %v6558_v57, %v6252_v40  ;;  %v6842_v63 = vpop.f32.mrb[72].mxu1  ;;  %v6560_v0 = vpop.f32.mrb[53].mxu0  ;;  %v9624_v40 = vpack.c.bf16 %v6197_v43, %v6191_v55  ;;  %v6215_v57 = vld [vmem:[#allocation13 + $0x1700] sm:$0xff] }
 0x7ca   : > { %v9688_v41 = vadd.f32 %v6842_v63, %v6260_v60  ;;  %v9687_v44 = vadd.f32 %v6560_v0, %v6256_v50  ;;  %v6844_v46 = vpop.f32.mrb[73].mxu1  ;;  %9601 = vmatpush1.bf16.msra.mxu0 %v9600_v35  ;;  %v9626_v60 = vpack.c.bf16 %v6210_v5, %v6204_v58  ;;  %v6203_v50 = vld [vmem:[#allocation13 + $0x16a0] sm:$0xff]  ;;  %v6209_v35 = vld [vmem:[#allocation13 + $0x16d0] sm:$0xff]  ;;  %v9634_v63 = vpack.c.bf16 %v6234_v24, %v6228_v11 }
 0x7cb   : > { %v7131_v18 = vmax.f32 %v9686_v26, 0.0  ;;  %v9689_v2 = vadd.f32 %v6844_v46, %v6264_v32  ;;  %9603 = vmatprep.subr.bf16.mxu0 %v9602_v59  ;;  %v6216_v32 = vld [vmem:[#allocation13 + $0x1708] sm:$0xff]  ;;  %v6222_v59 = vld [vmem:[#allocation13 + $0x1738] sm:$0xff]  ;;  %v9628_v16 = vpack.c.bf16 %v6209_v35, %v6203_v50  ;;  %v9632_v26 = vpack.c.bf16 %v6221_v29, %v6215_v57  ;;  %v6227_v0 = vld [vmem:[#allocation13 + $0x1760] sm:$0xff] }
 0x7cc   : > { %v7133_v56 = vmax.f32 %v9688_v41, 0.0  ;;  %v7132_v1 = vmax.f32 %v9687_v44, 0.0  ;;  %v9630_v20 = vpack.c.bf16 %v6222_v59, %v6216_v32  ;;  %v6233_v41 = vld [vmem:[#allocation13 + $0x1790] sm:$0xff]  ;;  %v6240_v44 = vld [vmem:[#allocation13 + $0x17c8] sm:$0xff]  ;;  %v6246_v46 = vld [vmem:[#allocation13 + $0x17f8] sm:$0xff] }
 0x7cd   : > { %v7134_v49 = vmax.f32 %v9689_v2, 0.0  ;;  %v6239_v2 = vld [vmem:[#allocation13 + $0x17c0] sm:$0xff] }
 0x7ce   : > { %v7143_v45 = vcombine.low %v7131_v18, %v7132_v1  ;;  %9605 = vmatpush1.bf16.msra.mxu0 %v9604_v34  ;;  %v9636_v34 = vpack.c.bf16 %v6233_v41, %v6227_v0  ;;  %v9638_v18 = vpack.c.bf16 %v6246_v46, %v6240_v44 }
 0x7cf   : > { %v7144_v53 = vcombine.low %v7133_v56, %v7134_v49  ;;  %9607 = vmatprep.subr.bf16.mxu0 %v9606_v3  ;;  %v6245_v3 = vld [vmem:[#allocation13 + $0x17f0] sm:$0xff]  ;;  %v6272_v56 = vrot.slane %v11780_v47, %v5253_v38  ;;  %v12008_v38 = vlaneseq }
 0x7d0   : > { %v7152_v22 = vrot.slane %v7143_v45, %v11793_v30  ;;  %v9640_v42 = vpack.c.bf16 %v6245_v3, %v6239_v2 }
 0x7d1   : > { %v7159_v61 = vrot.slane %v7144_v53, %v11793_v30  ;;  %vm7186_vm9 = vcmp.lt.s32.totalorder %v12008_v38, 768 }
 0x7d2   : > { %9609 = vmatpush1.bf16.msra.mxu0 %v9608_v48 }
 0x7d3   : > { %v11797_v8 = vcombine.low %v7152_v22, %v7159_v61  ;;  %9611 = vmatprep.subr.bf16.mxu0 %v9610_v36 }
 0x7d5   : > { %v7174_v54 = vrot.slane %v11797_v8, %v11793_v30 }
 0x7d6   : > { %9613 = vmatpush1.bf16.msra.mxu0 %v9612_v14 }
 0x7d7   : > { %9615 = vmatprep.subr.bf16.mxu0 %v9614_v19 }
 0x7da   : > { %9617 = vmatpush1.bf16.msra.mxu0 %v9616_v15 }
 0x7db   : > { %9619 = vmatprep.subr.bf16.mxu0 %v9618_v7 }
 0x7de   : > { %9621 = vmatpush1.bf16.msra.mxu0 %v9620_v21 }
 0x7df   : > { %9623 = vmatprep.subr.bf16.mxu0 %v9622_v13 }
 0x7e2   : > { %9625 = vmatpush1.bf16.msra.mxu0 %v9624_v40 }
 0x7e3   : > { %9627 = vmatprep.subr.bf16.mxu0 %v9626_v60 }
 0x7e6   : > { %9629 = vmatpush1.bf16.msra.mxu0 %v9628_v16 }
 0x7e7   : > { %9631 = vmatprep.subr.bf16.mxu0 %v9630_v20 }
 0x7ea   : > { %9633 = vmatpush1.bf16.msra.mxu0 %v9632_v26 }
 0x7eb   : > { %9635 = vmatprep.subr.bf16.mxu0 %v9634_v63 }
 0x7ee   : > { %9637 = vmatpush1.bf16.msra.mxu0 %v9636_v34 }
 0x7ef   : > { %9639 = vmatprep.subr.bf16.mxu0 %v9638_v18 }
 0x7f2   : > { %9641 = vmatpush1.bf16.msra.mxu0 %v9640_v42 }
 0x7f5   : > { %7125 = vmatmul.mubr.f32.vlgmr.msra.gmra.mrb[54].mxu0 %v11769_v52 }
 0x8c8   : > { %v7126_v1 = vpop.f32.mrb[54].mxu0 }
 0x8c9   : > { %v9690_v51 = vadd.f32 %v7126_v1, %v6268_v9  ;;  %v7128_v10 = vpop.f32.mrb[55].mxu0 }
 0x8ca   : > { %v9691_v49 = vadd.f32 %v7128_v10, %v6272_v56 }
 0x8cb   : > { %v7135_v45 = vmax.f32 %v9690_v51, 0.0 }
 0x8cc   : > { %v7136_v48 = vmax.f32 %v9691_v49, 0.0 }
 0x8ce   : > { %v7145_v53 = vcombine.low %v7135_v45, %v7136_v48 }
 0x8d0   : > { %v7166_v52 = vrot.slane %v7145_v53, %v11793_v30 }
 0x8d2   : > { %v7181_v12 = vrot.slane %v7166_v52, %v11793_v30 }
 0x8d4   : > { %v7182_v47 = vcombine.low %v7174_v54, %v7181_v12 }
 0x8d6   : > { %7188 = vst.msk [vmem:[%s434_s14] sm:$0x3f] %vm7186_vm9, %v7182_v47 }
 0x8d7   : > { %10309 = shalt.err (!%p10306_p9)
}
 0x8d8   : > { %s10310_s21 = scalar_lea.hbm %s11816_s16, 96  ;;  %s10314_s2 = scalar_lea.hbm %s11867_s9, 192 }
 0x8d9   : > { %p10311_p12 = scmp.ne.s32.totalorder %s11816_s16, %s10310_s21  ;;  %p10315_p3 = scmp.lt.u32.totalorder %s11816_s16, %s11867_s9 }
 0x8da   : > { %p10316_p4 = scmp.lt.u32.totalorder %s10314_s2, %s10310_s21  ;;  %p10318_p8 = scmp.lt.u32.totalorder %s10310_s21, %s11816_s16 }
 0x8db   : > { %p10312_p10 = pnand %p10311_p12, %p12009_p11 }
 0x8dc   : > { %p10317_p7 = por %p10316_p4, %p10315_p3 }
 0x8dd   : > { %p10313_p2 = pneg %p10312_p10 }
 0x8de   : > { %p10319_p13 = por %p10318_p8, %p10317_p7 }
 0x8e0   : > { %p10320_p1 = pnand %p10319_p13, %p10313_p2 }
 0x8e2   : > { %10323 = shalt.err (!%p10320_p1)
}
 0x8e3   : > { %9972 = dma.vmem_to_hbm [thread:$0]  (%p12009_p11), %s11818_s25, 96, %s11816_s16, %s7190_s13  }
 0x8e4 PF: > { %p10019_p0 = scmp.ge.s32.totalorder %s10378_s12, 2  ;;  %s7216_s27 = sand.u32 1, %s10366_s30  }
 0x8e5   : > { %p12010_p6 = scmp.ne.s32.totalorder %s11907_s20, 0  ;;  %s7217_s29 = scalar_lea.sflag [#allocation4], %s7216_s27 }
 0x8e7   : > { %p10000_p5 = pnand %p10019_p0, %p12010_p6 }
 0x8e9   : > { %10361 = dma.done.wait (!%p10000_p5), %s7217_s29, 96  }
 0x8ea   : > { %10363 = vsyncadd (!%p10000_p5), %s7217_s29, 4294967200  ;;  %s12011_s12 = sld [smem:[#allocation24_spill]]  ;;  %s12012_s14 = sld [smem:[#allocation23_spill]] }
 0x8eb   : > { %s12013_s11 = sld [smem:[#allocation25_spill]]  ;;  %s12014_s30 = smov %s10370_s10 }
 0x8f0   : > { %p24_p9 = scmp.ge.s32.totalorder %s12011_s12, 4   ;;  %s12015_s10 = smov %s12012_s14 }
 0x8f2   :  { %26 = sbr.rel (!%p24_p9) target bundleno = 11 (0xb), region = 132 }
 0x8f9   :  { %7222 = vsyncpa [#allocation3], 1 }
 0x8fa   :  { %7224 = vsyncpa [#allocation3 + $0x1], 1 }
 0x8fb   :  { %7225 = vsyncpa [#allocation6], 1 }
 0x8fc   :  { %7226 = vsyncpa [#allocation9], 1 }
 0x8fd   :  { %7227 = vsyncpa [#allocation12], 1 }
 0x8fe   :  { %7228 = vsyncpa [#allocation15], 1 }
 0x8ff   :  { %7229 = vsyncpa [#allocation4], 1 }
 0x900   :  { %7231 = vsyncpa [#allocation4 + $0x1], 1 }

</bundles_post_ra>
